<compile_context>
chip_gen: v5e
topology: v5e:2x2
jax: 0.10.0
libtpu: 0.0.40
codegen_flags: <defaults>
</compile_context>

<pallas_src>
import functools
import math

import jax
import jax.numpy as jnp
from jax.experimental import pallas as pl
from jax.experimental.pallas import tpu as pltpu


# ---------------------------------------------------------------------------
# Fused decoder kernel
# ---------------------------------------------------------------------------
def _decoder_kernel(*refs, n_hidden, out_act):
    """Fused MLP decoder.

    refs = (z, w0, b0, ..., w_{n-1}, b_{n-1}, w_final_tile, b_final_tile, out_tile)

    The hidden layers are tiny, so they are recomputed for every output tile;
    each grid step is therefore fully independent (safe for megacore).
    """
    z_ref = refs[0]
    o_ref = refs[-1]

    h = z_ref[...].astype(jnp.float32)
    idx = 1
    for _ in range(n_hidden):
        w = refs[idx][...].astype(jnp.float32)
        b = refs[idx + 1][...].astype(jnp.float32)
        idx += 2
        h = jnp.dot(h, w, preferred_element_type=jnp.float32) + b
        h = jnp.maximum(h, 0.0)  # ReLU; Dropout is identity in eval mode

    # Final projection: bf16 weight tile straight into the MXU (no f32 upcast
    # of the big tile); cast the tiny activation instead, accumulate in f32.
    w_f = refs[idx][...]                             # bf16 (K, tn) tile
    b_f = refs[idx + 1][...].astype(jnp.float32)     # (1, tn) bias tile
    acc = jnp.dot(h.astype(jnp.bfloat16), w_f,
                  preferred_element_type=jnp.float32) + b_f
    if out_act == "tanh":
        acc = jnp.tanh(acc)
    elif out_act == "sigmoid":
        acc = jax.nn.sigmoid(acc)
    o_ref[...] = acc.astype(o_ref.dtype)


def _plan_final_tiles(n):
    """Pick (tile_n, padded_n) for the big output-feature axis.

    Aim for 2-4 grid steps of lane-dense (multiple-of-128) tiles: low per-step
    overhead, >= 2 tiles for v7x megacore, and double-buffered bf16 weight
    tiles well inside VMEM.  Irregular N is padded to a fixed tile width
    instead of falling back to a full-width (VMEM-hazard) block.
    """
    if n <= 4096:
        return n, n  # small enough: single full-width tile
    if n % 128 == 0:
        for steps in (2, 3, 4, 6, 8):
            if n % steps == 0:
                tn = n // steps
                if tn % 128 == 0 and tn <= 32768:
                    return tn, n
    tn = 8192
    return tn, ((n + tn - 1) // tn) * tn


def decoder_forward_pallas(z, hidden_ws, hidden_bs, w_final_pad, b_final_pad,
                           out_act, tn, n_pad, n_true):
    """out = act( relu(...relu(z @ W0 + b0)...) @ W_final + b_final ), fused.

    `w_final_pad` (bf16) and `b_final_pad` (f32, shape (1, n_pad)) are already
    padded to a multiple of the tile width at construction time.
    """
    M, latent = z.shape
    K = w_final_pad.shape[0]
    grid = (n_pad // tn,)

    in_specs = [pl.BlockSpec((M, latent), lambda j: (0, 0))]  # z: resident
    args = [z.astype(jnp.float32)]
    for w, b in zip(hidden_ws, hidden_bs):
        in_specs.append(pl.BlockSpec(w.shape, lambda j: (0, 0)))          # tiny, resident
        in_specs.append(pl.BlockSpec((1, b.shape[0]), lambda j: (0, 0)))  # tiny, resident
        args.append(w)
        args.append(b.reshape(1, -1))
    in_specs.append(pl.BlockSpec((K, tn), lambda j: (0, j)))   # bf16 weight column-tile
    in_specs.append(pl.BlockSpec((1, tn), lambda j: (0, j)))   # bias tile
    args.append(w_final_pad)
    args.append(b_final_pad)

    kernel = functools.partial(_decoder_kernel,
                               n_hidden=len(hidden_ws),
                               out_act=out_act)

    out = pl.pallas_call(
        kernel,
        out_shape=jax.ShapeDtypeStruct((M, n_pad), jnp.float32),
        grid_spec=pltpu.PrefetchScalarGridSpec(
            num_scalar_prefetch=0,
            grid=grid,
            in_specs=in_specs,
            out_specs=pl.BlockSpec((M, tn), lambda j: (0, j)),
        ),
        compiler_params=pltpu.CompilerParams(
            dimension_semantics=("parallel",),       # megacore split on v7x
            vmem_limit_bytes=32 * 1024 * 1024,       # ~8.5 MB/step footprint; leave headroom
        ),
    )(*args)

    if n_pad != n_true:
        out = out[:, :n_true]
    return out


# ---------------------------------------------------------------------------
# Decoder module (parameters + forward)
# ---------------------------------------------------------------------------
class Decoder:
    def __init__(self, input_dim, latent_dim, hidden_units, dropout_prob,
                 out_act="tanh", key=None):
        assert input_dim == 768, "x.view(-1, 77, 768) requires input_dim == 768"
        self.input_dim = input_dim
        self.latent_dim = latent_dim
        self.hidden_units = list(hidden_units)
        self.dropout_prob = dropout_prob  # TODO(synk): training-mode dropout not implemented (eval-mode identity only)
        self.out_act = out_act if out_act in ("tanh", "sigmoid") else None

        if key is None:
            key = jax.random.PRNGKey(0)

        out_dim = 77 * input_dim
        dims = [latent_dim] + self.hidden_units + [out_dim]
        self.hidden_ws = []
        self.hidden_bs = []
        for i in range(len(dims) - 1):
            fan_in, fan_out = dims[i], dims[i + 1]
            key, kw, kb = jax.random.split(key, 3)
            bound = 1.0 / math.sqrt(fan_in)
            # Matches torch.nn.Linear default init (uniform +/- 1/sqrt(fan_in)),
            # stored as (in, out) so the kernel computes x @ W.
            w = jax.random.uniform(kw, (fan_in, fan_out), jnp.float32,
                                   minval=-bound, maxval=bound)
            b = jax.random.uniform(kb, (fan_out,), jnp.float32,
                                   minval=-bound, maxval=bound)
            if i < len(dims) - 2:
                self.hidden_ws.append(w)
                self.hidden_bs.append(b)
            else:
                # Big final weight stored bf16 in HBM (bandwidth-bound layer);
                # fed directly to the MXU with f32 accumulation.
                # Padding (if N is irregular) is done ONCE here, not per forward.
                self.n_true = out_dim
                self.tn, self.n_pad = _plan_final_tiles(out_dim)
                bf = b.reshape(1, out_dim).astype(jnp.float32)
                if self.n_pad != out_dim:
                    w = jnp.pad(w, ((0, 0), (0, self.n_pad - out_dim)))
                    bf = jnp.pad(bf, ((0, 0), (0, self.n_pad - out_dim)))
                self.w_final = w.astype(jnp.bfloat16)
                self.b_final = bf

    def __call__(self, z):
        assert z.shape == (z.shape[0], self.latent_dim)
        x = decoder_forward_pallas(z, self.hidden_ws, self.hidden_bs,
                                   self.w_final, self.b_final, self.out_act,
                                   self.tn, self.n_pad, self.n_true)
        # glue reshape (plain JAX): (B, 77*768) -> (B, 77, 768)
        return x.reshape(-1, 77, 768)


# ---------------------------------------------------------------------------
# Pure-JAX reference for a sanity check
# ---------------------------------------------------------------------------
def reference_forward(dec, z):
    x = z.astype(jnp.float32)
    for w, b in zip(dec.hidden_ws, dec.hidden_bs):
        x = jnp.maximum(x @ w + b, 0.0)
    wf = dec.w_final[:, :dec.n_true].astype(jnp.float32)
    bf = dec.b_final[0, :dec.n_true]
    x = x @ wf + bf
    if dec.out_act == "tanh":
        x = jnp.tanh(x)
    elif dec.out_act == "sigmoid":
        x = jax.nn.sigmoid(x)
    return x.reshape(-1, 77, 768)


if __name__ == "__main__":
    key = jax.random.PRNGKey(0)
    k_param, k_z = jax.random.split(key)

    batch = 2
    latent_dim = 16
    hidden_units = [32, 64]
    input_dim = 768  # forced by x.view(-1, 77, 768)

    dec = Decoder(input_dim=input_dim, latent_dim=latent_dim,
                  hidden_units=hidden_units, dropout_prob=0.1,
                  out_act="tanh", key=k_param)

    z = jax.random.normal(k_z, (batch, latent_dim), jnp.float32)

    out = dec(z)
    out = jax.block_until_ready(out)
    assert out.shape == (batch, 77, 768), out.shape

    ref = jax.block_until_ready(reference_forward(dec, z))
    # Final weight is bf16 and the tiny activation h is cast to bf16 before the
    # MXU (f32 accumulation), so tolerate ~1e-2-level rounding vs the f32 ref.
    assert jnp.allclose(out, ref, atol=1e-2, rtol=1e-2), \
        float(jnp.max(jnp.abs(out - ref)))

    print("KERNEL_OK")
</pallas_src>

<mosaic_0001>
module attributes {stable_mosaic.version = 11 : i64} {
  func.func @_decoder_kernel(%arg0: i32, %arg1: memref<2x16xf32, #tpu.memory_space<vmem>>, %arg2: memref<16x32xf32, #tpu.memory_space<vmem>>, %arg3: memref<1x32xf32, #tpu.memory_space<vmem>>, %arg4: memref<32x64xf32, #tpu.memory_space<vmem>>, %arg5: memref<1x64xf32, #tpu.memory_space<vmem>>, %arg6: memref<64x29568xbf16, #tpu.memory_space<vmem>>, %arg7: memref<1x29568xf32, #tpu.memory_space<vmem>>, %arg8: memref<2x29568xf32, #tpu.memory_space<vmem>>) attributes {dimension_semantics = [#tpu.dimension_semantics<parallel>], iteration_bounds = array<i64: 2>, scalar_prefetch = 0 : i64, scratch_operands = 0 : i64, tpu.core_type = #tpu.core_type<tc>, window_params = [{pipeline_mode = #tpu.pipeline_mode<synchronous>, transform_indices = @transform_0, window_bounds = array<i64: 2, 16>}, {pipeline_mode = #tpu.pipeline_mode<synchronous>, transform_indices = @transform_1, window_bounds = array<i64: 16, 32>}, {pipeline_mode = #tpu.pipeline_mode<synchronous>, transform_indices = @transform_2, window_bounds = array<i64: 1, 32>}, {pipeline_mode = #tpu.pipeline_mode<synchronous>, transform_indices = @transform_3, window_bounds = array<i64: 32, 64>}, {pipeline_mode = #tpu.pipeline_mode<synchronous>, transform_indices = @transform_4, window_bounds = array<i64: 1, 64>}, {transform_indices = @transform_5, window_bounds = array<i64: 64, 29568>}, {transform_indices = @transform_6, window_bounds = array<i64: 1, 29568>}, {transform_indices = @transform_7, window_bounds = array<i64: 2, 29568>}]} {
    %c0 = arith.constant 0 : index
    %c0_0 = arith.constant 0 : index
    %0 = vector.load %arg1[%c0, %c0_0] : memref<2x16xf32, #tpu.memory_space<vmem>>, vector<2x16xf32>
    %c0_1 = arith.constant 0 : index
    %c0_2 = arith.constant 0 : index
    %1 = vector.load %arg2[%c0_1, %c0_2] : memref<16x32xf32, #tpu.memory_space<vmem>>, vector<16x32xf32>
    %c0_3 = arith.constant 0 : index
    %c0_4 = arith.constant 0 : index
    %2 = vector.load %arg3[%c0_3, %c0_4] : memref<1x32xf32, #tpu.memory_space<vmem>>, vector<1x32xf32>
    %cst = arith.constant dense<0.000000e+00> : vector<2x32xf32>
    %3 = tpu.matmul %0, %1, %cst {dimension_numbers = #tpu.dot_dimension_numbers<[1], [0], [0], [1], [0, 0, 1, 1], [], []>} : vector<2x16xf32>, vector<16x32xf32>, vector<2x32xf32> -> vector<2x32xf32>
    %4 = vector.broadcast %2 : vector<1x32xf32> to vector<2x32xf32>
    %5 = arith.addf %3, %4 : vector<2x32xf32>
    %cst_5 = arith.constant 0.000000e+00 : f32
    %6 = vector.broadcast %cst_5 : f32 to vector<2x32xf32>
    %7 = arith.maximumf %5, %6 : vector<2x32xf32>
    %c0_6 = arith.constant 0 : index
    %c0_7 = arith.constant 0 : index
    %8 = vector.load %arg4[%c0_6, %c0_7] : memref<32x64xf32, #tpu.memory_space<vmem>>, vector<32x64xf32>
    %c0_8 = arith.constant 0 : index
    %c0_9 = arith.constant 0 : index
    %9 = vector.load %arg5[%c0_8, %c0_9] : memref<1x64xf32, #tpu.memory_space<vmem>>, vector<1x64xf32>
    %cst_10 = arith.constant dense<0.000000e+00> : vector<2x64xf32>
    %10 = tpu.matmul %7, %8, %cst_10 {dimension_numbers = #tpu.dot_dimension_numbers<[1], [0], [0], [1], [0, 0, 1, 1], [], []>} : vector<2x32xf32>, vector<32x64xf32>, vector<2x64xf32> -> vector<2x64xf32>
    %11 = vector.broadcast %9 : vector<1x64xf32> to vector<2x64xf32>
    %12 = arith.addf %10, %11 : vector<2x64xf32>
    %cst_11 = arith.constant 0.000000e+00 : f32
    %13 = vector.broadcast %cst_11 : f32 to vector<2x64xf32>
    %14 = arith.maximumf %12, %13 : vector<2x64xf32>
    %c0_12 = arith.constant 0 : index
    %c0_13 = arith.constant 0 : index
    %15 = vector.load %arg6[%c0_12, %c0_13] : memref<64x29568xbf16, #tpu.memory_space<vmem>>, vector<64x29568xbf16>
    %c0_14 = arith.constant 0 : index
    %c0_15 = arith.constant 0 : index
    %16 = vector.load %arg7[%c0_14, %c0_15] : memref<1x29568xf32, #tpu.memory_space<vmem>>, vector<1x29568xf32>
    %17 = arith.truncf %14 : vector<2x64xf32> to vector<2x64xbf16>
    %cst_16 = arith.constant dense<0.000000e+00> : vector<2x29568xf32>
    %18 = tpu.matmul %17, %15, %cst_16 {dimension_numbers = #tpu.dot_dimension_numbers<[1], [0], [0], [1], [0, 0, 1, 1], [], []>} : vector<2x64xbf16>, vector<64x29568xbf16>, vector<2x29568xf32> -> vector<2x29568xf32>
    %19 = vector.broadcast %16 : vector<1x29568xf32> to vector<2x29568xf32>
    %20 = arith.addf %18, %19 : vector<2x29568xf32>
    %21 = math.tanh %20 : vector<2x29568xf32>
    %c0_17 = arith.constant 0 : index
    %c0_18 = arith.constant 0 : index
    %22 = vector.load %arg8[%c0_17, %c0_18] : memref<2x29568xf32, #tpu.memory_space<vmem>>, vector<2x29568xf32>
    tpu.vector_store %arg8[%c0_17, %c0_18], %21 {strides = array<i32>} : memref<2x29568xf32, #tpu.memory_space<vmem>>, vector<2x29568xf32>,
    return
  }
  func.func @transform_0(%arg0: i32) -> (i32, i32) {
    %c0_i32 = arith.constant 0 : i32
    %c0_i32_0 = arith.constant 0 : i32
    %c0_i32_1 = arith.constant 0 : i32
    return %c0_i32, %c0_i32_0 : i32, i32
  }
  func.func @transform_1(%arg0: i32) -> (i32, i32) {
    %c0_i32 = arith.constant 0 : i32
    %c0_i32_0 = arith.constant 0 : i32
    %c0_i32_1 = arith.constant 0 : i32
    return %c0_i32, %c0_i32_0 : i32, i32
  }
  func.func @transform_2(%arg0: i32) -> (i32, i32) {
    %c0_i32 = arith.constant 0 : i32
    %c0_i32_0 = arith.constant 0 : i32
    %c0_i32_1 = arith.constant 0 : i32
    return %c0_i32, %c0_i32_0 : i32, i32
  }
  func.func @transform_3(%arg0: i32) -> (i32, i32) {
    %c0_i32 = arith.constant 0 : i32
    %c0_i32_0 = arith.constant 0 : i32
    %c0_i32_1 = arith.constant 0 : i32
    return %c0_i32, %c0_i32_0 : i32, i32
  }
  func.func @transform_4(%arg0: i32) -> (i32, i32) {
    %c0_i32 = arith.constant 0 : i32
    %c0_i32_0 = arith.constant 0 : i32
    %c0_i32_1 = arith.constant 0 : i32
    return %c0_i32, %c0_i32_0 : i32, i32
  }
  func.func @transform_5(%arg0: i32) -> (i32, i32) {
    %c0_i32 = arith.constant 0 : i32
    %c0_i32_0 = arith.constant 0 : i32
    return %c0_i32, %arg0 : i32, i32
  }
  func.func @transform_6(%arg0: i32) -> (i32, i32) {
    %c0_i32 = arith.constant 0 : i32
    %c0_i32_0 = arith.constant 0 : i32
    return %c0_i32, %arg0 : i32, i32
  }
  func.func @transform_7(%arg0: i32) -> (i32, i32) {
    %c0_i32 = arith.constant 0 : i32
    %c0_i32_0 = arith.constant 0 : i32
    return %c0_i32, %arg0 : i32, i32
  }
}

</mosaic_0001>

<bundles_post_ra>
// kernel: tpu_custom_call.1
= control target key start
LH: loop header
LB: loop body
LE: loop exit
PB: predicated region body
PF: predicated region fallthrough
CT: control target
= control target key end

     0   :  { %s19468_s0 = inlined_call_operand.hbm [shape: f32[2,16], index: 0, kind: input, shape index: {}]   ;;  %s19469_s1 = inlined_call_operand.hbm [shape: f32[16,32], index: 1, kind: input, shape index: {}]   ;;  %s19470_s2 = inlined_call_operand.hbm [shape: f32[1,32], index: 2, kind: input, shape index: {}]   ;;  %s19471_s3 = inlined_call_operand.hbm [shape: f32[32,64], index: 3, kind: input, shape index: {}]   ;;  %s19472_s4 = inlined_call_operand.hbm [shape: f32[1,64], index: 4, kind: input, shape index: {}]   ;;  %s19473_s5 = inlined_call_operand.hbm [shape: bf16[64,59136], index: 5, kind: input, shape index: {}]   ;;  %s19474_s6 = inlined_call_operand.hbm [shape: f32[1,59136], index: 6, kind: input, shape index: {}]   ;;  %s19475_s7 = inlined_call_operand.hbm [shape: f32[2,59136], index: 7, kind: output, shape index: {}]  }
   0x1   :  { %19481 = sst [smem:[#allocation23_spill]] %s19468_s0 }
   0x2   :  { %19482 = sst [smem:[#allocation24_spill]] %s19469_s1 }
   0x3   :  { %19483 = sst [smem:[#allocation25_spill]] %s19471_s3 }
   0x4   :  { %12 = vsyncpa [#allocation3], 0 }
   0x5   :  { %13 = vsyncpa [#allocation6], 0 }
   0x6   :  { %14 = vsyncpa [#allocation9], 0 }
   0x7   :  { %15 = vsyncpa [#allocation12], 0 }
   0x8   :  { %17 = vsyncpa [#allocation12 + $0x1], 0 }
   0x9   :  { %18 = vsyncpa [#allocation4], 0 }
   0xa   :  { %20 = vsyncpa [#allocation4 + $0x1], 0  ;;  %s16434_s24 = smov 0   ;;  %s16436_s25 = smov 0  }
   0xb   :  { %s16438_s26 = smov 0   ;;  %s16440_s27 = smov 0  }
   0xc LB: > { %s16455_s28 = sadd.s32 4294967295, %s16382_s27   ;;  %s10645_s29 = sadd.s32 4294967294, %s16382_s27   ;;  %s16382_s27 = sphi %s16440_s27, %s19505_s27   ;;  %s16378_s26 = sphi %s16438_s26, %s19509_s26   ;;  %s16374_s25 = sphi %s16436_s25, %s19508_s25   ;;  %s16370_s24 = sphi %s16434_s24, %s19507_s24  }
   0xd   : > { %p151_p0 = scmp.ne.s32.totalorder %s16374_s25, %s16370_s24  ;;  %p19480_p1 = scmp.eq.s32.totalorder %s16455_s28, 0 }
   0xe   : > { %p201_p2 = scmp.eq.s32.totalorder %s16455_s28, 1  ;;  %p207_p3 = scmp.eq.s32.totalorder %s10645_s29, 1 }
   0xf   : > { %p16464_p4 = por %p19480_p1, %p151_p0  ;;  %p10646_p5 = scmp.ge.s32.totalorder %s16382_s27, 1 }
  0x10   : > { %p16469_p6 = por %p207_p3, %p151_p0  ;;  %p214_p7 = scmp.lt.s32.totalorder %s16382_s27, 3 }
  0x11   : > { %s19487_s1 = sld [smem:[#allocation24_spill]]  ;;  %s16384_s13 = smov [#allocation5]  }
  0x12   : > { %s19485_s8 = scalar_select %p16469_p6, 1, 0 }
  0x13   : > { %p16477_p8 = pnand %p10646_p5, %p214_p7  ;;  %s239_s14 = sshll.u32 %s16384_s13, 4  ;;  %s240_s14 = int_to_ptr.vmem [resolvable:$true] %s239_s14 }
  0x14   : > { %19486 = sst [smem:[#allocation20_spill]] %s19485_s8  ;;  %s16385_s19 = smov 128  }
  0x15   : > { %p15549_p9 = pneg %p16477_p8  ;;  %s19490_s3 = sld [smem:[#allocation25_spill]] }
  0x16   : > { %s16386_s20 = smov 8   ;;  %s16387_s21 = smov [#allocation8]  }
  0x17   : > { %s237_s11 = sshll.u32 %s19487_s1, 4  ;;  %p16485_p10 = pnand %p15549_p9, %p19480_p1  ;;  %s238_s11 = int_to_ptr.hbm [resolvable:$true] %s237_s11 }
  0x18   : > { %s265_s22 = sshll.u32 %s16387_s21, 4  ;;  %s16498_s23 = sadd.s32 1, %s16382_s27   ;;  %s266_s22 = int_to_ptr.vmem [resolvable:$true] %s265_s22 }
  0x19   : > { %15555 = dma.hbm_to_vmem [thread:$0]  (!%p16485_p10), %s238_s11, 256, %s240_s14, [#allocation6], %s16385_s19, %s16385_s19, %s16386_s20  }
  0x1a   : > { %19491 = sst [smem:[#allocation21_spill]] %s16498_s23  ;;  %s138_s29 = sadd.s32 1, %s16378_s26 }
  0x1b   : > { %s263_s18 = sshll.u32 %s19490_s3, 4  ;;  %s135_s9 = ssub.s32 %s16382_s27, %s16498_s23  ;;  %s264_s18 = int_to_ptr.hbm [resolvable:$true] %s263_s18 }
  0x1c   : > { %15561 = dma.hbm_to_vmem [thread:$0]  (!%p16485_p10), %s264_s18, 512, %s266_s22, [#allocation9], %s16385_s19, %s16385_s19, %s16386_s20  }
  0x1d   : > { %p145_p12 = scmp.ne.s32.totalorder %s16378_s26, %s16374_s25  ;;  %p136_p13 = scmp.eq.s32.totalorder %s135_s9, 0 }
  0x1e   : > { %p146_p0 = scmp.eq.s32.totalorder %s16382_s27, 0  ;;  %p15581_p5 = scmp.lt.s32.totalorder %s16382_s27, 2 }
  0x1f   : > { %p16508_p3 = por %p201_p2, %p145_p12  ;;  %s291_s13 = sand.u32 1, %s16382_s27  }
  0x20   : > { %s16514_s11 = scalar_select %p136_p13, %s16378_s26, %s138_s29  }
  0x21   : > { %p147_p7 = por %p146_p0, %p145_p12  ;;  %s19476_s14 = sand.u32 1, %s16378_s26  }
  0x22   : > { %19493 = sst [smem:[#allocation22_spill]] %s16514_s11  ;;  %s15518_s16 = smul.u32 7392, %s19476_s14 }
  0x23   : > { %p16520_p9 = pnand %p15581_p5, %p147_p7  ;;  %s14592_s18 = smul.u32 924, %s16382_s27 }
  0x24   : > { %s295_s22 = scalar_lea.vmem [#allocation11], %s15518_s16  ;;  %s19495_s0 = sld [smem:[#allocation23_spill]] }
  0x25   : > { %s300_s21 = scalar_lea.hbm %s19473_s5, %s14592_s18  ;;  %s303_s9 = sshll.u32 %s295_s22, 4  ;;  %s304_s9 = int_to_ptr.vmem [resolvable:$true] %s303_s9 }
  0x26   : > { %s301_s29 = sshll.u32 %s300_s21, 4  ;;  %s16531_s11 = scalar_lea.sflag [#allocation12], %s291_s13  ;;  %s302_s29 = int_to_ptr.hbm [resolvable:$true] %s301_s29 }
  0x27   : > { %s16154_s23 = sshra.s32 %s302_s29, 4  ;;  %p16158_p12 = pneg %p16520_p9  ;;  %s16155_s23 = int_to_ptr.hbm [resolvable:$true] %s16154_s23 }
  0x28   : > { %s16156_s8 = scalar_lea.hbm %s16155_s23, 7392  ;;  %s16161_s19 = scalar_lea.hbm %s19473_s5, 14784 }
  0x29   : > { %p16157_p2 = scmp.ne.s32.totalorder %s16155_s23, %s16156_s8  ;;  %p16162_p5 = scmp.lt.s32.totalorder %s16155_s23, %s19473_s5 }
  0x2a   : > { %s226_s14 = sshll.u32 %s19495_s0, 4  ;;  %p16163_p7 = scmp.lt.s32.totalorder %s16161_s19, %s16156_s8  ;;  %s227_s14 = int_to_ptr.hbm [resolvable:$true] %s226_s14 }
  0x2b   : > { %p16159_p13 = pnand %p16158_p12, %p16157_p2 }
  0x2c   : > { %p16164_p11 = por %p16163_p7, %p16162_p5 }
  0x2d   : > { %p16160_p0 = pneg %p16159_p13 }
  0x2f   : > { %p16165_p1 = pnand %p16164_p11, %p16160_p0 }
  0x31   : > { %16168 = shalt.err (!%p16165_p1)
}
  0x32   : > { %s16388_s1 = smov 29568   ;;  %s16389_s3 = smov 14784  }
  0x33   : > { %s16390_s13 = smov 924   ;;  %s16391_s22 = smov [#allocation2]  }
  0x34   : > { %15568 = dma.hbm_to_vmem [thread:$0]  (!%p16520_p9), %s302_s29, 118272, %s304_s9, %s16531_s11, %s16388_s1, %s16389_s3, %s16390_s13  }
  0x35   : > { %s228_s16 = sshll.u32 %s16391_s22, 4  ;;  %s252_s8 = sshll.u32 %s19470_s2, 4  ;;  %s229_s16 = int_to_ptr.vmem [resolvable:$true] %s228_s16  ;;  %s253_s8 = int_to_ptr.hbm [resolvable:$true] %s252_s8 }
  0x36   : > { %15552 = dma.hbm_to_vmem [thread:$0]  (!%p16485_p10), %s227_s14, 32, %s229_s16, [#allocation3]  }
  0x37   : > { %s278_s21 = sshll.u32 %s19472_s4, 4  ;;  %s16392_s0 = smov [#allocation7]   ;;  %s279_s21 = int_to_ptr.hbm [resolvable:$true] %s278_s21 }
  0x38   : > { %s254_s9 = sshll.u32 %s16392_s0, 4  ;;  %s16393_s29 = smov [#allocation10]   ;;  %s255_s9 = int_to_ptr.vmem [resolvable:$true] %s254_s9 }
  0x39   : > { %15558 = dma.hbm_to_vmem [thread:$0]  (!%p16485_p10), %s253_s8, 16, %s255_s9, [#allocation6]  }
  0x3a   : > { %s280_s1 = sshll.u32 %s16393_s29, 4  ;;  %s19496_s3 = sand.u32 1, %s16378_s26   ;;  %s281_s1 = int_to_ptr.vmem [resolvable:$true] %s280_s1 }
  0x3b   : > { %s15519_s13 = smul.u32 231, %s19496_s3 }
  0x3c   : > { %s318_s22 = smul.u32 231, %s16382_s27 }
  0x3d   : > { %15564 = dma.hbm_to_vmem [thread:$0]  (!%p16485_p10), %s279_s21, 16, %s281_s1, [#allocation9]  }
  0x3e   : > { %s321_s18 = scalar_lea.hbm %s19474_s6, %s318_s22  ;;  %s317_s19 = scalar_lea.vmem [#allocation13], %s15519_s13 }
  0x3f   : > { %s323_s23 = sshll.u32 %s321_s18, 4  ;;  %s325_s0 = sshll.u32 %s317_s19, 4  ;;  %s324_s23 = int_to_ptr.hbm [resolvable:$true] %s323_s23  ;;  %s326_s0 = int_to_ptr.vmem [resolvable:$true] %s325_s0 }
  0x40   : > { %s16274_s20 = sshra.s32 %s324_s23, 4  ;;  %s16281_s21 = scalar_lea.hbm %s19474_s6, 462  ;;  %s16275_s20 = int_to_ptr.hbm [resolvable:$true] %s16274_s20 }
  0x41   : > { %s16276_s8 = scalar_lea.hbm %s16275_s20, 231  ;;  %p16282_p10 = scmp.lt.s32.totalorder %s16275_s20, %s19474_s6 }
  0x42   : > { %p16277_p1 = scmp.ne.s32.totalorder %s16275_s20, %s16276_s8  ;;  %p16283_p13 = scmp.lt.s32.totalorder %s16281_s21, %s16276_s8 }
  0x44   : > { %p16279_p11 = pnand %p16277_p1, %p16158_p12  ;;  %p16284_p0 = por %p16283_p13, %p16282_p10 }
  0x46   : > { %p16280_p2 = pneg %p16279_p11 }
  0x48   : > { %p16285_p5 = pnand %p16284_p0, %p16280_p2 }
  0x4a   : > { %16288 = shalt.err (!%p16285_p5)
}
  0x4b   : > { %15571 = dma.hbm_to_vmem [thread:$0]  (!%p16520_p9), %s324_s23, 3696, %s326_s0, %s16531_s11  }
  0x4c   : > { %334 = sbr.rel (%p16477_p8) target bundleno = 1420 (0x58c), region = 48  ;;  %p19497_p12 = scmp.eq.s32.totalorder (!%p16477_p8), %s16455_s28, 0 }
  0x51   : > { %16349 = dma.done.wait (%p19497_p12), [#allocation3], 32   ;;  %p19498_p7 = pmov %p19497_p12 }
  0x53   : > { %16351 = vsyncadd (%p19498_p7), [#allocation3], 4294967264  ;;  %p19499_p1 = pmov %p19498_p7 }
  0x55   : > { %16353 = dma.done.wait (%p19499_p1), [#allocation6], 272   ;;  %p19500_p11 = pmov %p19499_p1 }
  0x56   : > { %p19501_p2 = pmov %p19499_p1 }
  0x57   : > { %16355 = vsyncadd (%p19500_p11), [#allocation6], 4294967024 }
  0x58   : > { %16357 = dma.done.wait (%p19501_p2), [#allocation9], 528   ;;  %p19502_p9 = pmov %p19499_p1 }
  0x59   : > { %s361_s12 = sand.u32 1, %s16455_s28   ;;  %s16593_s11 = sand.u32 1, %s16374_s25  }
  0x5a   : > { %16359 = vsyncadd (%p19502_p9), [#allocation9], 4294966768  ;;  %s15520_s17 = smul.u32 7392, %s16593_s11  ;;  %s362_s3 = scalar_lea.sflag [#allocation12], %s361_s12 }
  0x5c   : > { %s16596_s13 = scalar_lea.vmem [#allocation11], %s15520_s17 }
  0x5d   : > { %16361 = dma.done.wait (%p16464_p4), %s362_s3, 121968  }
  0x5e   : > { %16363 = vsyncadd (%p16464_p4), %s362_s3, 4294845328  ;;  %v418_v0 = vld [vmem:[#allocation5 + $0x8] sm:$0xff]  ;;  %v417_v1 = vld [vmem:[#allocation5] sm:$0xff]  ;;  %vm423_vm0 = vcmask 130048   ;;  %vm456_vm1 = vcmask 261120   ;;  %vm6554_vm2 = vcmask 523264  }
  0x5f   : > { %441 = vmatpush.msra.mxu1 %v418_v0  ;;  %v416_v2 = vld [vmem:[#allocation2] sm:$0x3]  ;;  %v451_v3 = vld [vmem:[#allocation8 + $0x18] sm:$0xff]  ;;  %v450_v4 = vld [vmem:[#allocation8 + $0x10] sm:$0xff]  ;;  %s15521_s30 = smul.u32 231, %s16593_s11  ;;  %vm10198_vm3 = vcmask 1045508  }
  0x60   : > { %v449_v5 = vld [vmem:[#allocation8 + $0x8] sm:$0xff]  ;;  %v448_v6 = vld [vmem:[#allocation8] sm:$0xff]  ;;  %v13444_v12 = vld [vmem:[%s16596_s13 + $0x15b0] sm:$0xf]  ;;  %s15522_s14 = smul.u32 462, %s16593_s11  ;;  %vm10196_vm4 = vcmask 1041408  }
  0x61   : > { %442 = vmatpush.msra.mxu1 %v417_v1  ;;  %v13436_v7 = vld [vmem:[%s16596_s13 + $0x15a8] sm:$0xf]  ;;  %v15401_v8 = vld [vmem:[%s16596_s13 + $0x1940] sm:$0xf0]  ;;  %v15286_v9 = vld [vmem:[%s16596_s13 + $0x15ac] sm:$0xf] }
  0x62   : > { %10660 = vmatmul.msk.f32.vlgmr.msra.gmra.mxu1 %vm423_vm0, %v416_v2  ;;  %v13437_v10 = vor.u32 %v15401_v8, %v13436_v7  ;;  %v13438_v11 = vld [vmem:[%s16596_s13 + $0x1944] sm:$0xf0]  ;;  %v15402_v13 = vld [vmem:[%s16596_s13 + $0x1948] sm:$0xf0]  ;;  %v15287_v16 = vld [vmem:[%s16596_s13 + $0x15b4] sm:$0xf] }
  0x63   : > { %472 = vmatpush.msrb.mxu1 %v451_v3  ;;  %v13441_v14 = vor.u32 %v15286_v9, %v13438_v11  ;;  %v13445_v15 = vor.u32 %v15402_v13, %v13444_v12  ;;  %v13446_v17 = vld [vmem:[%s16596_s13 + $0x194c] sm:$0xf0]  ;;  %v15170_v20 = vld [vmem:[%s16596_s13 + $0x1208] sm:$0xf0]  ;;  %v15055_v21 = vld [vmem:[%s16596_s13 + $0xe74] sm:$0xf] }
  0x64   : > { %v12512_v18 = vld [vmem:[%s16596_s13 + $0xe70] sm:$0xf]  ;;  %6562 = vmatpush.bf16.msra.mxu2 %v13437_v10  ;;  %v13449_v19 = vor.u32 %v15287_v16, %v13446_v17  ;;  %v12520_v25 = vld [vmem:[%s16596_s13 + $0xe78] sm:$0xf]  ;;  %v15171_v26 = vld [vmem:[%s16596_s13 + $0x1210] sm:$0xf0] }
  0x65   : > { %473 = vmatpush.msrb.mxu1 %v450_v4  ;;  %v12514_v22 = vld [vmem:[%s16596_s13 + $0x120c] sm:$0xf0]  ;;  %6575 = vmatpush.bf16.msra.mxu3 %v13441_v14  ;;  %v12513_v23 = vor.u32 %v15170_v20, %v12512_v18  ;;  %v15056_v27 = vld [vmem:[%s16596_s13 + $0xe7c] sm:$0xf]  ;;  %v12521_v28 = vor.u32 %v15171_v26, %v12520_v25  ;;  %v12522_v29 = vld [vmem:[%s16596_s13 + $0x1214] sm:$0xf0] }
  0x66   : > { %6588 = vmatpush.bf16.msra.mxu0 %v13445_v15  ;;  %v12517_v24 = vor.u32 %v15055_v21, %v12514_v22  ;;  %v12525_v30 = vor.u32 %v15056_v27, %v12522_v29  ;;  %v15630_v31 = vld [vmem:[#allocation7] ss:$0 sm:$0xff]  ;;  %v11588_v35 = vld [vmem:[%s16596_s13 + $0x738] sm:$0xf]  ;;  %v14939_v36 = vld [vmem:[%s16596_s13 + $0xad0] sm:$0xf0] }
  0x67   : > { %474 = vmatpush.msrb.mxu1 %v449_v5  ;;  %v14824_v37 = vld [vmem:[%s16596_s13 + $0x73c] sm:$0xf]  ;;  %v11589_v38 = vor.u32 %v14939_v36, %v11588_v35  ;;  %v11590_v39 = vld [vmem:[%s16596_s13 + $0xad4] sm:$0xf0]  ;;  %v11596_v40 = vld [vmem:[%s16596_s13 + $0x740] sm:$0xf] }
  0x68   : > { %6563 = vmatpush.bf16.msra.mxu2 %v12513_v23  ;;  %v14940_v41 = vld [vmem:[%s16596_s13 + $0xad8] sm:$0xf0]  ;;  %v11593_v42 = vor.u32 %v14824_v37, %v11590_v39  ;;  %v14825_v44 = vld [vmem:[%s16596_s13 + $0x744] sm:$0xf]  ;;  %v11598_v45 = vld [vmem:[%s16596_s13 + $0xadc] sm:$0xf0] }
  0x69   : > { %475 = vmatpush.msrb.mxu1 %v448_v6  ;;  %6576 = vmatpush.bf16.msra.mxu3 %v12517_v24  ;;  %v11597_v43 = vor.u32 %v14940_v41, %v11596_v40  ;;  %v11601_v46 = vor.u32 %v14825_v44, %v11598_v45  ;;  %v10664_v47 = vld [vmem:[%s16596_s13] sm:$0xf]  ;;  %v14708_v48 = vld [vmem:[%s16596_s13 + $0x398] sm:$0xf0]  ;;  %v14593_v49 = vld [vmem:[%s16596_s13 + $0x4] sm:$0xf] }
  0x6a   : > { %6589 = vmatpush.bf16.msra.mxu0 %v12521_v28  ;;  %v10665_v50 = vor.u32 %v14708_v48, %v10664_v47  ;;  %v10666_v51 = vld [vmem:[%s16596_s13 + $0x39c] sm:$0xf0]  ;;  %v10672_v52 = vld [vmem:[%s16596_s13 + $0x8] sm:$0xf]  ;;  %v14709_v53 = vld [vmem:[%s16596_s13 + $0x3a0] sm:$0xf0] }
  0x6b   : > { %6601 = vmatpush.bf16.msra.mxu1 %v13449_v19  ;;  %v10669_v54 = vor.u32 %v14593_v49, %v10666_v51  ;;  %v10673_v55 = vor.u32 %v14709_v53, %v10672_v52  ;;  %v14594_v56 = vld [vmem:[%s16596_s13 + $0xc] sm:$0xf]  ;;  %v10674_v57 = vld [vmem:[%s16596_s13 + $0x3a4] sm:$0xf0]  ;;  %v15288_v59 = vld [vmem:[%s16596_s13 + $0x15bc] sm:$0xf] }
  0x6c   : > { %6564 = vmatpush.bf16.msra.mxu2 %v11589_v38  ;;  %v10677_v58 = vor.u32 %v14594_v56, %v10674_v57  ;;  %v13454_v60 = vld [vmem:[%s16596_s13 + $0x1954] sm:$0xf0]  ;;  %v15403_v63 = vld [vmem:[%s16596_s13 + $0x1950] sm:$0xf0]  ;;  %v13460_v0 = vld [vmem:[%s16596_s13 + $0x15c0] sm:$0xf] }
  0x6d   : > { %6577 = vmatpush.bf16.msra.mxu3 %v11593_v42  ;;  %v13452_v61 = vld [vmem:[%s16596_s13 + $0x15b8] sm:$0xf]  ;;  %v13457_v62 = vor.u32 %v15288_v59, %v13454_v60  ;;  %v15404_v1 = vld [vmem:[%s16596_s13 + $0x1958] sm:$0xf0]  ;;  %v15289_v4 = vld [vmem:[%s16596_s13 + $0x15c4] sm:$0xf] }
  0x6e   : > { %6590 = vmatpush.bf16.msra.mxu0 %v11597_v43  ;;  %v13453_v2 = vor.u32 %v15403_v63, %v13452_v61  ;;  %v13461_v3 = vor.u32 %v15404_v1, %v13460_v0  ;;  %v13462_v5 = vld [vmem:[%s16596_s13 + $0x195c] sm:$0xf0]  ;;  %v15057_v6 = vld [vmem:[%s16596_s13 + $0xe84] sm:$0xf]  ;;  %v15172_v10 = vld [vmem:[%s16596_s13 + $0x1218] sm:$0xf0] }
  0x6f   : > { %6602 = vmatpush.bf16.msra.mxu1 %v12525_v30  ;;  %v13465_v7 = vor.u32 %v15289_v4, %v13462_v5  ;;  %v12530_v8 = vld [vmem:[%s16596_s13 + $0x121c] sm:$0xf0]  ;;  %v12536_v13 = vld [vmem:[%s16596_s13 + $0xe88] sm:$0xf]  ;;  %v15173_v14 = vld [vmem:[%s16596_s13 + $0x1220] sm:$0xf0] }
  0x70   : > { %6565 = vmatpush.bf16.msra.mxu2 %v10665_v50  ;;  %v12528_v9 = vld [vmem:[%s16596_s13 + $0xe80] sm:$0xf]  ;;  %v12533_v11 = vor.u32 %v15057_v6, %v12530_v8  ;;  %v15058_v15 = vld [vmem:[%s16596_s13 + $0xe8c] sm:$0xf]  ;;  %v12537_v16 = vor.u32 %v15173_v14, %v12536_v13  ;;  %v12538_v17 = vld [vmem:[%s16596_s13 + $0x1224] sm:$0xf0] }
  0x71   : > { %6578 = vmatpush.bf16.msra.mxu3 %v10669_v54  ;;  %v12529_v12 = vor.u32 %v15172_v10, %v12528_v9  ;;  %v14826_v18 = vld [vmem:[%s16596_s13 + $0x74c] sm:$0xf]  ;;  %v11606_v19 = vld [vmem:[%s16596_s13 + $0xae4] sm:$0xf0]  ;;  %v12541_v20 = vor.u32 %v15058_v15, %v12538_v17  ;;  %v14941_v22 = vld [vmem:[%s16596_s13 + $0xae0] sm:$0xf0] }
  0x72   : > { %6591 = vmatpush.bf16.msra.mxu0 %v10673_v55  ;;  %v11604_v21 = vld [vmem:[%s16596_s13 + $0x748] sm:$0xf]  ;;  %v11612_v23 = vld [vmem:[%s16596_s13 + $0x750] sm:$0xf]  ;;  %v11609_v24 = vor.u32 %v14826_v18, %v11606_v19  ;;  %v14942_v25 = vld [vmem:[%s16596_s13 + $0xae8] sm:$0xf0] }
  0x73   : > { %6603 = vmatpush.bf16.msra.mxu1 %v11601_v46  ;;  %v14827_v26 = vld [vmem:[%s16596_s13 + $0x754] sm:$0xf]  ;;  %v11614_v27 = vld [vmem:[%s16596_s13 + $0xaec] sm:$0xf0]  ;;  %v11605_v28 = vor.u32 %v14941_v22, %v11604_v21  ;;  %v11613_v29 = vor.u32 %v14942_v25, %v11612_v23  ;;  %v10688_v35 = vld [vmem:[%s16596_s13 + $0x18] sm:$0xf] }
  0x74   : > { %6614 = vmatpush.bf16.msrb.mxu2 %v13453_v2  ;;  %v14595_v30 = vld [vmem:[%s16596_s13 + $0x14] sm:$0xf]  ;;  %v14596_v37 = vld [vmem:[%s16596_s13 + $0x1c] sm:$0xf]  ;;  %v10690_v38 = vld [vmem:[%s16596_s13 + $0x3b4] sm:$0xf0] }
  0x75   : > { %6627 = vmatpush.bf16.msrb.mxu3 %v13457_v62  ;;  %v14711_v36 = vld [vmem:[%s16596_s13 + $0x3b0] sm:$0xf0]  ;;  %v10693_v42 = vor.u32 %v14596_v37, %v10690_v38  ;;  %v15631_v43 = vld [vmem:[#allocation10] ss:$0 sm:$0xff]  ;;  %v15290_v46 = vld [vmem:[%s16596_s13 + $0x15cc] sm:$0xf] }
  0x76   : > { %6640 = vmatpush.bf16.msrb.mxu0 %v13461_v3  ;;  %v10689_v41 = vor.u32 %v14711_v36, %v10688_v35  ;;  %v13470_v47 = vld [vmem:[%s16596_s13 + $0x1964] sm:$0xf0]  ;;  %v15405_v49 = vld [vmem:[%s16596_s13 + $0x1960] sm:$0xf0]  ;;  %v13476_v50 = vld [vmem:[%s16596_s13 + $0x15d0] sm:$0xf] }
  0x77   : > { %6604 = vmatpush.bf16.msra.mxu1 %v10677_v58  ;;  %v13468_v48 = vld [vmem:[%s16596_s13 + $0x15c8] sm:$0xf]  ;;  %v15406_v51 = vld [vmem:[%s16596_s13 + $0x1968] sm:$0xf0]  ;;  %v15291_v53 = vld [vmem:[%s16596_s13 + $0x15d4] sm:$0xf]  ;;  %v13473_v56 = vor.u32 %v15290_v46, %v13470_v47 }
  0x78   : > { %6615 = vmatpush.bf16.msrb.mxu2 %v12529_v12  ;;  %v13478_v54 = vld [vmem:[%s16596_s13 + $0x196c] sm:$0xf0]  ;;  %v13469_v57 = vor.u32 %v15405_v49, %v13468_v48  ;;  %v15059_v58 = vld [vmem:[%s16596_s13 + $0xe94] sm:$0xf]  ;;  %v13477_v60 = vor.u32 %v15406_v51, %v13476_v50  ;;  %v15174_v63 = vld [vmem:[%s16596_s13 + $0x1228] sm:$0xf0] }
  0x79   : > { %6628 = vmatpush.bf16.msrb.mxu3 %v12533_v11  ;;  %v12546_v59 = vld [vmem:[%s16596_s13 + $0x122c] sm:$0xf0]  ;;  %v13481_v61 = vor.u32 %v15291_v53, %v13478_v54  ;;  %v12552_v0 = vld [vmem:[%s16596_s13 + $0xe98] sm:$0xf]  ;;  %v15175_v1 = vld [vmem:[%s16596_s13 + $0x1230] sm:$0xf0] }
  0x7a   : > { %6641 = vmatpush.bf16.msrb.mxu0 %v12537_v16  ;;  %v12544_v62 = vld [vmem:[%s16596_s13 + $0xe90] sm:$0xf]  ;;  %v15060_v2 = vld [vmem:[%s16596_s13 + $0xe9c] sm:$0xf]  ;;  %v12554_v3 = vld [vmem:[%s16596_s13 + $0x1234] sm:$0xf0]  ;;  %v12549_v4 = vor.u32 %v15059_v58, %v12546_v59  ;;  %v12553_v8 = vor.u32 %v15175_v1, %v12552_v0 }
  0x7b   : > { %v12545_v5 = vor.u32 %v15174_v63, %v12544_v62  ;;  %v14828_v6 = vld [vmem:[%s16596_s13 + $0x75c] sm:$0xf]  ;;  %v12557_v9 = vor.u32 %v15060_v2, %v12554_v3  ;;  %v11620_v10 = vld [vmem:[%s16596_s13 + $0x758] sm:$0xf]  ;;  %v14943_v11 = vld [vmem:[%s16596_s13 + $0xaf0] sm:$0xf0] }
  0x7c   : > { %6616 = vmatpush.bf16.msrb.mxu2 %v11605_v28  ;;  %v11628_v12 = vld [vmem:[%s16596_s13 + $0x760] sm:$0xf]  ;;  %v14944_v13 = vld [vmem:[%s16596_s13 + $0xaf8] sm:$0xf0]  ;;  %v14829_v14 = vld [vmem:[%s16596_s13 + $0x764] sm:$0xf]  ;;  %v11621_v17 = vor.u32 %v14943_v11, %v11620_v10 }
  0x7d   : > { %6629 = vmatpush.bf16.msrb.mxu3 %v11609_v24  ;;  %v11630_v15 = vld [vmem:[%s16596_s13 + $0xafc] sm:$0xf0]  ;;  %v14597_v18 = vld [vmem:[%s16596_s13 + $0x24] sm:$0xf]  ;;  %v14712_v23 = vld [vmem:[%s16596_s13 + $0x3b8] sm:$0xf0] }
  0x7e   : > { %6642 = vmatpush.bf16.msrb.mxu0 %v11613_v29  ;;  %v10698_v19 = vld [vmem:[%s16596_s13 + $0x3bc] sm:$0xf0]  ;;  %v11633_v21 = vor.u32 %v14829_v14, %v11630_v15  ;;  %v10704_v24 = vld [vmem:[%s16596_s13 + $0x28] sm:$0xf]  ;;  %v14713_v25 = vld [vmem:[%s16596_s13 + $0x3c0] sm:$0xf0] }
  0x7f   : > { %v10696_v22 = vld [vmem:[%s16596_s13 + $0x20] sm:$0xf]  ;;  %v10701_v28 = vor.u32 %v14597_v18, %v10698_v19  ;;  %v15407_v35 = vld [vmem:[%s16596_s13 + $0x1970] sm:$0xf0]  ;;  %v15408_v37 = vld [vmem:[%s16596_s13 + $0x1978] sm:$0xf0] }
  0x80   : > { %v10697_v29 = vor.u32 %v14712_v23, %v10696_v22  ;;  %v13492_v36 = vld [vmem:[%s16596_s13 + $0x15e0] sm:$0xf]  ;;  %v15293_v38 = vld [vmem:[%s16596_s13 + $0x15e4] sm:$0xf]  ;;  %v15176_v47 = vld [vmem:[%s16596_s13 + $0x1238] sm:$0xf0] }
  0x81   : > { %v12560_v46 = vld [vmem:[%s16596_s13 + $0xea0] sm:$0xf]  ;;  %v12568_v48 = vld [vmem:[%s16596_s13 + $0xea8] sm:$0xf]  ;;  %v15177_v49 = vld [vmem:[%s16596_s13 + $0x1240] sm:$0xf0] }
  0x82   : > { %6643 = vmatpush.bf16.msrb.mxu0 %v10689_v41  ;;  %v15062_v50 = vld [vmem:[%s16596_s13 + $0xeac] sm:$0xf]  ;;  %v12570_v51 = vld [vmem:[%s16596_s13 + $0x1244] sm:$0xf0]  ;;  %v12561_v53 = vor.u32 %v15176_v47, %v12560_v46  ;;  %v14831_v63 = vld [vmem:[%s16596_s13 + $0x774] sm:$0xf] }
  0x83   : > { %v14830_v54 = vld [vmem:[%s16596_s13 + $0x76c] sm:$0xf]  ;;  %v12573_v58 = vor.u32 %v15062_v50, %v12570_v51  ;;  %v11636_v59 = vld [vmem:[%s16596_s13 + $0x768] sm:$0xf]  ;;  %v11646_v0 = vld [vmem:[%s16596_s13 + $0xb0c] sm:$0xf0] }
  0x84   : > { %v14946_v62 = vld [vmem:[%s16596_s13 + $0xb08] sm:$0xf0]  ;;  %v14599_v3 = vld [vmem:[%s16596_s13 + $0x34] sm:$0xf]  ;;  %v14600_v11 = vld [vmem:[%s16596_s13 + $0x3c] sm:$0xf] }
  0x85   : > { %v14715_v10 = vld [vmem:[%s16596_s13 + $0x3d0] sm:$0xf0]  ;;  %v15294_v15 = vld [vmem:[%s16596_s13 + $0x15ec] sm:$0xf]  ;;  %v13500_v19 = vld [vmem:[%s16596_s13 + $0x15e8] sm:$0xf] }
  0x86   : > { %v15410_v22 = vld [vmem:[%s16596_s13 + $0x1988] sm:$0xf0]  ;;  %v15295_v23 = vld [vmem:[%s16596_s13 + $0x15f4] sm:$0xf]  ;;  %v14948_v46 = vld [vmem:[%s16596_s13 + $0xb18] sm:$0xf0] }
  0x87   : > { %v14833_v47 = vld [vmem:[%s16596_s13 + $0x784] sm:$0xf]  ;;  %s16983_s22 = scalar_lea.vmem [#allocation13], %s15521_s30  ;;  %vm10200_vm5 = vcmask 1043456   ;;  %s17074_s16 = scalar_lea.vmem [#allocation14], %s15522_s14 }
  0x88   : > { %v14601_v51 = vld [vmem:[%s16596_s13 + $0x44] sm:$0xf]  ;;  %s15517_s18 = smul.u32 462, %s16455_s28  ;;  %s10502_s20 = sshll.u32 %s17074_s16, 4  ;;  %s10503_s20 = int_to_ptr.vmem [resolvable:$true] %s10502_s20 }
  0x89   : > { %s10489_s28 = scalar_lea.sflag [#allocation4], %s16593_s11  ;;  %s16324_s1 = scalar_lea.hbm %s19475_s7, 924 }
  0x8a   : > { %s10500_s0 = scalar_lea.hbm %s19475_s7, %s15517_s18 }
  0x8b   : > { %s10504_s8 = sshll.u32 %s10500_s0, 4  ;;  %s10505_s8 = int_to_ptr.hbm [resolvable:$true] %s10504_s8 }
  0x8c   : > { %s16318_s9 = sshra.s32 %s10505_s8, 4  ;;  %s16319_s9 = int_to_ptr.hbm [resolvable:$true] %s16318_s9 }
  0x8d   : > { %s16320_s15 = scalar_lea.hbm %s16319_s9, 462  ;;  %p16325_p13 = scmp.lt.s32.totalorder %s16319_s9, %s19475_s7 }
  0x8e   : > { %p16321_p4 = scmp.ne.s32.totalorder %s16319_s9, %s16320_s15  ;;  %p16326_p0 = scmp.lt.s32.totalorder %s16324_s1, %s16320_s15 }
  0x90   : > { %p16322_p8 = pnand %p16321_p4, %p16508_p3  ;;  %p16327_p5 = por %p16326_p0, %p16325_p13 }
  0x92   : > { %p16323_p10 = pneg %p16322_p8 }
  0x94   : > { %p16328_p12 = pnand %p16327_p5, %p16323_p10 }
  0xdf   : > { %v444_v32 = vpop.f32.mrf.mxu1 }
  0xe0   : > { %v445_v33 = vadd.f32 %v15630_v31, %v444_v32  ;;  %v10682_v31 = vld [vmem:[%s16596_s13 + $0x3ac] sm:$0xf0] }
  0xe1   : > { %v10680_v32 = vld [vmem:[%s16596_s13 + $0x10] sm:$0xf]  ;;  %v10685_v39 = vor.u32 %v14595_v30, %v10682_v31  ;;  %v15292_v30 = vld [vmem:[%s16596_s13 + $0x15dc] sm:$0xf]  ;;  %v13486_v31 = vld [vmem:[%s16596_s13 + $0x1974] sm:$0xf0] }
  0xe2   : > { %v447_v34 = vmax.f32 %v445_v33, 0.0  ;;  %v11617_v33 = vor.u32 %v14827_v26, %v11614_v27  ;;  %v14598_v26 = vld [vmem:[%s16596_s13 + $0x2c] sm:$0xf]  ;;  %v10706_v27 = vld [vmem:[%s16596_s13 + $0x3c4] sm:$0xf0] }
  0xe3   : > { %6630 = vmatpush.bf16.msrb.mxu3 %v10685_v39  ;;  %v13494_v39 = vld [vmem:[%s16596_s13 + $0x197c] sm:$0xf0] }
  0xe4   : > { %10661 = vmatmul.msk.f32.vlgmr.msrb.gmra.mxu1 %vm456_vm1, %v447_v34  ;;  %v14710_v34 = vld [vmem:[%s16596_s13 + $0x3a8] sm:$0xf0] }
  0xe5   : > { %6653 = vmatpush.bf16.msrb.mxu1 %v13465_v7  ;;  %v10681_v40 = vor.u32 %v14710_v34, %v10680_v32  ;;  %v11622_v7 = vld [vmem:[%s16596_s13 + $0xaf4] sm:$0xf0]  ;;  %v10705_v32 = vor.u32 %v14713_v25, %v10704_v24  ;;  %v13510_v24 = vld [vmem:[%s16596_s13 + $0x198c] sm:$0xf0] }
  0xe6   : > { %v11625_v16 = vor.u32 %v14828_v6, %v11622_v7  ;;  %v13484_v34 = vld [vmem:[%s16596_s13 + $0x15d8] sm:$0xf]  ;;  %v11649_v6 = vor.u32 %v14831_v63, %v11646_v0  ;;  %v10712_v7 = vld [vmem:[%s16596_s13 + $0x30] sm:$0xf]  ;;  %v15296_v0 = vld [vmem:[%s16596_s13 + $0x15fc] sm:$0xf] }
  0xe7   : > { %6617 = vmatpush.bf16.msrb.mxu2 %v10681_v40  ;;  %v13489_v40 = vor.u32 %v15292_v30, %v13486_v31  ;;  %v13485_v41 = vor.u32 %v15407_v35, %v13484_v34  ;;  %v13513_v30 = vor.u32 %v15295_v23, %v13510_v24  ;;  %v12576_v31 = vld [vmem:[%s16596_s13 + $0xeb0] sm:$0xf]  ;;  %v15179_v34 = vld [vmem:[%s16596_s13 + $0x1250] sm:$0xf0]  ;;  %v15064_v35 = vld [vmem:[%s16596_s13 + $0xebc] sm:$0xf] }
  0xe8   : > { %v14834_v24 = vld [vmem:[%s16596_s13 + $0x78c] sm:$0xf] }
  0xe9   : > { %6654 = vmatpush.bf16.msrb.mxu1 %v12541_v20  ;;  %v11629_v20 = vor.u32 %v14944_v13, %v11628_v12  ;;  %v10722_v12 = vld [vmem:[%s16596_s13 + $0x3d4] sm:$0xf0] }
  0xea   : > { %v10725_v18 = vor.u32 %v14600_v11, %v10722_v12  ;;  %v15065_v12 = vld [vmem:[%s16596_s13 + $0xec4] sm:$0xf] }
  0xed   : > { %6655 = vmatpush.bf16.msrb.mxu1 %v11617_v33  ;;  %v10709_v33 = vor.u32 %v14598_v26, %v10706_v27  ;;  %v15063_v27 = vld [vmem:[%s16596_s13 + $0xeb4] sm:$0xf] }
  0xf1   : > { %6656 = vmatpush.bf16.msrb.mxu1 %v10693_v42  ;;  %v15061_v42 = vld [vmem:[%s16596_s13 + $0xea4] sm:$0xf] }
 0x161   : > { %v477_v44 = vpop.f32.mrf.mxu1 }
 0x162   : > { %v478_v45 = vadd.f32 %v15631_v43, %v477_v44  ;;  %v12562_v43 = vld [vmem:[%s16596_s13 + $0x123c] sm:$0xf0]  ;;  %v13493_v44 = vor.u32 %v15408_v37, %v13492_v36  ;;  %v12586_v36 = vld [vmem:[%s16596_s13 + $0x1254] sm:$0xf0] }
 0x164   : > { %v480_v52 = vmax.f32 %v478_v45, 0.0  ;;  %v13497_v45 = vor.u32 %v15293_v38, %v13494_v39  ;;  %v14832_v39 = vld [vmem:[%s16596_s13 + $0x77c] sm:$0xf] }
 0x166   : > { %v16674_v55 = vpack.c.bf16 %v480_v52, %v480_v52  ;;  %v12565_v52 = vor.u32 %v15061_v42, %v12562_v43  ;;  %v12589_v42 = vor.u32 %v15064_v35, %v12586_v36  ;;  %v11652_v43 = vld [vmem:[%s16596_s13 + $0x778] sm:$0xf]  ;;  %v14603_v36 = vld [vmem:[%s16596_s13 + $0x54] sm:$0xf] }
 0x168   : > { %14358 = vmatmul.msk.bf16.vlgmr.msra.gmra.mxu2 %vm6554_vm2, %v16674_v55  ;;  %14359 = vmatmul.msk.bf16.vlgmr.msra.gmra.mxu3 %vm6554_vm2, %v16674_v55 }
 0x169   : > { %14360 = vmatmul.msk.bf16.vlgmr.msra.gmra.mxu0 %vm6554_vm2, %v16674_v55  ;;  %14361 = vmatmul.msk.bf16.vlgmr.msra.gmra.mxu1 %vm6554_vm2, %v16674_v55 }
 0x16a   : > { %6679 = vmatpush.bf16.msra.mxu3 %v13473_v56  ;;  %6666 = vmatpush.bf16.msra.mxu2 %v13469_v57  ;;  %v11638_v56 = vld [vmem:[%s16596_s13 + $0xb04] sm:$0xf0]  ;;  %v12569_v57 = vor.u32 %v15177_v49, %v12568_v48  ;;  %v11662_v48 = vld [vmem:[%s16596_s13 + $0xb1c] sm:$0xf0] }
 0x16b   : > { %6692 = vmatpush.bf16.msra.mxu0 %v13477_v60  ;;  %6705 = vmatpush.bf16.msra.mxu1 %v13481_v61  ;;  %v14945_v60 = vld [vmem:[%s16596_s13 + $0xb00] sm:$0xf0]  ;;  %v11644_v61 = vld [vmem:[%s16596_s13 + $0x770] sm:$0xf]  ;;  %v11641_v1 = vor.u32 %v14830_v54, %v11638_v56  ;;  %v11665_v54 = vor.u32 %v14833_v47, %v11662_v48  ;;  %v10728_v56 = vld [vmem:[%s16596_s13 + $0x40] sm:$0xf] }
 0x16c   : > { %v11637_v2 = vor.u32 %v14945_v60, %v11636_v59  ;;  %v14717_v59 = vld [vmem:[%s16596_s13 + $0x3e0] sm:$0xf0]  ;;  %v14602_v60 = vld [vmem:[%s16596_s13 + $0x4c] sm:$0xf] }
 0x16d   : > { %v15298_v48 = vld [vmem:[%s16596_s13 + $0x160c] sm:$0xf] }
 0x16e   : > { %6680 = vmatpush.bf16.msra.mxu3 %v12549_v4  ;;  %6667 = vmatpush.bf16.msra.mxu2 %v12545_v5  ;;  %v10714_v4 = vld [vmem:[%s16596_s13 + $0x3cc] sm:$0xf0]  ;;  %v11645_v5 = vor.u32 %v14946_v62, %v11644_v61  ;;  %v10738_v61 = vld [vmem:[%s16596_s13 + $0x3e4] sm:$0xf0] }
 0x16f   : > { %6693 = vmatpush.bf16.msra.mxu0 %v12553_v8  ;;  %6706 = vmatpush.bf16.msra.mxu1 %v12557_v9  ;;  %v14714_v8 = vld [vmem:[%s16596_s13 + $0x3c8] sm:$0xf0]  ;;  %v10720_v9 = vld [vmem:[%s16596_s13 + $0x38] sm:$0xf]  ;;  %v10717_v13 = vor.u32 %v14599_v3, %v10714_v4  ;;  %v10741_v3 = vor.u32 %v14602_v60, %v10738_v61  ;;  %v15067_v61 = vld [vmem:[%s16596_s13 + $0xed4] sm:$0xf] }
 0x170   : > { %v10713_v14 = vor.u32 %v14714_v8, %v10712_v7  ;;  %v13516_v4 = vld [vmem:[%s16596_s13 + $0x15f8] sm:$0xf]  ;;  %v15412_v7 = vld [vmem:[%s16596_s13 + $0x1998] sm:$0xf0]  ;;  %v15297_v8 = vld [vmem:[%s16596_s13 + $0x1604] sm:$0xf] }
 0x172   : > { %6681 = vmatpush.bf16.msra.mxu3 %v11625_v16  ;;  %6668 = vmatpush.bf16.msra.mxu2 %v11621_v17  ;;  %v13502_v16 = vld [vmem:[%s16596_s13 + $0x1984] sm:$0xf0]  ;;  %v10721_v17 = vor.u32 %v14715_v10, %v10720_v9  ;;  %v13526_v9 = vld [vmem:[%s16596_s13 + $0x199c] sm:$0xf0] }
 0x173   : > { %6694 = vmatpush.bf16.msra.mxu0 %v11629_v20  ;;  %6707 = vmatpush.bf16.msra.mxu1 %v11633_v21  ;;  %v15409_v20 = vld [vmem:[%s16596_s13 + $0x1980] sm:$0xf0]  ;;  %v13508_v21 = vld [vmem:[%s16596_s13 + $0x15f0] sm:$0xf]  ;;  %v13505_v25 = vor.u32 %v15294_v15, %v13502_v16  ;;  %v13529_v15 = vor.u32 %v15297_v8, %v13526_v9  ;;  %v12592_v16 = vld [vmem:[%s16596_s13 + $0xec0] sm:$0xf] }
 0x174   : > { %v13501_v26 = vor.u32 %v15409_v20, %v13500_v19  ;;  %v15181_v19 = vld [vmem:[%s16596_s13 + $0x1260] sm:$0xf0]  ;;  %v15066_v20 = vld [vmem:[%s16596_s13 + $0xecc] sm:$0xf]  ;;  %v14836_v9 = vld [vmem:[%s16596_s13 + $0x79c] sm:$0xf] }
 0x176   : > { %6682 = vmatpush.bf16.msra.mxu3 %v10701_v28  ;;  %6669 = vmatpush.bf16.msra.mxu2 %v10697_v29  ;;  %v12578_v28 = vld [vmem:[%s16596_s13 + $0x124c] sm:$0xf0]  ;;  %v13509_v29 = vor.u32 %v15410_v22, %v13508_v21  ;;  %v12602_v21 = vld [vmem:[%s16596_s13 + $0x1264] sm:$0xf0] }
 0x177   : > { %6695 = vmatpush.bf16.msra.mxu0 %v10705_v32  ;;  %6708 = vmatpush.bf16.msra.mxu1 %v10709_v33  ;;  %v15178_v32 = vld [vmem:[%s16596_s13 + $0x1248] sm:$0xf0]  ;;  %v12584_v33 = vld [vmem:[%s16596_s13 + $0xeb8] sm:$0xf]  ;;  %v12581_v37 = vor.u32 %v15063_v27, %v12578_v28  ;;  %v12605_v27 = vor.u32 %v15066_v20, %v12602_v21  ;;  %v11668_v28 = vld [vmem:[%s16596_s13 + $0x788] sm:$0xf] }
 0x178   : > { %14362 = vmatmul.msk.bf16.vlgmr.msrb.gmra.mxu2 %vm6554_vm2, %v16674_v55  ;;  %14363 = vmatmul.msk.bf16.vlgmr.msrb.gmra.mxu3 %vm6554_vm2, %v16674_v55  ;;  %v12577_v38 = vor.u32 %v15178_v32, %v12576_v31  ;;  %v14950_v31 = vld [vmem:[%s16596_s13 + $0xb28] sm:$0xf0]  ;;  %v14835_v32 = vld [vmem:[%s16596_s13 + $0x794] sm:$0xf]  ;;  %v14605_v21 = vld [vmem:[%s16596_s13 + $0x64] sm:$0xf] }
 0x179   : > { %14364 = vmatmul.msk.bf16.vlgmr.msrb.gmra.mxu0 %vm6554_vm2, %v16674_v55  ;;  %14365 = vmatmul.msk.bf16.vlgmr.msrb.gmra.mxu1 %vm6554_vm2, %v16674_v55 }
 0x17a   : > { %6731 = vmatpush.bf16.msrb.mxu3 %v13489_v40  ;;  %6718 = vmatpush.bf16.msrb.mxu2 %v13485_v41  ;;  %v11654_v40 = vld [vmem:[%s16596_s13 + $0xb14] sm:$0xf0]  ;;  %v12585_v41 = vor.u32 %v15179_v34, %v12584_v33  ;;  %v11678_v33 = vld [vmem:[%s16596_s13 + $0xb2c] sm:$0xf0] }
 0x17b   : > { %6744 = vmatpush.bf16.msrb.mxu0 %v13493_v44  ;;  %6757 = vmatpush.bf16.msrb.mxu1 %v13497_v45  ;;  %v14947_v44 = vld [vmem:[%s16596_s13 + $0xb10] sm:$0xf0]  ;;  %v11660_v45 = vld [vmem:[%s16596_s13 + $0x780] sm:$0xf]  ;;  %v11657_v49 = vor.u32 %v14832_v39, %v11654_v40  ;;  %v11681_v39 = vor.u32 %v14835_v32, %v11678_v33  ;;  %v10744_v40 = vld [vmem:[%s16596_s13 + $0x50] sm:$0xf] }
 0x17c   : > { %v11653_v50 = vor.u32 %v14947_v44, %v11652_v43  ;;  %v14719_v43 = vld [vmem:[%s16596_s13 + $0x3f0] sm:$0xf0]  ;;  %v14604_v44 = vld [vmem:[%s16596_s13 + $0x5c] sm:$0xf] }
 0x17d   : > { %v15300_v33 = vld [vmem:[%s16596_s13 + $0x161c] sm:$0xf] }
 0x17e   : > { %6732 = vmatpush.bf16.msrb.mxu3 %v12565_v52  ;;  %6719 = vmatpush.bf16.msrb.mxu2 %v12561_v53  ;;  %v10730_v52 = vld [vmem:[%s16596_s13 + $0x3dc] sm:$0xf0]  ;;  %v11661_v53 = vor.u32 %v14948_v46, %v11660_v45  ;;  %v10754_v45 = vld [vmem:[%s16596_s13 + $0x3f4] sm:$0xf0] }
 0x17f   : > { %6745 = vmatpush.bf16.msrb.mxu0 %v12569_v57  ;;  %6758 = vmatpush.bf16.msrb.mxu1 %v12573_v58  ;;  %v14716_v57 = vld [vmem:[%s16596_s13 + $0x3d8] sm:$0xf0]  ;;  %v10736_v58 = vld [vmem:[%s16596_s13 + $0x48] sm:$0xf]  ;;  %v10733_v62 = vor.u32 %v14601_v51, %v10730_v52  ;;  %v10757_v51 = vor.u32 %v14604_v44, %v10754_v45  ;;  %v15069_v45 = vld [vmem:[%s16596_s13 + $0xee4] sm:$0xf] }
 0x180   : > { %v10729_v63 = vor.u32 %v14716_v57, %v10728_v56  ;;  %v13532_v52 = vld [vmem:[%s16596_s13 + $0x1608] sm:$0xf]  ;;  %v15414_v56 = vld [vmem:[%s16596_s13 + $0x19a8] sm:$0xf0]  ;;  %v15299_v57 = vld [vmem:[%s16596_s13 + $0x1614] sm:$0xf] }
 0x182   : > { %6733 = vmatpush.bf16.msrb.mxu3 %v11641_v1  ;;  %6720 = vmatpush.bf16.msrb.mxu2 %v11637_v2  ;;  %v13518_v1 = vld [vmem:[%s16596_s13 + $0x1994] sm:$0xf0]  ;;  %v10737_v2 = vor.u32 %v14717_v59, %v10736_v58  ;;  %v13542_v58 = vld [vmem:[%s16596_s13 + $0x19ac] sm:$0xf0] }
 0x183   : > { %6746 = vmatpush.bf16.msrb.mxu0 %v11645_v5  ;;  %6759 = vmatpush.bf16.msrb.mxu1 %v11649_v6  ;;  %v15411_v5 = vld [vmem:[%s16596_s13 + $0x1990] sm:$0xf0]  ;;  %v13524_v6 = vld [vmem:[%s16596_s13 + $0x1600] sm:$0xf]  ;;  %v13521_v10 = vor.u32 %v15296_v0, %v13518_v1  ;;  %v13545_v0 = vor.u32 %v15299_v57, %v13542_v58  ;;  %v12608_v1 = vld [vmem:[%s16596_s13 + $0xed0] sm:$0xf] }
 0x184   : > { %v13517_v11 = vor.u32 %v15411_v5, %v13516_v4  ;;  %v15183_v4 = vld [vmem:[%s16596_s13 + $0x1270] sm:$0xf0]  ;;  %v15068_v5 = vld [vmem:[%s16596_s13 + $0xedc] sm:$0xf]  ;;  %v14838_v58 = vld [vmem:[%s16596_s13 + $0x7ac] sm:$0xf] }
 0x186   : > { %6734 = vmatpush.bf16.msrb.mxu3 %v10717_v13  ;;  %6721 = vmatpush.bf16.msrb.mxu2 %v10713_v14  ;;  %v12594_v13 = vld [vmem:[%s16596_s13 + $0x125c] sm:$0xf0]  ;;  %v13525_v14 = vor.u32 %v15412_v7, %v13524_v6  ;;  %v12618_v6 = vld [vmem:[%s16596_s13 + $0x1274] sm:$0xf0] }
 0x187   : > { %6747 = vmatpush.bf16.msrb.mxu0 %v10721_v17  ;;  %6760 = vmatpush.bf16.msrb.mxu1 %v10725_v18  ;;  %v15180_v17 = vld [vmem:[%s16596_s13 + $0x1258] sm:$0xf0]  ;;  %v12600_v18 = vld [vmem:[%s16596_s13 + $0xec8] sm:$0xf]  ;;  %v12597_v22 = vor.u32 %v15065_v12, %v12594_v13  ;;  %v12621_v12 = vor.u32 %v15068_v5, %v12618_v6  ;;  %v11684_v13 = vld [vmem:[%s16596_s13 + $0x798] sm:$0xf] }
 0x188   : > { %14366 = vmatmul.msk.bf16.vlgmr.msra.gmra.mxu2 %vm6554_vm2, %v16674_v55  ;;  %14367 = vmatmul.msk.bf16.vlgmr.msra.gmra.mxu3 %vm6554_vm2, %v16674_v55  ;;  %v12593_v23 = vor.u32 %v15180_v17, %v12592_v16  ;;  %v14952_v16 = vld [vmem:[%s16596_s13 + $0xb38] sm:$0xf0]  ;;  %v14837_v17 = vld [vmem:[%s16596_s13 + $0x7a4] sm:$0xf]  ;;  %v14607_v6 = vld [vmem:[%s16596_s13 + $0x74] sm:$0xf] }
 0x189   : > { %14368 = vmatmul.msk.bf16.vlgmr.msra.gmra.mxu0 %vm6554_vm2, %v16674_v55  ;;  %14369 = vmatmul.msk.bf16.vlgmr.msra.gmra.mxu1 %vm6554_vm2, %v16674_v55 }
 0x18a   : > { %6783 = vmatpush.bf16.msra.mxu3 %v13505_v25  ;;  %6770 = vmatpush.bf16.msra.mxu2 %v13501_v26  ;;  %v11670_v25 = vld [vmem:[%s16596_s13 + $0xb24] sm:$0xf0]  ;;  %v12601_v26 = vor.u32 %v15181_v19, %v12600_v18  ;;  %v11694_v18 = vld [vmem:[%s16596_s13 + $0xb3c] sm:$0xf0] }
 0x18b   : > { %6796 = vmatpush.bf16.msra.mxu0 %v13509_v29  ;;  %6809 = vmatpush.bf16.msra.mxu1 %v13513_v30  ;;  %v14949_v29 = vld [vmem:[%s16596_s13 + $0xb20] sm:$0xf0]  ;;  %v11676_v30 = vld [vmem:[%s16596_s13 + $0x790] sm:$0xf]  ;;  %v11673_v34 = vor.u32 %v14834_v24, %v11670_v25  ;;  %v11697_v24 = vor.u32 %v14837_v17, %v11694_v18  ;;  %v10760_v25 = vld [vmem:[%s16596_s13 + $0x60] sm:$0xf] }
 0x18c   : > { %v11669_v35 = vor.u32 %v14949_v29, %v11668_v28  ;;  %v14721_v28 = vld [vmem:[%s16596_s13 + $0x400] sm:$0xf0]  ;;  %v14606_v29 = vld [vmem:[%s16596_s13 + $0x6c] sm:$0xf] }
 0x18d   : > { %v15302_v18 = vld [vmem:[%s16596_s13 + $0x162c] sm:$0xf] }
 0x18e   : > { %6784 = vmatpush.bf16.msra.mxu3 %v12581_v37  ;;  %6771 = vmatpush.bf16.msra.mxu2 %v12577_v38  ;;  %v10746_v37 = vld [vmem:[%s16596_s13 + $0x3ec] sm:$0xf0]  ;;  %v11677_v38 = vor.u32 %v14950_v31, %v11676_v30  ;;  %v10770_v30 = vld [vmem:[%s16596_s13 + $0x404] sm:$0xf0] }
 0x18f   : > { %6797 = vmatpush.bf16.msra.mxu0 %v12585_v41  ;;  %6810 = vmatpush.bf16.msra.mxu1 %v12589_v42  ;;  %v14718_v41 = vld [vmem:[%s16596_s13 + $0x3e8] sm:$0xf0]  ;;  %v10752_v42 = vld [vmem:[%s16596_s13 + $0x58] sm:$0xf]  ;;  %v10749_v46 = vor.u32 %v14603_v36, %v10746_v37  ;;  %v10773_v36 = vor.u32 %v14606_v29, %v10770_v30  ;;  %v15071_v30 = vld [vmem:[%s16596_s13 + $0xef4] sm:$0xf] }
 0x190   : > { %v10745_v47 = vor.u32 %v14718_v41, %v10744_v40  ;;  %v13548_v37 = vld [vmem:[%s16596_s13 + $0x1618] sm:$0xf]  ;;  %v15416_v40 = vld [vmem:[%s16596_s13 + $0x19b8] sm:$0xf0]  ;;  %v15301_v41 = vld [vmem:[%s16596_s13 + $0x1624] sm:$0xf] }
 0x192   : > { %6785 = vmatpush.bf16.msra.mxu3 %v11657_v49  ;;  %6772 = vmatpush.bf16.msra.mxu2 %v11653_v50  ;;  %v13534_v49 = vld [vmem:[%s16596_s13 + $0x19a4] sm:$0xf0]  ;;  %v10753_v50 = vor.u32 %v14719_v43, %v10752_v42  ;;  %v13558_v42 = vld [vmem:[%s16596_s13 + $0x19bc] sm:$0xf0] }
 0x193   : > { %6798 = vmatpush.bf16.msra.mxu0 %v11661_v53  ;;  %6811 = vmatpush.bf16.msra.mxu1 %v11665_v54  ;;  %v15413_v53 = vld [vmem:[%s16596_s13 + $0x19a0] sm:$0xf0]  ;;  %v13540_v54 = vld [vmem:[%s16596_s13 + $0x1610] sm:$0xf]  ;;  %v13537_v59 = vor.u32 %v15298_v48, %v13534_v49  ;;  %v13561_v48 = vor.u32 %v15301_v41, %v13558_v42  ;;  %v12624_v49 = vld [vmem:[%s16596_s13 + $0xee0] sm:$0xf] }
 0x194   : > { %v13533_v60 = vor.u32 %v15413_v53, %v13532_v52  ;;  %v15185_v52 = vld [vmem:[%s16596_s13 + $0x1280] sm:$0xf0]  ;;  %v15070_v53 = vld [vmem:[%s16596_s13 + $0xeec] sm:$0xf]  ;;  %v14840_v42 = vld [vmem:[%s16596_s13 + $0x7bc] sm:$0xf] }
 0x196   : > { %6786 = vmatpush.bf16.msra.mxu3 %v10733_v62  ;;  %6773 = vmatpush.bf16.msra.mxu2 %v10729_v63  ;;  %v12610_v62 = vld [vmem:[%s16596_s13 + $0x126c] sm:$0xf0]  ;;  %v13541_v63 = vor.u32 %v15414_v56, %v13540_v54  ;;  %v12634_v54 = vld [vmem:[%s16596_s13 + $0x1284] sm:$0xf0] }
 0x197   : > { %6799 = vmatpush.bf16.msra.mxu0 %v10737_v2  ;;  %6812 = vmatpush.bf16.msra.mxu1 %v10741_v3  ;;  %v15182_v2 = vld [vmem:[%s16596_s13 + $0x1268] sm:$0xf0]  ;;  %v12616_v3 = vld [vmem:[%s16596_s13 + $0xed8] sm:$0xf]  ;;  %v12613_v7 = vor.u32 %v15067_v61, %v12610_v62  ;;  %v12637_v61 = vor.u32 %v15070_v53, %v12634_v54  ;;  %v11700_v62 = vld [vmem:[%s16596_s13 + $0x7a8] sm:$0xf] }
 0x198   : > { %14370 = vmatmul.msk.bf16.vlgmr.msrb.gmra.mxu2 %vm6554_vm2, %v16674_v55  ;;  %14371 = vmatmul.msk.bf16.vlgmr.msrb.gmra.mxu3 %vm6554_vm2, %v16674_v55  ;;  %v12609_v8 = vor.u32 %v15182_v2, %v12608_v1  ;;  %v14954_v1 = vld [vmem:[%s16596_s13 + $0xb48] sm:$0xf0]  ;;  %v14839_v2 = vld [vmem:[%s16596_s13 + $0x7b4] sm:$0xf]  ;;  %v14609_v54 = vld [vmem:[%s16596_s13 + $0x84] sm:$0xf] }
 0x199   : > { %14372 = vmatmul.msk.bf16.vlgmr.msrb.gmra.mxu0 %vm6554_vm2, %v16674_v55  ;;  %14373 = vmatmul.msk.bf16.vlgmr.msrb.gmra.mxu1 %vm6554_vm2, %v16674_v55 }
 0x19a   : > { %6835 = vmatpush.bf16.msrb.mxu3 %v13521_v10  ;;  %6822 = vmatpush.bf16.msrb.mxu2 %v13517_v11  ;;  %v11686_v10 = vld [vmem:[%s16596_s13 + $0xb34] sm:$0xf0]  ;;  %v12617_v11 = vor.u32 %v15183_v4, %v12616_v3  ;;  %v11710_v3 = vld [vmem:[%s16596_s13 + $0xb4c] sm:$0xf0] }
 0x19b   : > { %6848 = vmatpush.bf16.msrb.mxu0 %v13525_v14  ;;  %6861 = vmatpush.bf16.msrb.mxu1 %v13529_v15  ;;  %v14951_v14 = vld [vmem:[%s16596_s13 + $0xb30] sm:$0xf0]  ;;  %v11692_v15 = vld [vmem:[%s16596_s13 + $0x7a0] sm:$0xf]  ;;  %v11689_v19 = vor.u32 %v14836_v9, %v11686_v10  ;;  %v11713_v9 = vor.u32 %v14839_v2, %v11710_v3  ;;  %v10776_v10 = vld [vmem:[%s16596_s13 + $0x70] sm:$0xf] }
 0x19c   : > { %v11685_v20 = vor.u32 %v14951_v14, %v11684_v13  ;;  %v14723_v13 = vld [vmem:[%s16596_s13 + $0x410] sm:$0xf0]  ;;  %v14608_v14 = vld [vmem:[%s16596_s13 + $0x7c] sm:$0xf] }
 0x19d   : > { %v15304_v3 = vld [vmem:[%s16596_s13 + $0x163c] sm:$0xf] }
 0x19e   : > { %6836 = vmatpush.bf16.msrb.mxu3 %v12597_v22  ;;  %6823 = vmatpush.bf16.msrb.mxu2 %v12593_v23  ;;  %v10762_v22 = vld [vmem:[%s16596_s13 + $0x3fc] sm:$0xf0]  ;;  %v11693_v23 = vor.u32 %v14952_v16, %v11692_v15  ;;  %v10786_v15 = vld [vmem:[%s16596_s13 + $0x414] sm:$0xf0] }
 0x19f   : > { %6849 = vmatpush.bf16.msrb.mxu0 %v12601_v26  ;;  %6862 = vmatpush.bf16.msrb.mxu1 %v12605_v27  ;;  %v14720_v26 = vld [vmem:[%s16596_s13 + $0x3f8] sm:$0xf0]  ;;  %v10768_v27 = vld [vmem:[%s16596_s13 + $0x68] sm:$0xf]  ;;  %v10765_v31 = vor.u32 %v14605_v21, %v10762_v22  ;;  %v10789_v21 = vor.u32 %v14608_v14, %v10786_v15  ;;  %v15073_v15 = vld [vmem:[%s16596_s13 + $0xf04] sm:$0xf] }
 0x1a0   : > { %v10761_v32 = vor.u32 %v14720_v26, %v10760_v25  ;;  %v13564_v22 = vld [vmem:[%s16596_s13 + $0x1628] sm:$0xf]  ;;  %v15418_v25 = vld [vmem:[%s16596_s13 + $0x19c8] sm:$0xf0]  ;;  %v15303_v26 = vld [vmem:[%s16596_s13 + $0x1634] sm:$0xf] }
 0x1a2   : > { %6837 = vmatpush.bf16.msrb.mxu3 %v11673_v34  ;;  %6824 = vmatpush.bf16.msrb.mxu2 %v11669_v35  ;;  %v13550_v34 = vld [vmem:[%s16596_s13 + $0x19b4] sm:$0xf0]  ;;  %v10769_v35 = vor.u32 %v14721_v28, %v10768_v27  ;;  %v13574_v27 = vld [vmem:[%s16596_s13 + $0x19cc] sm:$0xf0] }
 0x1a3   : > { %6850 = vmatpush.bf16.msrb.mxu0 %v11677_v38  ;;  %6863 = vmatpush.bf16.msrb.mxu1 %v11681_v39  ;;  %v15415_v38 = vld [vmem:[%s16596_s13 + $0x19b0] sm:$0xf0]  ;;  %v13556_v39 = vld [vmem:[%s16596_s13 + $0x1620] sm:$0xf]  ;;  %v13553_v43 = vor.u32 %v15300_v33, %v13550_v34  ;;  %v13577_v33 = vor.u32 %v15303_v26, %v13574_v27  ;;  %v12640_v34 = vld [vmem:[%s16596_s13 + $0xef0] sm:$0xf] }
 0x1a4   : > { %v13549_v44 = vor.u32 %v15415_v38, %v13548_v37  ;;  %v15187_v37 = vld [vmem:[%s16596_s13 + $0x1290] sm:$0xf0]  ;;  %v15072_v38 = vld [vmem:[%s16596_s13 + $0xefc] sm:$0xf]  ;;  %v14842_v27 = vld [vmem:[%s16596_s13 + $0x7cc] sm:$0xf] }
 0x1a6   : > { %6838 = vmatpush.bf16.msrb.mxu3 %v10749_v46  ;;  %6825 = vmatpush.bf16.msrb.mxu2 %v10745_v47  ;;  %v12626_v46 = vld [vmem:[%s16596_s13 + $0x127c] sm:$0xf0]  ;;  %v13557_v47 = vor.u32 %v15416_v40, %v13556_v39  ;;  %v12650_v39 = vld [vmem:[%s16596_s13 + $0x1294] sm:$0xf0] }
 0x1a7   : > { %6851 = vmatpush.bf16.msrb.mxu0 %v10753_v50  ;;  %6864 = vmatpush.bf16.msrb.mxu1 %v10757_v51  ;;  %v15184_v50 = vld [vmem:[%s16596_s13 + $0x1278] sm:$0xf0]  ;;  %v12632_v51 = vld [vmem:[%s16596_s13 + $0xee8] sm:$0xf]  ;;  %v12629_v56 = vor.u32 %v15069_v45, %v12626_v46  ;;  %v12653_v45 = vor.u32 %v15072_v38, %v12650_v39  ;;  %v11716_v46 = vld [vmem:[%s16596_s13 + $0x7b8] sm:$0xf] }
 0x1a8   : > { %14374 = vmatmul.msk.bf16.vlgmr.msra.gmra.mxu2 %vm6554_vm2, %v16674_v55  ;;  %14375 = vmatmul.msk.bf16.vlgmr.msra.gmra.mxu3 %vm6554_vm2, %v16674_v55  ;;  %v12625_v57 = vor.u32 %v15184_v50, %v12624_v49  ;;  %v14956_v49 = vld [vmem:[%s16596_s13 + $0xb58] sm:$0xf0]  ;;  %v14841_v50 = vld [vmem:[%s16596_s13 + $0x7c4] sm:$0xf] }
 0x1a9   : > { %14376 = vmatmul.msk.bf16.vlgmr.msra.gmra.mxu0 %vm6554_vm2, %v16674_v55  ;;  %14377 = vmatmul.msk.bf16.vlgmr.msra.gmra.mxu1 %vm6554_vm2, %v16674_v55 }
 0x1aa   : > { %6887 = vmatpush.bf16.msra.mxu3 %v13537_v59  ;;  %6874 = vmatpush.bf16.msra.mxu2 %v13533_v60  ;;  %v11702_v59 = vld [vmem:[%s16596_s13 + $0xb44] sm:$0xf0]  ;;  %v12633_v60 = vor.u32 %v15185_v52, %v12632_v51  ;;  %v11726_v51 = vld [vmem:[%s16596_s13 + $0xb5c] sm:$0xf0] }
 0x1ab   : > { %6900 = vmatpush.bf16.msra.mxu0 %v13541_v63  ;;  %6913 = vmatpush.bf16.msra.mxu1 %v13545_v0  ;;  %v14953_v63 = vld [vmem:[%s16596_s13 + $0xb40] sm:$0xf0]  ;;  %v11708_v0 = vld [vmem:[%s16596_s13 + $0x7b0] sm:$0xf]  ;;  %v11705_v4 = vor.u32 %v14838_v58, %v11702_v59  ;;  %v11729_v58 = vor.u32 %v14841_v50, %v11726_v51  ;;  %v10792_v59 = vld [vmem:[%s16596_s13 + $0x80] sm:$0xf] }
 0x1ac   : > { %v11701_v5 = vor.u32 %v14953_v63, %v11700_v62  ;;  %v14725_v62 = vld [vmem:[%s16596_s13 + $0x420] sm:$0xf0]  ;;  %v14610_v63 = vld [vmem:[%s16596_s13 + $0x8c] sm:$0xf] }
 0x1ae   : > { %6888 = vmatpush.bf16.msra.mxu3 %v12613_v7  ;;  %6875 = vmatpush.bf16.msra.mxu2 %v12609_v8  ;;  %v10778_v7 = vld [vmem:[%s16596_s13 + $0x40c] sm:$0xf0]  ;;  %v11709_v8 = vor.u32 %v14954_v1, %v11708_v0  ;;  %v10802_v0 = vld [vmem:[%s16596_s13 + $0x424] sm:$0xf0] }
 0x1af   : > { %6901 = vmatpush.bf16.msra.mxu0 %v12617_v11  ;;  %6914 = vmatpush.bf16.msra.mxu1 %v12621_v12  ;;  %v14722_v11 = vld [vmem:[%s16596_s13 + $0x408] sm:$0xf0]  ;;  %v10784_v12 = vld [vmem:[%s16596_s13 + $0x78] sm:$0xf]  ;;  %v10781_v16 = vor.u32 %v14607_v6, %v10778_v7  ;;  %v10805_v6 = vor.u32 %v14610_v63, %v10802_v0  ;;  %v15307_v63 = vld [vmem:[%s16596_s13 + $0x1654] sm:$0xf] }
 0x1b0   : > { %v10777_v17 = vor.u32 %v14722_v11, %v10776_v10  ;;  %v13580_v7 = vld [vmem:[%s16596_s13 + $0x1638] sm:$0xf]  ;;  %v15420_v10 = vld [vmem:[%s16596_s13 + $0x19d8] sm:$0xf0]  ;;  %v15305_v11 = vld [vmem:[%s16596_s13 + $0x1644] sm:$0xf] }
 0x1b1   : > { %v13606_v0 = vld [vmem:[%s16596_s13 + $0x19ec] sm:$0xf0] }
 0x1b2   : > { %6889 = vmatpush.bf16.msra.mxu3 %v11689_v19  ;;  %6876 = vmatpush.bf16.msra.mxu2 %v11685_v20  ;;  %v13566_v19 = vld [vmem:[%s16596_s13 + $0x19c4] sm:$0xf0]  ;;  %v10785_v20 = vor.u32 %v14723_v13, %v10784_v12  ;;  %v13590_v12 = vld [vmem:[%s16596_s13 + $0x19dc] sm:$0xf0] }
 0x1b3   : > { %6902 = vmatpush.bf16.msra.mxu0 %v11693_v23  ;;  %6915 = vmatpush.bf16.msra.mxu1 %v11697_v24  ;;  %v15417_v23 = vld [vmem:[%s16596_s13 + $0x19c0] sm:$0xf0]  ;;  %v13572_v24 = vld [vmem:[%s16596_s13 + $0x1630] sm:$0xf]  ;;  %v13569_v28 = vor.u32 %v15302_v18, %v13566_v19  ;;  %v13593_v18 = vor.u32 %v15305_v11, %v13590_v12  ;;  %v12656_v19 = vld [vmem:[%s16596_s13 + $0xf00] sm:$0xf]  ;;  %v13609_v11 = vor.u32 %v15307_v63, %v13606_v0 }
 0x1b4   : > { %v13565_v29 = vor.u32 %v15417_v23, %v13564_v22  ;;  %v15189_v22 = vld [vmem:[%s16596_s13 + $0x12a0] sm:$0xf0]  ;;  %v15074_v23 = vld [vmem:[%s16596_s13 + $0xf0c] sm:$0xf]  ;;  %v12672_v12 = vld [vmem:[%s16596_s13 + $0xf10] sm:$0xf] }
 0x1b5   : > { %v15423_v0 = vld [vmem:[%s16596_s13 + $0x19f0] sm:$0xf0] }
 0x1b6   : > { %6890 = vmatpush.bf16.msra.mxu3 %v10765_v31  ;;  %6877 = vmatpush.bf16.msra.mxu2 %v10761_v32  ;;  %v12642_v31 = vld [vmem:[%s16596_s13 + $0x128c] sm:$0xf0]  ;;  %v13573_v32 = vor.u32 %v15418_v25, %v13572_v24  ;;  %v12666_v24 = vld [vmem:[%s16596_s13 + $0x12a4] sm:$0xf0] }
 0x1b7   : > { %6903 = vmatpush.bf16.msra.mxu0 %v10769_v35  ;;  %6916 = vmatpush.bf16.msra.mxu1 %v10773_v36  ;;  %v15186_v35 = vld [vmem:[%s16596_s13 + $0x1288] sm:$0xf0]  ;;  %v12648_v36 = vld [vmem:[%s16596_s13 + $0xef8] sm:$0xf]  ;;  %v12645_v40 = vor.u32 %v15071_v30, %v12642_v31  ;;  %v12669_v30 = vor.u32 %v15074_v23, %v12666_v24  ;;  %v11732_v31 = vld [vmem:[%s16596_s13 + $0x7c8] sm:$0xf] }
 0x1b8   : > { %14378 = vmatmul.msk.bf16.vlgmr.msrb.gmra.mxu2 %vm6554_vm2, %v16674_v55  ;;  %14379 = vmatmul.msk.bf16.vlgmr.msrb.gmra.mxu3 %vm6554_vm2, %v16674_v55  ;;  %v12641_v41 = vor.u32 %v15186_v35, %v12640_v34  ;;  %v14958_v34 = vld [vmem:[%s16596_s13 + $0xb68] sm:$0xf0]  ;;  %v14843_v35 = vld [vmem:[%s16596_s13 + $0x7d4] sm:$0xf] }
 0x1b9   : > { %14380 = vmatmul.msk.bf16.vlgmr.msrb.gmra.mxu0 %vm6554_vm2, %v16674_v55  ;;  %14381 = vmatmul.msk.bf16.vlgmr.msrb.gmra.mxu1 %vm6554_vm2, %v16674_v55 }
 0x1ba   : > { %6939 = vmatpush.bf16.msrb.mxu3 %v13553_v43  ;;  %6926 = vmatpush.bf16.msrb.mxu2 %v13549_v44  ;;  %v11718_v43 = vld [vmem:[%s16596_s13 + $0xb54] sm:$0xf0]  ;;  %v12649_v44 = vor.u32 %v15187_v37, %v12648_v36  ;;  %v11742_v36 = vld [vmem:[%s16596_s13 + $0xb6c] sm:$0xf0]  ;;  %v16986_v37 = vld [vmem:[%s16983_s22] sm:$0xff] }
 0x1bb   : > { %6952 = vmatpush.bf16.msrb.mxu0 %v13557_v47  ;;  %6965 = vmatpush.bf16.msrb.mxu1 %v13561_v48  ;;  %v14955_v47 = vld [vmem:[%s16596_s13 + $0xb50] sm:$0xf0]  ;;  %v11724_v48 = vld [vmem:[%s16596_s13 + $0x7c0] sm:$0xf]  ;;  %v11721_v52 = vor.u32 %v14840_v42, %v11718_v43  ;;  %v11745_v43 = vor.u32 %v14843_v35, %v11742_v36  ;;  %v1470_v50 = vperm.slane %v16986_v37, 2  ;;  %v1471_v51 = vperm.slane %v16986_v37, 3 }
 0x1bc   : > { %v11717_v53 = vor.u32 %v14955_v47, %v11716_v46  ;;  %v10816_v46 = vld [vmem:[%s16596_s13 + $0x98] sm:$0xf]  ;;  %v14727_v47 = vld [vmem:[%s16596_s13 + $0x430] sm:$0xf0] }
 0x1be   : > { %6940 = vmatpush.bf16.msrb.mxu3 %v12629_v56  ;;  %6927 = vmatpush.bf16.msrb.mxu2 %v12625_v57  ;;  %v10794_v56 = vld [vmem:[%s16596_s13 + $0x41c] sm:$0xf0]  ;;  %v11725_v57 = vor.u32 %v14956_v49, %v11724_v48  ;;  %v14612_v48 = vld [vmem:[%s16596_s13 + $0x9c] sm:$0xf]  ;;  %v10818_v49 = vld [vmem:[%s16596_s13 + $0x434] sm:$0xf0] }
 0x1bf   : > { %6953 = vmatpush.bf16.msrb.mxu0 %v12633_v60  ;;  %6966 = vmatpush.bf16.msrb.mxu1 %v12637_v61  ;;  %v14724_v60 = vld [vmem:[%s16596_s13 + $0x418] sm:$0xf0]  ;;  %v10800_v61 = vld [vmem:[%s16596_s13 + $0x88] sm:$0xf]  ;;  %v10797_v1 = vor.u32 %v14609_v54, %v10794_v56  ;;  %v15306_v54 = vld [vmem:[%s16596_s13 + $0x164c] sm:$0xf] }
 0x1c0   : > { %v10793_v2 = vor.u32 %v14724_v60, %v10792_v59  ;;  %v13598_v56 = vld [vmem:[%s16596_s13 + $0x19e4] sm:$0xf0]  ;;  %v10821_v59 = vor.u32 %v14612_v48, %v10818_v49  ;;  %v15421_v60 = vld [vmem:[%s16596_s13 + $0x19e0] sm:$0xf0]  ;;  %v14614_v49 = vld [vmem:[%s16596_s13 + $0xac] sm:$0xf] }
 0x1c1   : > { %v14729_v48 = vld [vmem:[%s16596_s13 + $0x440] sm:$0xf0] }
 0x1c2   : > { %6941 = vmatpush.bf16.msrb.mxu3 %v11705_v4  ;;  %6928 = vmatpush.bf16.msrb.mxu2 %v11701_v5  ;;  %v13582_v4 = vld [vmem:[%s16596_s13 + $0x19d4] sm:$0xf0]  ;;  %v10801_v5 = vor.u32 %v14725_v62, %v10800_v61  ;;  %v13604_v61 = vld [vmem:[%s16596_s13 + $0x1650] sm:$0xf]  ;;  %v15422_v62 = vld [vmem:[%s16596_s13 + $0x19e8] sm:$0xf0] }
 0x1c3   : > { %6954 = vmatpush.bf16.msrb.mxu0 %v11709_v8  ;;  %6967 = vmatpush.bf16.msrb.mxu1 %v11713_v9  ;;  %v15419_v8 = vld [vmem:[%s16596_s13 + $0x19d0] sm:$0xf0]  ;;  %v13588_v9 = vld [vmem:[%s16596_s13 + $0x1640] sm:$0xf]  ;;  %v13585_v13 = vor.u32 %v15304_v3, %v13582_v4  ;;  %v1469_v3 = vperm.slane %v16986_v37, 1  ;;  %v13601_v4 = vor.u32 %v15306_v54, %v13598_v56 }
 0x1c4   : > { %v13581_v14 = vor.u32 %v15419_v8, %v13580_v7  ;;  %v15075_v7 = vld [vmem:[%s16596_s13 + $0xf14] sm:$0xf]  ;;  %v12674_v8 = vld [vmem:[%s16596_s13 + $0x12ac] sm:$0xf0] }
 0x1c6   : > { %6942 = vmatpush.bf16.msrb.mxu3 %v10781_v16  ;;  %6929 = vmatpush.bf16.msrb.mxu2 %v10777_v17  ;;  %v12658_v16 = vld [vmem:[%s16596_s13 + $0x129c] sm:$0xf0]  ;;  %v13589_v17 = vor.u32 %v15420_v10, %v13588_v9 }
 0x1c7   : > { %6955 = vmatpush.bf16.msrb.mxu0 %v10785_v20  ;;  %6968 = vmatpush.bf16.msrb.mxu1 %v10789_v21  ;;  %v15188_v20 = vld [vmem:[%s16596_s13 + $0x1298] sm:$0xf0]  ;;  %v12664_v21 = vld [vmem:[%s16596_s13 + $0xf08] sm:$0xf]  ;;  %v12661_v25 = vor.u32 %v15073_v15, %v12658_v16  ;;  %v15191_v15 = vld [vmem:[%s16596_s13 + $0x12b0] sm:$0xf0] }
 0x1c8   : > { %14382 = vmatmul.msk.bf16.vlgmr.msra.gmra.mxu2 %vm6554_vm2, %v16674_v55  ;;  %14383 = vmatmul.msk.bf16.vlgmr.msra.gmra.mxu3 %vm6554_vm2, %v16674_v55  ;;  %v12657_v26 = vor.u32 %v15188_v20, %v12656_v19  ;;  %v15076_v16 = vld [vmem:[%s16596_s13 + $0xf1c] sm:$0xf]  ;;  %v12677_v19 = vor.u32 %v15075_v7, %v12674_v8  ;;  %v1473_v8 = vperm.slane %v16986_v37, 5 }
 0x1c9   : > { %14384 = vmatmul.msk.bf16.vlgmr.msra.gmra.mxu0 %vm6554_vm2, %v16674_v55  ;;  %14385 = vmatmul.msk.bf16.vlgmr.msra.gmra.mxu1 %vm6554_vm2, %v16674_v55 }
 0x1ca   : > { %6991 = vmatpush.bf16.msra.mxu3 %v13569_v28  ;;  %6978 = vmatpush.bf16.msra.mxu2 %v13565_v29  ;;  %v11734_v28 = vld [vmem:[%s16596_s13 + $0xb64] sm:$0xf0]  ;;  %v12665_v29 = vor.u32 %v15189_v22, %v12664_v21  ;;  %v14844_v21 = vld [vmem:[%s16596_s13 + $0x7dc] sm:$0xf]  ;;  %v11750_v22 = vld [vmem:[%s16596_s13 + $0xb74] sm:$0xf0] }
 0x1cb   : > { %7004 = vmatpush.bf16.msra.mxu0 %v13573_v32  ;;  %7017 = vmatpush.bf16.msra.mxu1 %v13577_v33  ;;  %v14957_v32 = vld [vmem:[%s16596_s13 + $0xb60] sm:$0xf0]  ;;  %v11740_v33 = vld [vmem:[%s16596_s13 + $0x7d0] sm:$0xf]  ;;  %v11737_v38 = vor.u32 %v14842_v27, %v11734_v28  ;;  %v11748_v27 = vld [vmem:[%s16596_s13 + $0x7d8] sm:$0xf] }
 0x1cc   : > { %v11733_v39 = vor.u32 %v14957_v32, %v11732_v31  ;;  %v11741_v42 = vor.u32 %v14958_v34, %v11740_v33  ;;  %v14959_v28 = vld [vmem:[%s16596_s13 + $0xb70] sm:$0xf0]  ;;  %v14960_v31 = vld [vmem:[%s16596_s13 + $0xb78] sm:$0xf0]  ;;  %v14845_v32 = vld [vmem:[%s16596_s13 + $0x7e4] sm:$0xf] }
 0x1cd   : > { %v11758_v33 = vld [vmem:[%s16596_s13 + $0xb7c] sm:$0xf0] }
 0x1ce   : > { %6992 = vmatpush.bf16.msra.mxu3 %v12645_v40  ;;  %6979 = vmatpush.bf16.msra.mxu2 %v12641_v41  ;;  %v14611_v40 = vld [vmem:[%s16596_s13 + $0x94] sm:$0xf]  ;;  %v10810_v41 = vld [vmem:[%s16596_s13 + $0x42c] sm:$0xf0] }
 0x1cf   : > { %7005 = vmatpush.bf16.msra.mxu0 %v12649_v44  ;;  %7018 = vmatpush.bf16.msra.mxu1 %v12653_v45  ;;  %v10808_v44 = vld [vmem:[%s16596_s13 + $0x90] sm:$0xf]  ;;  %v14726_v45 = vld [vmem:[%s16596_s13 + $0x428] sm:$0xf0] }
 0x1d2   : > { %6993 = vmatpush.bf16.msra.mxu3 %v11721_v52  ;;  %6980 = vmatpush.bf16.msra.mxu2 %v11717_v53  ;;  %v10813_v52 = vor.u32 %v14611_v40, %v10810_v41  ;;  %v10809_v53 = vor.u32 %v14726_v45, %v10808_v44  ;;  %v14613_v40 = vld [vmem:[%s16596_s13 + $0xa4] sm:$0xf]  ;;  %v10826_v41 = vld [vmem:[%s16596_s13 + $0x43c] sm:$0xf0]  ;;  %v14728_v45 = vld [vmem:[%s16596_s13 + $0x438] sm:$0xf0] }
 0x1d3   : > { %7006 = vmatpush.bf16.msra.mxu0 %v11725_v57  ;;  %7019 = vmatpush.bf16.msra.mxu1 %v11729_v58  ;;  %v13596_v57 = vld [vmem:[%s16596_s13 + $0x1648] sm:$0xf]  ;;  %v10817_v58 = vor.u32 %v14727_v47, %v10816_v46  ;;  %v10824_v44 = vld [vmem:[%s16596_s13 + $0xa0] sm:$0xf]  ;;  %v10829_v54 = vor.u32 %v14613_v40, %v10826_v41  ;;  %v14961_v40 = vld [vmem:[%s16596_s13 + $0xb80] sm:$0xf0] }
 0x1d4   : > { %v10832_v46 = vld [vmem:[%s16596_s13 + $0xa8] sm:$0xf]  ;;  %v10825_v56 = vor.u32 %v14728_v45, %v10824_v44  ;;  %v11772_v41 = vld [vmem:[%s16596_s13 + $0x7f0] sm:$0xf]  ;;  %v14847_v44 = vld [vmem:[%s16596_s13 + $0x7f4] sm:$0xf] }
 0x1d5   : > { %v11774_v45 = vld [vmem:[%s16596_s13 + $0xb8c] sm:$0xf0] }
 0x1d6   : > { %6994 = vmatpush.bf16.msra.mxu3 %v10797_v1  ;;  %6981 = vmatpush.bf16.msra.mxu2 %v10793_v2 }
 0x1d7   : > { %7007 = vmatpush.bf16.msra.mxu0 %v10801_v5  ;;  %7020 = vmatpush.bf16.msra.mxu1 %v10805_v6  ;;  %v13597_v5 = vor.u32 %v15421_v60, %v13596_v57  ;;  %v13605_v6 = vor.u32 %v15422_v62, %v13604_v61  ;;  %v15308_v57 = vld [vmem:[%s16596_s13 + $0x165c] sm:$0xf]  ;;  %v10833_v62 = vor.u32 %v14729_v48, %v10832_v46 }
 0x1d8   : > { %14386 = vmatmul.msk.bf16.vlgmr.msrb.gmra.mxu2 %vm6554_vm2, %v16674_v55  ;;  %14387 = vmatmul.msk.bf16.vlgmr.msrb.gmra.mxu3 %vm6554_vm2, %v16674_v55 }
 0x1d9   : > { %14388 = vmatmul.msk.bf16.vlgmr.msrb.gmra.mxu0 %vm6554_vm2, %v16674_v55  ;;  %14389 = vmatmul.msk.bf16.vlgmr.msrb.gmra.mxu1 %vm6554_vm2, %v16674_v55 }
 0x1da   : > { %7043 = vmatpush.bf16.msrb.mxu3 %v13585_v13  ;;  %7030 = vmatpush.bf16.msrb.mxu2 %v13581_v14  ;;  %v15190_v13 = vld [vmem:[%s16596_s13 + $0x12a8] sm:$0xf0]  ;;  %v12680_v14 = vld [vmem:[%s16596_s13 + $0xf18] sm:$0xf] }
 0x1db   : > { %7056 = vmatpush.bf16.msrb.mxu0 %v13589_v17  ;;  %7069 = vmatpush.bf16.msrb.mxu1 %v13593_v18  ;;  %v12682_v17 = vld [vmem:[%s16596_s13 + $0x12b4] sm:$0xf0]  ;;  %v1468_v18 = vperm.slane %v16986_v37, 0  ;;  %v12673_v20 = vor.u32 %v15190_v13, %v12672_v12 }
 0x1de   : > { %7044 = vmatpush.bf16.msrb.mxu3 %v12661_v25  ;;  %7031 = vmatpush.bf16.msrb.mxu2 %v12657_v26  ;;  %v12681_v25 = vor.u32 %v15191_v15, %v12680_v14  ;;  %v12685_v26 = vor.u32 %v15076_v16, %v12682_v17  ;;  %v15077_v15 = vld [vmem:[%s16596_s13 + $0xf24] sm:$0xf]  ;;  %v12690_v16 = vld [vmem:[%s16596_s13 + $0x12bc] sm:$0xf0] }
 0x1df   : > { %7057 = vmatpush.bf16.msrb.mxu0 %v12665_v29  ;;  %7070 = vmatpush.bf16.msrb.mxu1 %v12669_v30  ;;  %v11756_v29 = vld [vmem:[%s16596_s13 + $0x7e0] sm:$0xf] }
 0x1e2   : > { %7045 = vmatpush.bf16.msrb.mxu3 %v11737_v38  ;;  %7032 = vmatpush.bf16.msrb.mxu2 %v11733_v39  ;;  %v11753_v38 = vor.u32 %v14844_v21, %v11750_v22  ;;  %v11749_v39 = vor.u32 %v14959_v28, %v11748_v27  ;;  %v12688_v21 = vld [vmem:[%s16596_s13 + $0xf20] sm:$0xf]  ;;  %v15192_v22 = vld [vmem:[%s16596_s13 + $0x12b8] sm:$0xf0]  ;;  %v15078_v27 = vld [vmem:[%s16596_s13 + $0xf2c] sm:$0xf] }
 0x1e3   : > { %7058 = vmatpush.bf16.msrb.mxu0 %v11741_v42  ;;  %7071 = vmatpush.bf16.msrb.mxu1 %v11745_v43  ;;  %v11757_v42 = vor.u32 %v14960_v31, %v11756_v29  ;;  %v11761_v43 = vor.u32 %v14845_v32, %v11758_v33  ;;  %v12698_v28 = vld [vmem:[%s16596_s13 + $0x12c4] sm:$0xf0]  ;;  %v12693_v31 = vor.u32 %v15077_v15, %v12690_v16  ;;  %v14846_v33 = vld [vmem:[%s16596_s13 + $0x7ec] sm:$0xf] }
 0x1e4   : > { %v12689_v32 = vor.u32 %v15192_v22, %v12688_v21 }
 0x1e6   : > { %v6593_v1 = vpop.f32.mrf.mxu0  ;;  %v6606_v2 = vpop.f32.mrf.mxu1  ;;  %7046 = vmatpush.bf16.msrb.mxu3 %v10813_v52  ;;  %7033 = vmatpush.bf16.msrb.mxu2 %v10809_v53  ;;  %v1474_v52 = vperm.slane %v16986_v37, 6  ;;  %v1475_v53 = vperm.slane %v16986_v37, 7 }
 0x1e7   : > { %v6594_v9 = vadd.f32 %v6593_v1, %v1470_v50  ;;  %v6607_v10 = vadd.f32 %v6606_v2, %v1471_v51  ;;  %7059 = vmatpush.bf16.msrb.mxu0 %v10817_v58  ;;  %7072 = vmatpush.bf16.msrb.mxu1 %v10821_v59  ;;  %v10834_v50 = vld [vmem:[%s16596_s13 + $0x444] sm:$0xf0]  ;;  %v13614_v58 = vld [vmem:[%s16596_s13 + $0x19f4] sm:$0xf0]  ;;  %v13620_v1 = vld [vmem:[%s16596_s13 + $0x1660] sm:$0xf] }
 0x1e8   : > { %14390 = vmatmul.msk.bf16.vlgmr.msra.gmra.mxu2 %vm6554_vm2, %v16674_v55  ;;  %14391 = vmatmul.msk.bf16.vlgmr.msra.gmra.mxu3 %vm6554_vm2, %v16674_v55  ;;  %v13612_v59 = vld [vmem:[%s16596_s13 + $0x1658] sm:$0xf]  ;;  %v10837_v63 = vor.u32 %v14614_v49, %v10834_v50  ;;  %v15424_v2 = vld [vmem:[%s16596_s13 + $0x19f8] sm:$0xf0]  ;;  %v13617_v12 = vor.u32 %v15308_v57, %v13614_v58  ;;  %v17086_v49 = vld [vmem:[%s16983_s22 + $0x8] sm:$0xff] }
 0x1e9   : > { %14392 = vmatmul.msk.bf16.vlgmr.msra.gmra.mxu0 %vm6554_vm2, %v16674_v55  ;;  %14393 = vmatmul.msk.bf16.vlgmr.msra.gmra.mxu1 %vm6554_vm2, %v16674_v55  ;;  %15632 = vtanh.f32 %v6594_v9  ;;  %v13613_v13 = vor.u32 %v15423_v0, %v13612_v59  ;;  %v13621_v14 = vor.u32 %v15424_v2, %v13620_v1  ;;  %v10840_v57 = vld [vmem:[%s16596_s13 + $0xb0] sm:$0xf]  ;;  %v14730_v58 = vld [vmem:[%s16596_s13 + $0x448] sm:$0xf0]  ;;  %v10848_v59 = vld [vmem:[%s16596_s13 + $0xb8] sm:$0xf] }
 0x1ea   : > { %7095 = vmatpush.bf16.msra.mxu3 %v13601_v4  ;;  %7082 = vmatpush.bf16.msra.mxu2 %v13597_v5  ;;  %15634 = vtanh.f32 %v6607_v10  ;;  %v15309_v5 = vld [vmem:[%s16596_s13 + $0x1664] sm:$0xf]  ;;  %v1478_v1 = vperm.slane %v17086_v49, 2  ;;  %v1479_v2 = vperm.slane %v17086_v49, 3 }
 0x1eb   : > { %v6567_v23 = vpop.f32.mrf.mxu2  ;;  %v6580_v24 = vpop.f32.mrf.mxu3  ;;  %7108 = vmatpush.bf16.msra.mxu0 %v13605_v6  ;;  %7121 = vmatpush.bf16.msra.mxu1 %v13609_v11  ;;  %v13622_v6 = vld [vmem:[%s16596_s13 + $0x19fc] sm:$0xf0] }
 0x1ec   : > { %v6581_v30 = vadd.f32 %v6580_v24, %v1469_v3  ;;  %v6568_v34 = vadd.f32 %v6567_v23, %v1468_v18  ;;  %v12696_v23 = vld [vmem:[%s16596_s13 + $0xf28] sm:$0xf] }
 0x1ee   : > { %v6595_v35 = vpop.f32.mrf.mxu0  ;;  %v6608_v36 = vpop.f32.mrf.mxu1  ;;  %7096 = vmatpush.bf16.msra.mxu3 %v12677_v19  ;;  %7083 = vmatpush.bf16.msra.mxu2 %v12673_v20  ;;  %15636 = vtanh.f32 %v6581_v30  ;;  %v13625_v20 = vor.u32 %v15309_v5, %v13622_v6  ;;  %v1472_v30 = vperm.slane %v16986_v37, 4  ;;  %v15310_v5 = vld [vmem:[%s16596_s13 + $0x166c] sm:$0xf]  ;;  %v13630_v6 = vld [vmem:[%s16596_s13 + $0x1a04] sm:$0xf0] }
 0x1ef   : > { %7109 = vmatpush.bf16.msra.mxu0 %v12681_v25  ;;  %7122 = vmatpush.bf16.msra.mxu1 %v12685_v26  ;;  %v15633_v47 = vpop.eup %15632  ;;  %15638 = vtanh.f32 %v6568_v34  ;;  %v15193_v26 = vld [vmem:[%s16596_s13 + $0x12c0] sm:$0xf0]  ;;  %v11766_v34 = vld [vmem:[%s16596_s13 + $0xb84] sm:$0xf0] }
 0x1f0   : > { %v15635_v51 = vpop.eup %15634  ;;  %v10024_v3 = vrot.slane %v15633_v47, 4  ;;  %v12697_v36 = vor.u32 %v15193_v26, %v12696_v23  ;;  %v11769_v50 = vor.u32 %v14846_v33, %v11766_v34  ;;  %v12704_v33 = vld [vmem:[%s16596_s13 + $0xf30] sm:$0xf]  ;;  %v15194_v34 = vld [vmem:[%s16596_s13 + $0x12c8] sm:$0xf0] }
 0x1f1   : > { %v10025_v4 = vrot.slane %v15635_v51, 2 }
 0x1f2   : > { %7097 = vmatpush.bf16.msra.mxu3 %v11753_v38  ;;  %7084 = vmatpush.bf16.msra.mxu2 %v11749_v39  ;;  %v12701_v38 = vor.u32 %v15078_v27, %v12698_v28  ;;  %v11764_v39 = vld [vmem:[%s16596_s13 + $0x7e8] sm:$0xf]  ;;  %v15079_v27 = vld [vmem:[%s16596_s13 + $0xf34] sm:$0xf]  ;;  %v12706_v28 = vld [vmem:[%s16596_s13 + $0x12cc] sm:$0xf0] }
 0x1f3   : > { %v6569_v60 = vpop.f32.mrf.mxu2  ;;  %v6582_v61 = vpop.f32.mrf.mxu3  ;;  %7110 = vmatpush.bf16.msra.mxu0 %v11757_v42  ;;  %7123 = vmatpush.bf16.msra.mxu1 %v11761_v43  ;;  %v10199_v24 = vsel %vm10198_vm3, %v10024_v3, %v10025_v4  ;;  %v14962_v43 = vld [vmem:[%s16596_s13 + $0xb88] sm:$0xf0]  ;;  %v11765_v51 = vor.u32 %v14961_v40, %v11764_v39  ;;  %v10841_v4 = vor.u32 %v14730_v58, %v10840_v57  ;;  %v15080_v39 = vld [vmem:[%s16596_s13 + $0xf3c] sm:$0xf]  ;;  %v12714_v40 = vld [vmem:[%s16596_s13 + $0x12d4] sm:$0xf0] }
 0x1f4   : > { %v15637_v7 = vpop.eup %15636  ;;  %v14731_v61 = vld [vmem:[%s16596_s13 + $0x450] sm:$0xf0]  ;;  %v14964_v57 = vld [vmem:[%s16596_s13 + $0xb98] sm:$0xf0]  ;;  %v14849_v58 = vld [vmem:[%s16596_s13 + $0x804] sm:$0xf] }
 0x1f5   : > { %v10023_v9 = vrot.slane %v15637_v7, 6  ;;  %v15639_v17 = vpop.eup %15638  ;;  %v13628_v7 = vld [vmem:[%s16596_s13 + $0x1668] sm:$0xf] }
 0x1f6   : > { %v6645_v10 = vpop.f32.mrf.mxu0  ;;  %v6658_v11 = vpop.f32.mrf.mxu1  ;;  %7098 = vmatpush.bf16.msra.mxu3 %v10829_v54  ;;  %7085 = vmatpush.bf16.msra.mxu2 %v10825_v56  ;;  %v11773_v54 = vor.u32 %v14962_v43, %v11772_v41  ;;  %v11777_v56 = vor.u32 %v14847_v44, %v11774_v45  ;;  %v12709_v43 = vor.u32 %v15079_v27, %v12706_v28  ;;  %v14848_v45 = vld [vmem:[%s16596_s13 + $0x7fc] sm:$0xf] }
 0x1f7   : > { %v6646_v18 = vadd.f32 %v6645_v10, %v1474_v52  ;;  %v6659_v19 = vadd.f32 %v6658_v11, %v1475_v53  ;;  %7111 = vmatpush.bf16.msra.mxu0 %v10833_v62  ;;  %7124 = vmatpush.bf16.msra.mxu1 %v10837_v63  ;;  %v10197_v25 = vsel %vm10196_vm4, %v15639_v17, %v10023_v9  ;;  %v14615_v52 = vld [vmem:[%s16596_s13 + $0xb4] sm:$0xf]  ;;  %v10842_v53 = vld [vmem:[%s16596_s13 + $0x44c] sm:$0xf0]  ;;  %v14616_v62 = vld [vmem:[%s16596_s13 + $0xbc] sm:$0xf] }
 0x1f8   : > { %14394 = vmatmul.msk.bf16.vlgmr.msrb.gmra.mxu2 %vm6554_vm2, %v16674_v55  ;;  %14395 = vmatmul.msk.bf16.vlgmr.msrb.gmra.mxu3 %vm6554_vm2, %v16674_v55  ;;  %v10201_v29 = vsel %vm10200_vm5, %v10197_v25, %v10199_v24  ;;  %v10850_v63 = vld [vmem:[%s16596_s13 + $0x454] sm:$0xf0]  ;;  %v10845_v3 = vor.u32 %v14615_v52, %v10842_v53  ;;  %v10849_v10 = vor.u32 %v14731_v61, %v10848_v59  ;;  %v15311_v17 = vld [vmem:[%s16596_s13 + $0x1674] sm:$0xf]  ;;  %v11790_v59 = vld [vmem:[%s16596_s13 + $0xb9c] sm:$0xf0] }
 0x1f9   : > { %14396 = vmatmul.msk.bf16.vlgmr.msrb.gmra.mxu0 %vm6554_vm2, %v16674_v55  ;;  %14397 = vmatmul.msk.bf16.vlgmr.msrb.gmra.mxu1 %vm6554_vm2, %v16674_v55  ;;  %10430 = vst [vmem:[%s17074_s16] sm:$0xff] %v10201_v29  ;;  %15640 = vtanh.f32 %v6646_v18  ;;  %v10853_v11 = vor.u32 %v14616_v62, %v10850_v63  ;;  %v13638_v18 = vld [vmem:[%s16596_s13 + $0x1a0c] sm:$0xf0]  ;;  %v13633_v24 = vor.u32 %v15310_v5, %v13630_v6  ;;  %v11780_v52 = vld [vmem:[%s16596_s13 + $0x7f8] sm:$0xf]  ;;  %v14963_v53 = vld [vmem:[%s16596_s13 + $0xb90] sm:$0xf0] }
 0x1fa   : > { %7147 = vmatpush.bf16.msrb.mxu3 %v13617_v12  ;;  %7134 = vmatpush.bf16.msrb.mxu2 %v13613_v13  ;;  %15642 = vtanh.f32 %v6659_v19  ;;  %v15425_v12 = vld [vmem:[%s16596_s13 + $0x1a00] sm:$0xf0]  ;;  %v13636_v13 = vld [vmem:[%s16596_s13 + $0x1670] sm:$0xf]  ;;  %v12705_v44 = vor.u32 %v15194_v34, %v12704_v33  ;;  %v10856_v5 = vld [vmem:[%s16596_s13 + $0xc0] sm:$0xf] }
 0x1fb   : > { %v6619_v37 = vpop.f32.mrf.mxu2  ;;  %v6632_v35 = vpop.f32.mrf.mxu3  ;;  %7160 = vmatpush.bf16.msrb.mxu0 %v13621_v14  ;;  %7173 = vmatpush.bf16.msrb.mxu1 %v13625_v20  ;;  %v15426_v14 = vld [vmem:[%s16596_s13 + $0x1a08] sm:$0xf0]  ;;  %v1477_v20 = vperm.slane %v17086_v49, 1  ;;  %v13629_v25 = vor.u32 %v15425_v12, %v13628_v7  ;;  %v14732_v6 = vld [vmem:[%s16596_s13 + $0x458] sm:$0xf0] }
 0x1fc   : > { %v6633_v42 = vadd.f32 %v6632_v35, %v1473_v8  ;;  %v6620_v46 = vadd.f32 %v6619_v37, %v1472_v30  ;;  %v13637_v26 = vor.u32 %v15426_v14, %v13636_v13  ;;  %v12712_v37 = vld [vmem:[%s16596_s13 + $0xf38] sm:$0xf]  ;;  %v10864_v7 = vld [vmem:[%s16596_s13 + $0xc8] sm:$0xf]  ;;  %v1482_v13 = vperm.slane %v17086_v49, 6 }
 0x1fd   : > { %v1483_v14 = vperm.slane %v17086_v49, 7 }
 0x1fe   : > { %v6647_v47 = vpop.f32.mrf.mxu0  ;;  %v6660_v48 = vpop.f32.mrf.mxu1  ;;  %7148 = vmatpush.bf16.msrb.mxu3 %v12693_v31  ;;  %7135 = vmatpush.bf16.msrb.mxu2 %v12689_v32  ;;  %15644 = vtanh.f32 %v6633_v42  ;;  %v13641_v32 = vor.u32 %v15311_v17, %v13638_v18  ;;  %v1476_v42 = vperm.slane %v17086_v49, 0  ;;  %v15312_v17 = vld [vmem:[%s16596_s13 + $0x167c] sm:$0xf]  ;;  %v13646_v18 = vld [vmem:[%s16596_s13 + $0x1a14] sm:$0xf0] }
 0x1ff   : > { %7161 = vmatpush.bf16.msrb.mxu0 %v12697_v36  ;;  %7174 = vmatpush.bf16.msrb.mxu1 %v12701_v38  ;;  %v15641_v60 = vpop.eup %15640  ;;  %15646 = vtanh.f32 %v6620_v46  ;;  %v15195_v38 = vld [vmem:[%s16596_s13 + $0x12d0] sm:$0xf0]  ;;  %v11782_v46 = vld [vmem:[%s16596_s13 + $0xb94] sm:$0xf0] }
 0x200   : > { %v15643_v0 = vpop.eup %15642  ;;  %v10027_v15 = vrot.slane %v15641_v60, 4  ;;  %v11785_v63 = vor.u32 %v14848_v45, %v11782_v46  ;;  %v12720_v45 = vld [vmem:[%s16596_s13 + $0xf40] sm:$0xf]  ;;  %v15196_v46 = vld [vmem:[%s16596_s13 + $0x12d8] sm:$0xf0] }
 0x201   : > { %v10028_v16 = vrot.slane %v15643_v0, 2  ;;  %v11781_v0 = vor.u32 %v14963_v53, %v11780_v52  ;;  %v15082_v52 = vld [vmem:[%s16596_s13 + $0xf4c] sm:$0xf]  ;;  %v12730_v53 = vld [vmem:[%s16596_s13 + $0x12e4] sm:$0xf0] }
 0x202   : > { %7149 = vmatpush.bf16.msrb.mxu3 %v11769_v50  ;;  %7136 = vmatpush.bf16.msrb.mxu2 %v11765_v51  ;;  %v12713_v50 = vor.u32 %v15195_v38, %v12712_v37  ;;  %v12717_v51 = vor.u32 %v15080_v39, %v12714_v40  ;;  %v15081_v39 = vld [vmem:[%s16596_s13 + $0xf44] sm:$0xf]  ;;  %v12722_v40 = vld [vmem:[%s16596_s13 + $0x12dc] sm:$0xf0] }
 0x203   : > { %v6621_v8 = vpop.f32.mrf.mxu2  ;;  %v6634_v9 = vpop.f32.mrf.mxu3  ;;  %7162 = vmatpush.bf16.msrb.mxu0 %v11773_v54  ;;  %7175 = vmatpush.bf16.msrb.mxu1 %v11777_v56  ;;  %v10203_v35 = vsel %vm10198_vm3, %v10027_v15, %v10028_v16  ;;  %v11788_v54 = vld [vmem:[%s16596_s13 + $0x800] sm:$0xf]  ;;  %v10857_v16 = vor.u32 %v14732_v6, %v10856_v5  ;;  %v14851_v5 = vld [vmem:[%s16596_s13 + $0x814] sm:$0xf]  ;;  %v11806_v6 = vld [vmem:[%s16596_s13 + $0xbac] sm:$0xf0] }
 0x204   : > { %v15645_v19 = vpop.eup %15644  ;;  %v14733_v9 = vld [vmem:[%s16596_s13 + $0x460] sm:$0xf0] }
 0x205   : > { %v10026_v21 = vrot.slane %v15645_v19, 6  ;;  %v15647_v29 = vpop.eup %15646  ;;  %v13644_v19 = vld [vmem:[%s16596_s13 + $0x1678] sm:$0xf] }
 0x206   : > { %v6697_v22 = vpop.f32.mrf.mxu0  ;;  %v6710_v23 = vpop.f32.mrf.mxu1  ;;  %7150 = vmatpush.bf16.msrb.mxu3 %v10845_v3  ;;  %7137 = vmatpush.bf16.msrb.mxu2 %v10841_v4  ;;  %v11789_v3 = vor.u32 %v14964_v57, %v11788_v54  ;;  %v11793_v4 = vor.u32 %v14849_v58, %v11790_v59  ;;  %v12725_v57 = vor.u32 %v15081_v39, %v12722_v40  ;;  %v14850_v59 = vld [vmem:[%s16596_s13 + $0x80c] sm:$0xf] }
 0x207   : > { %v6698_v30 = vadd.f32 %v6697_v22, %v1478_v1  ;;  %v6711_v31 = vadd.f32 %v6710_v23, %v1479_v2  ;;  %7163 = vmatpush.bf16.msrb.mxu0 %v10849_v10  ;;  %7176 = vmatpush.bf16.msrb.mxu1 %v10853_v11  ;;  %v10202_v36 = vsel %vm10196_vm4, %v15647_v29, %v10026_v21  ;;  %v14617_v1 = vld [vmem:[%s16596_s13 + $0xc4] sm:$0xf]  ;;  %v10858_v2 = vld [vmem:[%s16596_s13 + $0x45c] sm:$0xf0]  ;;  %v14618_v10 = vld [vmem:[%s16596_s13 + $0xcc] sm:$0xf] }
 0x208   : > { %14398 = vmatmul.msk.bf16.vlgmr.msra.gmra.mxu2 %vm6554_vm2, %v16674_v55  ;;  %14399 = vmatmul.msk.bf16.vlgmr.msra.gmra.mxu3 %vm6554_vm2, %v16674_v55  ;;  %v10204_v41 = vsel %vm10200_vm5, %v10202_v36, %v10203_v35  ;;  %v10866_v11 = vld [vmem:[%s16596_s13 + $0x464] sm:$0xf0]  ;;  %v10861_v15 = vor.u32 %v14617_v1, %v10858_v2  ;;  %v10865_v22 = vor.u32 %v14733_v9, %v10864_v7  ;;  %v15313_v29 = vld [vmem:[%s16596_s13 + $0x1684] sm:$0xf]  ;;  %v11804_v2 = vld [vmem:[%s16596_s13 + $0x810] sm:$0xf] }
 0x209   : > { %14400 = vmatmul.msk.bf16.vlgmr.msra.gmra.mxu0 %vm6554_vm2, %v16674_v55  ;;  %14401 = vmatmul.msk.bf16.vlgmr.msra.gmra.mxu1 %vm6554_vm2, %v16674_v55  ;;  %10431 = vst [vmem:[%s17074_s16 + $0x8] sm:$0xff] %v10204_v41  ;;  %15648 = vtanh.f32 %v6698_v30  ;;  %v10869_v23 = vor.u32 %v14618_v10, %v10866_v11  ;;  %v13654_v30 = vld [vmem:[%s16596_s13 + $0x1a1c] sm:$0xf0]  ;;  %v13649_v35 = vor.u32 %v15312_v17, %v13646_v18  ;;  %v14965_v1 = vld [vmem:[%s16596_s13 + $0xba0] sm:$0xf0]  ;;  %v17185_v10 = vld [vmem:[%s16983_s22 + $0x10] sm:$0xff] }
 0x20a   : > { %7199 = vmatpush.bf16.msra.mxu3 %v13633_v24  ;;  %7186 = vmatpush.bf16.msra.mxu2 %v13629_v25  ;;  %15650 = vtanh.f32 %v6711_v31  ;;  %v15427_v24 = vld [vmem:[%s16596_s13 + $0x1a10] sm:$0xf0]  ;;  %v13652_v25 = vld [vmem:[%s16596_s13 + $0x1680] sm:$0xf]  ;;  %v12721_v58 = vor.u32 %v15196_v46, %v12720_v45  ;;  %v10872_v17 = vld [vmem:[%s16596_s13 + $0xd0] sm:$0xf] }
 0x20b   : > { %v6671_v47 = vpop.f32.mrf.mxu2  ;;  %v6684_v48 = vpop.f32.mrf.mxu3  ;;  %7212 = vmatpush.bf16.msra.mxu0 %v13637_v26  ;;  %7225 = vmatpush.bf16.msra.mxu1 %v13641_v32  ;;  %v15428_v26 = vld [vmem:[%s16596_s13 + $0x1a18] sm:$0xf0]  ;;  %v1481_v32 = vperm.slane %v17086_v49, 5  ;;  %v13645_v36 = vor.u32 %v15427_v24, %v13644_v19  ;;  %v14734_v18 = vld [vmem:[%s16596_s13 + $0x468] sm:$0xf0] }
 0x20c   : > { %v6685_v56 = vadd.f32 %v6684_v48, %v1477_v20  ;;  %v6672_v60 = vadd.f32 %v6671_v47, %v1476_v42  ;;  %v13653_v38 = vor.u32 %v15428_v26, %v13652_v25  ;;  %v12728_v47 = vld [vmem:[%s16596_s13 + $0xf48] sm:$0xf]  ;;  %v10880_v19 = vld [vmem:[%s16596_s13 + $0xd8] sm:$0xf]  ;;  %v1486_v25 = vperm.slane %v17185_v10, 2 }
 0x20d   : > { %v1487_v26 = vperm.slane %v17185_v10, 3 }
 0x20e   : > { %v6699_v61 = vpop.f32.mrf.mxu0  ;;  %v6712_v62 = vpop.f32.mrf.mxu1  ;;  %7200 = vmatpush.bf16.msra.mxu3 %v12709_v43  ;;  %7187 = vmatpush.bf16.msra.mxu2 %v12705_v44  ;;  %15652 = vtanh.f32 %v6685_v56  ;;  %v13657_v44 = vor.u32 %v15313_v29, %v13654_v30  ;;  %v1480_v56 = vperm.slane %v17086_v49, 4  ;;  %v15314_v29 = vld [vmem:[%s16596_s13 + $0x168c] sm:$0xf]  ;;  %v13662_v30 = vld [vmem:[%s16596_s13 + $0x1a24] sm:$0xf0] }
 0x20f   : > { %7213 = vmatpush.bf16.msra.mxu0 %v12713_v50  ;;  %7226 = vmatpush.bf16.msra.mxu1 %v12717_v51  ;;  %v15649_v8 = vpop.eup %15648  ;;  %15654 = vtanh.f32 %v6672_v60  ;;  %v15197_v51 = vld [vmem:[%s16596_s13 + $0x12e0] sm:$0xf0]  ;;  %v11798_v60 = vld [vmem:[%s16596_s13 + $0xba4] sm:$0xf0] }
 0x210   : > { %v15651_v12 = vpop.eup %15650  ;;  %v10030_v27 = vrot.slane %v15649_v8, 4  ;;  %v12729_v49 = vor.u32 %v15197_v51, %v12728_v47  ;;  %v11801_v11 = vor.u32 %v14850_v59, %v11798_v60  ;;  %v12736_v59 = vld [vmem:[%s16596_s13 + $0xf50] sm:$0xf]  ;;  %v15198_v60 = vld [vmem:[%s16596_s13 + $0x12e8] sm:$0xf0] }
 0x211   : > { %v10031_v28 = vrot.slane %v15651_v12, 2 }
 0x212   : > { %7201 = vmatpush.bf16.msra.mxu3 %v11785_v63  ;;  %7188 = vmatpush.bf16.msra.mxu2 %v11781_v0  ;;  %v12733_v63 = vor.u32 %v15082_v52, %v12730_v53  ;;  %v11796_v0 = vld [vmem:[%s16596_s13 + $0x808] sm:$0xf]  ;;  %v15083_v52 = vld [vmem:[%s16596_s13 + $0xf54] sm:$0xf]  ;;  %v12738_v53 = vld [vmem:[%s16596_s13 + $0x12ec] sm:$0xf0] }
 0x213   : > { %v6673_v20 = vpop.f32.mrf.mxu2  ;;  %v6686_v21 = vpop.f32.mrf.mxu3  ;;  %7214 = vmatpush.bf16.msra.mxu0 %v11789_v3  ;;  %7227 = vmatpush.bf16.msra.mxu1 %v11793_v4  ;;  %v10206_v48 = vsel %vm10198_vm3, %v10030_v27, %v10031_v28  ;;  %v14966_v4 = vld [vmem:[%s16596_s13 + $0xba8] sm:$0xf0]  ;;  %v11797_v12 = vor.u32 %v14965_v1, %v11796_v0  ;;  %v10873_v28 = vor.u32 %v14734_v18, %v10872_v17  ;;  %v15084_v0 = vld [vmem:[%s16596_s13 + $0xf5c] sm:$0xf]  ;;  %v12746_v1 = vld [vmem:[%s16596_s13 + $0x12f4] sm:$0xf0] }
 0x214   : > { %v15653_v31 = vpop.eup %15652  ;;  %v14735_v21 = vld [vmem:[%s16596_s13 + $0x470] sm:$0xf0]  ;;  %v14968_v17 = vld [vmem:[%s16596_s13 + $0xbb8] sm:$0xf0]  ;;  %v14853_v18 = vld [vmem:[%s16596_s13 + $0x824] sm:$0xf] }
 0x215   : > { %v10029_v33 = vrot.slane %v15653_v31, 6  ;;  %v15655_v41 = vpop.eup %15654  ;;  %v13660_v31 = vld [vmem:[%s16596_s13 + $0x1688] sm:$0xf] }
 0x216   : > { %v6749_v34 = vpop.f32.mrf.mxu0  ;;  %v6762_v37 = vpop.f32.mrf.mxu1  ;;  %7202 = vmatpush.bf16.msra.mxu3 %v10861_v15  ;;  %7189 = vmatpush.bf16.msra.mxu2 %v10857_v16  ;;  %v11805_v15 = vor.u32 %v14966_v4, %v11804_v2  ;;  %v11809_v16 = vor.u32 %v14851_v5, %v11806_v6  ;;  %v12741_v4 = vor.u32 %v15083_v52, %v12738_v53  ;;  %v14852_v6 = vld [vmem:[%s16596_s13 + $0x81c] sm:$0xf] }
 0x217   : > { %v6750_v42 = vadd.f32 %v6749_v34, %v1482_v13  ;;  %v6763_v43 = vadd.f32 %v6762_v37, %v1483_v14  ;;  %7215 = vmatpush.bf16.msra.mxu0 %v10865_v22  ;;  %7228 = vmatpush.bf16.msra.mxu1 %v10869_v23  ;;  %v10205_v50 = vsel %vm10196_vm4, %v15655_v41, %v10029_v33  ;;  %v14619_v13 = vld [vmem:[%s16596_s13 + $0xd4] sm:$0xf]  ;;  %v10874_v14 = vld [vmem:[%s16596_s13 + $0x46c] sm:$0xf0]  ;;  %v14620_v22 = vld [vmem:[%s16596_s13 + $0xdc] sm:$0xf] }
 0x218   : > { %14402 = vmatmul.msk.bf16.vlgmr.msrb.gmra.mxu2 %vm6554_vm2, %v16674_v55  ;;  %14403 = vmatmul.msk.bf16.vlgmr.msrb.gmra.mxu3 %vm6554_vm2, %v16674_v55  ;;  %v10207_v54 = vsel %vm10200_vm5, %v10205_v50, %v10206_v48  ;;  %v10882_v23 = vld [vmem:[%s16596_s13 + $0x474] sm:$0xf0]  ;;  %v10877_v27 = vor.u32 %v14619_v13, %v10874_v14  ;;  %v10881_v34 = vor.u32 %v14735_v21, %v10880_v19  ;;  %v15315_v41 = vld [vmem:[%s16596_s13 + $0x1694] sm:$0xf]  ;;  %v11822_v19 = vld [vmem:[%s16596_s13 + $0xbbc] sm:$0xf0] }
 0x219   : > { %14404 = vmatmul.msk.bf16.vlgmr.msrb.gmra.mxu0 %vm6554_vm2, %v16674_v55  ;;  %14405 = vmatmul.msk.bf16.vlgmr.msrb.gmra.mxu1 %vm6554_vm2, %v16674_v55  ;;  %10432 = vst [vmem:[%s17074_s16 + $0x10] sm:$0xff] %v10207_v54  ;;  %15656 = vtanh.f32 %v6750_v42  ;;  %v10885_v37 = vor.u32 %v14620_v22, %v10882_v23  ;;  %v13670_v42 = vld [vmem:[%s16596_s13 + $0x1a2c] sm:$0xf0]  ;;  %v13665_v48 = vor.u32 %v15314_v29, %v13662_v30  ;;  %v11812_v13 = vld [vmem:[%s16596_s13 + $0x818] sm:$0xf] }
 0x21a   : > { %7251 = vmatpush.bf16.msrb.mxu3 %v13649_v35  ;;  %7238 = vmatpush.bf16.msrb.mxu2 %v13645_v36  ;;  %15658 = vtanh.f32 %v6763_v43  ;;  %v15429_v35 = vld [vmem:[%s16596_s13 + $0x1a20] sm:$0xf0]  ;;  %v13668_v36 = vld [vmem:[%s16596_s13 + $0x1690] sm:$0xf]  ;;  %v12737_v5 = vor.u32 %v15198_v60, %v12736_v59  ;;  %v14967_v14 = vld [vmem:[%s16596_s13 + $0xbb0] sm:$0xf0] }
 0x21b   : > { %v6723_v61 = vpop.f32.mrf.mxu2  ;;  %v6736_v62 = vpop.f32.mrf.mxu3  ;;  %7264 = vmatpush.bf16.msrb.mxu0 %v13653_v38  ;;  %7277 = vmatpush.bf16.msrb.mxu1 %v13657_v44  ;;  %v15430_v38 = vld [vmem:[%s16596_s13 + $0x1a28] sm:$0xf0]  ;;  %v1485_v44 = vperm.slane %v17185_v10, 1  ;;  %v13661_v50 = vor.u32 %v15429_v35, %v13660_v31  ;;  %v10888_v29 = vld [vmem:[%s16596_s13 + $0xe0] sm:$0xf] }
 0x21c   : > { %v6737_v3 = vadd.f32 %v6736_v62, %v1481_v32  ;;  %v6724_v7 = vadd.f32 %v6723_v61, %v1480_v56  ;;  %v13669_v51 = vor.u32 %v15430_v38, %v13668_v36  ;;  %v12744_v61 = vld [vmem:[%s16596_s13 + $0xf58] sm:$0xf]  ;;  %v14736_v30 = vld [vmem:[%s16596_s13 + $0x478] sm:$0xf0]  ;;  %v10896_v31 = vld [vmem:[%s16596_s13 + $0xe8] sm:$0xf] }
 0x21d   : > { %v1490_v36 = vperm.slane %v17185_v10, 6  ;;  %v1491_v38 = vperm.slane %v17185_v10, 7 }
 0x21e   : > { %v6751_v8 = vpop.f32.mrf.mxu0  ;;  %v6764_v9 = vpop.f32.mrf.mxu1  ;;  %7252 = vmatpush.bf16.msrb.mxu3 %v12725_v57  ;;  %7239 = vmatpush.bf16.msrb.mxu2 %v12721_v58  ;;  %15660 = vtanh.f32 %v6737_v3  ;;  %v13673_v58 = vor.u32 %v15315_v41, %v13670_v42  ;;  %v1484_v3 = vperm.slane %v17185_v10, 0  ;;  %v15316_v41 = vld [vmem:[%s16596_s13 + $0x169c] sm:$0xf]  ;;  %v13678_v42 = vld [vmem:[%s16596_s13 + $0x1a34] sm:$0xf0] }
 0x21f   : > { %7265 = vmatpush.bf16.msrb.mxu0 %v12729_v49  ;;  %7278 = vmatpush.bf16.msrb.mxu1 %v12733_v63  ;;  %v15657_v20 = vpop.eup %15656  ;;  %15662 = vtanh.f32 %v6724_v7  ;;  %v15199_v63 = vld [vmem:[%s16596_s13 + $0x12f0] sm:$0xf0]  ;;  %v11814_v7 = vld [vmem:[%s16596_s13 + $0xbb4] sm:$0xf0] }
 0x220   : > { %v15659_v24 = vpop.eup %15658  ;;  %v10033_v39 = vrot.slane %v15657_v20, 4  ;;  %v11817_v23 = vor.u32 %v14852_v6, %v11814_v7  ;;  %v12752_v6 = vld [vmem:[%s16596_s13 + $0xf60] sm:$0xf]  ;;  %v15200_v7 = vld [vmem:[%s16596_s13 + $0x12f8] sm:$0xf0] }
 0x221   : > { %v10034_v40 = vrot.slane %v15659_v24, 2  ;;  %v11813_v24 = vor.u32 %v14967_v14, %v11812_v13  ;;  %v15086_v13 = vld [vmem:[%s16596_s13 + $0xf6c] sm:$0xf]  ;;  %v12762_v14 = vld [vmem:[%s16596_s13 + $0x1304] sm:$0xf0] }
 0x222   : > { %7253 = vmatpush.bf16.msrb.mxu3 %v11801_v11  ;;  %7240 = vmatpush.bf16.msrb.mxu2 %v11797_v12  ;;  %v12745_v11 = vor.u32 %v15199_v63, %v12744_v61  ;;  %v12749_v12 = vor.u32 %v15084_v0, %v12746_v1  ;;  %v15085_v0 = vld [vmem:[%s16596_s13 + $0xf64] sm:$0xf]  ;;  %v12754_v1 = vld [vmem:[%s16596_s13 + $0x12fc] sm:$0xf0] }
 0x223   : > { %v6725_v32 = vpop.f32.mrf.mxu2  ;;  %v6738_v33 = vpop.f32.mrf.mxu3  ;;  %7266 = vmatpush.bf16.msrb.mxu0 %v11805_v15  ;;  %7279 = vmatpush.bf16.msrb.mxu1 %v11809_v16  ;;  %v10209_v62 = vsel %vm10198_vm3, %v10033_v39, %v10034_v40  ;;  %v11820_v15 = vld [vmem:[%s16596_s13 + $0x820] sm:$0xf]  ;;  %v10889_v40 = vor.u32 %v14736_v30, %v10888_v29  ;;  %v14855_v29 = vld [vmem:[%s16596_s13 + $0x834] sm:$0xf]  ;;  %v11838_v30 = vld [vmem:[%s16596_s13 + $0xbcc] sm:$0xf0] }
 0x224   : > { %v15661_v43 = vpop.eup %15660  ;;  %v14737_v33 = vld [vmem:[%s16596_s13 + $0x480] sm:$0xf0] }
 0x225   : > { %v10032_v45 = vrot.slane %v15661_v43, 6  ;;  %v15663_v54 = vpop.eup %15662  ;;  %v13676_v43 = vld [vmem:[%s16596_s13 + $0x1698] sm:$0xf] }
 0x226   : > { %v6801_v46 = vpop.f32.mrf.mxu0  ;;  %v6814_v47 = vpop.f32.mrf.mxu1  ;;  %7254 = vmatpush.bf16.msrb.mxu3 %v10877_v27  ;;  %7241 = vmatpush.bf16.msrb.mxu2 %v10873_v28  ;;  %v11821_v27 = vor.u32 %v14968_v17, %v11820_v15  ;;  %v11825_v28 = vor.u32 %v14853_v18, %v11822_v19  ;;  %v12757_v17 = vor.u32 %v15085_v0, %v12754_v1  ;;  %v14854_v19 = vld [vmem:[%s16596_s13 + $0x82c] sm:$0xf] }
 0x227   : > { %v6802_v56 = vadd.f32 %v6801_v46, %v1486_v25  ;;  %v6815_v57 = vadd.f32 %v6814_v47, %v1487_v26  ;;  %7267 = vmatpush.bf16.msrb.mxu0 %v10881_v34  ;;  %7280 = vmatpush.bf16.msrb.mxu1 %v10885_v37  ;;  %v10208_v49 = vsel %vm10196_vm4, %v15663_v54, %v10032_v45  ;;  %v14621_v25 = vld [vmem:[%s16596_s13 + $0xe4] sm:$0xf]  ;;  %v10890_v26 = vld [vmem:[%s16596_s13 + $0x47c] sm:$0xf0]  ;;  %v14622_v34 = vld [vmem:[%s16596_s13 + $0xec] sm:$0xf] }
 0x228   : > { %14406 = vmatmul.msk.bf16.vlgmr.msra.gmra.mxu2 %vm6554_vm2, %v16674_v55  ;;  %14407 = vmatmul.msk.bf16.vlgmr.msra.gmra.mxu3 %vm6554_vm2, %v16674_v55  ;;  %v10210_v2 = vsel %vm10200_vm5, %v10208_v49, %v10209_v62  ;;  %v10898_v37 = vld [vmem:[%s16596_s13 + $0x484] sm:$0xf0]  ;;  %v10893_v39 = vor.u32 %v14621_v25, %v10890_v26  ;;  %v10897_v46 = vor.u32 %v14737_v33, %v10896_v31  ;;  %v15317_v54 = vld [vmem:[%s16596_s13 + $0x16a4] sm:$0xf]  ;;  %v11836_v26 = vld [vmem:[%s16596_s13 + $0x830] sm:$0xf] }
 0x229   : > { %14408 = vmatmul.msk.bf16.vlgmr.msra.gmra.mxu0 %vm6554_vm2, %v16674_v55  ;;  %14409 = vmatmul.msk.bf16.vlgmr.msra.gmra.mxu1 %vm6554_vm2, %v16674_v55  ;;  %10433 = vst [vmem:[%s17074_s16 + $0x18] sm:$0xff] %v10210_v2  ;;  %15664 = vtanh.f32 %v6802_v56  ;;  %v10901_v47 = vor.u32 %v14622_v34, %v10898_v37  ;;  %v13686_v56 = vld [vmem:[%s16596_s13 + $0x1a3c] sm:$0xf0]  ;;  %v13681_v62 = vor.u32 %v15316_v41, %v13678_v42  ;;  %v14969_v25 = vld [vmem:[%s16596_s13 + $0xbc0] sm:$0xf0] }
 0x22a   : > { %7303 = vmatpush.bf16.msra.mxu3 %v13665_v48  ;;  %7290 = vmatpush.bf16.msra.mxu2 %v13661_v50  ;;  %15666 = vtanh.f32 %v6815_v57  ;;  %v15431_v48 = vld [vmem:[%s16596_s13 + $0x1a30] sm:$0xf0]  ;;  %v13684_v50 = vld [vmem:[%s16596_s13 + $0x16a0] sm:$0xf]  ;;  %v12753_v18 = vor.u32 %v15200_v7, %v12752_v6  ;;  %v10904_v41 = vld [vmem:[%s16596_s13 + $0xf0] sm:$0xf] }
 0x22b   : > { %v6775_v8 = vpop.f32.mrf.mxu2  ;;  %v6788_v9 = vpop.f32.mrf.mxu3  ;;  %7316 = vmatpush.bf16.msra.mxu0 %v13669_v51  ;;  %7329 = vmatpush.bf16.msra.mxu1 %v13673_v58  ;;  %v15432_v51 = vld [vmem:[%s16596_s13 + $0x1a38] sm:$0xf0]  ;;  %v1489_v58 = vperm.slane %v17185_v10, 5  ;;  %v13677_v49 = vor.u32 %v15431_v48, %v13676_v43  ;;  %v14738_v42 = vld [vmem:[%s16596_s13 + $0x488] sm:$0xf0] }
 0x22c   : > { %v6789_v16 = vadd.f32 %v6788_v9, %v1485_v44  ;;  %v6776_v20 = vadd.f32 %v6775_v8, %v1484_v3  ;;  %v13685_v63 = vor.u32 %v15432_v51, %v13684_v50  ;;  %v12760_v8 = vld [vmem:[%s16596_s13 + $0xf68] sm:$0xf]  ;;  %v17284_v34 = vld [vmem:[%s16983_s22 + $0x18] sm:$0xff] }
 0x22d   : > { %v10912_v43 = vld [vmem:[%s16596_s13 + $0xf8] sm:$0xf]  ;;  %v1494_v50 = vperm.slane %v17284_v34, 2  ;;  %v1495_v51 = vperm.slane %v17284_v34, 3 }
 0x22e   : > { %v6803_v21 = vpop.f32.mrf.mxu0  ;;  %v6816_v22 = vpop.f32.mrf.mxu1  ;;  %7304 = vmatpush.bf16.msra.mxu3 %v12741_v4  ;;  %7291 = vmatpush.bf16.msra.mxu2 %v12737_v5  ;;  %15668 = vtanh.f32 %v6789_v16  ;;  %v13689_v5 = vor.u32 %v15317_v54, %v13686_v56  ;;  %v1488_v16 = vperm.slane %v17185_v10, 4  ;;  %v15318_v54 = vld [vmem:[%s16596_s13 + $0x16ac] sm:$0xf]  ;;  %v13694_v56 = vld [vmem:[%s16596_s13 + $0x1a44] sm:$0xf0] }
 0x22f   : > { %7317 = vmatpush.bf16.msra.mxu0 %v12745_v11  ;;  %7330 = vmatpush.bf16.msra.mxu1 %v12749_v12  ;;  %v15665_v32 = vpop.eup %15664  ;;  %15670 = vtanh.f32 %v6776_v20  ;;  %v15201_v12 = vld [vmem:[%s16596_s13 + $0x1300] sm:$0xf0]  ;;  %v11830_v20 = vld [vmem:[%s16596_s13 + $0xbc4] sm:$0xf0] }
 0x230   : > { %v15667_v35 = vpop.eup %15666  ;;  %v10036_v52 = vrot.slane %v15665_v32, 4  ;;  %v12761_v10 = vor.u32 %v15201_v12, %v12760_v8  ;;  %v11833_v37 = vor.u32 %v14854_v19, %v11830_v20  ;;  %v12768_v19 = vld [vmem:[%s16596_s13 + $0xf70] sm:$0xf]  ;;  %v15202_v20 = vld [vmem:[%s16596_s13 + $0x1308] sm:$0xf0] }
 0x231   : > { %v10037_v53 = vrot.slane %v15667_v35, 2 }
 0x232   : > { %7305 = vmatpush.bf16.msra.mxu3 %v11817_v23  ;;  %7292 = vmatpush.bf16.msra.mxu2 %v11813_v24  ;;  %v12765_v23 = vor.u32 %v15086_v13, %v12762_v14  ;;  %v11828_v24 = vld [vmem:[%s16596_s13 + $0x828] sm:$0xf]  ;;  %v15087_v13 = vld [vmem:[%s16596_s13 + $0xf74] sm:$0xf]  ;;  %v12770_v14 = vld [vmem:[%s16596_s13 + $0x130c] sm:$0xf0] }
 0x233   : > { %v6777_v44 = vpop.f32.mrf.mxu2  ;;  %v6790_v45 = vpop.f32.mrf.mxu3  ;;  %7318 = vmatpush.bf16.msra.mxu0 %v11821_v27  ;;  %7331 = vmatpush.bf16.msra.mxu1 %v11825_v28  ;;  %v10212_v9 = vsel %vm10198_vm3, %v10036_v52, %v10037_v53  ;;  %v14970_v28 = vld [vmem:[%s16596_s13 + $0xbc8] sm:$0xf0]  ;;  %v11829_v35 = vor.u32 %v14969_v25, %v11828_v24  ;;  %v10905_v53 = vor.u32 %v14738_v42, %v10904_v41  ;;  %v15088_v24 = vld [vmem:[%s16596_s13 + $0xf7c] sm:$0xf]  ;;  %v12778_v25 = vld [vmem:[%s16596_s13 + $0x1314] sm:$0xf0] }
 0x234   : > { %v15669_v57 = vpop.eup %15668  ;;  %v14739_v45 = vld [vmem:[%s16596_s13 + $0x490] sm:$0xf0]  ;;  %v14972_v41 = vld [vmem:[%s16596_s13 + $0xbd8] sm:$0xf0]  ;;  %v14857_v42 = vld [vmem:[%s16596_s13 + $0x844] sm:$0xf] }
 0x235   : > { %v10035_v59 = vrot.slane %v15669_v57, 6  ;;  %v15671_v2 = vpop.eup %15670  ;;  %v13692_v57 = vld [vmem:[%s16596_s13 + $0x16a8] sm:$0xf] }
 0x236   : > { %v6853_v60 = vpop.f32.mrf.mxu0  ;;  %v6866_v61 = vpop.f32.mrf.mxu1  ;;  %7306 = vmatpush.bf16.msra.mxu3 %v10893_v39  ;;  %7293 = vmatpush.bf16.msra.mxu2 %v10889_v40  ;;  %v11837_v39 = vor.u32 %v14970_v28, %v11836_v26  ;;  %v11841_v40 = vor.u32 %v14855_v29, %v11838_v30  ;;  %v12773_v28 = vor.u32 %v15087_v13, %v12770_v14  ;;  %v14856_v30 = vld [vmem:[%s16596_s13 + $0x83c] sm:$0xf] }
 0x237   : > { %v6854_v3 = vadd.f32 %v6853_v60, %v1490_v36  ;;  %v6867_v4 = vadd.f32 %v6866_v61, %v1491_v38  ;;  %7319 = vmatpush.bf16.msra.mxu0 %v10897_v46  ;;  %7332 = vmatpush.bf16.msra.mxu1 %v10901_v47  ;;  %v10211_v11 = vsel %vm10196_vm4, %v15671_v2, %v10035_v59  ;;  %v14623_v36 = vld [vmem:[%s16596_s13 + $0xf4] sm:$0xf]  ;;  %v10906_v38 = vld [vmem:[%s16596_s13 + $0x48c] sm:$0xf0]  ;;  %v14624_v46 = vld [vmem:[%s16596_s13 + $0xfc] sm:$0xf] }
 0x238   : > { %14410 = vmatmul.msk.bf16.vlgmr.msrb.gmra.mxu2 %vm6554_vm2, %v16674_v55  ;;  %14411 = vmatmul.msk.bf16.vlgmr.msrb.gmra.mxu3 %vm6554_vm2, %v16674_v55  ;;  %v10213_v15 = vsel %vm10200_vm5, %v10211_v11, %v10212_v9  ;;  %v10914_v47 = vld [vmem:[%s16596_s13 + $0x494] sm:$0xf0]  ;;  %v10909_v52 = vor.u32 %v14623_v36, %v10906_v38  ;;  %v10913_v60 = vor.u32 %v14739_v45, %v10912_v43  ;;  %v15319_v2 = vld [vmem:[%s16596_s13 + $0x16b4] sm:$0xf]  ;;  %v11854_v43 = vld [vmem:[%s16596_s13 + $0xbdc] sm:$0xf0] }
 0x239   : > { %14412 = vmatmul.msk.bf16.vlgmr.msrb.gmra.mxu0 %vm6554_vm2, %v16674_v55  ;;  %14413 = vmatmul.msk.bf16.vlgmr.msrb.gmra.mxu1 %vm6554_vm2, %v16674_v55  ;;  %10434 = vst [vmem:[%s17074_s16 + $0x20] sm:$0xff] %v10213_v15  ;;  %15672 = vtanh.f32 %v6854_v3  ;;  %v10917_v61 = vor.u32 %v14624_v46, %v10914_v47  ;;  %v13702_v3 = vld [vmem:[%s16596_s13 + $0x1a4c] sm:$0xf0]  ;;  %v13697_v9 = vor.u32 %v15318_v54, %v13694_v56  ;;  %v11844_v36 = vld [vmem:[%s16596_s13 + $0x838] sm:$0xf] }
 0x23a   : > { %7355 = vmatpush.bf16.msrb.mxu3 %v13681_v62  ;;  %7342 = vmatpush.bf16.msrb.mxu2 %v13677_v49  ;;  %15674 = vtanh.f32 %v6867_v4  ;;  %v15433_v62 = vld [vmem:[%s16596_s13 + $0x1a40] sm:$0xf0]  ;;  %v13700_v49 = vld [vmem:[%s16596_s13 + $0x16b0] sm:$0xf]  ;;  %v12769_v29 = vor.u32 %v15202_v20, %v12768_v19  ;;  %v14971_v38 = vld [vmem:[%s16596_s13 + $0xbd0] sm:$0xf0] }
 0x23b   : > { %v6827_v21 = vpop.f32.mrf.mxu2  ;;  %v6840_v22 = vpop.f32.mrf.mxu3  ;;  %7368 = vmatpush.bf16.msrb.mxu0 %v13685_v63  ;;  %7381 = vmatpush.bf16.msrb.mxu1 %v13689_v5  ;;  %v15434_v63 = vld [vmem:[%s16596_s13 + $0x1a48] sm:$0xf0]  ;;  %v1493_v5 = vperm.slane %v17284_v34, 1  ;;  %v13693_v11 = vor.u32 %v15433_v62, %v13692_v57  ;;  %v10920_v54 = vld [vmem:[%s16596_s13 + $0x100] sm:$0xf] }
 0x23c   : > { %v6841_v27 = vadd.f32 %v6840_v22, %v1489_v58  ;;  %v6828_v31 = vadd.f32 %v6827_v21, %v1488_v16  ;;  %v13701_v12 = vor.u32 %v15434_v63, %v13700_v49  ;;  %v12776_v21 = vld [vmem:[%s16596_s13 + $0xf78] sm:$0xf]  ;;  %v14740_v56 = vld [vmem:[%s16596_s13 + $0x498] sm:$0xf0]  ;;  %v10928_v57 = vld [vmem:[%s16596_s13 + $0x108] sm:$0xf] }
 0x23d   : > { %v1498_v49 = vperm.slane %v17284_v34, 6  ;;  %v1499_v63 = vperm.slane %v17284_v34, 7 }
 0x23e   : > { %v6855_v32 = vpop.f32.mrf.mxu0  ;;  %v6868_v33 = vpop.f32.mrf.mxu1  ;;  %7356 = vmatpush.bf16.msrb.mxu3 %v12757_v17  ;;  %7343 = vmatpush.bf16.msrb.mxu2 %v12753_v18  ;;  %15676 = vtanh.f32 %v6841_v27  ;;  %v13705_v18 = vor.u32 %v15319_v2, %v13702_v3  ;;  %v1492_v27 = vperm.slane %v17284_v34, 0  ;;  %v15320_v2 = vld [vmem:[%s16596_s13 + $0x16bc] sm:$0xf]  ;;  %v13710_v3 = vld [vmem:[%s16596_s13 + $0x1a54] sm:$0xf0] }
 0x23f   : > { %7369 = vmatpush.bf16.msrb.mxu0 %v12761_v10  ;;  %7382 = vmatpush.bf16.msrb.mxu1 %v12765_v23  ;;  %v15673_v44 = vpop.eup %15672  ;;  %15678 = vtanh.f32 %v6828_v31  ;;  %v15203_v23 = vld [vmem:[%s16596_s13 + $0x1310] sm:$0xf0]  ;;  %v11846_v31 = vld [vmem:[%s16596_s13 + $0xbd4] sm:$0xf0] }
 0x240   : > { %v15675_v48 = vpop.eup %15674  ;;  %v10039_v0 = vrot.slane %v15673_v44, 4  ;;  %v11849_v47 = vor.u32 %v14856_v30, %v11846_v31  ;;  %v12784_v30 = vld [vmem:[%s16596_s13 + $0xf80] sm:$0xf]  ;;  %v15204_v31 = vld [vmem:[%s16596_s13 + $0x1318] sm:$0xf0] }
 0x241   : > { %v10040_v1 = vrot.slane %v15675_v48, 2  ;;  %v11845_v48 = vor.u32 %v14971_v38, %v11844_v36  ;;  %v15090_v36 = vld [vmem:[%s16596_s13 + $0xf8c] sm:$0xf]  ;;  %v12794_v38 = vld [vmem:[%s16596_s13 + $0x1324] sm:$0xf0] }
 0x242   : > { %7357 = vmatpush.bf16.msrb.mxu3 %v11833_v37  ;;  %7344 = vmatpush.bf16.msrb.mxu2 %v11829_v35  ;;  %v12777_v37 = vor.u32 %v15203_v23, %v12776_v21  ;;  %v12781_v35 = vor.u32 %v15088_v24, %v12778_v25  ;;  %v15089_v24 = vld [vmem:[%s16596_s13 + $0xf84] sm:$0xf]  ;;  %v12786_v25 = vld [vmem:[%s16596_s13 + $0x131c] sm:$0xf0] }
 0x243   : > { %v6829_v58 = vpop.f32.mrf.mxu2  ;;  %v6842_v59 = vpop.f32.mrf.mxu3  ;;  %7370 = vmatpush.bf16.msrb.mxu0 %v11837_v39  ;;  %7383 = vmatpush.bf16.msrb.mxu1 %v11841_v40  ;;  %v10215_v22 = vsel %vm10198_vm3, %v10039_v0, %v10040_v1  ;;  %v11852_v39 = vld [vmem:[%s16596_s13 + $0x840] sm:$0xf]  ;;  %v10921_v1 = vor.u32 %v14740_v56, %v10920_v54  ;;  %v14859_v54 = vld [vmem:[%s16596_s13 + $0x854] sm:$0xf]  ;;  %v11870_v56 = vld [vmem:[%s16596_s13 + $0xbec] sm:$0xf0] }
 0x244   : > { %v15677_v4 = vpop.eup %15676  ;;  %v14741_v59 = vld [vmem:[%s16596_s13 + $0x4a0] sm:$0xf0] }
 0x245   : > { %v10038_v6 = vrot.slane %v15677_v4, 6  ;;  %v15679_v15 = vpop.eup %15678  ;;  %v13708_v4 = vld [vmem:[%s16596_s13 + $0x16b8] sm:$0xf] }
 0x246   : > { %v6905_v7 = vpop.f32.mrf.mxu0  ;;  %v6918_v8 = vpop.f32.mrf.mxu1  ;;  %7358 = vmatpush.bf16.msrb.mxu3 %v10909_v52  ;;  %7345 = vmatpush.bf16.msrb.mxu2 %v10905_v53  ;;  %v11853_v52 = vor.u32 %v14972_v41, %v11852_v39  ;;  %v11857_v53 = vor.u32 %v14857_v42, %v11854_v43  ;;  %v12789_v41 = vor.u32 %v15089_v24, %v12786_v25  ;;  %v14858_v43 = vld [vmem:[%s16596_s13 + $0x84c] sm:$0xf] }
 0x247   : > { %v6906_v16 = vadd.f32 %v6905_v7, %v1494_v50  ;;  %v6919_v17 = vadd.f32 %v6918_v8, %v1495_v51  ;;  %7371 = vmatpush.bf16.msrb.mxu0 %v10913_v60  ;;  %7384 = vmatpush.bf16.msrb.mxu1 %v10917_v61  ;;  %v10214_v10 = vsel %vm10196_vm4, %v15679_v15, %v10038_v6  ;;  %v14625_v50 = vld [vmem:[%s16596_s13 + $0x104] sm:$0xf]  ;;  %v10922_v51 = vld [vmem:[%s16596_s13 + $0x49c] sm:$0xf0]  ;;  %v14626_v60 = vld [vmem:[%s16596_s13 + $0x10c] sm:$0xf] }
 0x248   : > { %14414 = vmatmul.msk.bf16.vlgmr.msra.gmra.mxu2 %vm6554_vm2, %v16674_v55  ;;  %14415 = vmatmul.msk.bf16.vlgmr.msra.gmra.mxu3 %vm6554_vm2, %v16674_v55  ;;  %v10216_v26 = vsel %vm10200_vm5, %v10214_v10, %v10215_v22  ;;  %v10930_v61 = vld [vmem:[%s16596_s13 + $0x4a4] sm:$0xf0]  ;;  %v10925_v0 = vor.u32 %v14625_v50, %v10922_v51  ;;  %v10929_v7 = vor.u32 %v14741_v59, %v10928_v57  ;;  %v15321_v15 = vld [vmem:[%s16596_s13 + $0x16c4] sm:$0xf]  ;;  %v11868_v51 = vld [vmem:[%s16596_s13 + $0x850] sm:$0xf] }
 0x249   : > { %14416 = vmatmul.msk.bf16.vlgmr.msra.gmra.mxu0 %vm6554_vm2, %v16674_v55  ;;  %14417 = vmatmul.msk.bf16.vlgmr.msra.gmra.mxu1 %vm6554_vm2, %v16674_v55  ;;  %10435 = vst [vmem:[%s17074_s16 + $0x28] sm:$0xff] %v10216_v26  ;;  %15680 = vtanh.f32 %v6906_v16  ;;  %v10933_v8 = vor.u32 %v14626_v60, %v10930_v61  ;;  %v13718_v16 = vld [vmem:[%s16596_s13 + $0x1a5c] sm:$0xf0]  ;;  %v13713_v22 = vor.u32 %v15320_v2, %v13710_v3  ;;  %v14973_v50 = vld [vmem:[%s16596_s13 + $0xbe0] sm:$0xf0] }
 0x24a   : > { %7407 = vmatpush.bf16.msra.mxu3 %v13697_v9  ;;  %7394 = vmatpush.bf16.msra.mxu2 %v13693_v11  ;;  %15682 = vtanh.f32 %v6919_v17  ;;  %v15435_v9 = vld [vmem:[%s16596_s13 + $0x1a50] sm:$0xf0]  ;;  %v13716_v11 = vld [vmem:[%s16596_s13 + $0x16c0] sm:$0xf]  ;;  %v12785_v42 = vor.u32 %v15204_v31, %v12784_v30  ;;  %v10936_v2 = vld [vmem:[%s16596_s13 + $0x110] sm:$0xf] }
 0x24b   : > { %v6879_v32 = vpop.f32.mrf.mxu2  ;;  %v6892_v33 = vpop.f32.mrf.mxu3  ;;  %7420 = vmatpush.bf16.msra.mxu0 %v13701_v12  ;;  %7433 = vmatpush.bf16.msra.mxu1 %v13705_v18  ;;  %v15436_v12 = vld [vmem:[%s16596_s13 + $0x1a58] sm:$0xf0]  ;;  %v1497_v18 = vperm.slane %v17284_v34, 5  ;;  %v13709_v10 = vor.u32 %v15435_v9, %v13708_v4  ;;  %v17383_v60 = vld [vmem:[%s16983_s22 + $0x20] sm:$0xff]  ;;  %v10944_v4 = vld [vmem:[%s16596_s13 + $0x118] sm:$0xf] }
 0x24c   : > { %v6893_v40 = vadd.f32 %v6892_v33, %v1493_v5  ;;  %v6880_v44 = vadd.f32 %v6879_v32, %v1492_v27  ;;  %v13717_v23 = vor.u32 %v15436_v12, %v13716_v11  ;;  %v12792_v32 = vld [vmem:[%s16596_s13 + $0xf88] sm:$0xf]  ;;  %v14742_v3 = vld [vmem:[%s16596_s13 + $0x4a8] sm:$0xf0]  ;;  %v1502_v11 = vperm.slane %v17383_v60, 2 }
 0x24d   : > { %v1503_v12 = vperm.slane %v17383_v60, 3 }
 0x24e   : > { %v6907_v45 = vpop.f32.mrf.mxu0  ;;  %v6920_v46 = vpop.f32.mrf.mxu1  ;;  %7408 = vmatpush.bf16.msra.mxu3 %v12773_v28  ;;  %7395 = vmatpush.bf16.msra.mxu2 %v12769_v29  ;;  %15684 = vtanh.f32 %v6893_v40  ;;  %v13721_v29 = vor.u32 %v15321_v15, %v13718_v16  ;;  %v1496_v40 = vperm.slane %v17284_v34, 4  ;;  %v15322_v15 = vld [vmem:[%s16596_s13 + $0x16cc] sm:$0xf]  ;;  %v13726_v16 = vld [vmem:[%s16596_s13 + $0x1a64] sm:$0xf0] }
 0x24f   : > { %7421 = vmatpush.bf16.msra.mxu0 %v12777_v37  ;;  %7434 = vmatpush.bf16.msra.mxu1 %v12781_v35  ;;  %v15681_v58 = vpop.eup %15680  ;;  %15686 = vtanh.f32 %v6880_v44  ;;  %v15205_v35 = vld [vmem:[%s16596_s13 + $0x1320] sm:$0xf0]  ;;  %v11862_v44 = vld [vmem:[%s16596_s13 + $0xbe4] sm:$0xf0] }
 0x250   : > { %v15683_v62 = vpop.eup %15682  ;;  %v10042_v13 = vrot.slane %v15681_v58, 4  ;;  %v12793_v34 = vor.u32 %v15205_v35, %v12792_v32  ;;  %v11865_v61 = vor.u32 %v14858_v43, %v11862_v44  ;;  %v12800_v43 = vld [vmem:[%s16596_s13 + $0xf90] sm:$0xf]  ;;  %v15206_v44 = vld [vmem:[%s16596_s13 + $0x1328] sm:$0xf0] }
 0x251   : > { %v10043_v14 = vrot.slane %v15683_v62, 2 }
 0x252   : > { %7409 = vmatpush.bf16.msra.mxu3 %v11849_v47  ;;  %7396 = vmatpush.bf16.msra.mxu2 %v11845_v48  ;;  %v12797_v47 = vor.u32 %v15090_v36, %v12794_v38  ;;  %v11860_v48 = vld [vmem:[%s16596_s13 + $0x848] sm:$0xf]  ;;  %v15091_v36 = vld [vmem:[%s16596_s13 + $0xf94] sm:$0xf]  ;;  %v12802_v38 = vld [vmem:[%s16596_s13 + $0x132c] sm:$0xf0] }
 0x253   : > { %v6881_v5 = vpop.f32.mrf.mxu2  ;;  %v6894_v6 = vpop.f32.mrf.mxu3  ;;  %7422 = vmatpush.bf16.msra.mxu0 %v11853_v52  ;;  %7435 = vmatpush.bf16.msra.mxu1 %v11857_v53  ;;  %v10218_v33 = vsel %vm10198_vm3, %v10042_v13, %v10043_v14  ;;  %v14974_v53 = vld [vmem:[%s16596_s13 + $0xbe8] sm:$0xf0]  ;;  %v11861_v62 = vor.u32 %v14973_v50, %v11860_v48  ;;  %v10937_v14 = vor.u32 %v14742_v3, %v10936_v2  ;;  %v15092_v48 = vld [vmem:[%s16596_s13 + $0xf9c] sm:$0xf]  ;;  %v12810_v50 = vld [vmem:[%s16596_s13 + $0x1334] sm:$0xf0] }
 0x254   : > { %v15685_v17 = vpop.eup %15684  ;;  %v14743_v6 = vld [vmem:[%s16596_s13 + $0x4b0] sm:$0xf0]  ;;  %v14976_v2 = vld [vmem:[%s16596_s13 + $0xbf8] sm:$0xf0]  ;;  %v14861_v3 = vld [vmem:[%s16596_s13 + $0x864] sm:$0xf] }
 0x255   : > { %v10041_v19 = vrot.slane %v15685_v17, 6  ;;  %v15687_v26 = vpop.eup %15686  ;;  %v13724_v17 = vld [vmem:[%s16596_s13 + $0x16c8] sm:$0xf] }
 0x256   : > { %v6957_v20 = vpop.f32.mrf.mxu0  ;;  %v6970_v21 = vpop.f32.mrf.mxu1  ;;  %7410 = vmatpush.bf16.msra.mxu3 %v10925_v0  ;;  %7397 = vmatpush.bf16.msra.mxu2 %v10921_v1  ;;  %v11869_v0 = vor.u32 %v14974_v53, %v11868_v51  ;;  %v11873_v1 = vor.u32 %v14859_v54, %v11870_v56  ;;  %v12805_v53 = vor.u32 %v15091_v36, %v12802_v38  ;;  %v14860_v56 = vld [vmem:[%s16596_s13 + $0x85c] sm:$0xf] }
 0x257   : > { %v6958_v27 = vadd.f32 %v6957_v20, %v1498_v49  ;;  %v6971_v28 = vadd.f32 %v6970_v21, %v1499_v63  ;;  %7423 = vmatpush.bf16.msra.mxu0 %v10929_v7  ;;  %7436 = vmatpush.bf16.msra.mxu1 %v10933_v8  ;;  %v10217_v37 = vsel %vm10196_vm4, %v15687_v26, %v10041_v19  ;;  %v14627_v49 = vld [vmem:[%s16596_s13 + $0x114] sm:$0xf]  ;;  %v10938_v63 = vld [vmem:[%s16596_s13 + $0x4ac] sm:$0xf0]  ;;  %v14628_v7 = vld [vmem:[%s16596_s13 + $0x11c] sm:$0xf] }
 0x258   : > { %14418 = vmatmul.msk.bf16.vlgmr.msrb.gmra.mxu2 %vm6554_vm2, %v16674_v55  ;;  %14419 = vmatmul.msk.bf16.vlgmr.msrb.gmra.mxu3 %vm6554_vm2, %v16674_v55  ;;  %v10219_v39 = vsel %vm10200_vm5, %v10217_v37, %v10218_v33  ;;  %v10946_v8 = vld [vmem:[%s16596_s13 + $0x4b4] sm:$0xf0]  ;;  %v10941_v13 = vor.u32 %v14627_v49, %v10938_v63  ;;  %v10945_v20 = vor.u32 %v14743_v6, %v10944_v4  ;;  %v15323_v26 = vld [vmem:[%s16596_s13 + $0x16d4] sm:$0xf]  ;;  %v11886_v4 = vld [vmem:[%s16596_s13 + $0xbfc] sm:$0xf0] }
 0x259   : > { %14420 = vmatmul.msk.bf16.vlgmr.msrb.gmra.mxu0 %vm6554_vm2, %v16674_v55  ;;  %14421 = vmatmul.msk.bf16.vlgmr.msrb.gmra.mxu1 %vm6554_vm2, %v16674_v55  ;;  %10436 = vst [vmem:[%s17074_s16 + $0x30] sm:$0xff] %v10219_v39  ;;  %15688 = vtanh.f32 %v6958_v27  ;;  %v10949_v21 = vor.u32 %v14628_v7, %v10946_v8  ;;  %v13734_v27 = vld [vmem:[%s16596_s13 + $0x1a6c] sm:$0xf0]  ;;  %v13729_v33 = vor.u32 %v15322_v15, %v13726_v16  ;;  %v11876_v49 = vld [vmem:[%s16596_s13 + $0x858] sm:$0xf] }
 0x25a   : > { %7459 = vmatpush.bf16.msrb.mxu3 %v13713_v22  ;;  %7446 = vmatpush.bf16.msrb.mxu2 %v13709_v10  ;;  %15690 = vtanh.f32 %v6971_v28  ;;  %v15437_v22 = vld [vmem:[%s16596_s13 + $0x1a60] sm:$0xf0]  ;;  %v13732_v10 = vld [vmem:[%s16596_s13 + $0x16d0] sm:$0xf]  ;;  %v12801_v54 = vor.u32 %v15206_v44, %v12800_v43  ;;  %v14975_v63 = vld [vmem:[%s16596_s13 + $0xbf0] sm:$0xf0] }
 0x25b   : > { %v6931_v45 = vpop.f32.mrf.mxu2  ;;  %v6944_v46 = vpop.f32.mrf.mxu3  ;;  %7472 = vmatpush.bf16.msrb.mxu0 %v13717_v23  ;;  %7485 = vmatpush.bf16.msrb.mxu1 %v13721_v29  ;;  %v15438_v23 = vld [vmem:[%s16596_s13 + $0x1a68] sm:$0xf0]  ;;  %v1501_v29 = vperm.slane %v17383_v60, 1  ;;  %v13725_v37 = vor.u32 %v15437_v22, %v13724_v17  ;;  %v10952_v15 = vld [vmem:[%s16596_s13 + $0x120] sm:$0xf] }
 0x25c   : > { %v6945_v52 = vadd.f32 %v6944_v46, %v1497_v18  ;;  %v6932_v57 = vadd.f32 %v6931_v45, %v1496_v40  ;;  %v13733_v35 = vor.u32 %v15438_v23, %v13732_v10  ;;  %v12808_v45 = vld [vmem:[%s16596_s13 + $0xf98] sm:$0xf]  ;;  %v14744_v16 = vld [vmem:[%s16596_s13 + $0x4b8] sm:$0xf0]  ;;  %v10960_v17 = vld [vmem:[%s16596_s13 + $0x128] sm:$0xf] }
 0x25d   : > { %v1506_v10 = vperm.slane %v17383_v60, 6  ;;  %v1507_v23 = vperm.slane %v17383_v60, 7 }
 0x25e   : > { %v6959_v58 = vpop.f32.mrf.mxu0  ;;  %v6972_v59 = vpop.f32.mrf.mxu1  ;;  %7460 = vmatpush.bf16.msrb.mxu3 %v12789_v41  ;;  %7447 = vmatpush.bf16.msrb.mxu2 %v12785_v42  ;;  %15692 = vtanh.f32 %v6945_v52  ;;  %v13737_v42 = vor.u32 %v15323_v26, %v13734_v27  ;;  %v1500_v52 = vperm.slane %v17383_v60, 0  ;;  %v15324_v26 = vld [vmem:[%s16596_s13 + $0x16dc] sm:$0xf]  ;;  %v13742_v27 = vld [vmem:[%s16596_s13 + $0x1a74] sm:$0xf0] }
 0x25f   : > { %7473 = vmatpush.bf16.msrb.mxu0 %v12793_v34  ;;  %7486 = vmatpush.bf16.msrb.mxu1 %v12797_v47  ;;  %v15689_v5 = vpop.eup %15688  ;;  %15694 = vtanh.f32 %v6932_v57  ;;  %v15207_v47 = vld [vmem:[%s16596_s13 + $0x1330] sm:$0xf0]  ;;  %v11878_v57 = vld [vmem:[%s16596_s13 + $0xbf4] sm:$0xf0] }
 0x260   : > { %v15691_v9 = vpop.eup %15690  ;;  %v10045_v24 = vrot.slane %v15689_v5, 4  ;;  %v11881_v8 = vor.u32 %v14860_v56, %v11878_v57  ;;  %v12816_v56 = vld [vmem:[%s16596_s13 + $0xfa0] sm:$0xf]  ;;  %v15208_v57 = vld [vmem:[%s16596_s13 + $0x1338] sm:$0xf0] }
 0x261   : > { %v10046_v25 = vrot.slane %v15691_v9, 2  ;;  %v11877_v9 = vor.u32 %v14975_v63, %v11876_v49  ;;  %v15094_v49 = vld [vmem:[%s16596_s13 + $0xfac] sm:$0xf]  ;;  %v12826_v63 = vld [vmem:[%s16596_s13 + $0x1344] sm:$0xf0] }
 0x262   : > { %7461 = vmatpush.bf16.msrb.mxu3 %v11865_v61  ;;  %7448 = vmatpush.bf16.msrb.mxu2 %v11861_v62  ;;  %v12809_v61 = vor.u32 %v15207_v47, %v12808_v45  ;;  %v12813_v62 = vor.u32 %v15092_v48, %v12810_v50  ;;  %v15093_v48 = vld [vmem:[%s16596_s13 + $0xfa4] sm:$0xf]  ;;  %v12818_v50 = vld [vmem:[%s16596_s13 + $0x133c] sm:$0xf0] }
 0x263   : > { %v6933_v18 = vpop.f32.mrf.mxu2  ;;  %v6946_v19 = vpop.f32.mrf.mxu3  ;;  %7474 = vmatpush.bf16.msrb.mxu0 %v11869_v0  ;;  %7487 = vmatpush.bf16.msrb.mxu1 %v11873_v1  ;;  %v10221_v46 = vsel %vm10198_vm3, %v10045_v24, %v10046_v25  ;;  %v11884_v0 = vld [vmem:[%s16596_s13 + $0x860] sm:$0xf]  ;;  %v10953_v25 = vor.u32 %v14744_v16, %v10952_v15  ;;  %v14863_v15 = vld [vmem:[%s16596_s13 + $0x874] sm:$0xf]  ;;  %v11902_v16 = vld [vmem:[%s16596_s13 + $0xc0c] sm:$0xf0] }
 0x264   : > { %v15693_v28 = vpop.eup %15692  ;;  %v14745_v19 = vld [vmem:[%s16596_s13 + $0x4c0] sm:$0xf0] }
 0x265   : > { %v10044_v30 = vrot.slane %v15693_v28, 6  ;;  %v15695_v39 = vpop.eup %15694  ;;  %v13740_v28 = vld [vmem:[%s16596_s13 + $0x16d8] sm:$0xf] }
 0x266   : > { %v7009_v31 = vpop.f32.mrf.mxu0  ;;  %v7022_v32 = vpop.f32.mrf.mxu1  ;;  %7462 = vmatpush.bf16.msrb.mxu3 %v10941_v13  ;;  %7449 = vmatpush.bf16.msrb.mxu2 %v10937_v14  ;;  %v11885_v13 = vor.u32 %v14976_v2, %v11884_v0  ;;  %v11889_v14 = vor.u32 %v14861_v3, %v11886_v4  ;;  %v12821_v2 = vor.u32 %v15093_v48, %v12818_v50  ;;  %v14862_v4 = vld [vmem:[%s16596_s13 + $0x86c] sm:$0xf] }
 0x267   : > { %v7010_v40 = vadd.f32 %v7009_v31, %v1502_v11  ;;  %v7023_v41 = vadd.f32 %v7022_v32, %v1503_v12  ;;  %7475 = vmatpush.bf16.msrb.mxu0 %v10945_v20  ;;  %7488 = vmatpush.bf16.msrb.mxu1 %v10949_v21  ;;  %v10220_v34 = vsel %vm10196_vm4, %v15695_v39, %v10044_v30  ;;  %v14629_v11 = vld [vmem:[%s16596_s13 + $0x124] sm:$0xf]  ;;  %v10954_v12 = vld [vmem:[%s16596_s13 + $0x4bc] sm:$0xf0]  ;;  %v14630_v20 = vld [vmem:[%s16596_s13 + $0x12c] sm:$0xf] }
 0x268   : > { %14422 = vmatmul.msk.bf16.vlgmr.msra.gmra.mxu2 %vm6554_vm2, %v16674_v55  ;;  %14423 = vmatmul.msk.bf16.vlgmr.msra.gmra.mxu3 %vm6554_vm2, %v16674_v55  ;;  %v10222_v51 = vsel %vm10200_vm5, %v10220_v34, %v10221_v46  ;;  %v10962_v21 = vld [vmem:[%s16596_s13 + $0x4c4] sm:$0xf0]  ;;  %v10957_v24 = vor.u32 %v14629_v11, %v10954_v12  ;;  %v10961_v31 = vor.u32 %v14745_v19, %v10960_v17  ;;  %v15325_v39 = vld [vmem:[%s16596_s13 + $0x16e4] sm:$0xf]  ;;  %v11900_v12 = vld [vmem:[%s16596_s13 + $0x870] sm:$0xf] }
 0x269   : > { %14424 = vmatmul.msk.bf16.vlgmr.msra.gmra.mxu0 %vm6554_vm2, %v16674_v55  ;;  %14425 = vmatmul.msk.bf16.vlgmr.msra.gmra.mxu1 %vm6554_vm2, %v16674_v55  ;;  %10437 = vst [vmem:[%s17074_s16 + $0x38] sm:$0xff] %v10222_v51  ;;  %15696 = vtanh.f32 %v7010_v40  ;;  %v10965_v32 = vor.u32 %v14630_v20, %v10962_v21  ;;  %v13750_v40 = vld [vmem:[%s16596_s13 + $0x1a7c] sm:$0xf0]  ;;  %v13745_v46 = vor.u32 %v15324_v26, %v13742_v27  ;;  %v14977_v11 = vld [vmem:[%s16596_s13 + $0xc00] sm:$0xf0]  ;;  %v17482_v20 = vld [vmem:[%s16983_s22 + $0x28] sm:$0xff] }
 0x26a   : > { %7511 = vmatpush.bf16.msra.mxu3 %v13729_v33  ;;  %7498 = vmatpush.bf16.msra.mxu2 %v13725_v37  ;;  %15698 = vtanh.f32 %v7023_v41  ;;  %v15439_v33 = vld [vmem:[%s16596_s13 + $0x1a70] sm:$0xf0]  ;;  %v13748_v37 = vld [vmem:[%s16596_s13 + $0x16e0] sm:$0xf]  ;;  %v12817_v3 = vor.u32 %v15208_v57, %v12816_v56  ;;  %v10968_v26 = vld [vmem:[%s16596_s13 + $0x130] sm:$0xf] }
 0x26b   : > { %v6983_v58 = vpop.f32.mrf.mxu2  ;;  %v6996_v59 = vpop.f32.mrf.mxu3  ;;  %7524 = vmatpush.bf16.msra.mxu0 %v13733_v35  ;;  %7537 = vmatpush.bf16.msra.mxu1 %v13737_v42  ;;  %v15440_v35 = vld [vmem:[%s16596_s13 + $0x1a78] sm:$0xf0]  ;;  %v1505_v42 = vperm.slane %v17383_v60, 5  ;;  %v13741_v34 = vor.u32 %v15439_v33, %v13740_v28  ;;  %v14746_v27 = vld [vmem:[%s16596_s13 + $0x4c8] sm:$0xf0] }
 0x26c   : > { %v6997_v1 = vadd.f32 %v6996_v59, %v1501_v29  ;;  %v6984_v5 = vadd.f32 %v6983_v58, %v1500_v52  ;;  %v13749_v47 = vor.u32 %v15440_v35, %v13748_v37  ;;  %v12824_v58 = vld [vmem:[%s16596_s13 + $0xfa8] sm:$0xf]  ;;  %v10976_v28 = vld [vmem:[%s16596_s13 + $0x138] sm:$0xf]  ;;  %v1510_v37 = vperm.slane %v17482_v20, 2 }
 0x26d   : > { %v1511_v35 = vperm.slane %v17482_v20, 3 }
 0x26e   : > { %v7011_v6 = vpop.f32.mrf.mxu0  ;;  %v7024_v7 = vpop.f32.mrf.mxu1  ;;  %7512 = vmatpush.bf16.msra.mxu3 %v12805_v53  ;;  %7499 = vmatpush.bf16.msra.mxu2 %v12801_v54  ;;  %15700 = vtanh.f32 %v6997_v1  ;;  %v13753_v54 = vor.u32 %v15325_v39, %v13750_v40  ;;  %v1504_v1 = vperm.slane %v17383_v60, 4  ;;  %v15326_v39 = vld [vmem:[%s16596_s13 + $0x16ec] sm:$0xf]  ;;  %v13758_v40 = vld [vmem:[%s16596_s13 + $0x1a84] sm:$0xf0] }
 0x26f   : > { %7525 = vmatpush.bf16.msra.mxu0 %v12809_v61  ;;  %7538 = vmatpush.bf16.msra.mxu1 %v12813_v62  ;;  %v15697_v18 = vpop.eup %15696  ;;  %15702 = vtanh.f32 %v6984_v5  ;;  %v15209_v62 = vld [vmem:[%s16596_s13 + $0x1340] sm:$0xf0]  ;;  %v11894_v5 = vld [vmem:[%s16596_s13 + $0xc04] sm:$0xf0] }
 0x270   : > { %v15699_v22 = vpop.eup %15698  ;;  %v10048_v36 = vrot.slane %v15697_v18, 4  ;;  %v12825_v60 = vor.u32 %v15209_v62, %v12824_v58  ;;  %v11897_v21 = vor.u32 %v14862_v4, %v11894_v5  ;;  %v12832_v4 = vld [vmem:[%s16596_s13 + $0xfb0] sm:$0xf]  ;;  %v15210_v5 = vld [vmem:[%s16596_s13 + $0x1348] sm:$0xf0] }
 0x271   : > { %v10049_v38 = vrot.slane %v15699_v22, 2 }
 0x272   : > { %7513 = vmatpush.bf16.msra.mxu3 %v11881_v8  ;;  %7500 = vmatpush.bf16.msra.mxu2 %v11877_v9  ;;  %v12829_v8 = vor.u32 %v15094_v49, %v12826_v63  ;;  %v11892_v9 = vld [vmem:[%s16596_s13 + $0x868] sm:$0xf]  ;;  %v15095_v49 = vld [vmem:[%s16596_s13 + $0xfb4] sm:$0xf]  ;;  %v12834_v63 = vld [vmem:[%s16596_s13 + $0x134c] sm:$0xf0] }
 0x273   : > { %v6985_v29 = vpop.f32.mrf.mxu2  ;;  %v6998_v30 = vpop.f32.mrf.mxu3  ;;  %7526 = vmatpush.bf16.msra.mxu0 %v11885_v13  ;;  %7539 = vmatpush.bf16.msra.mxu1 %v11889_v14  ;;  %v10224_v59 = vsel %vm10198_vm3, %v10048_v36, %v10049_v38  ;;  %v14978_v14 = vld [vmem:[%s16596_s13 + $0xc08] sm:$0xf0]  ;;  %v11893_v22 = vor.u32 %v14977_v11, %v11892_v9  ;;  %v10969_v38 = vor.u32 %v14746_v27, %v10968_v26  ;;  %v15096_v9 = vld [vmem:[%s16596_s13 + $0xfbc] sm:$0xf]  ;;  %v12842_v11 = vld [vmem:[%s16596_s13 + $0x1354] sm:$0xf0] }
 0x274   : > { %v15701_v41 = vpop.eup %15700  ;;  %v14747_v30 = vld [vmem:[%s16596_s13 + $0x4d0] sm:$0xf0]  ;;  %v14980_v26 = vld [vmem:[%s16596_s13 + $0xc18] sm:$0xf0]  ;;  %v14865_v27 = vld [vmem:[%s16596_s13 + $0x884] sm:$0xf] }
 0x275   : > { %v10047_v43 = vrot.slane %v15701_v41, 6  ;;  %v15703_v51 = vpop.eup %15702  ;;  %v13756_v41 = vld [vmem:[%s16596_s13 + $0x16e8] sm:$0xf] }
 0x276   : > { %v7061_v44 = vpop.f32.mrf.mxu0  ;;  %v7074_v45 = vpop.f32.mrf.mxu1  ;;  %7514 = vmatpush.bf16.msra.mxu3 %v10957_v24  ;;  %7501 = vmatpush.bf16.msra.mxu2 %v10953_v25  ;;  %v11901_v24 = vor.u32 %v14978_v14, %v11900_v12  ;;  %v11905_v25 = vor.u32 %v14863_v15, %v11902_v16  ;;  %v12837_v14 = vor.u32 %v15095_v49, %v12834_v63  ;;  %v14864_v16 = vld [vmem:[%s16596_s13 + $0x87c] sm:$0xf] }
 0x277   : > { %v7062_v52 = vadd.f32 %v7061_v44, %v1506_v10  ;;  %v7075_v53 = vadd.f32 %v7074_v45, %v1507_v23  ;;  %7527 = vmatpush.bf16.msra.mxu0 %v10961_v31  ;;  %7540 = vmatpush.bf16.msra.mxu1 %v10965_v32  ;;  %v10223_v61 = vsel %vm10196_vm4, %v15703_v51, %v10047_v43  ;;  %v14631_v10 = vld [vmem:[%s16596_s13 + $0x134] sm:$0xf]  ;;  %v10970_v23 = vld [vmem:[%s16596_s13 + $0x4cc] sm:$0xf0]  ;;  %v14632_v31 = vld [vmem:[%s16596_s13 + $0x13c] sm:$0xf] }
 0x278   : > { %14426 = vmatmul.msk.bf16.vlgmr.msrb.gmra.mxu2 %vm6554_vm2, %v16674_v55  ;;  %14427 = vmatmul.msk.bf16.vlgmr.msrb.gmra.mxu3 %vm6554_vm2, %v16674_v55  ;;  %v10225_v0 = vsel %vm10200_vm5, %v10223_v61, %v10224_v59  ;;  %v10978_v32 = vld [vmem:[%s16596_s13 + $0x4d4] sm:$0xf0]  ;;  %v10973_v36 = vor.u32 %v14631_v10, %v10970_v23  ;;  %v10977_v44 = vor.u32 %v14747_v30, %v10976_v28  ;;  %v15327_v51 = vld [vmem:[%s16596_s13 + $0x16f4] sm:$0xf]  ;;  %v11918_v28 = vld [vmem:[%s16596_s13 + $0xc1c] sm:$0xf0] }
 0x279   : > { %14428 = vmatmul.msk.bf16.vlgmr.msrb.gmra.mxu0 %vm6554_vm2, %v16674_v55  ;;  %14429 = vmatmul.msk.bf16.vlgmr.msrb.gmra.mxu1 %vm6554_vm2, %v16674_v55  ;;  %10438 = vst [vmem:[%s17074_s16 + $0x40] sm:$0xff] %v10225_v0  ;;  %15704 = vtanh.f32 %v7062_v52  ;;  %v10981_v45 = vor.u32 %v14632_v31, %v10978_v32  ;;  %v13766_v52 = vld [vmem:[%s16596_s13 + $0x1a8c] sm:$0xf0]  ;;  %v13761_v59 = vor.u32 %v15326_v39, %v13758_v40  ;;  %v11908_v10 = vld [vmem:[%s16596_s13 + $0x878] sm:$0xf] }
 0x27a   : > { %7563 = vmatpush.bf16.msrb.mxu3 %v13745_v46  ;;  %7550 = vmatpush.bf16.msrb.mxu2 %v13741_v34  ;;  %15706 = vtanh.f32 %v7075_v53  ;;  %v15441_v46 = vld [vmem:[%s16596_s13 + $0x1a80] sm:$0xf0]  ;;  %v13764_v34 = vld [vmem:[%s16596_s13 + $0x16f0] sm:$0xf]  ;;  %v12833_v15 = vor.u32 %v15210_v5, %v12832_v4  ;;  %v14979_v23 = vld [vmem:[%s16596_s13 + $0xc10] sm:$0xf0] }
 0x27b   : > { %v7035_v6 = vpop.f32.mrf.mxu2  ;;  %v7048_v7 = vpop.f32.mrf.mxu3  ;;  %7576 = vmatpush.bf16.msrb.mxu0 %v13749_v47  ;;  %7589 = vmatpush.bf16.msrb.mxu1 %v13753_v54  ;;  %v15442_v47 = vld [vmem:[%s16596_s13 + $0x1a88] sm:$0xf0]  ;;  %v1509_v54 = vperm.slane %v17482_v20, 1  ;;  %v13757_v61 = vor.u32 %v15441_v46, %v13756_v41  ;;  %v10984_v39 = vld [vmem:[%s16596_s13 + $0x140] sm:$0xf] }
 0x27c   : > { %v7049_v13 = vadd.f32 %v7048_v7, %v1505_v42  ;;  %v7036_v17 = vadd.f32 %v7035_v6, %v1504_v1  ;;  %v13765_v62 = vor.u32 %v15442_v47, %v13764_v34  ;;  %v12840_v6 = vld [vmem:[%s16596_s13 + $0xfb8] sm:$0xf]  ;;  %v14748_v40 = vld [vmem:[%s16596_s13 + $0x4d8] sm:$0xf0]  ;;  %v10992_v41 = vld [vmem:[%s16596_s13 + $0x148] sm:$0xf] }
 0x27d   : > { %v1514_v34 = vperm.slane %v17482_v20, 6  ;;  %v1515_v47 = vperm.slane %v17482_v20, 7 }
 0x27e   : > { %v7063_v18 = vpop.f32.mrf.mxu0  ;;  %v7076_v19 = vpop.f32.mrf.mxu1  ;;  %7564 = vmatpush.bf16.msrb.mxu3 %v12821_v2  ;;  %7551 = vmatpush.bf16.msrb.mxu2 %v12817_v3  ;;  %15708 = vtanh.f32 %v7049_v13  ;;  %v13769_v3 = vor.u32 %v15327_v51, %v13766_v52  ;;  %v1508_v13 = vperm.slane %v17482_v20, 0  ;;  %v15328_v51 = vld [vmem:[%s16596_s13 + $0x16fc] sm:$0xf]  ;;  %v13774_v52 = vld [vmem:[%s16596_s13 + $0x1a94] sm:$0xf0] }
 0x27f   : > { %7577 = vmatpush.bf16.msrb.mxu0 %v12825_v60  ;;  %7590 = vmatpush.bf16.msrb.mxu1 %v12829_v8  ;;  %v15705_v29 = vpop.eup %15704  ;;  %15710 = vtanh.f32 %v7036_v17  ;;  %v15211_v8 = vld [vmem:[%s16596_s13 + $0x1350] sm:$0xf0]  ;;  %v11910_v17 = vld [vmem:[%s16596_s13 + $0xc14] sm:$0xf0] }
 0x280   : > { %v15707_v33 = vpop.eup %15706  ;;  %v10051_v48 = vrot.slane %v15705_v29, 4  ;;  %v11913_v32 = vor.u32 %v14864_v16, %v11910_v17  ;;  %v12848_v16 = vld [vmem:[%s16596_s13 + $0xfc0] sm:$0xf]  ;;  %v15212_v17 = vld [vmem:[%s16596_s13 + $0x1358] sm:$0xf0] }
 0x281   : > { %v10052_v50 = vrot.slane %v15707_v33, 2  ;;  %v11909_v33 = vor.u32 %v14979_v23, %v11908_v10  ;;  %v15098_v10 = vld [vmem:[%s16596_s13 + $0xfcc] sm:$0xf]  ;;  %v12858_v23 = vld [vmem:[%s16596_s13 + $0x1364] sm:$0xf0] }
 0x282   : > { %7565 = vmatpush.bf16.msrb.mxu3 %v11897_v21  ;;  %7552 = vmatpush.bf16.msrb.mxu2 %v11893_v22  ;;  %v12841_v21 = vor.u32 %v15211_v8, %v12840_v6  ;;  %v12845_v22 = vor.u32 %v15096_v9, %v12842_v11  ;;  %v15097_v9 = vld [vmem:[%s16596_s13 + $0xfc4] sm:$0xf]  ;;  %v12850_v11 = vld [vmem:[%s16596_s13 + $0x135c] sm:$0xf0] }
 0x283   : > { %v7037_v42 = vpop.f32.mrf.mxu2  ;;  %v7050_v43 = vpop.f32.mrf.mxu3  ;;  %7578 = vmatpush.bf16.msrb.mxu0 %v11901_v24  ;;  %7591 = vmatpush.bf16.msrb.mxu1 %v11905_v25  ;;  %v10227_v7 = vsel %vm10198_vm3, %v10051_v48, %v10052_v50  ;;  %v11916_v24 = vld [vmem:[%s16596_s13 + $0x880] sm:$0xf]  ;;  %v10985_v50 = vor.u32 %v14748_v40, %v10984_v39  ;;  %v14867_v39 = vld [vmem:[%s16596_s13 + $0x894] sm:$0xf]  ;;  %v11934_v40 = vld [vmem:[%s16596_s13 + $0xc2c] sm:$0xf0] }
 0x284   : > { %v15709_v53 = vpop.eup %15708  ;;  %v14749_v43 = vld [vmem:[%s16596_s13 + $0x4e0] sm:$0xf0] }
 0x285   : > { %v10050_v56 = vrot.slane %v15709_v53, 6  ;;  %v15711_v0 = vpop.eup %15710  ;;  %v13772_v53 = vld [vmem:[%s16596_s13 + $0x16f8] sm:$0xf] }
 0x286   : > { %v7113_v57 = vpop.f32.mrf.mxu0  ;;  %v7126_v58 = vpop.f32.mrf.mxu1  ;;  %7566 = vmatpush.bf16.msrb.mxu3 %v10973_v36  ;;  %7553 = vmatpush.bf16.msrb.mxu2 %v10969_v38  ;;  %v11917_v36 = vor.u32 %v14980_v26, %v11916_v24  ;;  %v11921_v38 = vor.u32 %v14865_v27, %v11918_v28  ;;  %v12853_v26 = vor.u32 %v15097_v9, %v12850_v11  ;;  %v14866_v28 = vld [vmem:[%s16596_s13 + $0x88c] sm:$0xf] }
 0x287   : > { %v7114_v1 = vadd.f32 %v7113_v57, %v1510_v37  ;;  %v7127_v2 = vadd.f32 %v7126_v58, %v1511_v35  ;;  %7579 = vmatpush.bf16.msrb.mxu0 %v10977_v44  ;;  %7592 = vmatpush.bf16.msrb.mxu1 %v10981_v45  ;;  %v10226_v60 = vsel %vm10196_vm4, %v15711_v0, %v10050_v56  ;;  %v14633_v37 = vld [vmem:[%s16596_s13 + $0x144] sm:$0xf]  ;;  %v10986_v35 = vld [vmem:[%s16596_s13 + $0x4dc] sm:$0xf0]  ;;  %v14634_v44 = vld [vmem:[%s16596_s13 + $0x14c] sm:$0xf] }
 0x288   : > { %14430 = vmatmul.msk.bf16.vlgmr.msra.gmra.mxu2 %vm6554_vm2, %v16674_v55  ;;  %14431 = vmatmul.msk.bf16.vlgmr.msra.gmra.mxu3 %vm6554_vm2, %v16674_v55  ;;  %v10228_v12 = vsel %vm10200_vm5, %v10226_v60, %v10227_v7  ;;  %v10994_v45 = vld [vmem:[%s16596_s13 + $0x4e4] sm:$0xf0]  ;;  %v10989_v48 = vor.u32 %v14633_v37, %v10986_v35  ;;  %v10993_v57 = vor.u32 %v14749_v43, %v10992_v41  ;;  %v15329_v0 = vld [vmem:[%s16596_s13 + $0x1704] sm:$0xf]  ;;  %v11932_v35 = vld [vmem:[%s16596_s13 + $0x890] sm:$0xf] }
 0x289   : > { %14432 = vmatmul.msk.bf16.vlgmr.msra.gmra.mxu0 %vm6554_vm2, %v16674_v55  ;;  %14433 = vmatmul.msk.bf16.vlgmr.msra.gmra.mxu1 %vm6554_vm2, %v16674_v55  ;;  %10439 = vst [vmem:[%s17074_s16 + $0x48] sm:$0xff] %v10228_v12  ;;  %15712 = vtanh.f32 %v7114_v1  ;;  %v10997_v58 = vor.u32 %v14634_v44, %v10994_v45  ;;  %v13782_v1 = vld [vmem:[%s16596_s13 + $0x1a9c] sm:$0xf0]  ;;  %v13777_v7 = vor.u32 %v15328_v51, %v13774_v52  ;;  %v14981_v37 = vld [vmem:[%s16596_s13 + $0xc20] sm:$0xf0]  ;;  %v17581_v44 = vld [vmem:[%s16983_s22 + $0x30] sm:$0xff] }
 0x28a   : > { %7615 = vmatpush.bf16.msra.mxu3 %v13761_v59  ;;  %7602 = vmatpush.bf16.msra.mxu2 %v13757_v61  ;;  %15714 = vtanh.f32 %v7127_v2  ;;  %v15443_v59 = vld [vmem:[%s16596_s13 + $0x1a90] sm:$0xf0]  ;;  %v13780_v61 = vld [vmem:[%s16596_s13 + $0x1700] sm:$0xf]  ;;  %v12849_v27 = vor.u32 %v15212_v17, %v12848_v16  ;;  %v11000_v51 = vld [vmem:[%s16596_s13 + $0x150] sm:$0xf] }
 0x28b   : > { %v7087_v18 = vpop.f32.mrf.mxu2  ;;  %v7100_v19 = vpop.f32.mrf.mxu3  ;;  %7628 = vmatpush.bf16.msra.mxu0 %v13765_v62  ;;  %7641 = vmatpush.bf16.msra.mxu1 %v13769_v3  ;;  %v15444_v62 = vld [vmem:[%s16596_s13 + $0x1a98] sm:$0xf0]  ;;  %v1513_v3 = vperm.slane %v17482_v20, 5  ;;  %v13773_v60 = vor.u32 %v15443_v59, %v13772_v53  ;;  %v14750_v52 = vld [vmem:[%s16596_s13 + $0x4e8] sm:$0xf0] }
 0x28c   : > { %v7101_v25 = vadd.f32 %v7100_v19, %v1509_v54  ;;  %v7088_v29 = vadd.f32 %v7087_v18, %v1508_v13  ;;  %v13781_v8 = vor.u32 %v15444_v62, %v13780_v61  ;;  %v12856_v18 = vld [vmem:[%s16596_s13 + $0xfc8] sm:$0xf]  ;;  %v11008_v53 = vld [vmem:[%s16596_s13 + $0x158] sm:$0xf]  ;;  %v1518_v61 = vperm.slane %v17581_v44, 2 }
 0x28d   : > { %v1519_v62 = vperm.slane %v17581_v44, 3 }
 0x28e   : > { %v7115_v30 = vpop.f32.mrf.mxu0  ;;  %v7128_v31 = vpop.f32.mrf.mxu1  ;;  %7616 = vmatpush.bf16.msra.mxu3 %v12837_v14  ;;  %7603 = vmatpush.bf16.msra.mxu2 %v12833_v15  ;;  %15716 = vtanh.f32 %v7101_v25  ;;  %v13785_v15 = vor.u32 %v15329_v0, %v13782_v1  ;;  %v1512_v25 = vperm.slane %v17482_v20, 4  ;;  %v15330_v0 = vld [vmem:[%s16596_s13 + $0x170c] sm:$0xf]  ;;  %v13790_v1 = vld [vmem:[%s16596_s13 + $0x1aa4] sm:$0xf0] }
 0x28f   : > { %7629 = vmatpush.bf16.msra.mxu0 %v12841_v21  ;;  %7642 = vmatpush.bf16.msra.mxu1 %v12845_v22  ;;  %v15713_v42 = vpop.eup %15712  ;;  %15718 = vtanh.f32 %v7088_v29  ;;  %v15213_v22 = vld [vmem:[%s16596_s13 + $0x1360] sm:$0xf0]  ;;  %v11926_v29 = vld [vmem:[%s16596_s13 + $0xc24] sm:$0xf0] }
 0x290   : > { %v15715_v46 = vpop.eup %15714  ;;  %v10054_v49 = vrot.slane %v15713_v42, 4  ;;  %v12857_v20 = vor.u32 %v15213_v22, %v12856_v18  ;;  %v11929_v45 = vor.u32 %v14866_v28, %v11926_v29  ;;  %v12864_v28 = vld [vmem:[%s16596_s13 + $0xfd0] sm:$0xf]  ;;  %v15214_v29 = vld [vmem:[%s16596_s13 + $0x1368] sm:$0xf0] }
 0x291   : > { %v10055_v63 = vrot.slane %v15715_v46, 2 }
 0x292   : > { %7617 = vmatpush.bf16.msra.mxu3 %v11913_v32  ;;  %7604 = vmatpush.bf16.msra.mxu2 %v11909_v33  ;;  %v12861_v32 = vor.u32 %v15098_v10, %v12858_v23  ;;  %v11924_v33 = vld [vmem:[%s16596_s13 + $0x888] sm:$0xf]  ;;  %v15099_v10 = vld [vmem:[%s16596_s13 + $0xfd4] sm:$0xf]  ;;  %v12866_v23 = vld [vmem:[%s16596_s13 + $0x136c] sm:$0xf0] }
 0x293   : > { %v7089_v54 = vpop.f32.mrf.mxu2  ;;  %v7102_v56 = vpop.f32.mrf.mxu3  ;;  %7630 = vmatpush.bf16.msra.mxu0 %v11917_v36  ;;  %7643 = vmatpush.bf16.msra.mxu1 %v11921_v38  ;;  %v10230_v19 = vsel %vm10198_vm3, %v10054_v49, %v10055_v63  ;;  %v14982_v38 = vld [vmem:[%s16596_s13 + $0xc28] sm:$0xf0]  ;;  %v11925_v46 = vor.u32 %v14981_v37, %v11924_v33  ;;  %v11001_v63 = vor.u32 %v14750_v52, %v11000_v51  ;;  %v15100_v33 = vld [vmem:[%s16596_s13 + $0xfdc] sm:$0xf]  ;;  %v12874_v37 = vld [vmem:[%s16596_s13 + $0x1374] sm:$0xf0] }
 0x294   : > { %v15717_v2 = vpop.eup %15716  ;;  %v14751_v56 = vld [vmem:[%s16596_s13 + $0x4f0] sm:$0xf0]  ;;  %v14984_v51 = vld [vmem:[%s16596_s13 + $0xc38] sm:$0xf0]  ;;  %v14869_v52 = vld [vmem:[%s16596_s13 + $0x8a4] sm:$0xf] }
 0x295   : > { %v10053_v4 = vrot.slane %v15717_v2, 6  ;;  %v15719_v12 = vpop.eup %15718  ;;  %v13788_v2 = vld [vmem:[%s16596_s13 + $0x1708] sm:$0xf] }
 0x296   : > { %v7165_v5 = vpop.f32.mrf.mxu0  ;;  %v7178_v6 = vpop.f32.mrf.mxu1  ;;  %7618 = vmatpush.bf16.msra.mxu3 %v10989_v48  ;;  %7605 = vmatpush.bf16.msra.mxu2 %v10985_v50  ;;  %v11933_v48 = vor.u32 %v14982_v38, %v11932_v35  ;;  %v11937_v50 = vor.u32 %v14867_v39, %v11934_v40  ;;  %v12869_v38 = vor.u32 %v15099_v10, %v12866_v23  ;;  %v14868_v40 = vld [vmem:[%s16596_s13 + $0x89c] sm:$0xf] }
 0x297   : > { %v7166_v13 = vadd.f32 %v7165_v5, %v1514_v34  ;;  %v7179_v14 = vadd.f32 %v7178_v6, %v1515_v47  ;;  %7631 = vmatpush.bf16.msra.mxu0 %v10993_v57  ;;  %7644 = vmatpush.bf16.msra.mxu1 %v10997_v58  ;;  %v10229_v21 = vsel %vm10196_vm4, %v15719_v12, %v10053_v4  ;;  %v14635_v34 = vld [vmem:[%s16596_s13 + $0x154] sm:$0xf]  ;;  %v11002_v47 = vld [vmem:[%s16596_s13 + $0x4ec] sm:$0xf0]  ;;  %v14636_v57 = vld [vmem:[%s16596_s13 + $0x15c] sm:$0xf] }
 0x298   : > { %14434 = vmatmul.msk.bf16.vlgmr.msrb.gmra.mxu2 %vm6554_vm2, %v16674_v55  ;;  %14435 = vmatmul.msk.bf16.vlgmr.msrb.gmra.mxu3 %vm6554_vm2, %v16674_v55  ;;  %v10231_v24 = vsel %vm10200_vm5, %v10229_v21, %v10230_v19  ;;  %v11010_v58 = vld [vmem:[%s16596_s13 + $0x4f4] sm:$0xf0]  ;;  %v11005_v49 = vor.u32 %v14635_v34, %v11002_v47  ;;  %v11009_v5 = vor.u32 %v14751_v56, %v11008_v53  ;;  %v15331_v12 = vld [vmem:[%s16596_s13 + $0x1714] sm:$0xf]  ;;  %v11950_v53 = vld [vmem:[%s16596_s13 + $0xc3c] sm:$0xf0] }
 0x299   : > { %14436 = vmatmul.msk.bf16.vlgmr.msrb.gmra.mxu0 %vm6554_vm2, %v16674_v55  ;;  %14437 = vmatmul.msk.bf16.vlgmr.msrb.gmra.mxu1 %vm6554_vm2, %v16674_v55  ;;  %10440 = vst [vmem:[%s17074_s16 + $0x50] sm:$0xff] %v10231_v24  ;;  %15720 = vtanh.f32 %v7166_v13  ;;  %v11013_v6 = vor.u32 %v14636_v57, %v11010_v58  ;;  %v13798_v13 = vld [vmem:[%s16596_s13 + $0x1aac] sm:$0xf0]  ;;  %v13793_v19 = vor.u32 %v15330_v0, %v13790_v1  ;;  %v11940_v34 = vld [vmem:[%s16596_s13 + $0x898] sm:$0xf] }
 0x29a   : > { %7667 = vmatpush.bf16.msrb.mxu3 %v13777_v7  ;;  %7654 = vmatpush.bf16.msrb.mxu2 %v13773_v60  ;;  %15722 = vtanh.f32 %v7179_v14  ;;  %v15445_v7 = vld [vmem:[%s16596_s13 + $0x1aa0] sm:$0xf0]  ;;  %v13796_v60 = vld [vmem:[%s16596_s13 + $0x1710] sm:$0xf]  ;;  %v12865_v39 = vor.u32 %v15214_v29, %v12864_v28  ;;  %v14983_v47 = vld [vmem:[%s16596_s13 + $0xc30] sm:$0xf0] }
 0x29b   : > { %v7139_v30 = vpop.f32.mrf.mxu2  ;;  %v7152_v31 = vpop.f32.mrf.mxu3  ;;  %7680 = vmatpush.bf16.msrb.mxu0 %v13781_v8  ;;  %7693 = vmatpush.bf16.msrb.mxu1 %v13785_v15  ;;  %v15446_v8 = vld [vmem:[%s16596_s13 + $0x1aa8] sm:$0xf0]  ;;  %v1517_v15 = vperm.slane %v17581_v44, 1  ;;  %v13789_v21 = vor.u32 %v15445_v7, %v13788_v2  ;;  %v11016_v0 = vld [vmem:[%s16596_s13 + $0x160] sm:$0xf] }
 0x29c   : > { %v7153_v36 = vadd.f32 %v7152_v31, %v1513_v3  ;;  %v7140_v41 = vadd.f32 %v7139_v30, %v1512_v25  ;;  %v13797_v22 = vor.u32 %v15446_v8, %v13796_v60  ;;  %v12872_v30 = vld [vmem:[%s16596_s13 + $0xfd8] sm:$0xf]  ;;  %v14752_v1 = vld [vmem:[%s16596_s13 + $0x4f8] sm:$0xf0]  ;;  %v11024_v2 = vld [vmem:[%s16596_s13 + $0x168] sm:$0xf] }
 0x29d   : > { %v1522_v60 = vperm.slane %v17581_v44, 6  ;;  %v1523_v8 = vperm.slane %v17581_v44, 7 }
 0x29e   : > { %v7167_v42 = vpop.f32.mrf.mxu0  ;;  %v7180_v43 = vpop.f32.mrf.mxu1  ;;  %7668 = vmatpush.bf16.msrb.mxu3 %v12853_v26  ;;  %7655 = vmatpush.bf16.msrb.mxu2 %v12849_v27  ;;  %15724 = vtanh.f32 %v7153_v36  ;;  %v13801_v27 = vor.u32 %v15331_v12, %v13798_v13  ;;  %v1516_v36 = vperm.slane %v17581_v44, 0  ;;  %v15332_v12 = vld [vmem:[%s16596_s13 + $0x171c] sm:$0xf]  ;;  %v13806_v13 = vld [vmem:[%s16596_s13 + $0x1ab4] sm:$0xf0] }
 0x29f   : > { %7681 = vmatpush.bf16.msrb.mxu0 %v12857_v20  ;;  %7694 = vmatpush.bf16.msrb.mxu1 %v12861_v32  ;;  %v15721_v54 = vpop.eup %15720  ;;  %15726 = vtanh.f32 %v7140_v41  ;;  %v15215_v32 = vld [vmem:[%s16596_s13 + $0x1370] sm:$0xf0]  ;;  %v11942_v41 = vld [vmem:[%s16596_s13 + $0xc34] sm:$0xf0] }
 0x2a0   : > { %v15723_v59 = vpop.eup %15722  ;;  %v10057_v9 = vrot.slane %v15721_v54, 4  ;;  %v11945_v58 = vor.u32 %v14868_v40, %v11942_v41  ;;  %v12880_v40 = vld [vmem:[%s16596_s13 + $0xfe0] sm:$0xf]  ;;  %v15216_v41 = vld [vmem:[%s16596_s13 + $0x1378] sm:$0xf0] }
 0x2a1   : > { %v10058_v11 = vrot.slane %v15723_v59, 2  ;;  %v11941_v59 = vor.u32 %v14983_v47, %v11940_v34  ;;  %v15102_v34 = vld [vmem:[%s16596_s13 + $0xfec] sm:$0xf]  ;;  %v12890_v47 = vld [vmem:[%s16596_s13 + $0x1384] sm:$0xf0] }
 0x2a2   : > { %7669 = vmatpush.bf16.msrb.mxu3 %v11929_v45  ;;  %7656 = vmatpush.bf16.msrb.mxu2 %v11925_v46  ;;  %v12873_v45 = vor.u32 %v15215_v32, %v12872_v30  ;;  %v12877_v46 = vor.u32 %v15100_v33, %v12874_v37  ;;  %v15101_v33 = vld [vmem:[%s16596_s13 + $0xfe4] sm:$0xf]  ;;  %v12882_v37 = vld [vmem:[%s16596_s13 + $0x137c] sm:$0xf0] }
 0x2a3   : > { %v7141_v3 = vpop.f32.mrf.mxu2  ;;  %v7154_v4 = vpop.f32.mrf.mxu3  ;;  %7682 = vmatpush.bf16.msrb.mxu0 %v11933_v48  ;;  %7695 = vmatpush.bf16.msrb.mxu1 %v11937_v50  ;;  %v10233_v31 = vsel %vm10198_vm3, %v10057_v9, %v10058_v11  ;;  %v11948_v48 = vld [vmem:[%s16596_s13 + $0x8a0] sm:$0xf]  ;;  %v11017_v11 = vor.u32 %v14752_v1, %v11016_v0  ;;  %v14871_v0 = vld [vmem:[%s16596_s13 + $0x8b4] sm:$0xf]  ;;  %v11966_v1 = vld [vmem:[%s16596_s13 + $0xc4c] sm:$0xf0] }
 0x2a4   : > { %v15725_v14 = vpop.eup %15724  ;;  %v14753_v4 = vld [vmem:[%s16596_s13 + $0x500] sm:$0xf0] }
 0x2a5   : > { %v10056_v16 = vrot.slane %v15725_v14, 6  ;;  %v15727_v24 = vpop.eup %15726  ;;  %v13804_v14 = vld [vmem:[%s16596_s13 + $0x1718] sm:$0xf] }
 0x2a6   : > { %v7217_v17 = vpop.f32.mrf.mxu0  ;;  %v7230_v18 = vpop.f32.mrf.mxu1  ;;  %7670 = vmatpush.bf16.msrb.mxu3 %v11005_v49  ;;  %7657 = vmatpush.bf16.msrb.mxu2 %v11001_v63  ;;  %v11949_v49 = vor.u32 %v14984_v51, %v11948_v48  ;;  %v11953_v63 = vor.u32 %v14869_v52, %v11950_v53  ;;  %v12885_v51 = vor.u32 %v15101_v33, %v12882_v37  ;;  %v14870_v53 = vld [vmem:[%s16596_s13 + $0x8ac] sm:$0xf] }
 0x2a7   : > { %v7218_v25 = vadd.f32 %v7217_v17, %v1518_v61  ;;  %v7231_v26 = vadd.f32 %v7230_v18, %v1519_v62  ;;  %7683 = vmatpush.bf16.msrb.mxu0 %v11009_v5  ;;  %7696 = vmatpush.bf16.msrb.mxu1 %v11013_v6  ;;  %v10232_v20 = vsel %vm10196_vm4, %v15727_v24, %v10056_v16  ;;  %v14637_v61 = vld [vmem:[%s16596_s13 + $0x164] sm:$0xf]  ;;  %v11018_v62 = vld [vmem:[%s16596_s13 + $0x4fc] sm:$0xf0]  ;;  %v14638_v5 = vld [vmem:[%s16596_s13 + $0x16c] sm:$0xf] }
 0x2a8   : > { %14438 = vmatmul.msk.bf16.vlgmr.msra.gmra.mxu2 %vm6554_vm2, %v16674_v55  ;;  %14439 = vmatmul.msk.bf16.vlgmr.msra.gmra.mxu3 %vm6554_vm2, %v16674_v55  ;;  %v10234_v35 = vsel %vm10200_vm5, %v10232_v20, %v10233_v31  ;;  %v11026_v6 = vld [vmem:[%s16596_s13 + $0x504] sm:$0xf0]  ;;  %v11021_v9 = vor.u32 %v14637_v61, %v11018_v62  ;;  %v11025_v17 = vor.u32 %v14753_v4, %v11024_v2  ;;  %v15333_v24 = vld [vmem:[%s16596_s13 + $0x1724] sm:$0xf]  ;;  %v11964_v62 = vld [vmem:[%s16596_s13 + $0x8b0] sm:$0xf] }
 0x2a9   : > { %14440 = vmatmul.msk.bf16.vlgmr.msra.gmra.mxu0 %vm6554_vm2, %v16674_v55  ;;  %14441 = vmatmul.msk.bf16.vlgmr.msra.gmra.mxu1 %vm6554_vm2, %v16674_v55  ;;  %10441 = vst [vmem:[%s17074_s16 + $0x58] sm:$0xff] %v10234_v35  ;;  %15728 = vtanh.f32 %v7218_v25  ;;  %v11029_v18 = vor.u32 %v14638_v5, %v11026_v6  ;;  %v13814_v25 = vld [vmem:[%s16596_s13 + $0x1abc] sm:$0xf0]  ;;  %v13809_v31 = vor.u32 %v15332_v12, %v13806_v13  ;;  %v14985_v61 = vld [vmem:[%s16596_s13 + $0xc40] sm:$0xf0] }
 0x2aa   : > { %7719 = vmatpush.bf16.msra.mxu3 %v13793_v19  ;;  %7706 = vmatpush.bf16.msra.mxu2 %v13789_v21  ;;  %15730 = vtanh.f32 %v7231_v26  ;;  %v15447_v19 = vld [vmem:[%s16596_s13 + $0x1ab0] sm:$0xf0]  ;;  %v13812_v21 = vld [vmem:[%s16596_s13 + $0x1720] sm:$0xf]  ;;  %v12881_v52 = vor.u32 %v15216_v41, %v12880_v40  ;;  %v11032_v12 = vld [vmem:[%s16596_s13 + $0x170] sm:$0xf] }
 0x2ab   : > { %v7191_v42 = vpop.f32.mrf.mxu2  ;;  %v7204_v43 = vpop.f32.mrf.mxu3  ;;  %7732 = vmatpush.bf16.msra.mxu0 %v13797_v22  ;;  %7745 = vmatpush.bf16.msra.mxu1 %v13801_v27  ;;  %v15448_v22 = vld [vmem:[%s16596_s13 + $0x1ab8] sm:$0xf0]  ;;  %v1521_v27 = vperm.slane %v17581_v44, 5  ;;  %v13805_v20 = vor.u32 %v15447_v19, %v13804_v14  ;;  %v14754_v13 = vld [vmem:[%s16596_s13 + $0x508] sm:$0xf0] }
 0x2ac   : > { %v7205_v50 = vadd.f32 %v7204_v43, %v1517_v15  ;;  %v7192_v54 = vadd.f32 %v7191_v42, %v1516_v36  ;;  %v13813_v32 = vor.u32 %v15448_v22, %v13812_v21  ;;  %v12888_v42 = vld [vmem:[%s16596_s13 + $0xfe8] sm:$0xf]  ;;  %v17680_v5 = vld [vmem:[%s16983_s22 + $0x38] sm:$0xff] }
 0x2ad   : > { %v11040_v14 = vld [vmem:[%s16596_s13 + $0x178] sm:$0xf]  ;;  %v1526_v21 = vperm.slane %v17680_v5, 2  ;;  %v1527_v22 = vperm.slane %v17680_v5, 3 }
 0x2ae   : > { %v7219_v56 = vpop.f32.mrf.mxu0  ;;  %v7232_v57 = vpop.f32.mrf.mxu1  ;;  %7720 = vmatpush.bf16.msra.mxu3 %v12869_v38  ;;  %7707 = vmatpush.bf16.msra.mxu2 %v12865_v39  ;;  %15732 = vtanh.f32 %v7205_v50  ;;  %v13817_v39 = vor.u32 %v15333_v24, %v13814_v25  ;;  %v1520_v50 = vperm.slane %v17581_v44, 4  ;;  %v15334_v24 = vld [vmem:[%s16596_s13 + $0x172c] sm:$0xf]  ;;  %v13822_v25 = vld [vmem:[%s16596_s13 + $0x1ac4] sm:$0xf0] }
 0x2af   : > { %7733 = vmatpush.bf16.msra.mxu0 %v12873_v45  ;;  %7746 = vmatpush.bf16.msra.mxu1 %v12877_v46  ;;  %v15729_v3 = vpop.eup %15728  ;;  %15734 = vtanh.f32 %v7192_v54  ;;  %v15217_v46 = vld [vmem:[%s16596_s13 + $0x1380] sm:$0xf0]  ;;  %v11958_v54 = vld [vmem:[%s16596_s13 + $0xc44] sm:$0xf0] }
 0x2b0   : > { %v15731_v7 = vpop.eup %15730  ;;  %v10060_v10 = vrot.slane %v15729_v3, 4  ;;  %v12889_v44 = vor.u32 %v15217_v46, %v12888_v42  ;;  %v11961_v6 = vor.u32 %v14870_v53, %v11958_v54  ;;  %v12896_v53 = vld [vmem:[%s16596_s13 + $0xff0] sm:$0xf]  ;;  %v15218_v54 = vld [vmem:[%s16596_s13 + $0x1388] sm:$0xf0] }
 0x2b1   : > { %v10061_v23 = vrot.slane %v15731_v7, 2 }
 0x2b2   : > { %7721 = vmatpush.bf16.msra.mxu3 %v11945_v58  ;;  %7708 = vmatpush.bf16.msra.mxu2 %v11941_v59  ;;  %v12893_v58 = vor.u32 %v15102_v34, %v12890_v47  ;;  %v11956_v59 = vld [vmem:[%s16596_s13 + $0x8a8] sm:$0xf]  ;;  %v15103_v34 = vld [vmem:[%s16596_s13 + $0xff4] sm:$0xf]  ;;  %v12898_v47 = vld [vmem:[%s16596_s13 + $0x138c] sm:$0xf0] }
 0x2b3   : > { %v7193_v15 = vpop.f32.mrf.mxu2  ;;  %v7206_v16 = vpop.f32.mrf.mxu3  ;;  %7734 = vmatpush.bf16.msra.mxu0 %v11949_v49  ;;  %7747 = vmatpush.bf16.msra.mxu1 %v11953_v63  ;;  %v10236_v43 = vsel %vm10198_vm3, %v10060_v10, %v10061_v23  ;;  %v14986_v63 = vld [vmem:[%s16596_s13 + $0xc48] sm:$0xf0]  ;;  %v11957_v7 = vor.u32 %v14985_v61, %v11956_v59  ;;  %v11033_v23 = vor.u32 %v14754_v13, %v11032_v12  ;;  %v15104_v59 = vld [vmem:[%s16596_s13 + $0xffc] sm:$0xf]  ;;  %v12906_v61 = vld [vmem:[%s16596_s13 + $0x1394] sm:$0xf0] }
 0x2b4   : > { %v15733_v26 = vpop.eup %15732  ;;  %v14755_v16 = vld [vmem:[%s16596_s13 + $0x510] sm:$0xf0]  ;;  %v14988_v12 = vld [vmem:[%s16596_s13 + $0xc58] sm:$0xf0]  ;;  %v14873_v13 = vld [vmem:[%s16596_s13 + $0x8c4] sm:$0xf] }
 0x2b5   : > { %v10059_v28 = vrot.slane %v15733_v26, 6  ;;  %v15735_v35 = vpop.eup %15734  ;;  %v13820_v26 = vld [vmem:[%s16596_s13 + $0x1728] sm:$0xf] }
 0x2b6   : > { %v7269_v29 = vpop.f32.mrf.mxu0  ;;  %v7282_v30 = vpop.f32.mrf.mxu1  ;;  %7722 = vmatpush.bf16.msra.mxu3 %v11021_v9  ;;  %7709 = vmatpush.bf16.msra.mxu2 %v11017_v11  ;;  %v11965_v9 = vor.u32 %v14986_v63, %v11964_v62  ;;  %v11969_v11 = vor.u32 %v14871_v0, %v11966_v1  ;;  %v12901_v63 = vor.u32 %v15103_v34, %v12898_v47  ;;  %v14872_v1 = vld [vmem:[%s16596_s13 + $0x8bc] sm:$0xf] }
 0x2b7   : > { %v7270_v36 = vadd.f32 %v7269_v29, %v1522_v60  ;;  %v7283_v38 = vadd.f32 %v7282_v30, %v1523_v8  ;;  %7735 = vmatpush.bf16.msra.mxu0 %v11025_v17  ;;  %7748 = vmatpush.bf16.msra.mxu1 %v11029_v18  ;;  %v10235_v45 = vsel %vm10196_vm4, %v15735_v35, %v10059_v28  ;;  %v14639_v60 = vld [vmem:[%s16596_s13 + $0x174] sm:$0xf]  ;;  %v11034_v8 = vld [vmem:[%s16596_s13 + $0x50c] sm:$0xf0]  ;;  %v14640_v17 = vld [vmem:[%s16596_s13 + $0x17c] sm:$0xf] }
 0x2b8   : > { %14442 = vmatmul.msk.bf16.vlgmr.msrb.gmra.mxu2 %vm6554_vm2, %v16674_v55  ;;  %14443 = vmatmul.msk.bf16.vlgmr.msrb.gmra.mxu3 %vm6554_vm2, %v16674_v55  ;;  %v10237_v48 = vsel %vm10200_vm5, %v10235_v45, %v10236_v43  ;;  %v11042_v18 = vld [vmem:[%s16596_s13 + $0x514] sm:$0xf0]  ;;  %v11037_v10 = vor.u32 %v14639_v60, %v11034_v8  ;;  %v11041_v29 = vor.u32 %v14755_v16, %v11040_v14  ;;  %v15335_v35 = vld [vmem:[%s16596_s13 + $0x1734] sm:$0xf]  ;;  %v11982_v14 = vld [vmem:[%s16596_s13 + $0xc5c] sm:$0xf0] }
 0x2b9   : > { %14444 = vmatmul.msk.bf16.vlgmr.msrb.gmra.mxu0 %vm6554_vm2, %v16674_v55  ;;  %14445 = vmatmul.msk.bf16.vlgmr.msrb.gmra.mxu1 %vm6554_vm2, %v16674_v55  ;;  %10442 = vst [vmem:[%s17074_s16 + $0x60] sm:$0xff] %v10237_v48  ;;  %15736 = vtanh.f32 %v7270_v36  ;;  %v11045_v30 = vor.u32 %v14640_v17, %v11042_v18  ;;  %v13830_v36 = vld [vmem:[%s16596_s13 + $0x1acc] sm:$0xf0]  ;;  %v13825_v43 = vor.u32 %v15334_v24, %v13822_v25  ;;  %v11972_v60 = vld [vmem:[%s16596_s13 + $0x8b8] sm:$0xf] }
 0x2ba   : > { %7771 = vmatpush.bf16.msrb.mxu3 %v13809_v31  ;;  %7758 = vmatpush.bf16.msrb.mxu2 %v13805_v20  ;;  %15738 = vtanh.f32 %v7283_v38  ;;  %v15449_v31 = vld [vmem:[%s16596_s13 + $0x1ac0] sm:$0xf0]  ;;  %v13828_v20 = vld [vmem:[%s16596_s13 + $0x1730] sm:$0xf]  ;;  %v12897_v0 = vor.u32 %v15218_v54, %v12896_v53  ;;  %v14987_v8 = vld [vmem:[%s16596_s13 + $0xc50] sm:$0xf0] }
 0x2bb   : > { %v7243_v56 = vpop.f32.mrf.mxu2  ;;  %v7256_v57 = vpop.f32.mrf.mxu3  ;;  %7784 = vmatpush.bf16.msrb.mxu0 %v13813_v32  ;;  %7797 = vmatpush.bf16.msrb.mxu1 %v13817_v39  ;;  %v15450_v32 = vld [vmem:[%s16596_s13 + $0x1ac8] sm:$0xf0]  ;;  %v1525_v39 = vperm.slane %v17680_v5, 1  ;;  %v13821_v45 = vor.u32 %v15449_v31, %v13820_v26  ;;  %v11048_v24 = vld [vmem:[%s16596_s13 + $0x180] sm:$0xf] }
 0x2bc   : > { %v7257_v49 = vadd.f32 %v7256_v57, %v1521_v27  ;;  %v7244_v2 = vadd.f32 %v7243_v56, %v1520_v50  ;;  %v13829_v46 = vor.u32 %v15450_v32, %v13828_v20  ;;  %v12904_v56 = vld [vmem:[%s16596_s13 + $0xff8] sm:$0xf]  ;;  %v14756_v25 = vld [vmem:[%s16596_s13 + $0x518] sm:$0xf0]  ;;  %v11056_v26 = vld [vmem:[%s16596_s13 + $0x188] sm:$0xf] }
 0x2bd   : > { %v1530_v20 = vperm.slane %v17680_v5, 6  ;;  %v1531_v32 = vperm.slane %v17680_v5, 7 }
 0x2be   : > { %v7271_v3 = vpop.f32.mrf.mxu0  ;;  %v7284_v4 = vpop.f32.mrf.mxu1  ;;  %7772 = vmatpush.bf16.msrb.mxu3 %v12885_v51  ;;  %7759 = vmatpush.bf16.msrb.mxu2 %v12881_v52  ;;  %15740 = vtanh.f32 %v7257_v49  ;;  %v13833_v52 = vor.u32 %v15335_v35, %v13830_v36  ;;  %v1524_v49 = vperm.slane %v17680_v5, 0  ;;  %v15336_v35 = vld [vmem:[%s16596_s13 + $0x173c] sm:$0xf]  ;;  %v13838_v36 = vld [vmem:[%s16596_s13 + $0x1ad4] sm:$0xf0] }
 0x2bf   : > { %7785 = vmatpush.bf16.msrb.mxu0 %v12889_v44  ;;  %7798 = vmatpush.bf16.msrb.mxu1 %v12893_v58  ;;  %v15737_v15 = vpop.eup %15736  ;;  %15742 = vtanh.f32 %v7244_v2  ;;  %v15219_v58 = vld [vmem:[%s16596_s13 + $0x1390] sm:$0xf0]  ;;  %v11974_v2 = vld [vmem:[%s16596_s13 + $0xc54] sm:$0xf0] }
 0x2c0   : > { %v15739_v19 = vpop.eup %15738  ;;  %v10063_v33 = vrot.slane %v15737_v15, 4  ;;  %v11977_v18 = vor.u32 %v14872_v1, %v11974_v2  ;;  %v12912_v1 = vld [vmem:[%s16596_s13 + $0x1000] sm:$0xf]  ;;  %v15220_v2 = vld [vmem:[%s16596_s13 + $0x1398] sm:$0xf0] }
 0x2c1   : > { %v10064_v37 = vrot.slane %v15739_v19, 2  ;;  %v11973_v19 = vor.u32 %v14987_v8, %v11972_v60  ;;  %v15106_v60 = vld [vmem:[%s16596_s13 + $0x100c] sm:$0xf]  ;;  %v12922_v8 = vld [vmem:[%s16596_s13 + $0x13a4] sm:$0xf0] }
 0x2c2   : > { %7773 = vmatpush.bf16.msrb.mxu3 %v11961_v6  ;;  %7760 = vmatpush.bf16.msrb.mxu2 %v11957_v7  ;;  %v12905_v6 = vor.u32 %v15219_v58, %v12904_v56  ;;  %v12909_v7 = vor.u32 %v15104_v59, %v12906_v61  ;;  %v15105_v59 = vld [vmem:[%s16596_s13 + $0x1004] sm:$0xf]  ;;  %v12914_v61 = vld [vmem:[%s16596_s13 + $0x139c] sm:$0xf0] }
 0x2c3   : > { %v7245_v27 = vpop.f32.mrf.mxu2  ;;  %v7258_v28 = vpop.f32.mrf.mxu3  ;;  %7786 = vmatpush.bf16.msrb.mxu0 %v11965_v9  ;;  %7799 = vmatpush.bf16.msrb.mxu1 %v11969_v11  ;;  %v10239_v57 = vsel %vm10198_vm3, %v10063_v33, %v10064_v37  ;;  %v11980_v9 = vld [vmem:[%s16596_s13 + $0x8c0] sm:$0xf]  ;;  %v11049_v37 = vor.u32 %v14756_v25, %v11048_v24  ;;  %v14875_v24 = vld [vmem:[%s16596_s13 + $0x8d4] sm:$0xf]  ;;  %v11998_v25 = vld [vmem:[%s16596_s13 + $0xc6c] sm:$0xf0] }
 0x2c4   : > { %v15741_v38 = vpop.eup %15740  ;;  %v14757_v28 = vld [vmem:[%s16596_s13 + $0x520] sm:$0xf0] }
 0x2c5   : > { %v10062_v40 = vrot.slane %v15741_v38, 6  ;;  %v15743_v48 = vpop.eup %15742  ;;  %v13836_v38 = vld [vmem:[%s16596_s13 + $0x1738] sm:$0xf] }
 0x2c6   : > { %v7321_v41 = vpop.f32.mrf.mxu0  ;;  %v7334_v42 = vpop.f32.mrf.mxu1  ;;  %7774 = vmatpush.bf16.msrb.mxu3 %v11037_v10  ;;  %7761 = vmatpush.bf16.msrb.mxu2 %v11033_v23  ;;  %v11981_v10 = vor.u32 %v14988_v12, %v11980_v9  ;;  %v11985_v23 = vor.u32 %v14873_v13, %v11982_v14  ;;  %v12917_v12 = vor.u32 %v15105_v59, %v12914_v61  ;;  %v14874_v14 = vld [vmem:[%s16596_s13 + $0x8cc] sm:$0xf] }
 0x2c7   : > { %v7322_v50 = vadd.f32 %v7321_v41, %v1526_v21  ;;  %v7335_v51 = vadd.f32 %v7334_v42, %v1527_v22  ;;  %7787 = vmatpush.bf16.msrb.mxu0 %v11041_v29  ;;  %7800 = vmatpush.bf16.msrb.mxu1 %v11045_v30  ;;  %v10238_v44 = vsel %vm10196_vm4, %v15743_v48, %v10062_v40  ;;  %v14641_v21 = vld [vmem:[%s16596_s13 + $0x184] sm:$0xf]  ;;  %v11050_v22 = vld [vmem:[%s16596_s13 + $0x51c] sm:$0xf0]  ;;  %v14642_v29 = vld [vmem:[%s16596_s13 + $0x18c] sm:$0xf] }
 0x2c8   : > { %14446 = vmatmul.msk.bf16.vlgmr.msra.gmra.mxu2 %vm6554_vm2, %v16674_v55  ;;  %14447 = vmatmul.msk.bf16.vlgmr.msra.gmra.mxu3 %vm6554_vm2, %v16674_v55  ;;  %v10240_v62 = vsel %vm10200_vm5, %v10238_v44, %v10239_v57  ;;  %v11058_v30 = vld [vmem:[%s16596_s13 + $0x524] sm:$0xf0]  ;;  %v11053_v33 = vor.u32 %v14641_v21, %v11050_v22  ;;  %v11057_v41 = vor.u32 %v14757_v28, %v11056_v26  ;;  %v15337_v48 = vld [vmem:[%s16596_s13 + $0x1744] sm:$0xf]  ;;  %v11996_v22 = vld [vmem:[%s16596_s13 + $0x8d0] sm:$0xf] }
 0x2c9   : > { %14448 = vmatmul.msk.bf16.vlgmr.msra.gmra.mxu0 %vm6554_vm2, %v16674_v55  ;;  %14449 = vmatmul.msk.bf16.vlgmr.msra.gmra.mxu1 %vm6554_vm2, %v16674_v55  ;;  %10443 = vst [vmem:[%s17074_s16 + $0x68] sm:$0xff] %v10240_v62  ;;  %15744 = vtanh.f32 %v7322_v50  ;;  %v11061_v42 = vor.u32 %v14642_v29, %v11058_v30  ;;  %v13846_v50 = vld [vmem:[%s16596_s13 + $0x1adc] sm:$0xf0]  ;;  %v13841_v57 = vor.u32 %v15336_v35, %v13838_v36  ;;  %v14989_v21 = vld [vmem:[%s16596_s13 + $0xc60] sm:$0xf0] }
 0x2ca   : > { %7823 = vmatpush.bf16.msra.mxu3 %v13825_v43  ;;  %7810 = vmatpush.bf16.msra.mxu2 %v13821_v45  ;;  %15746 = vtanh.f32 %v7335_v51  ;;  %v15451_v43 = vld [vmem:[%s16596_s13 + $0x1ad0] sm:$0xf0]  ;;  %v13844_v45 = vld [vmem:[%s16596_s13 + $0x1740] sm:$0xf]  ;;  %v12913_v13 = vor.u32 %v15220_v2, %v12912_v1  ;;  %v11064_v35 = vld [vmem:[%s16596_s13 + $0x190] sm:$0xf] }
 0x2cb   : > { %v7295_v3 = vpop.f32.mrf.mxu2  ;;  %v7308_v4 = vpop.f32.mrf.mxu3  ;;  %7836 = vmatpush.bf16.msra.mxu0 %v13829_v46  ;;  %7849 = vmatpush.bf16.msra.mxu1 %v13833_v52  ;;  %v15452_v46 = vld [vmem:[%s16596_s13 + $0x1ad8] sm:$0xf0]  ;;  %v1529_v52 = vperm.slane %v17680_v5, 5  ;;  %v13837_v44 = vor.u32 %v15451_v43, %v13836_v38  ;;  %v17779_v29 = vld [vmem:[%s16983_s22 + $0x40] sm:$0xff]  ;;  %v11072_v38 = vld [vmem:[%s16596_s13 + $0x198] sm:$0xf] }
 0x2cc   : > { %v7309_v11 = vadd.f32 %v7308_v4, %v1525_v39  ;;  %v7296_v15 = vadd.f32 %v7295_v3, %v1524_v49  ;;  %v13845_v58 = vor.u32 %v15452_v46, %v13844_v45  ;;  %v12920_v3 = vld [vmem:[%s16596_s13 + $0x1008] sm:$0xf]  ;;  %v14758_v36 = vld [vmem:[%s16596_s13 + $0x528] sm:$0xf0]  ;;  %v1534_v45 = vperm.slane %v17779_v29, 2 }
 0x2cd   : > { %v1535_v46 = vperm.slane %v17779_v29, 3 }
 0x2ce   : > { %v7323_v16 = vpop.f32.mrf.mxu0  ;;  %v7336_v17 = vpop.f32.mrf.mxu1  ;;  %7824 = vmatpush.bf16.msra.mxu3 %v12901_v63  ;;  %7811 = vmatpush.bf16.msra.mxu2 %v12897_v0  ;;  %15748 = vtanh.f32 %v7309_v11  ;;  %v13849_v0 = vor.u32 %v15337_v48, %v13846_v50  ;;  %v1528_v11 = vperm.slane %v17680_v5, 4  ;;  %v15338_v48 = vld [vmem:[%s16596_s13 + $0x174c] sm:$0xf]  ;;  %v13854_v50 = vld [vmem:[%s16596_s13 + $0x1ae4] sm:$0xf0] }
 0x2cf   : > { %7837 = vmatpush.bf16.msra.mxu0 %v12905_v6  ;;  %7850 = vmatpush.bf16.msra.mxu1 %v12909_v7  ;;  %v15745_v27 = vpop.eup %15744  ;;  %15750 = vtanh.f32 %v7296_v15  ;;  %v15221_v7 = vld [vmem:[%s16596_s13 + $0x13a0] sm:$0xf0]  ;;  %v11990_v15 = vld [vmem:[%s16596_s13 + $0xc64] sm:$0xf0] }
 0x2d0   : > { %v15747_v31 = vpop.eup %15746  ;;  %v10066_v34 = vrot.slane %v15745_v27, 4  ;;  %v12921_v5 = vor.u32 %v15221_v7, %v12920_v3  ;;  %v11993_v30 = vor.u32 %v14874_v14, %v11990_v15  ;;  %v12928_v14 = vld [vmem:[%s16596_s13 + $0x1010] sm:$0xf]  ;;  %v15222_v15 = vld [vmem:[%s16596_s13 + $0x13a8] sm:$0xf0] }
 0x2d1   : > { %v10067_v47 = vrot.slane %v15747_v31, 2 }
 0x2d2   : > { %7825 = vmatpush.bf16.msra.mxu3 %v11977_v18  ;;  %7812 = vmatpush.bf16.msra.mxu2 %v11973_v19  ;;  %v12925_v18 = vor.u32 %v15106_v60, %v12922_v8  ;;  %v11988_v19 = vld [vmem:[%s16596_s13 + $0x8c8] sm:$0xf]  ;;  %v15107_v60 = vld [vmem:[%s16596_s13 + $0x1014] sm:$0xf]  ;;  %v12930_v8 = vld [vmem:[%s16596_s13 + $0x13ac] sm:$0xf0] }
 0x2d3   : > { %v7297_v39 = vpop.f32.mrf.mxu2  ;;  %v7310_v40 = vpop.f32.mrf.mxu3  ;;  %7838 = vmatpush.bf16.msra.mxu0 %v11981_v10  ;;  %7851 = vmatpush.bf16.msra.mxu1 %v11985_v23  ;;  %v10242_v4 = vsel %vm10198_vm3, %v10066_v34, %v10067_v47  ;;  %v14990_v23 = vld [vmem:[%s16596_s13 + $0xc68] sm:$0xf0]  ;;  %v11989_v31 = vor.u32 %v14989_v21, %v11988_v19  ;;  %v11065_v47 = vor.u32 %v14758_v36, %v11064_v35  ;;  %v15108_v19 = vld [vmem:[%s16596_s13 + $0x101c] sm:$0xf]  ;;  %v12938_v21 = vld [vmem:[%s16596_s13 + $0x13b4] sm:$0xf0] }
 0x2d4   : > { %v15749_v51 = vpop.eup %15748  ;;  %v14759_v40 = vld [vmem:[%s16596_s13 + $0x530] sm:$0xf0]  ;;  %v14992_v35 = vld [vmem:[%s16596_s13 + $0xc78] sm:$0xf0]  ;;  %v14877_v36 = vld [vmem:[%s16596_s13 + $0x8e4] sm:$0xf] }
 0x2d5   : > { %v10065_v53 = vrot.slane %v15749_v51, 6  ;;  %v15751_v62 = vpop.eup %15750  ;;  %v13852_v51 = vld [vmem:[%s16596_s13 + $0x1748] sm:$0xf] }
 0x2d6   : > { %v7373_v54 = vpop.f32.mrf.mxu0  ;;  %v7386_v56 = vpop.f32.mrf.mxu1  ;;  %7826 = vmatpush.bf16.msra.mxu3 %v11053_v33  ;;  %7813 = vmatpush.bf16.msra.mxu2 %v11049_v37  ;;  %v11997_v33 = vor.u32 %v14990_v23, %v11996_v22  ;;  %v12001_v37 = vor.u32 %v14875_v24, %v11998_v25  ;;  %v12933_v23 = vor.u32 %v15107_v60, %v12930_v8  ;;  %v14876_v25 = vld [vmem:[%s16596_s13 + $0x8dc] sm:$0xf] }
 0x2d7   : > { %v7374_v49 = vadd.f32 %v7373_v54, %v1530_v20  ;;  %v7387_v63 = vadd.f32 %v7386_v56, %v1531_v32  ;;  %7839 = vmatpush.bf16.msra.mxu0 %v11057_v41  ;;  %7852 = vmatpush.bf16.msra.mxu1 %v11061_v42  ;;  %v10241_v6 = vsel %vm10196_vm4, %v15751_v62, %v10065_v53  ;;  %v14643_v20 = vld [vmem:[%s16596_s13 + $0x194] sm:$0xf]  ;;  %v11066_v32 = vld [vmem:[%s16596_s13 + $0x52c] sm:$0xf0]  ;;  %v14644_v41 = vld [vmem:[%s16596_s13 + $0x19c] sm:$0xf] }
 0x2d8   : > { %14450 = vmatmul.msk.bf16.vlgmr.msrb.gmra.mxu2 %vm6554_vm2, %v16674_v55  ;;  %14451 = vmatmul.msk.bf16.vlgmr.msrb.gmra.mxu3 %vm6554_vm2, %v16674_v55  ;;  %v10243_v9 = vsel %vm10200_vm5, %v10241_v6, %v10242_v4  ;;  %v11074_v42 = vld [vmem:[%s16596_s13 + $0x534] sm:$0xf0]  ;;  %v11069_v34 = vor.u32 %v14643_v20, %v11066_v32  ;;  %v11073_v54 = vor.u32 %v14759_v40, %v11072_v38  ;;  %v15339_v62 = vld [vmem:[%s16596_s13 + $0x1754] sm:$0xf]  ;;  %v12014_v38 = vld [vmem:[%s16596_s13 + $0xc7c] sm:$0xf0] }
 0x2d9   : > { %14452 = vmatmul.msk.bf16.vlgmr.msrb.gmra.mxu0 %vm6554_vm2, %v16674_v55  ;;  %14453 = vmatmul.msk.bf16.vlgmr.msrb.gmra.mxu1 %vm6554_vm2, %v16674_v55  ;;  %10444 = vst [vmem:[%s17074_s16 + $0x70] sm:$0xff] %v10243_v9  ;;  %15752 = vtanh.f32 %v7374_v49  ;;  %v11077_v56 = vor.u32 %v14644_v41, %v11074_v42  ;;  %v13862_v49 = vld [vmem:[%s16596_s13 + $0x1aec] sm:$0xf0]  ;;  %v13857_v4 = vor.u32 %v15338_v48, %v13854_v50  ;;  %v12004_v20 = vld [vmem:[%s16596_s13 + $0x8d8] sm:$0xf] }
 0x2da   : > { %7875 = vmatpush.bf16.msrb.mxu3 %v13841_v57  ;;  %7862 = vmatpush.bf16.msrb.mxu2 %v13837_v44  ;;  %15754 = vtanh.f32 %v7387_v63  ;;  %v15453_v57 = vld [vmem:[%s16596_s13 + $0x1ae0] sm:$0xf0]  ;;  %v13860_v44 = vld [vmem:[%s16596_s13 + $0x1750] sm:$0xf]  ;;  %v12929_v24 = vor.u32 %v15222_v15, %v12928_v14  ;;  %v14991_v32 = vld [vmem:[%s16596_s13 + $0xc70] sm:$0xf0] }
 0x2db   : > { %v7347_v16 = vpop.f32.mrf.mxu2  ;;  %v7360_v17 = vpop.f32.mrf.mxu3  ;;  %7888 = vmatpush.bf16.msrb.mxu0 %v13845_v58  ;;  %7901 = vmatpush.bf16.msrb.mxu1 %v13849_v0  ;;  %v15454_v58 = vld [vmem:[%s16596_s13 + $0x1ae8] sm:$0xf0]  ;;  %v1533_v0 = vperm.slane %v17779_v29, 1  ;;  %v13853_v6 = vor.u32 %v15453_v57, %v13852_v51  ;;  %v11080_v48 = vld [vmem:[%s16596_s13 + $0x1a0] sm:$0xf] }
 0x2dc   : > { %v7361_v10 = vadd.f32 %v7360_v17, %v1529_v52  ;;  %v7348_v26 = vadd.f32 %v7347_v16, %v1528_v11  ;;  %v13861_v7 = vor.u32 %v15454_v58, %v13860_v44  ;;  %v12936_v16 = vld [vmem:[%s16596_s13 + $0x1018] sm:$0xf]  ;;  %v14760_v50 = vld [vmem:[%s16596_s13 + $0x538] sm:$0xf0]  ;;  %v11088_v51 = vld [vmem:[%s16596_s13 + $0x1a8] sm:$0xf] }
 0x2dd   : > { %v1538_v44 = vperm.slane %v17779_v29, 6  ;;  %v1539_v58 = vperm.slane %v17779_v29, 7 }
 0x2de   : > { %v7375_v27 = vpop.f32.mrf.mxu0  ;;  %v7388_v28 = vpop.f32.mrf.mxu1  ;;  %7876 = vmatpush.bf16.msrb.mxu3 %v12917_v12  ;;  %7863 = vmatpush.bf16.msrb.mxu2 %v12913_v13  ;;  %15756 = vtanh.f32 %v7361_v10  ;;  %v13865_v13 = vor.u32 %v15339_v62, %v13862_v49  ;;  %v1532_v10 = vperm.slane %v17779_v29, 0  ;;  %v15340_v62 = vld [vmem:[%s16596_s13 + $0x175c] sm:$0xf]  ;;  %v13870_v49 = vld [vmem:[%s16596_s13 + $0x1af4] sm:$0xf0] }
 0x2df   : > { %7889 = vmatpush.bf16.msrb.mxu0 %v12921_v5  ;;  %7902 = vmatpush.bf16.msrb.mxu1 %v12925_v18  ;;  %v15753_v39 = vpop.eup %15752  ;;  %15758 = vtanh.f32 %v7348_v26  ;;  %v15223_v18 = vld [vmem:[%s16596_s13 + $0x13b0] sm:$0xf0]  ;;  %v12006_v26 = vld [vmem:[%s16596_s13 + $0xc74] sm:$0xf0] }
 0x2e0   : > { %v15755_v43 = vpop.eup %15754  ;;  %v10069_v59 = vrot.slane %v15753_v39, 4  ;;  %v12009_v42 = vor.u32 %v14876_v25, %v12006_v26  ;;  %v12944_v25 = vld [vmem:[%s16596_s13 + $0x1020] sm:$0xf]  ;;  %v15224_v26 = vld [vmem:[%s16596_s13 + $0x13b8] sm:$0xf0] }
 0x2e1   : > { %v10070_v61 = vrot.slane %v15755_v43, 2  ;;  %v12005_v43 = vor.u32 %v14991_v32, %v12004_v20  ;;  %v15110_v20 = vld [vmem:[%s16596_s13 + $0x102c] sm:$0xf]  ;;  %v12954_v32 = vld [vmem:[%s16596_s13 + $0x13c4] sm:$0xf0] }
 0x2e2   : > { %7877 = vmatpush.bf16.msrb.mxu3 %v11993_v30  ;;  %7864 = vmatpush.bf16.msrb.mxu2 %v11989_v31  ;;  %v12937_v30 = vor.u32 %v15223_v18, %v12936_v16  ;;  %v12941_v31 = vor.u32 %v15108_v19, %v12938_v21  ;;  %v15109_v19 = vld [vmem:[%s16596_s13 + $0x1024] sm:$0xf]  ;;  %v12946_v21 = vld [vmem:[%s16596_s13 + $0x13bc] sm:$0xf0] }
 0x2e3   : > { %v7349_v52 = vpop.f32.mrf.mxu2  ;;  %v7362_v53 = vpop.f32.mrf.mxu3  ;;  %7890 = vmatpush.bf16.msrb.mxu0 %v11997_v33  ;;  %7903 = vmatpush.bf16.msrb.mxu1 %v12001_v37  ;;  %v10245_v17 = vsel %vm10198_vm3, %v10069_v59, %v10070_v61  ;;  %v12012_v33 = vld [vmem:[%s16596_s13 + $0x8e0] sm:$0xf]  ;;  %v11081_v61 = vor.u32 %v14760_v50, %v11080_v48  ;;  %v14879_v48 = vld [vmem:[%s16596_s13 + $0x8f4] sm:$0xf]  ;;  %v12030_v50 = vld [vmem:[%s16596_s13 + $0xc8c] sm:$0xf0] }
 0x2e4   : > { %v15757_v63 = vpop.eup %15756  ;;  %v14761_v53 = vld [vmem:[%s16596_s13 + $0x540] sm:$0xf0] }
 0x2e5   : > { %v10068_v1 = vrot.slane %v15757_v63, 6  ;;  %v15759_v9 = vpop.eup %15758  ;;  %v13868_v63 = vld [vmem:[%s16596_s13 + $0x1758] sm:$0xf] }
 0x2e6   : > { %v7425_v2 = vpop.f32.mrf.mxu0  ;;  %v7438_v3 = vpop.f32.mrf.mxu1  ;;  %7878 = vmatpush.bf16.msrb.mxu3 %v11069_v34  ;;  %7865 = vmatpush.bf16.msrb.mxu2 %v11065_v47  ;;  %v12013_v34 = vor.u32 %v14992_v35, %v12012_v33  ;;  %v12017_v47 = vor.u32 %v14877_v36, %v12014_v38  ;;  %v12949_v35 = vor.u32 %v15109_v19, %v12946_v21  ;;  %v14878_v38 = vld [vmem:[%s16596_s13 + $0x8ec] sm:$0xf] }
 0x2e7   : > { %v7426_v11 = vadd.f32 %v7425_v2, %v1534_v45  ;;  %v7439_v12 = vadd.f32 %v7438_v3, %v1535_v46  ;;  %7891 = vmatpush.bf16.msrb.mxu0 %v11073_v54  ;;  %7904 = vmatpush.bf16.msrb.mxu1 %v11077_v56  ;;  %v10244_v5 = vsel %vm10196_vm4, %v15759_v9, %v10068_v1  ;;  %v14645_v45 = vld [vmem:[%s16596_s13 + $0x1a4] sm:$0xf]  ;;  %v11082_v46 = vld [vmem:[%s16596_s13 + $0x53c] sm:$0xf0]  ;;  %v14646_v54 = vld [vmem:[%s16596_s13 + $0x1ac] sm:$0xf] }
 0x2e8   : > { %14454 = vmatmul.msk.bf16.vlgmr.msra.gmra.mxu2 %vm6554_vm2, %v16674_v55  ;;  %14455 = vmatmul.msk.bf16.vlgmr.msra.gmra.mxu3 %vm6554_vm2, %v16674_v55  ;;  %v10246_v22 = vsel %vm10200_vm5, %v10244_v5, %v10245_v17  ;;  %v11090_v56 = vld [vmem:[%s16596_s13 + $0x544] sm:$0xf0]  ;;  %v11085_v59 = vor.u32 %v14645_v45, %v11082_v46  ;;  %v11089_v2 = vor.u32 %v14761_v53, %v11088_v51  ;;  %v15341_v9 = vld [vmem:[%s16596_s13 + $0x1764] sm:$0xf]  ;;  %v12028_v46 = vld [vmem:[%s16596_s13 + $0x8f0] sm:$0xf] }
 0x2e9   : > { %14456 = vmatmul.msk.bf16.vlgmr.msra.gmra.mxu0 %vm6554_vm2, %v16674_v55  ;;  %14457 = vmatmul.msk.bf16.vlgmr.msra.gmra.mxu1 %vm6554_vm2, %v16674_v55  ;;  %10445 = vst [vmem:[%s17074_s16 + $0x78] sm:$0xff] %v10246_v22  ;;  %15760 = vtanh.f32 %v7426_v11  ;;  %v11093_v3 = vor.u32 %v14646_v54, %v11090_v56  ;;  %v13878_v11 = vld [vmem:[%s16596_s13 + $0x1afc] sm:$0xf0]  ;;  %v13873_v17 = vor.u32 %v15340_v62, %v13870_v49  ;;  %v14993_v45 = vld [vmem:[%s16596_s13 + $0xc80] sm:$0xf0]  ;;  %v17878_v54 = vld [vmem:[%s16983_s22 + $0x48] sm:$0xff] }
 0x2ea   : > { %7927 = vmatpush.bf16.msra.mxu3 %v13857_v4  ;;  %7914 = vmatpush.bf16.msra.mxu2 %v13853_v6  ;;  %15762 = vtanh.f32 %v7439_v12  ;;  %v15455_v4 = vld [vmem:[%s16596_s13 + $0x1af0] sm:$0xf0]  ;;  %v13876_v6 = vld [vmem:[%s16596_s13 + $0x1760] sm:$0xf]  ;;  %v12945_v36 = vor.u32 %v15224_v26, %v12944_v25  ;;  %v11096_v62 = vld [vmem:[%s16596_s13 + $0x1b0] sm:$0xf] }
 0x2eb   : > { %v7399_v27 = vpop.f32.mrf.mxu2  ;;  %v7412_v28 = vpop.f32.mrf.mxu3  ;;  %7940 = vmatpush.bf16.msra.mxu0 %v13861_v7  ;;  %7953 = vmatpush.bf16.msra.mxu1 %v13865_v13  ;;  %v15456_v7 = vld [vmem:[%s16596_s13 + $0x1af8] sm:$0xf0]  ;;  %v1537_v13 = vperm.slane %v17779_v29, 5  ;;  %v13869_v5 = vor.u32 %v15455_v4, %v13868_v63  ;;  %v14762_v49 = vld [vmem:[%s16596_s13 + $0x548] sm:$0xf0] }
 0x2ec   : > { %v7413_v37 = vadd.f32 %v7412_v28, %v1533_v0  ;;  %v7400_v39 = vadd.f32 %v7399_v27, %v1532_v10  ;;  %v13877_v18 = vor.u32 %v15456_v7, %v13876_v6  ;;  %v12952_v27 = vld [vmem:[%s16596_s13 + $0x1028] sm:$0xf]  ;;  %v11104_v63 = vld [vmem:[%s16596_s13 + $0x1b8] sm:$0xf]  ;;  %v1542_v6 = vperm.slane %v17878_v54, 2 }
 0x2ed   : > { %v1543_v7 = vperm.slane %v17878_v54, 3 }
 0x2ee   : > { %v7427_v40 = vpop.f32.mrf.mxu0  ;;  %v7440_v41 = vpop.f32.mrf.mxu1  ;;  %7928 = vmatpush.bf16.msra.mxu3 %v12933_v23  ;;  %7915 = vmatpush.bf16.msra.mxu2 %v12929_v24  ;;  %15764 = vtanh.f32 %v7413_v37  ;;  %v13881_v24 = vor.u32 %v15341_v9, %v13878_v11  ;;  %v1536_v37 = vperm.slane %v17779_v29, 4  ;;  %v15342_v9 = vld [vmem:[%s16596_s13 + $0x176c] sm:$0xf]  ;;  %v13886_v11 = vld [vmem:[%s16596_s13 + $0x1b04] sm:$0xf0] }
 0x2ef   : > { %7941 = vmatpush.bf16.msra.mxu0 %v12937_v30  ;;  %7954 = vmatpush.bf16.msra.mxu1 %v12941_v31  ;;  %v15761_v52 = vpop.eup %15760  ;;  %15766 = vtanh.f32 %v7400_v39  ;;  %v15225_v31 = vld [vmem:[%s16596_s13 + $0x13c0] sm:$0xf0]  ;;  %v12022_v39 = vld [vmem:[%s16596_s13 + $0xc84] sm:$0xf0] }
 0x2f0   : > { %v15763_v57 = vpop.eup %15762  ;;  %v10072_v60 = vrot.slane %v15761_v52, 4  ;;  %v12953_v29 = vor.u32 %v15225_v31, %v12952_v27  ;;  %v12025_v56 = vor.u32 %v14878_v38, %v12022_v39  ;;  %v12960_v38 = vld [vmem:[%s16596_s13 + $0x1030] sm:$0xf]  ;;  %v15226_v39 = vld [vmem:[%s16596_s13 + $0x13c8] sm:$0xf0] }
 0x2f1   : > { %v10073_v8 = vrot.slane %v15763_v57, 2 }
 0x2f2   : > { %7929 = vmatpush.bf16.msra.mxu3 %v12009_v42  ;;  %7916 = vmatpush.bf16.msra.mxu2 %v12005_v43  ;;  %v12957_v42 = vor.u32 %v15110_v20, %v12954_v32  ;;  %v12020_v43 = vld [vmem:[%s16596_s13 + $0x8e8] sm:$0xf]  ;;  %v15111_v20 = vld [vmem:[%s16596_s13 + $0x1034] sm:$0xf]  ;;  %v12962_v32 = vld [vmem:[%s16596_s13 + $0x13cc] sm:$0xf0] }
 0x2f3   : > { %v7401_v0 = vpop.f32.mrf.mxu2  ;;  %v7414_v1 = vpop.f32.mrf.mxu3  ;;  %7942 = vmatpush.bf16.msra.mxu0 %v12013_v34  ;;  %7955 = vmatpush.bf16.msra.mxu1 %v12017_v47  ;;  %v10248_v28 = vsel %vm10198_vm3, %v10072_v60, %v10073_v8  ;;  %v14994_v47 = vld [vmem:[%s16596_s13 + $0xc88] sm:$0xf0]  ;;  %v12021_v57 = vor.u32 %v14993_v45, %v12020_v43  ;;  %v11097_v8 = vor.u32 %v14762_v49, %v11096_v62  ;;  %v15112_v43 = vld [vmem:[%s16596_s13 + $0x103c] sm:$0xf]  ;;  %v12970_v45 = vld [vmem:[%s16596_s13 + $0x13d4] sm:$0xf0] }
 0x2f4   : > { %v15765_v12 = vpop.eup %15764  ;;  %v14763_v1 = vld [vmem:[%s16596_s13 + $0x550] sm:$0xf0]  ;;  %v14996_v62 = vld [vmem:[%s16596_s13 + $0xc98] sm:$0xf0]  ;;  %v14881_v49 = vld [vmem:[%s16596_s13 + $0x904] sm:$0xf] }
 0x2f5   : > { %v10071_v14 = vrot.slane %v15765_v12, 6  ;;  %v15767_v22 = vpop.eup %15766  ;;  %v13884_v12 = vld [vmem:[%s16596_s13 + $0x1768] sm:$0xf] }
 0x2f6   : > { %v7477_v15 = vpop.f32.mrf.mxu0  ;;  %v7490_v16 = vpop.f32.mrf.mxu1  ;;  %7930 = vmatpush.bf16.msra.mxu3 %v11085_v59  ;;  %7917 = vmatpush.bf16.msra.mxu2 %v11081_v61  ;;  %v12029_v59 = vor.u32 %v14994_v47, %v12028_v46  ;;  %v12033_v61 = vor.u32 %v14879_v48, %v12030_v50  ;;  %v12965_v47 = vor.u32 %v15111_v20, %v12962_v32  ;;  %v14880_v50 = vld [vmem:[%s16596_s13 + $0x8fc] sm:$0xf] }
 0x2f7   : > { %v7478_v10 = vadd.f32 %v7477_v15, %v1538_v44  ;;  %v7491_v23 = vadd.f32 %v7490_v16, %v1539_v58  ;;  %7943 = vmatpush.bf16.msra.mxu0 %v11089_v2  ;;  %7956 = vmatpush.bf16.msra.mxu1 %v11093_v3  ;;  %v10247_v30 = vsel %vm10196_vm4, %v15767_v22, %v10071_v14  ;;  %v14647_v44 = vld [vmem:[%s16596_s13 + $0x1b4] sm:$0xf]  ;;  %v11098_v58 = vld [vmem:[%s16596_s13 + $0x54c] sm:$0xf0]  ;;  %v14648_v2 = vld [vmem:[%s16596_s13 + $0x1bc] sm:$0xf] }
 0x2f8   : > { %14458 = vmatmul.msk.bf16.vlgmr.msrb.gmra.mxu2 %vm6554_vm2, %v16674_v55  ;;  %14459 = vmatmul.msk.bf16.vlgmr.msrb.gmra.mxu3 %vm6554_vm2, %v16674_v55  ;;  %v10249_v33 = vsel %vm10200_vm5, %v10247_v30, %v10248_v28  ;;  %v11106_v3 = vld [vmem:[%s16596_s13 + $0x554] sm:$0xf0]  ;;  %v11101_v60 = vor.u32 %v14647_v44, %v11098_v58  ;;  %v11105_v15 = vor.u32 %v14763_v1, %v11104_v63  ;;  %v15343_v22 = vld [vmem:[%s16596_s13 + $0x1774] sm:$0xf]  ;;  %v12046_v63 = vld [vmem:[%s16596_s13 + $0xc9c] sm:$0xf0] }
 0x2f9   : > { %14460 = vmatmul.msk.bf16.vlgmr.msrb.gmra.mxu0 %vm6554_vm2, %v16674_v55  ;;  %14461 = vmatmul.msk.bf16.vlgmr.msrb.gmra.mxu1 %vm6554_vm2, %v16674_v55  ;;  %10446 = vst [vmem:[%s17074_s16 + $0x80] sm:$0xff] %v10249_v33  ;;  %15768 = vtanh.f32 %v7478_v10  ;;  %v11109_v16 = vor.u32 %v14648_v2, %v11106_v3  ;;  %v13894_v10 = vld [vmem:[%s16596_s13 + $0x1b0c] sm:$0xf0]  ;;  %v13889_v28 = vor.u32 %v15342_v9, %v13886_v11  ;;  %v12036_v44 = vld [vmem:[%s16596_s13 + $0x8f8] sm:$0xf] }
 0x2fa   : > { %7979 = vmatpush.bf16.msrb.mxu3 %v13873_v17  ;;  %7966 = vmatpush.bf16.msrb.mxu2 %v13869_v5  ;;  %15770 = vtanh.f32 %v7491_v23  ;;  %v15457_v17 = vld [vmem:[%s16596_s13 + $0x1b00] sm:$0xf0]  ;;  %v13892_v5 = vld [vmem:[%s16596_s13 + $0x1770] sm:$0xf]  ;;  %v12961_v48 = vor.u32 %v15226_v39, %v12960_v38  ;;  %v14995_v58 = vld [vmem:[%s16596_s13 + $0xc90] sm:$0xf0] }
 0x2fb   : > { %v7451_v40 = vpop.f32.mrf.mxu2  ;;  %v7464_v41 = vpop.f32.mrf.mxu3  ;;  %7992 = vmatpush.bf16.msrb.mxu0 %v13877_v18  ;;  %8005 = vmatpush.bf16.msrb.mxu1 %v13881_v24  ;;  %v15458_v18 = vld [vmem:[%s16596_s13 + $0x1b08] sm:$0xf0]  ;;  %v1541_v24 = vperm.slane %v17878_v54, 1  ;;  %v13885_v30 = vor.u32 %v15457_v17, %v13884_v12  ;;  %v11112_v9 = vld [vmem:[%s16596_s13 + $0x1c0] sm:$0xf] }
 0x2fc   : > { %v7465_v34 = vadd.f32 %v7464_v41, %v1537_v13  ;;  %v7452_v51 = vadd.f32 %v7451_v40, %v1536_v37  ;;  %v13893_v31 = vor.u32 %v15458_v18, %v13892_v5  ;;  %v12968_v40 = vld [vmem:[%s16596_s13 + $0x1038] sm:$0xf]  ;;  %v14764_v11 = vld [vmem:[%s16596_s13 + $0x558] sm:$0xf0]  ;;  %v11120_v12 = vld [vmem:[%s16596_s13 + $0x1c8] sm:$0xf] }
 0x2fd   : > { %v1546_v5 = vperm.slane %v17878_v54, 6  ;;  %v1547_v18 = vperm.slane %v17878_v54, 7 }
 0x2fe   : > { %v7479_v52 = vpop.f32.mrf.mxu0  ;;  %v7492_v53 = vpop.f32.mrf.mxu1  ;;  %7980 = vmatpush.bf16.msrb.mxu3 %v12949_v35  ;;  %7967 = vmatpush.bf16.msrb.mxu2 %v12945_v36  ;;  %15772 = vtanh.f32 %v7465_v34  ;;  %v13897_v36 = vor.u32 %v15343_v22, %v13894_v10  ;;  %v1540_v34 = vperm.slane %v17878_v54, 0  ;;  %v15344_v22 = vld [vmem:[%s16596_s13 + $0x177c] sm:$0xf]  ;;  %v13902_v10 = vld [vmem:[%s16596_s13 + $0x1b14] sm:$0xf0] }
 0x2ff   : > { %7993 = vmatpush.bf16.msrb.mxu0 %v12953_v29  ;;  %8006 = vmatpush.bf16.msrb.mxu1 %v12957_v42  ;;  %v15769_v0 = vpop.eup %15768  ;;  %15774 = vtanh.f32 %v7452_v51  ;;  %v15227_v42 = vld [vmem:[%s16596_s13 + $0x13d0] sm:$0xf0]  ;;  %v12038_v51 = vld [vmem:[%s16596_s13 + $0xc94] sm:$0xf0] }
 0x300   : > { %v15771_v4 = vpop.eup %15770  ;;  %v10075_v19 = vrot.slane %v15769_v0, 4  ;;  %v12041_v3 = vor.u32 %v14880_v50, %v12038_v51  ;;  %v12976_v50 = vld [vmem:[%s16596_s13 + $0x1040] sm:$0xf]  ;;  %v15228_v51 = vld [vmem:[%s16596_s13 + $0x13d8] sm:$0xf0] }
 0x301   : > { %v10076_v21 = vrot.slane %v15771_v4, 2  ;;  %v12037_v4 = vor.u32 %v14995_v58, %v12036_v44  ;;  %v15114_v44 = vld [vmem:[%s16596_s13 + $0x104c] sm:$0xf]  ;;  %v12986_v58 = vld [vmem:[%s16596_s13 + $0x13e4] sm:$0xf0] }
 0x302   : > { %7981 = vmatpush.bf16.msrb.mxu3 %v12025_v56  ;;  %7968 = vmatpush.bf16.msrb.mxu2 %v12021_v57  ;;  %v12969_v56 = vor.u32 %v15227_v42, %v12968_v40  ;;  %v12973_v57 = vor.u32 %v15112_v43, %v12970_v45  ;;  %v15113_v43 = vld [vmem:[%s16596_s13 + $0x1044] sm:$0xf]  ;;  %v12978_v45 = vld [vmem:[%s16596_s13 + $0x13dc] sm:$0xf0] }
 0x303   : > { %v7453_v13 = vpop.f32.mrf.mxu2  ;;  %v7466_v14 = vpop.f32.mrf.mxu3  ;;  %7994 = vmatpush.bf16.msrb.mxu0 %v12029_v59  ;;  %8007 = vmatpush.bf16.msrb.mxu1 %v12033_v61  ;;  %v10251_v41 = vsel %vm10198_vm3, %v10075_v19, %v10076_v21  ;;  %v12044_v59 = vld [vmem:[%s16596_s13 + $0x900] sm:$0xf]  ;;  %v11113_v21 = vor.u32 %v14764_v11, %v11112_v9  ;;  %v14883_v9 = vld [vmem:[%s16596_s13 + $0x914] sm:$0xf]  ;;  %v12062_v11 = vld [vmem:[%s16596_s13 + $0xcac] sm:$0xf0] }
 0x304   : > { %v15773_v23 = vpop.eup %15772  ;;  %v14765_v14 = vld [vmem:[%s16596_s13 + $0x560] sm:$0xf0] }
 0x305   : > { %v10074_v25 = vrot.slane %v15773_v23, 6  ;;  %v15775_v33 = vpop.eup %15774  ;;  %v13900_v23 = vld [vmem:[%s16596_s13 + $0x1778] sm:$0xf] }
 0x306   : > { %v7529_v26 = vpop.f32.mrf.mxu0  ;;  %v7542_v27 = vpop.f32.mrf.mxu1  ;;  %7982 = vmatpush.bf16.msrb.mxu3 %v11101_v60  ;;  %7969 = vmatpush.bf16.msrb.mxu2 %v11097_v8  ;;  %v12045_v60 = vor.u32 %v14996_v62, %v12044_v59  ;;  %v12049_v8 = vor.u32 %v14881_v49, %v12046_v63  ;;  %v12981_v62 = vor.u32 %v15113_v43, %v12978_v45  ;;  %v14882_v63 = vld [vmem:[%s16596_s13 + $0x90c] sm:$0xf] }
 0x307   : > { %v7530_v37 = vadd.f32 %v7529_v26, %v1542_v6  ;;  %v7543_v35 = vadd.f32 %v7542_v27, %v1543_v7  ;;  %7995 = vmatpush.bf16.msrb.mxu0 %v11105_v15  ;;  %8008 = vmatpush.bf16.msrb.mxu1 %v11109_v16  ;;  %v10250_v29 = vsel %vm10196_vm4, %v15775_v33, %v10074_v25  ;;  %v14649_v6 = vld [vmem:[%s16596_s13 + $0x1c4] sm:$0xf]  ;;  %v11114_v7 = vld [vmem:[%s16596_s13 + $0x55c] sm:$0xf0]  ;;  %v14650_v15 = vld [vmem:[%s16596_s13 + $0x1cc] sm:$0xf] }
 0x308   : > { %14462 = vmatmul.msk.bf16.vlgmr.msra.gmra.mxu2 %vm6554_vm2, %v16674_v55  ;;  %14463 = vmatmul.msk.bf16.vlgmr.msra.gmra.mxu3 %vm6554_vm2, %v16674_v55  ;;  %v10252_v46 = vsel %vm10200_vm5, %v10250_v29, %v10251_v41  ;;  %v11122_v16 = vld [vmem:[%s16596_s13 + $0x564] sm:$0xf0]  ;;  %v11117_v19 = vor.u32 %v14649_v6, %v11114_v7  ;;  %v11121_v26 = vor.u32 %v14765_v14, %v11120_v12  ;;  %v15345_v33 = vld [vmem:[%s16596_s13 + $0x1784] sm:$0xf]  ;;  %v12060_v7 = vld [vmem:[%s16596_s13 + $0x910] sm:$0xf] }
 0x309   : > { %14464 = vmatmul.msk.bf16.vlgmr.msra.gmra.mxu0 %vm6554_vm2, %v16674_v55  ;;  %14465 = vmatmul.msk.bf16.vlgmr.msra.gmra.mxu1 %vm6554_vm2, %v16674_v55  ;;  %10447 = vst [vmem:[%s17074_s16 + $0x88] sm:$0xff] %v10252_v46  ;;  %15776 = vtanh.f32 %v7530_v37  ;;  %v11125_v27 = vor.u32 %v14650_v15, %v11122_v16  ;;  %v13910_v37 = vld [vmem:[%s16596_s13 + $0x1b1c] sm:$0xf0]  ;;  %v13905_v41 = vor.u32 %v15344_v22, %v13902_v10  ;;  %v14997_v6 = vld [vmem:[%s16596_s13 + $0xca0] sm:$0xf0]  ;;  %v17977_v15 = vld [vmem:[%s16983_s22 + $0x50] sm:$0xff] }
 0x30a   : > { %8031 = vmatpush.bf16.msra.mxu3 %v13889_v28  ;;  %8018 = vmatpush.bf16.msra.mxu2 %v13885_v30  ;;  %15778 = vtanh.f32 %v7543_v35  ;;  %v15459_v28 = vld [vmem:[%s16596_s13 + $0x1b10] sm:$0xf0]  ;;  %v13908_v30 = vld [vmem:[%s16596_s13 + $0x1780] sm:$0xf]  ;;  %v12977_v49 = vor.u32 %v15228_v51, %v12976_v50  ;;  %v11128_v22 = vld [vmem:[%s16596_s13 + $0x1d0] sm:$0xf] }
 0x30b   : > { %v7503_v52 = vpop.f32.mrf.mxu2  ;;  %v7516_v53 = vpop.f32.mrf.mxu3  ;;  %8044 = vmatpush.bf16.msra.mxu0 %v13893_v31  ;;  %8057 = vmatpush.bf16.msra.mxu1 %v13897_v36  ;;  %v15460_v31 = vld [vmem:[%s16596_s13 + $0x1b18] sm:$0xf0]  ;;  %v1545_v36 = vperm.slane %v17878_v54, 5  ;;  %v13901_v29 = vor.u32 %v15459_v28, %v13900_v23  ;;  %v14766_v10 = vld [vmem:[%s16596_s13 + $0x568] sm:$0xf0] }
 0x30c   : > { %v7517_v61 = vadd.f32 %v7516_v53, %v1541_v24  ;;  %v7504_v0 = vadd.f32 %v7503_v52, %v1540_v34  ;;  %v13909_v42 = vor.u32 %v15460_v31, %v13908_v30  ;;  %v12984_v52 = vld [vmem:[%s16596_s13 + $0x1048] sm:$0xf]  ;;  %v11136_v23 = vld [vmem:[%s16596_s13 + $0x1d8] sm:$0xf]  ;;  %v1550_v30 = vperm.slane %v17977_v15, 2 }
 0x30d   : > { %v1551_v31 = vperm.slane %v17977_v15, 3 }
 0x30e   : > { %v7531_v1 = vpop.f32.mrf.mxu0  ;;  %v7544_v2 = vpop.f32.mrf.mxu1  ;;  %8032 = vmatpush.bf16.msra.mxu3 %v12965_v47  ;;  %8019 = vmatpush.bf16.msra.mxu2 %v12961_v48  ;;  %15780 = vtanh.f32 %v7517_v61  ;;  %v13913_v48 = vor.u32 %v15345_v33, %v13910_v37  ;;  %v1544_v61 = vperm.slane %v17878_v54, 4  ;;  %v15346_v33 = vld [vmem:[%s16596_s13 + $0x178c] sm:$0xf]  ;;  %v13918_v37 = vld [vmem:[%s16596_s13 + $0x1b24] sm:$0xf0] }
 0x30f   : > { %8045 = vmatpush.bf16.msra.mxu0 %v12969_v56  ;;  %8058 = vmatpush.bf16.msra.mxu1 %v12973_v57  ;;  %v15777_v13 = vpop.eup %15776  ;;  %15782 = vtanh.f32 %v7504_v0  ;;  %v15229_v57 = vld [vmem:[%s16596_s13 + $0x13e0] sm:$0xf0]  ;;  %v12054_v0 = vld [vmem:[%s16596_s13 + $0xca4] sm:$0xf0] }
 0x310   : > { %v15779_v17 = vpop.eup %15778  ;;  %v10078_v20 = vrot.slane %v15777_v13, 4  ;;  %v12985_v54 = vor.u32 %v15229_v57, %v12984_v52  ;;  %v12057_v16 = vor.u32 %v14882_v63, %v12054_v0  ;;  %v12992_v63 = vld [vmem:[%s16596_s13 + $0x1050] sm:$0xf]  ;;  %v15230_v0 = vld [vmem:[%s16596_s13 + $0x13e8] sm:$0xf0] }
 0x311   : > { %v10079_v32 = vrot.slane %v15779_v17, 2 }
 0x312   : > { %8033 = vmatpush.bf16.msra.mxu3 %v12041_v3  ;;  %8020 = vmatpush.bf16.msra.mxu2 %v12037_v4  ;;  %v12989_v3 = vor.u32 %v15114_v44, %v12986_v58  ;;  %v12052_v4 = vld [vmem:[%s16596_s13 + $0x908] sm:$0xf]  ;;  %v15115_v44 = vld [vmem:[%s16596_s13 + $0x1054] sm:$0xf]  ;;  %v12994_v58 = vld [vmem:[%s16596_s13 + $0x13ec] sm:$0xf0] }
 0x313   : > { %v7505_v24 = vpop.f32.mrf.mxu2  ;;  %v7518_v25 = vpop.f32.mrf.mxu3  ;;  %8046 = vmatpush.bf16.msra.mxu0 %v12045_v60  ;;  %8059 = vmatpush.bf16.msra.mxu1 %v12049_v8  ;;  %v10254_v53 = vsel %vm10198_vm3, %v10078_v20, %v10079_v32  ;;  %v14998_v8 = vld [vmem:[%s16596_s13 + $0xca8] sm:$0xf0]  ;;  %v12053_v17 = vor.u32 %v14997_v6, %v12052_v4  ;;  %v11129_v32 = vor.u32 %v14766_v10, %v11128_v22  ;;  %v15116_v4 = vld [vmem:[%s16596_s13 + $0x105c] sm:$0xf]  ;;  %v13002_v6 = vld [vmem:[%s16596_s13 + $0x13f4] sm:$0xf0] }
 0x314   : > { %v15781_v35 = vpop.eup %15780  ;;  %v14767_v25 = vld [vmem:[%s16596_s13 + $0x570] sm:$0xf0]  ;;  %v15000_v22 = vld [vmem:[%s16596_s13 + $0xcb8] sm:$0xf0]  ;;  %v14885_v10 = vld [vmem:[%s16596_s13 + $0x924] sm:$0xf] }
 0x315   : > { %v10077_v38 = vrot.slane %v15781_v35, 6  ;;  %v15783_v46 = vpop.eup %15782  ;;  %v13916_v35 = vld [vmem:[%s16596_s13 + $0x1788] sm:$0xf] }
 0x316   : > { %v7581_v39 = vpop.f32.mrf.mxu0  ;;  %v7594_v40 = vpop.f32.mrf.mxu1  ;;  %8034 = vmatpush.bf16.msra.mxu3 %v11117_v19  ;;  %8021 = vmatpush.bf16.msra.mxu2 %v11113_v21  ;;  %v12061_v19 = vor.u32 %v14998_v8, %v12060_v7  ;;  %v12065_v21 = vor.u32 %v14883_v9, %v12062_v11  ;;  %v12997_v8 = vor.u32 %v15115_v44, %v12994_v58  ;;  %v14884_v11 = vld [vmem:[%s16596_s13 + $0x91c] sm:$0xf] }
 0x317   : > { %v7582_v34 = vadd.f32 %v7581_v39, %v1546_v5  ;;  %v7595_v47 = vadd.f32 %v7594_v40, %v1547_v18  ;;  %8047 = vmatpush.bf16.msra.mxu0 %v11121_v26  ;;  %8060 = vmatpush.bf16.msra.mxu1 %v11125_v27  ;;  %v10253_v56 = vsel %vm10196_vm4, %v15783_v46, %v10077_v38  ;;  %v14651_v5 = vld [vmem:[%s16596_s13 + $0x1d4] sm:$0xf]  ;;  %v11130_v18 = vld [vmem:[%s16596_s13 + $0x56c] sm:$0xf0]  ;;  %v14652_v26 = vld [vmem:[%s16596_s13 + $0x1dc] sm:$0xf] }
 0x318   : > { %14466 = vmatmul.msk.bf16.vlgmr.msrb.gmra.mxu2 %vm6554_vm2, %v16674_v55  ;;  %14467 = vmatmul.msk.bf16.vlgmr.msrb.gmra.mxu3 %vm6554_vm2, %v16674_v55  ;;  %v10255_v59 = vsel %vm10200_vm5, %v10253_v56, %v10254_v53  ;;  %v11138_v27 = vld [vmem:[%s16596_s13 + $0x574] sm:$0xf0]  ;;  %v11133_v20 = vor.u32 %v14651_v5, %v11130_v18  ;;  %v11137_v39 = vor.u32 %v14767_v25, %v11136_v23  ;;  %v15347_v46 = vld [vmem:[%s16596_s13 + $0x1794] sm:$0xf]  ;;  %v12078_v23 = vld [vmem:[%s16596_s13 + $0xcbc] sm:$0xf0] }
 0x319   : > { %14468 = vmatmul.msk.bf16.vlgmr.msrb.gmra.mxu0 %vm6554_vm2, %v16674_v55  ;;  %14469 = vmatmul.msk.bf16.vlgmr.msrb.gmra.mxu1 %vm6554_vm2, %v16674_v55  ;;  %10448 = vst [vmem:[%s17074_s16 + $0x90] sm:$0xff] %v10255_v59  ;;  %15784 = vtanh.f32 %v7582_v34  ;;  %v11141_v40 = vor.u32 %v14652_v26, %v11138_v27  ;;  %v13926_v34 = vld [vmem:[%s16596_s13 + $0x1b2c] sm:$0xf0]  ;;  %v13921_v53 = vor.u32 %v15346_v33, %v13918_v37  ;;  %v12068_v5 = vld [vmem:[%s16596_s13 + $0x918] sm:$0xf] }
 0x31a   : > { %8083 = vmatpush.bf16.msrb.mxu3 %v13905_v41  ;;  %8070 = vmatpush.bf16.msrb.mxu2 %v13901_v29  ;;  %15786 = vtanh.f32 %v7595_v47  ;;  %v15461_v41 = vld [vmem:[%s16596_s13 + $0x1b20] sm:$0xf0]  ;;  %v13924_v29 = vld [vmem:[%s16596_s13 + $0x1790] sm:$0xf]  ;;  %v12993_v9 = vor.u32 %v15230_v0, %v12992_v63  ;;  %v14999_v18 = vld [vmem:[%s16596_s13 + $0xcb0] sm:$0xf0] }
 0x31b   : > { %v7555_v1 = vpop.f32.mrf.mxu2  ;;  %v7568_v2 = vpop.f32.mrf.mxu3  ;;  %8096 = vmatpush.bf16.msrb.mxu0 %v13909_v42  ;;  %8109 = vmatpush.bf16.msrb.mxu1 %v13913_v48  ;;  %v15462_v42 = vld [vmem:[%s16596_s13 + $0x1b28] sm:$0xf0]  ;;  %v1549_v48 = vperm.slane %v17977_v15, 1  ;;  %v13917_v56 = vor.u32 %v15461_v41, %v13916_v35  ;;  %v11144_v33 = vld [vmem:[%s16596_s13 + $0x1e0] sm:$0xf] }
 0x31c   : > { %v7569_v60 = vadd.f32 %v7568_v2, %v1545_v36  ;;  %v7556_v12 = vadd.f32 %v7555_v1, %v1544_v61  ;;  %v13925_v57 = vor.u32 %v15462_v42, %v13924_v29  ;;  %v13000_v1 = vld [vmem:[%s16596_s13 + $0x1058] sm:$0xf]  ;;  %v14768_v37 = vld [vmem:[%s16596_s13 + $0x578] sm:$0xf0]  ;;  %v11152_v35 = vld [vmem:[%s16596_s13 + $0x1e8] sm:$0xf] }
 0x31d   : > { %v1554_v29 = vperm.slane %v17977_v15, 6  ;;  %v1555_v42 = vperm.slane %v17977_v15, 7 }
 0x31e   : > { %v7583_v13 = vpop.f32.mrf.mxu0  ;;  %v7596_v14 = vpop.f32.mrf.mxu1  ;;  %8084 = vmatpush.bf16.msrb.mxu3 %v12981_v62  ;;  %8071 = vmatpush.bf16.msrb.mxu2 %v12977_v49  ;;  %15788 = vtanh.f32 %v7569_v60  ;;  %v13929_v49 = vor.u32 %v15347_v46, %v13926_v34  ;;  %v1548_v60 = vperm.slane %v17977_v15, 0  ;;  %v15348_v46 = vld [vmem:[%s16596_s13 + $0x179c] sm:$0xf]  ;;  %v13934_v34 = vld [vmem:[%s16596_s13 + $0x1b34] sm:$0xf0] }
 0x31f   : > { %8097 = vmatpush.bf16.msrb.mxu0 %v12985_v54  ;;  %8110 = vmatpush.bf16.msrb.mxu1 %v12989_v3  ;;  %v15785_v24 = vpop.eup %15784  ;;  %15790 = vtanh.f32 %v7556_v12  ;;  %v15231_v3 = vld [vmem:[%s16596_s13 + $0x13f0] sm:$0xf0]  ;;  %v12070_v12 = vld [vmem:[%s16596_s13 + $0xcb4] sm:$0xf0] }
 0x320   : > { %v15787_v28 = vpop.eup %15786  ;;  %v10081_v43 = vrot.slane %v15785_v24, 4  ;;  %v12073_v27 = vor.u32 %v14884_v11, %v12070_v12  ;;  %v13008_v11 = vld [vmem:[%s16596_s13 + $0x1060] sm:$0xf]  ;;  %v15232_v12 = vld [vmem:[%s16596_s13 + $0x13f8] sm:$0xf0] }
 0x321   : > { %v10082_v45 = vrot.slane %v15787_v28, 2  ;;  %v12069_v28 = vor.u32 %v14999_v18, %v12068_v5  ;;  %v15118_v5 = vld [vmem:[%s16596_s13 + $0x106c] sm:$0xf]  ;;  %v13018_v18 = vld [vmem:[%s16596_s13 + $0x1404] sm:$0xf0] }
 0x322   : > { %8085 = vmatpush.bf16.msrb.mxu3 %v12057_v16  ;;  %8072 = vmatpush.bf16.msrb.mxu2 %v12053_v17  ;;  %v13001_v16 = vor.u32 %v15231_v3, %v13000_v1  ;;  %v13005_v17 = vor.u32 %v15116_v4, %v13002_v6  ;;  %v15117_v4 = vld [vmem:[%s16596_s13 + $0x1064] sm:$0xf]  ;;  %v13010_v6 = vld [vmem:[%s16596_s13 + $0x13fc] sm:$0xf0] }
 0x323   : > { %v7557_v36 = vpop.f32.mrf.mxu2  ;;  %v7570_v38 = vpop.f32.mrf.mxu3  ;;  %8098 = vmatpush.bf16.msrb.mxu0 %v12061_v19  ;;  %8111 = vmatpush.bf16.msrb.mxu1 %v12065_v21  ;;  %v10257_v2 = vsel %vm10198_vm3, %v10081_v43, %v10082_v45  ;;  %v12076_v19 = vld [vmem:[%s16596_s13 + $0x920] sm:$0xf]  ;;  %v11145_v45 = vor.u32 %v14768_v37, %v11144_v33  ;;  %v14887_v33 = vld [vmem:[%s16596_s13 + $0x934] sm:$0xf]  ;;  %v12094_v37 = vld [vmem:[%s16596_s13 + $0xccc] sm:$0xf0] }
 0x324   : > { %v15789_v47 = vpop.eup %15788  ;;  %v14769_v38 = vld [vmem:[%s16596_s13 + $0x580] sm:$0xf0] }
 0x325   : > { %v10080_v50 = vrot.slane %v15789_v47, 6  ;;  %v15791_v59 = vpop.eup %15790  ;;  %v13932_v47 = vld [vmem:[%s16596_s13 + $0x1798] sm:$0xf] }
 0x326   : > { %v7633_v51 = vpop.f32.mrf.mxu0  ;;  %v7646_v52 = vpop.f32.mrf.mxu1  ;;  %8086 = vmatpush.bf16.msrb.mxu3 %v11133_v20  ;;  %8073 = vmatpush.bf16.msrb.mxu2 %v11129_v32  ;;  %v12077_v20 = vor.u32 %v15000_v22, %v12076_v19  ;;  %v12081_v32 = vor.u32 %v14885_v10, %v12078_v23  ;;  %v13013_v22 = vor.u32 %v15117_v4, %v13010_v6  ;;  %v14886_v23 = vld [vmem:[%s16596_s13 + $0x92c] sm:$0xf] }
 0x327   : > { %v7634_v61 = vadd.f32 %v7633_v51, %v1550_v30  ;;  %v7647_v62 = vadd.f32 %v7646_v52, %v1551_v31  ;;  %8099 = vmatpush.bf16.msrb.mxu0 %v11137_v39  ;;  %8112 = vmatpush.bf16.msrb.mxu1 %v11141_v40  ;;  %v10256_v54 = vsel %vm10196_vm4, %v15791_v59, %v10080_v50  ;;  %v14653_v30 = vld [vmem:[%s16596_s13 + $0x1e4] sm:$0xf]  ;;  %v11146_v31 = vld [vmem:[%s16596_s13 + $0x57c] sm:$0xf0]  ;;  %v14654_v39 = vld [vmem:[%s16596_s13 + $0x1ec] sm:$0xf] }
 0x328   : > { %14470 = vmatmul.msk.bf16.vlgmr.msra.gmra.mxu2 %vm6554_vm2, %v16674_v55  ;;  %14471 = vmatmul.msk.bf16.vlgmr.msra.gmra.mxu3 %vm6554_vm2, %v16674_v55  ;;  %v10258_v7 = vsel %vm10200_vm5, %v10256_v54, %v10257_v2  ;;  %v11154_v40 = vld [vmem:[%s16596_s13 + $0x584] sm:$0xf0]  ;;  %v11149_v43 = vor.u32 %v14653_v30, %v11146_v31  ;;  %v11153_v51 = vor.u32 %v14769_v38, %v11152_v35  ;;  %v15349_v59 = vld [vmem:[%s16596_s13 + $0x17a4] sm:$0xf]  ;;  %v12092_v31 = vld [vmem:[%s16596_s13 + $0x930] sm:$0xf] }
 0x329   : > { %14472 = vmatmul.msk.bf16.vlgmr.msra.gmra.mxu0 %vm6554_vm2, %v16674_v55  ;;  %14473 = vmatmul.msk.bf16.vlgmr.msra.gmra.mxu1 %vm6554_vm2, %v16674_v55  ;;  %10449 = vst [vmem:[%s17074_s16 + $0x98] sm:$0xff] %v10258_v7  ;;  %15792 = vtanh.f32 %v7634_v61  ;;  %v11157_v52 = vor.u32 %v14654_v39, %v11154_v40  ;;  %v13942_v61 = vld [vmem:[%s16596_s13 + $0x1b3c] sm:$0xf0]  ;;  %v13937_v2 = vor.u32 %v15348_v46, %v13934_v34  ;;  %v15001_v30 = vld [vmem:[%s16596_s13 + $0xcc0] sm:$0xf0] }
 0x32a   : > { %8135 = vmatpush.bf16.msra.mxu3 %v13921_v53  ;;  %8122 = vmatpush.bf16.msra.mxu2 %v13917_v56  ;;  %15794 = vtanh.f32 %v7647_v62  ;;  %v15463_v53 = vld [vmem:[%s16596_s13 + $0x1b30] sm:$0xf0]  ;;  %v13940_v56 = vld [vmem:[%s16596_s13 + $0x17a0] sm:$0xf]  ;;  %v13009_v10 = vor.u32 %v15232_v12, %v13008_v11  ;;  %v11160_v46 = vld [vmem:[%s16596_s13 + $0x1f0] sm:$0xf] }
 0x32b   : > { %v7607_v13 = vpop.f32.mrf.mxu2  ;;  %v7620_v14 = vpop.f32.mrf.mxu3  ;;  %8148 = vmatpush.bf16.msra.mxu0 %v13925_v57  ;;  %8161 = vmatpush.bf16.msra.mxu1 %v13929_v49  ;;  %v15464_v57 = vld [vmem:[%s16596_s13 + $0x1b38] sm:$0xf0]  ;;  %v1553_v49 = vperm.slane %v17977_v15, 5  ;;  %v13933_v54 = vor.u32 %v15463_v53, %v13932_v47  ;;  %v14770_v34 = vld [vmem:[%s16596_s13 + $0x588] sm:$0xf0] }
 0x32c   : > { %v7621_v21 = vadd.f32 %v7620_v14, %v1549_v48  ;;  %v7608_v24 = vadd.f32 %v7607_v13, %v1548_v60  ;;  %v13941_v3 = vor.u32 %v15464_v57, %v13940_v56  ;;  %v13016_v13 = vld [vmem:[%s16596_s13 + $0x1068] sm:$0xf]  ;;  %v18076_v39 = vld [vmem:[%s16983_s22 + $0x58] sm:$0xff] }
 0x32d   : > { %v11168_v47 = vld [vmem:[%s16596_s13 + $0x1f8] sm:$0xf]  ;;  %v1558_v56 = vperm.slane %v18076_v39, 2  ;;  %v1559_v57 = vperm.slane %v18076_v39, 3 }
 0x32e   : > { %v7635_v25 = vpop.f32.mrf.mxu0  ;;  %v7648_v26 = vpop.f32.mrf.mxu1  ;;  %8136 = vmatpush.bf16.msra.mxu3 %v12997_v8  ;;  %8123 = vmatpush.bf16.msra.mxu2 %v12993_v9  ;;  %15796 = vtanh.f32 %v7621_v21  ;;  %v13945_v9 = vor.u32 %v15349_v59, %v13942_v61  ;;  %v1552_v21 = vperm.slane %v17977_v15, 4  ;;  %v15350_v59 = vld [vmem:[%s16596_s13 + $0x17ac] sm:$0xf]  ;;  %v13950_v61 = vld [vmem:[%s16596_s13 + $0x1b44] sm:$0xf0] }
 0x32f   : > { %8149 = vmatpush.bf16.msra.mxu0 %v13001_v16  ;;  %8162 = vmatpush.bf16.msra.mxu1 %v13005_v17  ;;  %v15793_v36 = vpop.eup %15792  ;;  %15798 = vtanh.f32 %v7608_v24  ;;  %v15233_v17 = vld [vmem:[%s16596_s13 + $0x1400] sm:$0xf0]  ;;  %v12086_v24 = vld [vmem:[%s16596_s13 + $0xcc4] sm:$0xf0] }
 0x330   : > { %v15795_v41 = vpop.eup %15794  ;;  %v10084_v44 = vrot.slane %v15793_v36, 4  ;;  %v13017_v15 = vor.u32 %v15233_v17, %v13016_v13  ;;  %v12089_v40 = vor.u32 %v14886_v23, %v12086_v24  ;;  %v13024_v23 = vld [vmem:[%s16596_s13 + $0x1070] sm:$0xf]  ;;  %v15234_v24 = vld [vmem:[%s16596_s13 + $0x1408] sm:$0xf0] }
 0x331   : > { %v10085_v58 = vrot.slane %v15795_v41, 2 }
 0x332   : > { %8137 = vmatpush.bf16.msra.mxu3 %v12073_v27  ;;  %8124 = vmatpush.bf16.msra.mxu2 %v12069_v28  ;;  %v13021_v27 = vor.u32 %v15118_v5, %v13018_v18  ;;  %v12084_v28 = vld [vmem:[%s16596_s13 + $0x928] sm:$0xf]  ;;  %v15119_v5 = vld [vmem:[%s16596_s13 + $0x1074] sm:$0xf]  ;;  %v13026_v18 = vld [vmem:[%s16596_s13 + $0x140c] sm:$0xf0] }
 0x333   : > { %v7609_v48 = vpop.f32.mrf.mxu2  ;;  %v7622_v50 = vpop.f32.mrf.mxu3  ;;  %8150 = vmatpush.bf16.msra.mxu0 %v12077_v20  ;;  %8163 = vmatpush.bf16.msra.mxu1 %v12081_v32  ;;  %v10260_v14 = vsel %vm10198_vm3, %v10084_v44, %v10085_v58  ;;  %v15002_v32 = vld [vmem:[%s16596_s13 + $0xcc8] sm:$0xf0]  ;;  %v12085_v41 = vor.u32 %v15001_v30, %v12084_v28  ;;  %v11161_v58 = vor.u32 %v14770_v34, %v11160_v46  ;;  %v15120_v28 = vld [vmem:[%s16596_s13 + $0x107c] sm:$0xf]  ;;  %v13034_v30 = vld [vmem:[%s16596_s13 + $0x1414] sm:$0xf0] }
 0x334   : > { %v15797_v62 = vpop.eup %15796  ;;  %v14771_v50 = vld [vmem:[%s16596_s13 + $0x590] sm:$0xf0]  ;;  %v15004_v46 = vld [vmem:[%s16596_s13 + $0xcd8] sm:$0xf0]  ;;  %v14889_v34 = vld [vmem:[%s16596_s13 + $0x944] sm:$0xf] }
 0x335   : > { %v10083_v63 = vrot.slane %v15797_v62, 6  ;;  %v15799_v7 = vpop.eup %15798  ;;  %v13948_v62 = vld [vmem:[%s16596_s13 + $0x17a8] sm:$0xf] }
 0x336   : > { %v7685_v0 = vpop.f32.mrf.mxu0  ;;  %v7698_v1 = vpop.f32.mrf.mxu1  ;;  %8138 = vmatpush.bf16.msra.mxu3 %v11149_v43  ;;  %8125 = vmatpush.bf16.msra.mxu2 %v11145_v45  ;;  %v12093_v43 = vor.u32 %v15002_v32, %v12092_v31  ;;  %v12097_v45 = vor.u32 %v14887_v33, %v12094_v37  ;;  %v13029_v32 = vor.u32 %v15119_v5, %v13026_v18  ;;  %v14888_v37 = vld [vmem:[%s16596_s13 + $0x93c] sm:$0xf] }
 0x337   : > { %v7686_v60 = vadd.f32 %v7685_v0, %v1554_v29  ;;  %v7699_v8 = vadd.f32 %v7698_v1, %v1555_v42  ;;  %8151 = vmatpush.bf16.msra.mxu0 %v11153_v51  ;;  %8164 = vmatpush.bf16.msra.mxu1 %v11157_v52  ;;  %v10259_v16 = vsel %vm10196_vm4, %v15799_v7, %v10083_v63  ;;  %v14655_v29 = vld [vmem:[%s16596_s13 + $0x1f4] sm:$0xf]  ;;  %v11162_v42 = vld [vmem:[%s16596_s13 + $0x58c] sm:$0xf0]  ;;  %v14656_v51 = vld [vmem:[%s16596_s13 + $0x1fc] sm:$0xf] }
 0x338   : > { %14474 = vmatmul.msk.bf16.vlgmr.msrb.gmra.mxu2 %vm6554_vm2, %v16674_v55  ;;  %14475 = vmatmul.msk.bf16.vlgmr.msrb.gmra.mxu3 %vm6554_vm2, %v16674_v55  ;;  %v10261_v19 = vsel %vm10200_vm5, %v10259_v16, %v10260_v14  ;;  %v11170_v52 = vld [vmem:[%s16596_s13 + $0x594] sm:$0xf0]  ;;  %v11165_v44 = vor.u32 %v14655_v29, %v11162_v42  ;;  %v11169_v0 = vor.u32 %v14771_v50, %v11168_v47  ;;  %v15351_v7 = vld [vmem:[%s16596_s13 + $0x17b4] sm:$0xf]  ;;  %v12110_v47 = vld [vmem:[%s16596_s13 + $0xcdc] sm:$0xf0] }
 0x339   : > { %14476 = vmatmul.msk.bf16.vlgmr.msrb.gmra.mxu0 %vm6554_vm2, %v16674_v55  ;;  %14477 = vmatmul.msk.bf16.vlgmr.msrb.gmra.mxu1 %vm6554_vm2, %v16674_v55  ;;  %10450 = vst [vmem:[%s17074_s16 + $0xa0] sm:$0xff] %v10261_v19  ;;  %15800 = vtanh.f32 %v7686_v60  ;;  %v11173_v1 = vor.u32 %v14656_v51, %v11170_v52  ;;  %v13958_v60 = vld [vmem:[%s16596_s13 + $0x1b4c] sm:$0xf0]  ;;  %v13953_v14 = vor.u32 %v15350_v59, %v13950_v61  ;;  %v12100_v29 = vld [vmem:[%s16596_s13 + $0x938] sm:$0xf] }
 0x33a   : > { %8187 = vmatpush.bf16.msrb.mxu3 %v13937_v2  ;;  %8174 = vmatpush.bf16.msrb.mxu2 %v13933_v54  ;;  %15802 = vtanh.f32 %v7699_v8  ;;  %v15465_v2 = vld [vmem:[%s16596_s13 + $0x1b40] sm:$0xf0]  ;;  %v13956_v54 = vld [vmem:[%s16596_s13 + $0x17b0] sm:$0xf]  ;;  %v13025_v33 = vor.u32 %v15234_v24, %v13024_v23  ;;  %v15003_v42 = vld [vmem:[%s16596_s13 + $0xcd0] sm:$0xf0] }
 0x33b   : > { %v7659_v25 = vpop.f32.mrf.mxu2  ;;  %v7672_v26 = vpop.f32.mrf.mxu3  ;;  %8200 = vmatpush.bf16.msrb.mxu0 %v13941_v3  ;;  %8213 = vmatpush.bf16.msrb.mxu1 %v13945_v9  ;;  %v15466_v3 = vld [vmem:[%s16596_s13 + $0x1b48] sm:$0xf0]  ;;  %v1557_v9 = vperm.slane %v18076_v39, 1  ;;  %v13949_v16 = vor.u32 %v15465_v2, %v13948_v62  ;;  %v11176_v59 = vld [vmem:[%s16596_s13 + $0x200] sm:$0xf] }
 0x33c   : > { %v7673_v20 = vadd.f32 %v7672_v26, %v1553_v49  ;;  %v7660_v35 = vadd.f32 %v7659_v25, %v1552_v21  ;;  %v13957_v17 = vor.u32 %v15466_v3, %v13956_v54  ;;  %v13032_v25 = vld [vmem:[%s16596_s13 + $0x1078] sm:$0xf]  ;;  %v14772_v61 = vld [vmem:[%s16596_s13 + $0x598] sm:$0xf0]  ;;  %v11184_v62 = vld [vmem:[%s16596_s13 + $0x208] sm:$0xf] }
 0x33d   : > { %v1562_v54 = vperm.slane %v18076_v39, 6  ;;  %v1563_v3 = vperm.slane %v18076_v39, 7 }
 0x33e   : > { %v7687_v36 = vpop.f32.mrf.mxu0  ;;  %v7700_v38 = vpop.f32.mrf.mxu1  ;;  %8188 = vmatpush.bf16.msrb.mxu3 %v13013_v22  ;;  %8175 = vmatpush.bf16.msrb.mxu2 %v13009_v10  ;;  %15804 = vtanh.f32 %v7673_v20  ;;  %v13961_v10 = vor.u32 %v15351_v7, %v13958_v60  ;;  %v1556_v20 = vperm.slane %v18076_v39, 0  ;;  %v15352_v7 = vld [vmem:[%s16596_s13 + $0x17bc] sm:$0xf]  ;;  %v13966_v60 = vld [vmem:[%s16596_s13 + $0x1b54] sm:$0xf0] }
 0x33f   : > { %8201 = vmatpush.bf16.msrb.mxu0 %v13017_v15  ;;  %8214 = vmatpush.bf16.msrb.mxu1 %v13021_v27  ;;  %v15801_v48 = vpop.eup %15800  ;;  %15806 = vtanh.f32 %v7660_v35  ;;  %v15235_v27 = vld [vmem:[%s16596_s13 + $0x1410] sm:$0xf0]  ;;  %v12102_v35 = vld [vmem:[%s16596_s13 + $0xcd4] sm:$0xf0] }
 0x340   : > { %v15803_v53 = vpop.eup %15802  ;;  %v10087_v4 = vrot.slane %v15801_v48, 4  ;;  %v12105_v52 = vor.u32 %v14888_v37, %v12102_v35  ;;  %v13040_v37 = vld [vmem:[%s16596_s13 + $0x1080] sm:$0xf]  ;;  %v15236_v35 = vld [vmem:[%s16596_s13 + $0x1418] sm:$0xf0] }
 0x341   : > { %v10088_v6 = vrot.slane %v15803_v53, 2  ;;  %v12101_v53 = vor.u32 %v15003_v42, %v12100_v29  ;;  %v15122_v29 = vld [vmem:[%s16596_s13 + $0x108c] sm:$0xf]  ;;  %v13050_v42 = vld [vmem:[%s16596_s13 + $0x1424] sm:$0xf0] }
 0x342   : > { %8189 = vmatpush.bf16.msrb.mxu3 %v12089_v40  ;;  %8176 = vmatpush.bf16.msrb.mxu2 %v12085_v41  ;;  %v13033_v40 = vor.u32 %v15235_v27, %v13032_v25  ;;  %v13037_v41 = vor.u32 %v15120_v28, %v13034_v30  ;;  %v15121_v28 = vld [vmem:[%s16596_s13 + $0x1084] sm:$0xf]  ;;  %v13042_v30 = vld [vmem:[%s16596_s13 + $0x141c] sm:$0xf0] }
 0x343   : > { %v7661_v49 = vpop.f32.mrf.mxu2  ;;  %v7674_v63 = vpop.f32.mrf.mxu3  ;;  %8202 = vmatpush.bf16.msrb.mxu0 %v12093_v43  ;;  %8215 = vmatpush.bf16.msrb.mxu1 %v12097_v45  ;;  %v10263_v26 = vsel %vm10198_vm3, %v10087_v4, %v10088_v6  ;;  %v12108_v43 = vld [vmem:[%s16596_s13 + $0x940] sm:$0xf]  ;;  %v11177_v6 = vor.u32 %v14772_v61, %v11176_v59  ;;  %v14891_v59 = vld [vmem:[%s16596_s13 + $0x954] sm:$0xf]  ;;  %v12126_v61 = vld [vmem:[%s16596_s13 + $0xcec] sm:$0xf0] }
 0x344   : > { %v15805_v8 = vpop.eup %15804  ;;  %v14773_v63 = vld [vmem:[%s16596_s13 + $0x5a0] sm:$0xf0] }
 0x345   : > { %v10086_v11 = vrot.slane %v15805_v8, 6  ;;  %v15807_v19 = vpop.eup %15806  ;;  %v13964_v8 = vld [vmem:[%s16596_s13 + $0x17b8] sm:$0xf] }
 0x346   : > { %v7737_v12 = vpop.f32.mrf.mxu0  ;;  %v7750_v13 = vpop.f32.mrf.mxu1  ;;  %8190 = vmatpush.bf16.msrb.mxu3 %v11165_v44  ;;  %8177 = vmatpush.bf16.msrb.mxu2 %v11161_v58  ;;  %v12109_v44 = vor.u32 %v15004_v46, %v12108_v43  ;;  %v12113_v58 = vor.u32 %v14889_v34, %v12110_v47  ;;  %v13045_v46 = vor.u32 %v15121_v28, %v13042_v30  ;;  %v14890_v47 = vld [vmem:[%s16596_s13 + $0x94c] sm:$0xf] }
 0x347   : > { %v7738_v21 = vadd.f32 %v7737_v12, %v1558_v56  ;;  %v7751_v22 = vadd.f32 %v7750_v13, %v1559_v57  ;;  %8203 = vmatpush.bf16.msrb.mxu0 %v11169_v0  ;;  %8216 = vmatpush.bf16.msrb.mxu1 %v11173_v1  ;;  %v10262_v15 = vsel %vm10196_vm4, %v15807_v19, %v10086_v11  ;;  %v14657_v56 = vld [vmem:[%s16596_s13 + $0x204] sm:$0xf]  ;;  %v11178_v57 = vld [vmem:[%s16596_s13 + $0x59c] sm:$0xf0]  ;;  %v14658_v0 = vld [vmem:[%s16596_s13 + $0x20c] sm:$0xf] }
 0x348   : > { %14478 = vmatmul.msk.bf16.vlgmr.msra.gmra.mxu2 %vm6554_vm2, %v16674_v55  ;;  %14479 = vmatmul.msk.bf16.vlgmr.msra.gmra.mxu3 %vm6554_vm2, %v16674_v55  ;;  %v10264_v31 = vsel %vm10200_vm5, %v10262_v15, %v10263_v26  ;;  %v11186_v1 = vld [vmem:[%s16596_s13 + $0x5a4] sm:$0xf0]  ;;  %v11181_v4 = vor.u32 %v14657_v56, %v11178_v57  ;;  %v11185_v12 = vor.u32 %v14773_v63, %v11184_v62  ;;  %v15353_v19 = vld [vmem:[%s16596_s13 + $0x17c4] sm:$0xf]  ;;  %v12124_v57 = vld [vmem:[%s16596_s13 + $0x950] sm:$0xf] }
 0x349   : > { %14480 = vmatmul.msk.bf16.vlgmr.msra.gmra.mxu0 %vm6554_vm2, %v16674_v55  ;;  %14481 = vmatmul.msk.bf16.vlgmr.msra.gmra.mxu1 %vm6554_vm2, %v16674_v55  ;;  %10451 = vst [vmem:[%s17074_s16 + $0xa8] sm:$0xff] %v10264_v31  ;;  %15808 = vtanh.f32 %v7738_v21  ;;  %v11189_v13 = vor.u32 %v14658_v0, %v11186_v1  ;;  %v13974_v21 = vld [vmem:[%s16596_s13 + $0x1b5c] sm:$0xf0]  ;;  %v13969_v26 = vor.u32 %v15352_v7, %v13966_v60  ;;  %v15005_v56 = vld [vmem:[%s16596_s13 + $0xce0] sm:$0xf0] }
 0x34a   : > { %8239 = vmatpush.bf16.msra.mxu3 %v13953_v14  ;;  %8226 = vmatpush.bf16.msra.mxu2 %v13949_v16  ;;  %15810 = vtanh.f32 %v7751_v22  ;;  %v15467_v14 = vld [vmem:[%s16596_s13 + $0x1b50] sm:$0xf0]  ;;  %v13972_v16 = vld [vmem:[%s16596_s13 + $0x17c0] sm:$0xf]  ;;  %v13041_v34 = vor.u32 %v15236_v35, %v13040_v37  ;;  %v11192_v7 = vld [vmem:[%s16596_s13 + $0x210] sm:$0xf] }
 0x34b   : > { %v7711_v36 = vpop.f32.mrf.mxu2  ;;  %v7724_v38 = vpop.f32.mrf.mxu3  ;;  %8252 = vmatpush.bf16.msra.mxu0 %v13957_v17  ;;  %8265 = vmatpush.bf16.msra.mxu1 %v13961_v10  ;;  %v15468_v17 = vld [vmem:[%s16596_s13 + $0x1b58] sm:$0xf0]  ;;  %v1561_v10 = vperm.slane %v18076_v39, 5  ;;  %v13965_v15 = vor.u32 %v15467_v14, %v13964_v8  ;;  %v18175_v0 = vld [vmem:[%s16983_s22 + $0x60] sm:$0xff]  ;;  %v11200_v8 = vld [vmem:[%s16596_s13 + $0x218] sm:$0xf] }
 0x34c   : > { %v7725_v45 = vadd.f32 %v7724_v38, %v1557_v9  ;;  %v7712_v48 = vadd.f32 %v7711_v36, %v1556_v20  ;;  %v13973_v27 = vor.u32 %v15468_v17, %v13972_v16  ;;  %v13048_v36 = vld [vmem:[%s16596_s13 + $0x1088] sm:$0xf]  ;;  %v14774_v60 = vld [vmem:[%s16596_s13 + $0x5a8] sm:$0xf0]  ;;  %v1566_v16 = vperm.slane %v18175_v0, 2 }
 0x34d   : > { %v1567_v17 = vperm.slane %v18175_v0, 3 }
 0x34e   : > { %v7739_v50 = vpop.f32.mrf.mxu0  ;;  %v7752_v51 = vpop.f32.mrf.mxu1  ;;  %8240 = vmatpush.bf16.msra.mxu3 %v13029_v32  ;;  %8227 = vmatpush.bf16.msra.mxu2 %v13025_v33  ;;  %15812 = vtanh.f32 %v7725_v45  ;;  %v13977_v33 = vor.u32 %v15353_v19, %v13974_v21  ;;  %v1560_v45 = vperm.slane %v18076_v39, 4  ;;  %v15354_v19 = vld [vmem:[%s16596_s13 + $0x17cc] sm:$0xf]  ;;  %v13982_v21 = vld [vmem:[%s16596_s13 + $0x1b64] sm:$0xf0] }
 0x34f   : > { %8253 = vmatpush.bf16.msra.mxu0 %v13033_v40  ;;  %8266 = vmatpush.bf16.msra.mxu1 %v13037_v41  ;;  %v15809_v49 = vpop.eup %15808  ;;  %15814 = vtanh.f32 %v7712_v48  ;;  %v15237_v41 = vld [vmem:[%s16596_s13 + $0x1420] sm:$0xf0]  ;;  %v12118_v48 = vld [vmem:[%s16596_s13 + $0xce4] sm:$0xf0] }
 0x350   : > { %v15811_v2 = vpop.eup %15810  ;;  %v10090_v5 = vrot.slane %v15809_v49, 4  ;;  %v13049_v39 = vor.u32 %v15237_v41, %v13048_v36  ;;  %v12121_v1 = vor.u32 %v14890_v47, %v12118_v48  ;;  %v13056_v47 = vld [vmem:[%s16596_s13 + $0x1090] sm:$0xf]  ;;  %v15238_v48 = vld [vmem:[%s16596_s13 + $0x1428] sm:$0xf0] }
 0x351   : > { %v10091_v18 = vrot.slane %v15811_v2, 2 }
 0x352   : > { %8241 = vmatpush.bf16.msra.mxu3 %v12105_v52  ;;  %8228 = vmatpush.bf16.msra.mxu2 %v12101_v53  ;;  %v13053_v52 = vor.u32 %v15122_v29, %v13050_v42  ;;  %v12116_v53 = vld [vmem:[%s16596_s13 + $0x948] sm:$0xf]  ;;  %v15123_v29 = vld [vmem:[%s16596_s13 + $0x1094] sm:$0xf]  ;;  %v13058_v42 = vld [vmem:[%s16596_s13 + $0x142c] sm:$0xf0] }
 0x353   : > { %v7713_v9 = vpop.f32.mrf.mxu2  ;;  %v7726_v11 = vpop.f32.mrf.mxu3  ;;  %8254 = vmatpush.bf16.msra.mxu0 %v12109_v44  ;;  %8267 = vmatpush.bf16.msra.mxu1 %v12113_v58  ;;  %v10266_v38 = vsel %vm10198_vm3, %v10090_v5, %v10091_v18  ;;  %v15006_v58 = vld [vmem:[%s16596_s13 + $0xce8] sm:$0xf0]  ;;  %v12117_v2 = vor.u32 %v15005_v56, %v12116_v53  ;;  %v11193_v18 = vor.u32 %v14774_v60, %v11192_v7  ;;  %v15124_v53 = vld [vmem:[%s16596_s13 + $0x109c] sm:$0xf]  ;;  %v13066_v56 = vld [vmem:[%s16596_s13 + $0x1434] sm:$0xf0] }
 0x354   : > { %v15813_v22 = vpop.eup %15812  ;;  %v14775_v11 = vld [vmem:[%s16596_s13 + $0x5b0] sm:$0xf0]  ;;  %v15008_v7 = vld [vmem:[%s16596_s13 + $0xcf8] sm:$0xf0]  ;;  %v14893_v60 = vld [vmem:[%s16596_s13 + $0x964] sm:$0xf] }
 0x355   : > { %v10089_v23 = vrot.slane %v15813_v22, 6  ;;  %v15815_v31 = vpop.eup %15814  ;;  %v13980_v22 = vld [vmem:[%s16596_s13 + $0x17c8] sm:$0xf] }
 0x356   : > { %v7789_v24 = vpop.f32.mrf.mxu0  ;;  %v7802_v25 = vpop.f32.mrf.mxu1  ;;  %8242 = vmatpush.bf16.msra.mxu3 %v11181_v4  ;;  %8229 = vmatpush.bf16.msra.mxu2 %v11177_v6  ;;  %v12125_v4 = vor.u32 %v15006_v58, %v12124_v57  ;;  %v12129_v6 = vor.u32 %v14891_v59, %v12126_v61  ;;  %v13061_v58 = vor.u32 %v15123_v29, %v13058_v42  ;;  %v14892_v61 = vld [vmem:[%s16596_s13 + $0x95c] sm:$0xf] }
 0x357   : > { %v7790_v20 = vadd.f32 %v7789_v24, %v1562_v54  ;;  %v7803_v32 = vadd.f32 %v7802_v25, %v1563_v3  ;;  %8255 = vmatpush.bf16.msra.mxu0 %v11185_v12  ;;  %8268 = vmatpush.bf16.msra.mxu1 %v11189_v13  ;;  %v10265_v40 = vsel %vm10196_vm4, %v15815_v31, %v10089_v23  ;;  %v14659_v54 = vld [vmem:[%s16596_s13 + $0x214] sm:$0xf]  ;;  %v11194_v3 = vld [vmem:[%s16596_s13 + $0x5ac] sm:$0xf0]  ;;  %v14660_v12 = vld [vmem:[%s16596_s13 + $0x21c] sm:$0xf] }
 0x358   : > { %14482 = vmatmul.msk.bf16.vlgmr.msrb.gmra.mxu2 %vm6554_vm2, %v16674_v55  ;;  %14483 = vmatmul.msk.bf16.vlgmr.msrb.gmra.mxu3 %vm6554_vm2, %v16674_v55  ;;  %v10267_v43 = vsel %vm10200_vm5, %v10265_v40, %v10266_v38  ;;  %v11202_v13 = vld [vmem:[%s16596_s13 + $0x5b4] sm:$0xf0]  ;;  %v11197_v5 = vor.u32 %v14659_v54, %v11194_v3  ;;  %v11201_v24 = vor.u32 %v14775_v11, %v11200_v8  ;;  %v15355_v31 = vld [vmem:[%s16596_s13 + $0x17d4] sm:$0xf]  ;;  %v12142_v8 = vld [vmem:[%s16596_s13 + $0xcfc] sm:$0xf0] }
 0x359   : > { %14484 = vmatmul.msk.bf16.vlgmr.msrb.gmra.mxu0 %vm6554_vm2, %v16674_v55  ;;  %14485 = vmatmul.msk.bf16.vlgmr.msrb.gmra.mxu1 %vm6554_vm2, %v16674_v55  ;;  %10452 = vst [vmem:[%s17074_s16 + $0xb0] sm:$0xff] %v10267_v43  ;;  %15816 = vtanh.f32 %v7790_v20  ;;  %v11205_v25 = vor.u32 %v14660_v12, %v11202_v13  ;;  %v13990_v20 = vld [vmem:[%s16596_s13 + $0x1b6c] sm:$0xf0]  ;;  %v13985_v38 = vor.u32 %v15354_v19, %v13982_v21  ;;  %v12132_v54 = vld [vmem:[%s16596_s13 + $0x958] sm:$0xf] }
 0x35a   : > { %8291 = vmatpush.bf16.msrb.mxu3 %v13969_v26  ;;  %8278 = vmatpush.bf16.msrb.mxu2 %v13965_v15  ;;  %15818 = vtanh.f32 %v7803_v32  ;;  %v15469_v26 = vld [vmem:[%s16596_s13 + $0x1b60] sm:$0xf0]  ;;  %v13988_v15 = vld [vmem:[%s16596_s13 + $0x17d0] sm:$0xf]  ;;  %v13057_v59 = vor.u32 %v15238_v48, %v13056_v47  ;;  %v15007_v3 = vld [vmem:[%s16596_s13 + $0xcf0] sm:$0xf0] }
 0x35b   : > { %v7763_v50 = vpop.f32.mrf.mxu2  ;;  %v7776_v51 = vpop.f32.mrf.mxu3  ;;  %8304 = vmatpush.bf16.msrb.mxu0 %v13973_v27  ;;  %8317 = vmatpush.bf16.msrb.mxu1 %v13977_v33  ;;  %v15470_v27 = vld [vmem:[%s16596_s13 + $0x1b68] sm:$0xf0]  ;;  %v1565_v33 = vperm.slane %v18175_v0, 1  ;;  %v13981_v40 = vor.u32 %v15469_v26, %v13980_v22  ;;  %v11208_v19 = vld [vmem:[%s16596_s13 + $0x220] sm:$0xf] }
 0x35c   : > { %v7777_v44 = vadd.f32 %v7776_v51, %v1561_v10  ;;  %v7764_v62 = vadd.f32 %v7763_v50, %v1560_v45  ;;  %v13989_v41 = vor.u32 %v15470_v27, %v13988_v15  ;;  %v13064_v50 = vld [vmem:[%s16596_s13 + $0x1098] sm:$0xf]  ;;  %v14776_v21 = vld [vmem:[%s16596_s13 + $0x5b8] sm:$0xf0]  ;;  %v11216_v22 = vld [vmem:[%s16596_s13 + $0x228] sm:$0xf] }
 0x35d   : > { %v1570_v15 = vperm.slane %v18175_v0, 6  ;;  %v1571_v27 = vperm.slane %v18175_v0, 7 }
 0x35e   : > { %v7791_v49 = vpop.f32.mrf.mxu0  ;;  %v7804_v63 = vpop.f32.mrf.mxu1  ;;  %8292 = vmatpush.bf16.msrb.mxu3 %v13045_v46  ;;  %8279 = vmatpush.bf16.msrb.mxu2 %v13041_v34  ;;  %15820 = vtanh.f32 %v7777_v44  ;;  %v13993_v34 = vor.u32 %v15355_v31, %v13990_v20  ;;  %v1564_v44 = vperm.slane %v18175_v0, 0  ;;  %v15356_v31 = vld [vmem:[%s16596_s13 + $0x17dc] sm:$0xf]  ;;  %v13998_v20 = vld [vmem:[%s16596_s13 + $0x1b74] sm:$0xf0] }
 0x35f   : > { %8305 = vmatpush.bf16.msrb.mxu0 %v13049_v39  ;;  %8318 = vmatpush.bf16.msrb.mxu1 %v13053_v52  ;;  %v15817_v9 = vpop.eup %15816  ;;  %15822 = vtanh.f32 %v7764_v62  ;;  %v15239_v52 = vld [vmem:[%s16596_s13 + $0x1430] sm:$0xf0]  ;;  %v12134_v62 = vld [vmem:[%s16596_s13 + $0xcf4] sm:$0xf0] }
 0x360   : > { %v15819_v14 = vpop.eup %15818  ;;  %v10093_v28 = vrot.slane %v15817_v9, 4  ;;  %v12137_v13 = vor.u32 %v14892_v61, %v12134_v62  ;;  %v13072_v61 = vld [vmem:[%s16596_s13 + $0x10a0] sm:$0xf]  ;;  %v15240_v62 = vld [vmem:[%s16596_s13 + $0x1438] sm:$0xf0] }
 0x361   : > { %v10094_v30 = vrot.slane %v15819_v14, 2  ;;  %v12133_v14 = vor.u32 %v15007_v3, %v12132_v54  ;;  %v15126_v54 = vld [vmem:[%s16596_s13 + $0x10ac] sm:$0xf]  ;;  %v13082_v3 = vld [vmem:[%s16596_s13 + $0x1444] sm:$0xf0] }
 0x362   : > { %8293 = vmatpush.bf16.msrb.mxu3 %v12121_v1  ;;  %8280 = vmatpush.bf16.msrb.mxu2 %v12117_v2  ;;  %v13065_v1 = vor.u32 %v15239_v52, %v13064_v50  ;;  %v13069_v2 = vor.u32 %v15124_v53, %v13066_v56  ;;  %v15125_v53 = vld [vmem:[%s16596_s13 + $0x10a4] sm:$0xf]  ;;  %v13074_v56 = vld [vmem:[%s16596_s13 + $0x143c] sm:$0xf0] }
 0x363   : > { %v7765_v10 = vpop.f32.mrf.mxu2  ;;  %v7778_v23 = vpop.f32.mrf.mxu3  ;;  %8306 = vmatpush.bf16.msrb.mxu0 %v12125_v4  ;;  %8319 = vmatpush.bf16.msrb.mxu1 %v12129_v6  ;;  %v10269_v51 = vsel %vm10198_vm3, %v10093_v28, %v10094_v30  ;;  %v12140_v4 = vld [vmem:[%s16596_s13 + $0x960] sm:$0xf]  ;;  %v11209_v30 = vor.u32 %v14776_v21, %v11208_v19  ;;  %v14895_v19 = vld [vmem:[%s16596_s13 + $0x974] sm:$0xf]  ;;  %v12158_v21 = vld [vmem:[%s16596_s13 + $0xd0c] sm:$0xf0] }
 0x364   : > { %v15821_v32 = vpop.eup %15820  ;;  %v14777_v23 = vld [vmem:[%s16596_s13 + $0x5c0] sm:$0xf0] }
 0x365   : > { %v10092_v37 = vrot.slane %v15821_v32, 6  ;;  %v15823_v43 = vpop.eup %15822  ;;  %v13996_v32 = vld [vmem:[%s16596_s13 + $0x17d8] sm:$0xf] }
 0x366   : > { %v7841_v35 = vpop.f32.mrf.mxu0  ;;  %v7854_v36 = vpop.f32.mrf.mxu1  ;;  %8294 = vmatpush.bf16.msrb.mxu3 %v11197_v5  ;;  %8281 = vmatpush.bf16.msrb.mxu2 %v11193_v18  ;;  %v12141_v5 = vor.u32 %v15008_v7, %v12140_v4  ;;  %v12145_v18 = vor.u32 %v14893_v60, %v12142_v8  ;;  %v13077_v7 = vor.u32 %v15125_v53, %v13074_v56  ;;  %v14894_v8 = vld [vmem:[%s16596_s13 + $0x96c] sm:$0xf] }
 0x367   : > { %v7842_v45 = vadd.f32 %v7841_v35, %v1566_v16  ;;  %v7855_v46 = vadd.f32 %v7854_v36, %v1567_v17  ;;  %8307 = vmatpush.bf16.msrb.mxu0 %v11201_v24  ;;  %8320 = vmatpush.bf16.msrb.mxu1 %v11205_v25  ;;  %v10268_v39 = vsel %vm10196_vm4, %v15823_v43, %v10092_v37  ;;  %v14661_v16 = vld [vmem:[%s16596_s13 + $0x224] sm:$0xf]  ;;  %v11210_v17 = vld [vmem:[%s16596_s13 + $0x5bc] sm:$0xf0]  ;;  %v14662_v24 = vld [vmem:[%s16596_s13 + $0x22c] sm:$0xf] }
 0x368   : > { %14486 = vmatmul.msk.bf16.vlgmr.msra.gmra.mxu2 %vm6554_vm2, %v16674_v55  ;;  %14487 = vmatmul.msk.bf16.vlgmr.msra.gmra.mxu3 %vm6554_vm2, %v16674_v55  ;;  %v10270_v57 = vsel %vm10200_vm5, %v10268_v39, %v10269_v51  ;;  %v11218_v25 = vld [vmem:[%s16596_s13 + $0x5c4] sm:$0xf0]  ;;  %v11213_v28 = vor.u32 %v14661_v16, %v11210_v17  ;;  %v11217_v35 = vor.u32 %v14777_v23, %v11216_v22  ;;  %v15357_v43 = vld [vmem:[%s16596_s13 + $0x17e4] sm:$0xf]  ;;  %v12156_v17 = vld [vmem:[%s16596_s13 + $0x970] sm:$0xf] }
 0x369   : > { %14488 = vmatmul.msk.bf16.vlgmr.msra.gmra.mxu0 %vm6554_vm2, %v16674_v55  ;;  %14489 = vmatmul.msk.bf16.vlgmr.msra.gmra.mxu1 %vm6554_vm2, %v16674_v55  ;;  %10453 = vst [vmem:[%s17074_s16 + $0xb8] sm:$0xff] %v10270_v57  ;;  %15824 = vtanh.f32 %v7842_v45  ;;  %v11221_v36 = vor.u32 %v14662_v24, %v11218_v25  ;;  %v14006_v45 = vld [vmem:[%s16596_s13 + $0x1b7c] sm:$0xf0]  ;;  %v14001_v51 = vor.u32 %v15356_v31, %v13998_v20  ;;  %v15009_v16 = vld [vmem:[%s16596_s13 + $0xd00] sm:$0xf0]  ;;  %v18274_v24 = vld [vmem:[%s16983_s22 + $0x68] sm:$0xff] }
 0x36a   : > { %8343 = vmatpush.bf16.msra.mxu3 %v13985_v38  ;;  %8330 = vmatpush.bf16.msra.mxu2 %v13981_v40  ;;  %15826 = vtanh.f32 %v7855_v46  ;;  %v15471_v38 = vld [vmem:[%s16596_s13 + $0x1b70] sm:$0xf0]  ;;  %v14004_v40 = vld [vmem:[%s16596_s13 + $0x17e0] sm:$0xf]  ;;  %v13073_v60 = vor.u32 %v15240_v62, %v13072_v61  ;;  %v11224_v31 = vld [vmem:[%s16596_s13 + $0x230] sm:$0xf] }
 0x36b   : > { %v7815_v49 = vpop.f32.mrf.mxu2  ;;  %v7828_v63 = vpop.f32.mrf.mxu3  ;;  %8356 = vmatpush.bf16.msra.mxu0 %v13989_v41  ;;  %8369 = vmatpush.bf16.msra.mxu1 %v13993_v34  ;;  %v15472_v41 = vld [vmem:[%s16596_s13 + $0x1b78] sm:$0xf0]  ;;  %v1569_v34 = vperm.slane %v18175_v0, 5  ;;  %v13997_v39 = vor.u32 %v15471_v38, %v13996_v32  ;;  %v14778_v20 = vld [vmem:[%s16596_s13 + $0x5c8] sm:$0xf0] }
 0x36c   : > { %v7829_v6 = vadd.f32 %v7828_v63, %v1565_v33  ;;  %v7816_v9 = vadd.f32 %v7815_v49, %v1564_v44  ;;  %v14005_v52 = vor.u32 %v15472_v41, %v14004_v40  ;;  %v13080_v49 = vld [vmem:[%s16596_s13 + $0x10a8] sm:$0xf]  ;;  %v11232_v32 = vld [vmem:[%s16596_s13 + $0x238] sm:$0xf]  ;;  %v1574_v40 = vperm.slane %v18274_v24, 2 }
 0x36d   : > { %v1575_v41 = vperm.slane %v18274_v24, 3 }
 0x36e   : > { %v7843_v11 = vpop.f32.mrf.mxu0  ;;  %v7856_v12 = vpop.f32.mrf.mxu1  ;;  %8344 = vmatpush.bf16.msra.mxu3 %v13061_v58  ;;  %8331 = vmatpush.bf16.msra.mxu2 %v13057_v59  ;;  %15828 = vtanh.f32 %v7829_v6  ;;  %v14009_v59 = vor.u32 %v15357_v43, %v14006_v45  ;;  %v1568_v6 = vperm.slane %v18175_v0, 4  ;;  %v15358_v43 = vld [vmem:[%s16596_s13 + $0x17ec] sm:$0xf]  ;;  %v14014_v45 = vld [vmem:[%s16596_s13 + $0x1b84] sm:$0xf0] }
 0x36f   : > { %8357 = vmatpush.bf16.msra.mxu0 %v13065_v1  ;;  %8370 = vmatpush.bf16.msra.mxu1 %v13069_v2  ;;  %v15825_v10 = vpop.eup %15824  ;;  %15830 = vtanh.f32 %v7816_v9  ;;  %v15241_v2 = vld [vmem:[%s16596_s13 + $0x1440] sm:$0xf0]  ;;  %v12150_v9 = vld [vmem:[%s16596_s13 + $0xd04] sm:$0xf0] }
 0x370   : > { %v15827_v26 = vpop.eup %15826  ;;  %v10096_v29 = vrot.slane %v15825_v10, 4  ;;  %v13081_v0 = vor.u32 %v15241_v2, %v13080_v49  ;;  %v12153_v25 = vor.u32 %v14894_v8, %v12150_v9  ;;  %v13088_v8 = vld [vmem:[%s16596_s13 + $0x10b0] sm:$0xf]  ;;  %v15242_v9 = vld [vmem:[%s16596_s13 + $0x1448] sm:$0xf0] }
 0x371   : > { %v10097_v42 = vrot.slane %v15827_v26, 2 }
 0x372   : > { %8345 = vmatpush.bf16.msra.mxu3 %v12137_v13  ;;  %8332 = vmatpush.bf16.msra.mxu2 %v12133_v14  ;;  %v13085_v13 = vor.u32 %v15126_v54, %v13082_v3  ;;  %v12148_v14 = vld [vmem:[%s16596_s13 + $0x968] sm:$0xf]  ;;  %v15127_v54 = vld [vmem:[%s16596_s13 + $0x10b4] sm:$0xf]  ;;  %v13090_v3 = vld [vmem:[%s16596_s13 + $0x144c] sm:$0xf0] }
 0x373   : > { %v7817_v33 = vpop.f32.mrf.mxu2  ;;  %v7830_v37 = vpop.f32.mrf.mxu3  ;;  %8358 = vmatpush.bf16.msra.mxu0 %v12141_v5  ;;  %8371 = vmatpush.bf16.msra.mxu1 %v12145_v18  ;;  %v10272_v63 = vsel %vm10198_vm3, %v10096_v29, %v10097_v42  ;;  %v15010_v18 = vld [vmem:[%s16596_s13 + $0xd08] sm:$0xf0]  ;;  %v12149_v26 = vor.u32 %v15009_v16, %v12148_v14  ;;  %v11225_v42 = vor.u32 %v14778_v20, %v11224_v31  ;;  %v15128_v14 = vld [vmem:[%s16596_s13 + $0x10bc] sm:$0xf]  ;;  %v13098_v16 = vld [vmem:[%s16596_s13 + $0x1454] sm:$0xf0] }
 0x374   : > { %v15829_v46 = vpop.eup %15828  ;;  %v14779_v37 = vld [vmem:[%s16596_s13 + $0x5d0] sm:$0xf0]  ;;  %v15012_v31 = vld [vmem:[%s16596_s13 + $0xd18] sm:$0xf0]  ;;  %v14897_v20 = vld [vmem:[%s16596_s13 + $0x984] sm:$0xf] }
 0x375   : > { %v10095_v47 = vrot.slane %v15829_v46, 6  ;;  %v15831_v57 = vpop.eup %15830  ;;  %v14012_v46 = vld [vmem:[%s16596_s13 + $0x17e8] sm:$0xf] }
 0x376   : > { %v7893_v48 = vpop.f32.mrf.mxu0  ;;  %v7906_v50 = vpop.f32.mrf.mxu1  ;;  %8346 = vmatpush.bf16.msra.mxu3 %v11213_v28  ;;  %8333 = vmatpush.bf16.msra.mxu2 %v11209_v30  ;;  %v12157_v28 = vor.u32 %v15010_v18, %v12156_v17  ;;  %v12161_v30 = vor.u32 %v14895_v19, %v12158_v21  ;;  %v13093_v18 = vor.u32 %v15127_v54, %v13090_v3  ;;  %v14896_v21 = vld [vmem:[%s16596_s13 + $0x97c] sm:$0xf] }
 0x377   : > { %v7894_v44 = vadd.f32 %v7893_v48, %v1570_v15  ;;  %v7907_v58 = vadd.f32 %v7906_v50, %v1571_v27  ;;  %8359 = vmatpush.bf16.msra.mxu0 %v11217_v35  ;;  %8372 = vmatpush.bf16.msra.mxu1 %v11221_v36  ;;  %v10271_v1 = vsel %vm10196_vm4, %v15831_v57, %v10095_v47  ;;  %v14663_v15 = vld [vmem:[%s16596_s13 + $0x234] sm:$0xf]  ;;  %v11226_v27 = vld [vmem:[%s16596_s13 + $0x5cc] sm:$0xf0]  ;;  %v14664_v35 = vld [vmem:[%s16596_s13 + $0x23c] sm:$0xf] }
 0x378   : > { %14490 = vmatmul.msk.bf16.vlgmr.msrb.gmra.mxu2 %vm6554_vm2, %v16674_v55  ;;  %14491 = vmatmul.msk.bf16.vlgmr.msrb.gmra.mxu3 %vm6554_vm2, %v16674_v55  ;;  %v10273_v4 = vsel %vm10200_vm5, %v10271_v1, %v10272_v63  ;;  %v11234_v36 = vld [vmem:[%s16596_s13 + $0x5d4] sm:$0xf0]  ;;  %v11229_v29 = vor.u32 %v14663_v15, %v11226_v27  ;;  %v11233_v48 = vor.u32 %v14779_v37, %v11232_v32  ;;  %v15359_v57 = vld [vmem:[%s16596_s13 + $0x17f4] sm:$0xf]  ;;  %v12174_v32 = vld [vmem:[%s16596_s13 + $0xd1c] sm:$0xf0] }
 0x379   : > { %14492 = vmatmul.msk.bf16.vlgmr.msrb.gmra.mxu0 %vm6554_vm2, %v16674_v55  ;;  %14493 = vmatmul.msk.bf16.vlgmr.msrb.gmra.mxu1 %vm6554_vm2, %v16674_v55  ;;  %10454 = vst [vmem:[%s17074_s16 + $0xc0] sm:$0xff] %v10273_v4  ;;  %15832 = vtanh.f32 %v7894_v44  ;;  %v11237_v50 = vor.u32 %v14664_v35, %v11234_v36  ;;  %v14022_v44 = vld [vmem:[%s16596_s13 + $0x1b8c] sm:$0xf0]  ;;  %v14017_v63 = vor.u32 %v15358_v43, %v14014_v45  ;;  %v12164_v15 = vld [vmem:[%s16596_s13 + $0x978] sm:$0xf] }
 0x37a   : > { %8395 = vmatpush.bf16.msrb.mxu3 %v14001_v51  ;;  %8382 = vmatpush.bf16.msrb.mxu2 %v13997_v39  ;;  %15834 = vtanh.f32 %v7907_v58  ;;  %v15473_v51 = vld [vmem:[%s16596_s13 + $0x1b80] sm:$0xf0]  ;;  %v14020_v39 = vld [vmem:[%s16596_s13 + $0x17f0] sm:$0xf]  ;;  %v13089_v19 = vor.u32 %v15242_v9, %v13088_v8  ;;  %v15011_v27 = vld [vmem:[%s16596_s13 + $0xd10] sm:$0xf0] }
 0x37b   : > { %v7867_v11 = vpop.f32.mrf.mxu2  ;;  %v7880_v12 = vpop.f32.mrf.mxu3  ;;  %8408 = vmatpush.bf16.msrb.mxu0 %v14005_v52  ;;  %8421 = vmatpush.bf16.msrb.mxu1 %v14009_v59  ;;  %v15474_v52 = vld [vmem:[%s16596_s13 + $0x1b88] sm:$0xf0]  ;;  %v1573_v59 = vperm.slane %v18274_v24, 1  ;;  %v14013_v1 = vor.u32 %v15473_v51, %v14012_v46  ;;  %v11240_v43 = vld [vmem:[%s16596_s13 + $0x240] sm:$0xf] }
 0x37c   : > { %v7881_v5 = vadd.f32 %v7880_v12, %v1569_v34  ;;  %v7868_v22 = vadd.f32 %v7867_v11, %v1568_v6  ;;  %v14021_v2 = vor.u32 %v15474_v52, %v14020_v39  ;;  %v13096_v11 = vld [vmem:[%s16596_s13 + $0x10b8] sm:$0xf]  ;;  %v14780_v45 = vld [vmem:[%s16596_s13 + $0x5d8] sm:$0xf0]  ;;  %v11248_v46 = vld [vmem:[%s16596_s13 + $0x248] sm:$0xf] }
 0x37d   : > { %v1578_v39 = vperm.slane %v18274_v24, 6  ;;  %v1579_v52 = vperm.slane %v18274_v24, 7 }
 0x37e   : > { %v7895_v10 = vpop.f32.mrf.mxu0  ;;  %v7908_v23 = vpop.f32.mrf.mxu1  ;;  %8396 = vmatpush.bf16.msrb.mxu3 %v13077_v7  ;;  %8383 = vmatpush.bf16.msrb.mxu2 %v13073_v60  ;;  %15836 = vtanh.f32 %v7881_v5  ;;  %v14025_v60 = vor.u32 %v15359_v57, %v14022_v44  ;;  %v1572_v5 = vperm.slane %v18274_v24, 0  ;;  %v15360_v57 = vld [vmem:[%s16596_s13 + $0x17fc] sm:$0xf]  ;;  %v14030_v44 = vld [vmem:[%s16596_s13 + $0x1b94] sm:$0xf0] }
 0x37f   : > { %8409 = vmatpush.bf16.msrb.mxu0 %v13081_v0  ;;  %8422 = vmatpush.bf16.msrb.mxu1 %v13085_v13  ;;  %v15833_v33 = vpop.eup %15832  ;;  %15838 = vtanh.f32 %v7868_v22  ;;  %v15243_v13 = vld [vmem:[%s16596_s13 + $0x1450] sm:$0xf0]  ;;  %v12166_v22 = vld [vmem:[%s16596_s13 + $0xd14] sm:$0xf0] }
 0x380   : > { %v15835_v38 = vpop.eup %15834  ;;  %v10099_v53 = vrot.slane %v15833_v33, 4  ;;  %v12169_v36 = vor.u32 %v14896_v21, %v12166_v22  ;;  %v13104_v21 = vld [vmem:[%s16596_s13 + $0x10c0] sm:$0xf]  ;;  %v15244_v22 = vld [vmem:[%s16596_s13 + $0x1458] sm:$0xf0] }
 0x381   : > { %v10100_v56 = vrot.slane %v15835_v38, 2  ;;  %v12165_v38 = vor.u32 %v15011_v27, %v12164_v15  ;;  %v15130_v15 = vld [vmem:[%s16596_s13 + $0x10cc] sm:$0xf]  ;;  %v13114_v27 = vld [vmem:[%s16596_s13 + $0x1464] sm:$0xf0] }
 0x382   : > { %8397 = vmatpush.bf16.msrb.mxu3 %v12153_v25  ;;  %8384 = vmatpush.bf16.msrb.mxu2 %v12149_v26  ;;  %v13097_v25 = vor.u32 %v15243_v13, %v13096_v11  ;;  %v13101_v26 = vor.u32 %v15128_v14, %v13098_v16  ;;  %v15129_v14 = vld [vmem:[%s16596_s13 + $0x10c4] sm:$0xf]  ;;  %v13106_v16 = vld [vmem:[%s16596_s13 + $0x145c] sm:$0xf0] }
 0x383   : > { %v7869_v34 = vpop.f32.mrf.mxu2  ;;  %v7882_v47 = vpop.f32.mrf.mxu3  ;;  %8410 = vmatpush.bf16.msrb.mxu0 %v12157_v28  ;;  %8423 = vmatpush.bf16.msrb.mxu1 %v12161_v30  ;;  %v10275_v12 = vsel %vm10198_vm3, %v10099_v53, %v10100_v56  ;;  %v12172_v28 = vld [vmem:[%s16596_s13 + $0x980] sm:$0xf]  ;;  %v11241_v56 = vor.u32 %v14780_v45, %v11240_v43  ;;  %v14899_v43 = vld [vmem:[%s16596_s13 + $0x994] sm:$0xf]  ;;  %v12190_v45 = vld [vmem:[%s16596_s13 + $0xd2c] sm:$0xf0] }
 0x384   : > { %v15837_v58 = vpop.eup %15836  ;;  %v14781_v47 = vld [vmem:[%s16596_s13 + $0x5e0] sm:$0xf0] }
 0x385   : > { %v10098_v61 = vrot.slane %v15837_v58, 6  ;;  %v15839_v4 = vpop.eup %15838  ;;  %v14028_v58 = vld [vmem:[%s16596_s13 + $0x17f8] sm:$0xf] }
 0x386   : > { %v7945_v62 = vpop.f32.mrf.mxu0  ;;  %v7958_v49 = vpop.f32.mrf.mxu1  ;;  %8398 = vmatpush.bf16.msrb.mxu3 %v11229_v29  ;;  %8385 = vmatpush.bf16.msrb.mxu2 %v11225_v42  ;;  %v12173_v29 = vor.u32 %v15012_v31, %v12172_v28  ;;  %v12177_v42 = vor.u32 %v14897_v20, %v12174_v32  ;;  %v13109_v31 = vor.u32 %v15129_v14, %v13106_v16  ;;  %v14898_v32 = vld [vmem:[%s16596_s13 + $0x98c] sm:$0xf] }
 0x387   : > { %v7946_v6 = vadd.f32 %v7945_v62, %v1574_v40  ;;  %v7959_v7 = vadd.f32 %v7958_v49, %v1575_v41  ;;  %8411 = vmatpush.bf16.msrb.mxu0 %v11233_v48  ;;  %8424 = vmatpush.bf16.msrb.mxu1 %v11237_v50  ;;  %v10274_v0 = vsel %vm10196_vm4, %v15839_v4, %v10098_v61  ;;  %v14665_v40 = vld [vmem:[%s16596_s13 + $0x244] sm:$0xf]  ;;  %v11242_v41 = vld [vmem:[%s16596_s13 + $0x5dc] sm:$0xf0]  ;;  %v14666_v48 = vld [vmem:[%s16596_s13 + $0x24c] sm:$0xf] }
 0x388   : > { %14494 = vmatmul.msk.bf16.vlgmr.msra.gmra.mxu2 %vm6554_vm2, %v16674_v55  ;;  %14495 = vmatmul.msk.bf16.vlgmr.msra.gmra.mxu3 %vm6554_vm2, %v16674_v55  ;;  %v10276_v17 = vsel %vm10200_vm5, %v10274_v0, %v10275_v12  ;;  %v11250_v50 = vld [vmem:[%s16596_s13 + $0x5e4] sm:$0xf0]  ;;  %v11245_v53 = vor.u32 %v14665_v40, %v11242_v41  ;;  %v11249_v62 = vor.u32 %v14781_v47, %v11248_v46  ;;  %v15361_v4 = vld [vmem:[%s16596_s13 + $0x1804] sm:$0xf]  ;;  %v12188_v41 = vld [vmem:[%s16596_s13 + $0x990] sm:$0xf] }
 0x389   : > { %14496 = vmatmul.msk.bf16.vlgmr.msra.gmra.mxu0 %vm6554_vm2, %v16674_v55  ;;  %14497 = vmatmul.msk.bf16.vlgmr.msra.gmra.mxu1 %vm6554_vm2, %v16674_v55  ;;  %10455 = vst [vmem:[%s17074_s16 + $0xc8] sm:$0xff] %v10276_v17  ;;  %15840 = vtanh.f32 %v7946_v6  ;;  %v11253_v49 = vor.u32 %v14666_v48, %v11250_v50  ;;  %v14038_v6 = vld [vmem:[%s16596_s13 + $0x1b9c] sm:$0xf0]  ;;  %v14033_v12 = vor.u32 %v15360_v57, %v14030_v44  ;;  %v15013_v40 = vld [vmem:[%s16596_s13 + $0xd20] sm:$0xf0]  ;;  %v18373_v48 = vld [vmem:[%s16983_s22 + $0x70] sm:$0xff] }
 0x38a   : > { %8447 = vmatpush.bf16.msra.mxu3 %v14017_v63  ;;  %8434 = vmatpush.bf16.msra.mxu2 %v14013_v1  ;;  %15842 = vtanh.f32 %v7959_v7  ;;  %v15475_v63 = vld [vmem:[%s16596_s13 + $0x1b90] sm:$0xf0]  ;;  %v14036_v1 = vld [vmem:[%s16596_s13 + $0x1800] sm:$0xf]  ;;  %v13105_v20 = vor.u32 %v15244_v22, %v13104_v21  ;;  %v11256_v57 = vld [vmem:[%s16596_s13 + $0x250] sm:$0xf] }
 0x38b   : > { %v7919_v10 = vpop.f32.mrf.mxu2  ;;  %v7932_v23 = vpop.f32.mrf.mxu3  ;;  %8460 = vmatpush.bf16.msra.mxu0 %v14021_v2  ;;  %8473 = vmatpush.bf16.msra.mxu1 %v14025_v60  ;;  %v15476_v2 = vld [vmem:[%s16596_s13 + $0x1b98] sm:$0xf0]  ;;  %v1577_v60 = vperm.slane %v18274_v24, 5  ;;  %v14029_v0 = vor.u32 %v15475_v63, %v14028_v58  ;;  %v14782_v44 = vld [vmem:[%s16596_s13 + $0x5e8] sm:$0xf0] }
 0x38c   : > { %v7933_v30 = vadd.f32 %v7932_v23, %v1573_v59  ;;  %v7920_v33 = vadd.f32 %v7919_v10, %v1572_v5  ;;  %v14037_v13 = vor.u32 %v15476_v2, %v14036_v1  ;;  %v13112_v10 = vld [vmem:[%s16596_s13 + $0x10c8] sm:$0xf]  ;;  %v11264_v58 = vld [vmem:[%s16596_s13 + $0x258] sm:$0xf]  ;;  %v1582_v1 = vperm.slane %v18373_v48, 2 }
 0x38d   : > { %v1583_v2 = vperm.slane %v18373_v48, 3 }
 0x38e   : > { %v7947_v37 = vpop.f32.mrf.mxu0  ;;  %v7960_v35 = vpop.f32.mrf.mxu1  ;;  %8448 = vmatpush.bf16.msra.mxu3 %v13093_v18  ;;  %8435 = vmatpush.bf16.msra.mxu2 %v13089_v19  ;;  %15844 = vtanh.f32 %v7933_v30  ;;  %v14041_v19 = vor.u32 %v15361_v4, %v14038_v6  ;;  %v1576_v30 = vperm.slane %v18274_v24, 4  ;;  %v15362_v4 = vld [vmem:[%s16596_s13 + $0x180c] sm:$0xf]  ;;  %v14046_v6 = vld [vmem:[%s16596_s13 + $0x1ba4] sm:$0xf0] }
 0x38f   : > { %8461 = vmatpush.bf16.msra.mxu0 %v13097_v25  ;;  %8474 = vmatpush.bf16.msra.mxu1 %v13101_v26  ;;  %v15841_v34 = vpop.eup %15840  ;;  %15846 = vtanh.f32 %v7920_v33  ;;  %v15245_v26 = vld [vmem:[%s16596_s13 + $0x1460] sm:$0xf0]  ;;  %v12182_v33 = vld [vmem:[%s16596_s13 + $0xd24] sm:$0xf0] }
 0x390   : > { %v15843_v51 = vpop.eup %15842  ;;  %v10102_v54 = vrot.slane %v15841_v34, 4  ;;  %v13113_v24 = vor.u32 %v15245_v26, %v13112_v10  ;;  %v12185_v50 = vor.u32 %v14898_v32, %v12182_v33  ;;  %v13120_v32 = vld [vmem:[%s16596_s13 + $0x10d0] sm:$0xf]  ;;  %v15246_v33 = vld [vmem:[%s16596_s13 + $0x1468] sm:$0xf0] }
 0x391   : > { %v10103_v3 = vrot.slane %v15843_v51, 2 }
 0x392   : > { %8449 = vmatpush.bf16.msra.mxu3 %v12169_v36  ;;  %8436 = vmatpush.bf16.msra.mxu2 %v12165_v38  ;;  %v13117_v36 = vor.u32 %v15130_v15, %v13114_v27  ;;  %v12180_v38 = vld [vmem:[%s16596_s13 + $0x988] sm:$0xf]  ;;  %v15131_v15 = vld [vmem:[%s16596_s13 + $0x10d4] sm:$0xf]  ;;  %v13122_v27 = vld [vmem:[%s16596_s13 + $0x146c] sm:$0xf0] }
 0x393   : > { %v7921_v59 = vpop.f32.mrf.mxu2  ;;  %v7934_v61 = vpop.f32.mrf.mxu3  ;;  %8462 = vmatpush.bf16.msra.mxu0 %v12173_v29  ;;  %8475 = vmatpush.bf16.msra.mxu1 %v12177_v42  ;;  %v10278_v23 = vsel %vm10198_vm3, %v10102_v54, %v10103_v3  ;;  %v15014_v42 = vld [vmem:[%s16596_s13 + $0xd28] sm:$0xf0]  ;;  %v12181_v51 = vor.u32 %v15013_v40, %v12180_v38  ;;  %v11257_v3 = vor.u32 %v14782_v44, %v11256_v57  ;;  %v15132_v38 = vld [vmem:[%s16596_s13 + $0x10dc] sm:$0xf]  ;;  %v13130_v40 = vld [vmem:[%s16596_s13 + $0x1474] sm:$0xf0] }
 0x394   : > { %v15845_v7 = vpop.eup %15844  ;;  %v14783_v61 = vld [vmem:[%s16596_s13 + $0x5f0] sm:$0xf0]  ;;  %v15016_v57 = vld [vmem:[%s16596_s13 + $0xd38] sm:$0xf0]  ;;  %v14901_v44 = vld [vmem:[%s16596_s13 + $0x9a4] sm:$0xf] }
 0x395   : > { %v10101_v8 = vrot.slane %v15845_v7, 6  ;;  %v15847_v17 = vpop.eup %15846  ;;  %v14044_v7 = vld [vmem:[%s16596_s13 + $0x1808] sm:$0xf] }
 0x396   : > { %v7997_v9 = vpop.f32.mrf.mxu0  ;;  %v8010_v11 = vpop.f32.mrf.mxu1  ;;  %8450 = vmatpush.bf16.msra.mxu3 %v11245_v53  ;;  %8437 = vmatpush.bf16.msra.mxu2 %v11241_v56  ;;  %v12189_v53 = vor.u32 %v15014_v42, %v12188_v41  ;;  %v12193_v56 = vor.u32 %v14899_v43, %v12190_v45  ;;  %v13125_v42 = vor.u32 %v15131_v15, %v13122_v27  ;;  %v14900_v45 = vld [vmem:[%s16596_s13 + $0x99c] sm:$0xf] }
 0x397   : > { %v7998_v5 = vadd.f32 %v7997_v9, %v1578_v39  ;;  %v8011_v18 = vadd.f32 %v8010_v11, %v1579_v52  ;;  %8463 = vmatpush.bf16.msra.mxu0 %v11249_v62  ;;  %8476 = vmatpush.bf16.msra.mxu1 %v11253_v49  ;;  %v10277_v25 = vsel %vm10196_vm4, %v15847_v17, %v10101_v8  ;;  %v14667_v39 = vld [vmem:[%s16596_s13 + $0x254] sm:$0xf]  ;;  %v11258_v52 = vld [vmem:[%s16596_s13 + $0x5ec] sm:$0xf0]  ;;  %v14668_v62 = vld [vmem:[%s16596_s13 + $0x25c] sm:$0xf] }
 0x398   : > { %14498 = vmatmul.msk.bf16.vlgmr.msrb.gmra.mxu2 %vm6554_vm2, %v16674_v55  ;;  %14499 = vmatmul.msk.bf16.vlgmr.msrb.gmra.mxu3 %vm6554_vm2, %v16674_v55  ;;  %v10279_v28 = vsel %vm10200_vm5, %v10277_v25, %v10278_v23  ;;  %v11266_v49 = vld [vmem:[%s16596_s13 + $0x5f4] sm:$0xf0]  ;;  %v11261_v54 = vor.u32 %v14667_v39, %v11258_v52  ;;  %v11265_v9 = vor.u32 %v14783_v61, %v11264_v58  ;;  %v15363_v17 = vld [vmem:[%s16596_s13 + $0x1814] sm:$0xf]  ;;  %v12206_v58 = vld [vmem:[%s16596_s13 + $0xd3c] sm:$0xf0] }
 0x399   : > { %14500 = vmatmul.msk.bf16.vlgmr.msrb.gmra.mxu0 %vm6554_vm2, %v16674_v55  ;;  %14501 = vmatmul.msk.bf16.vlgmr.msrb.gmra.mxu1 %vm6554_vm2, %v16674_v55  ;;  %10456 = vst [vmem:[%s17074_s16 + $0xd0] sm:$0xff] %v10279_v28  ;;  %15848 = vtanh.f32 %v7998_v5  ;;  %v11269_v11 = vor.u32 %v14668_v62, %v11266_v49  ;;  %v14054_v5 = vld [vmem:[%s16596_s13 + $0x1bac] sm:$0xf0]  ;;  %v14049_v23 = vor.u32 %v15362_v4, %v14046_v6  ;;  %v12196_v39 = vld [vmem:[%s16596_s13 + $0x998] sm:$0xf] }
 0x39a   : > { %8499 = vmatpush.bf16.msrb.mxu3 %v14033_v12  ;;  %8486 = vmatpush.bf16.msrb.mxu2 %v14029_v0  ;;  %15850 = vtanh.f32 %v8011_v18  ;;  %v15477_v12 = vld [vmem:[%s16596_s13 + $0x1ba0] sm:$0xf0]  ;;  %v14052_v0 = vld [vmem:[%s16596_s13 + $0x1810] sm:$0xf]  ;;  %v13121_v43 = vor.u32 %v15246_v33, %v13120_v32  ;;  %v15015_v52 = vld [vmem:[%s16596_s13 + $0xd30] sm:$0xf0] }
 0x39b   : > { %v7971_v37 = vpop.f32.mrf.mxu2  ;;  %v7984_v35 = vpop.f32.mrf.mxu3  ;;  %8512 = vmatpush.bf16.msrb.mxu0 %v14037_v13  ;;  %8525 = vmatpush.bf16.msrb.mxu1 %v14041_v19  ;;  %v15478_v13 = vld [vmem:[%s16596_s13 + $0x1ba8] sm:$0xf0]  ;;  %v1581_v19 = vperm.slane %v18373_v48, 1  ;;  %v14045_v25 = vor.u32 %v15477_v12, %v14044_v7  ;;  %v11272_v4 = vld [vmem:[%s16596_s13 + $0x260] sm:$0xf] }
 0x39c   : > { %v7985_v29 = vadd.f32 %v7984_v35, %v1577_v60  ;;  %v7972_v46 = vadd.f32 %v7971_v37, %v1576_v30  ;;  %v14053_v26 = vor.u32 %v15478_v13, %v14052_v0  ;;  %v13128_v37 = vld [vmem:[%s16596_s13 + $0x10d8] sm:$0xf]  ;;  %v14784_v6 = vld [vmem:[%s16596_s13 + $0x5f8] sm:$0xf0]  ;;  %v11280_v7 = vld [vmem:[%s16596_s13 + $0x268] sm:$0xf] }
 0x39d   : > { %v1586_v0 = vperm.slane %v18373_v48, 6  ;;  %v1587_v13 = vperm.slane %v18373_v48, 7 }
 0x39e   : > { %v7999_v34 = vpop.f32.mrf.mxu0  ;;  %v8012_v47 = vpop.f32.mrf.mxu1  ;;  %8500 = vmatpush.bf16.msrb.mxu3 %v13109_v31  ;;  %8487 = vmatpush.bf16.msrb.mxu2 %v13105_v20  ;;  %15852 = vtanh.f32 %v7985_v29  ;;  %v14057_v20 = vor.u32 %v15363_v17, %v14054_v5  ;;  %v1580_v29 = vperm.slane %v18373_v48, 0  ;;  %v15364_v17 = vld [vmem:[%s16596_s13 + $0x181c] sm:$0xf]  ;;  %v14062_v5 = vld [vmem:[%s16596_s13 + $0x1bb4] sm:$0xf0] }
 0x39f   : > { %8513 = vmatpush.bf16.msrb.mxu0 %v13113_v24  ;;  %8526 = vmatpush.bf16.msrb.mxu1 %v13117_v36  ;;  %v15849_v59 = vpop.eup %15848  ;;  %15854 = vtanh.f32 %v7972_v46  ;;  %v15247_v36 = vld [vmem:[%s16596_s13 + $0x1470] sm:$0xf0]  ;;  %v12198_v46 = vld [vmem:[%s16596_s13 + $0xd34] sm:$0xf0] }
 0x3a0   : > { %v15851_v63 = vpop.eup %15850  ;;  %v10105_v14 = vrot.slane %v15849_v59, 4  ;;  %v12201_v49 = vor.u32 %v14900_v45, %v12198_v46  ;;  %v13136_v45 = vld [vmem:[%s16596_s13 + $0x10e0] sm:$0xf]  ;;  %v15248_v46 = vld [vmem:[%s16596_s13 + $0x1478] sm:$0xf0] }
 0x3a1   : > { %v10106_v16 = vrot.slane %v15851_v63, 2  ;;  %v12197_v63 = vor.u32 %v15015_v52, %v12196_v39  ;;  %v15134_v39 = vld [vmem:[%s16596_s13 + $0x10ec] sm:$0xf]  ;;  %v13146_v52 = vld [vmem:[%s16596_s13 + $0x1484] sm:$0xf0] }
 0x3a2   : > { %8501 = vmatpush.bf16.msrb.mxu3 %v12185_v50  ;;  %8488 = vmatpush.bf16.msrb.mxu2 %v12181_v51  ;;  %v13129_v50 = vor.u32 %v15247_v36, %v13128_v37  ;;  %v13133_v51 = vor.u32 %v15132_v38, %v13130_v40  ;;  %v15133_v38 = vld [vmem:[%s16596_s13 + $0x10e4] sm:$0xf]  ;;  %v13138_v40 = vld [vmem:[%s16596_s13 + $0x147c] sm:$0xf0] }
 0x3a3   : > { %v7973_v60 = vpop.f32.mrf.mxu2  ;;  %v7986_v8 = vpop.f32.mrf.mxu3  ;;  %8514 = vmatpush.bf16.msrb.mxu0 %v12189_v53  ;;  %8527 = vmatpush.bf16.msrb.mxu1 %v12193_v56  ;;  %v10281_v35 = vsel %vm10198_vm3, %v10105_v14, %v10106_v16  ;;  %v12204_v53 = vld [vmem:[%s16596_s13 + $0x9a0] sm:$0xf]  ;;  %v11273_v16 = vor.u32 %v14784_v6, %v11272_v4  ;;  %v14903_v4 = vld [vmem:[%s16596_s13 + $0x9b4] sm:$0xf]  ;;  %v12222_v6 = vld [vmem:[%s16596_s13 + $0xd4c] sm:$0xf0] }
 0x3a4   : > { %v15853_v18 = vpop.eup %15852  ;;  %v14785_v8 = vld [vmem:[%s16596_s13 + $0x600] sm:$0xf0] }
 0x3a5   : > { %v10104_v21 = vrot.slane %v15853_v18, 6  ;;  %v15855_v28 = vpop.eup %15854  ;;  %v14060_v18 = vld [vmem:[%s16596_s13 + $0x1818] sm:$0xf] }
 0x3a6   : > { %v8049_v22 = vpop.f32.mrf.mxu0  ;;  %v8062_v10 = vpop.f32.mrf.mxu1  ;;  %8502 = vmatpush.bf16.msrb.mxu3 %v11261_v54  ;;  %8489 = vmatpush.bf16.msrb.mxu2 %v11257_v3  ;;  %v12205_v54 = vor.u32 %v15016_v57, %v12204_v53  ;;  %v12209_v3 = vor.u32 %v14901_v44, %v12206_v58  ;;  %v13141_v57 = vor.u32 %v15133_v38, %v13138_v40  ;;  %v14902_v58 = vld [vmem:[%s16596_s13 + $0x9ac] sm:$0xf] }
 0x3a7   : > { %v8050_v30 = vadd.f32 %v8049_v22, %v1582_v1  ;;  %v8063_v31 = vadd.f32 %v8062_v10, %v1583_v2  ;;  %8515 = vmatpush.bf16.msrb.mxu0 %v11265_v9  ;;  %8528 = vmatpush.bf16.msrb.mxu1 %v11269_v11  ;;  %v10280_v24 = vsel %vm10196_vm4, %v15855_v28, %v10104_v21  ;;  %v14669_v1 = vld [vmem:[%s16596_s13 + $0x264] sm:$0xf]  ;;  %v11274_v2 = vld [vmem:[%s16596_s13 + $0x5fc] sm:$0xf0]  ;;  %v14670_v9 = vld [vmem:[%s16596_s13 + $0x26c] sm:$0xf] }
 0x3a8   : > { %14502 = vmatmul.msk.bf16.vlgmr.msra.gmra.mxu2 %vm6554_vm2, %v16674_v55  ;;  %14503 = vmatmul.msk.bf16.vlgmr.msra.gmra.mxu3 %vm6554_vm2, %v16674_v55  ;;  %v10282_v41 = vsel %vm10200_vm5, %v10280_v24, %v10281_v35  ;;  %v11282_v11 = vld [vmem:[%s16596_s13 + $0x604] sm:$0xf0]  ;;  %v11277_v14 = vor.u32 %v14669_v1, %v11274_v2  ;;  %v11281_v22 = vor.u32 %v14785_v8, %v11280_v7  ;;  %v15365_v28 = vld [vmem:[%s16596_s13 + $0x1824] sm:$0xf]  ;;  %v12220_v2 = vld [vmem:[%s16596_s13 + $0x9b0] sm:$0xf] }
 0x3a9   : > { %14504 = vmatmul.msk.bf16.vlgmr.msra.gmra.mxu0 %vm6554_vm2, %v16674_v55  ;;  %14505 = vmatmul.msk.bf16.vlgmr.msra.gmra.mxu1 %vm6554_vm2, %v16674_v55  ;;  %10457 = vst [vmem:[%s17074_s16 + $0xd8] sm:$0xff] %v10282_v41  ;;  %15856 = vtanh.f32 %v8050_v30  ;;  %v11285_v10 = vor.u32 %v14670_v9, %v11282_v11  ;;  %v14070_v30 = vld [vmem:[%s16596_s13 + $0x1bbc] sm:$0xf0]  ;;  %v14065_v35 = vor.u32 %v15364_v17, %v14062_v5  ;;  %v15017_v1 = vld [vmem:[%s16596_s13 + $0xd40] sm:$0xf0] }
 0x3aa   : > { %8551 = vmatpush.bf16.msra.mxu3 %v14049_v23  ;;  %8538 = vmatpush.bf16.msra.mxu2 %v14045_v25  ;;  %15858 = vtanh.f32 %v8063_v31  ;;  %v15479_v23 = vld [vmem:[%s16596_s13 + $0x1bb0] sm:$0xf0]  ;;  %v14068_v25 = vld [vmem:[%s16596_s13 + $0x1820] sm:$0xf]  ;;  %v13137_v44 = vor.u32 %v15248_v46, %v13136_v45  ;;  %v11288_v17 = vld [vmem:[%s16596_s13 + $0x270] sm:$0xf] }
 0x3ab   : > { %v8023_v34 = vpop.f32.mrf.mxu2  ;;  %v8036_v47 = vpop.f32.mrf.mxu3  ;;  %8564 = vmatpush.bf16.msra.mxu0 %v14053_v26  ;;  %8577 = vmatpush.bf16.msra.mxu1 %v14057_v20  ;;  %v15480_v26 = vld [vmem:[%s16596_s13 + $0x1bb8] sm:$0xf0]  ;;  %v1585_v20 = vperm.slane %v18373_v48, 5  ;;  %v14061_v24 = vor.u32 %v15479_v23, %v14060_v18  ;;  %v14786_v5 = vld [vmem:[%s16596_s13 + $0x608] sm:$0xf0] }
 0x3ac   : > { %v8037_v56 = vadd.f32 %v8036_v47, %v1581_v19  ;;  %v8024_v59 = vadd.f32 %v8023_v34, %v1580_v29  ;;  %v14069_v36 = vor.u32 %v15480_v26, %v14068_v25  ;;  %v13144_v34 = vld [vmem:[%s16596_s13 + $0x10e8] sm:$0xf]  ;;  %v18472_v9 = vld [vmem:[%s16983_s22 + $0x78] sm:$0xff] }
 0x3ad   : > { %v11296_v18 = vld [vmem:[%s16596_s13 + $0x278] sm:$0xf]  ;;  %v1590_v25 = vperm.slane %v18472_v9, 2  ;;  %v1591_v26 = vperm.slane %v18472_v9, 3 }
 0x3ae   : > { %v8051_v61 = vpop.f32.mrf.mxu0  ;;  %v8064_v62 = vpop.f32.mrf.mxu1  ;;  %8552 = vmatpush.bf16.msra.mxu3 %v13125_v42  ;;  %8539 = vmatpush.bf16.msra.mxu2 %v13121_v43  ;;  %15860 = vtanh.f32 %v8037_v56  ;;  %v14073_v43 = vor.u32 %v15365_v28, %v14070_v30  ;;  %v1584_v56 = vperm.slane %v18373_v48, 4  ;;  %v15366_v28 = vld [vmem:[%s16596_s13 + $0x182c] sm:$0xf]  ;;  %v14078_v30 = vld [vmem:[%s16596_s13 + $0x1bc4] sm:$0xf0] }
 0x3af   : > { %8565 = vmatpush.bf16.msra.mxu0 %v13129_v50  ;;  %8578 = vmatpush.bf16.msra.mxu1 %v13133_v51  ;;  %v15857_v60 = vpop.eup %15856  ;;  %15862 = vtanh.f32 %v8024_v59  ;;  %v15249_v51 = vld [vmem:[%s16596_s13 + $0x1480] sm:$0xf0]  ;;  %v12214_v59 = vld [vmem:[%s16596_s13 + $0xd44] sm:$0xf0] }
 0x3b0   : > { %v15859_v12 = vpop.eup %15858  ;;  %v10108_v15 = vrot.slane %v15857_v60, 4  ;;  %v13145_v48 = vor.u32 %v15249_v51, %v13144_v34  ;;  %v12217_v11 = vor.u32 %v14902_v58, %v12214_v59  ;;  %v13152_v58 = vld [vmem:[%s16596_s13 + $0x10f0] sm:$0xf]  ;;  %v15250_v59 = vld [vmem:[%s16596_s13 + $0x1488] sm:$0xf0] }
 0x3b1   : > { %v10109_v27 = vrot.slane %v15859_v12, 2 }
 0x3b2   : > { %8553 = vmatpush.bf16.msra.mxu3 %v12201_v49  ;;  %8540 = vmatpush.bf16.msra.mxu2 %v12197_v63  ;;  %v13149_v49 = vor.u32 %v15134_v39, %v13146_v52  ;;  %v12212_v63 = vld [vmem:[%s16596_s13 + $0x9a8] sm:$0xf]  ;;  %v15135_v39 = vld [vmem:[%s16596_s13 + $0x10f4] sm:$0xf]  ;;  %v13154_v52 = vld [vmem:[%s16596_s13 + $0x148c] sm:$0xf0] }
 0x3b3   : > { %v8025_v19 = vpop.f32.mrf.mxu2  ;;  %v8038_v21 = vpop.f32.mrf.mxu3  ;;  %8566 = vmatpush.bf16.msra.mxu0 %v12205_v54  ;;  %8579 = vmatpush.bf16.msra.mxu1 %v12209_v3  ;;  %v10284_v47 = vsel %vm10198_vm3, %v10108_v15, %v10109_v27  ;;  %v15018_v3 = vld [vmem:[%s16596_s13 + $0xd48] sm:$0xf0]  ;;  %v12213_v12 = vor.u32 %v15017_v1, %v12212_v63  ;;  %v11289_v27 = vor.u32 %v14786_v5, %v11288_v17  ;;  %v15136_v63 = vld [vmem:[%s16596_s13 + $0x10fc] sm:$0xf]  ;;  %v13162_v1 = vld [vmem:[%s16596_s13 + $0x1494] sm:$0xf0] }
 0x3b4   : > { %v15861_v31 = vpop.eup %15860  ;;  %v14787_v21 = vld [vmem:[%s16596_s13 + $0x610] sm:$0xf0]  ;;  %v15020_v17 = vld [vmem:[%s16596_s13 + $0xd58] sm:$0xf0]  ;;  %v14905_v5 = vld [vmem:[%s16596_s13 + $0x9c4] sm:$0xf] }
 0x3b5   : > { %v10107_v32 = vrot.slane %v15861_v31, 6  ;;  %v15863_v41 = vpop.eup %15862  ;;  %v14076_v31 = vld [vmem:[%s16596_s13 + $0x1828] sm:$0xf] }
 0x3b6   : > { %v8101_v33 = vpop.f32.mrf.mxu0  ;;  %v8114_v37 = vpop.f32.mrf.mxu1  ;;  %8554 = vmatpush.bf16.msra.mxu3 %v11277_v14  ;;  %8541 = vmatpush.bf16.msra.mxu2 %v11273_v16  ;;  %v12221_v14 = vor.u32 %v15018_v3, %v12220_v2  ;;  %v12225_v16 = vor.u32 %v14903_v4, %v12222_v6  ;;  %v13157_v3 = vor.u32 %v15135_v39, %v13154_v52  ;;  %v14904_v6 = vld [vmem:[%s16596_s13 + $0x9bc] sm:$0xf] }
 0x3b7   : > { %v8102_v29 = vadd.f32 %v8101_v33, %v1586_v0  ;;  %v8115_v42 = vadd.f32 %v8114_v37, %v1587_v13  ;;  %8567 = vmatpush.bf16.msra.mxu0 %v11281_v22  ;;  %8580 = vmatpush.bf16.msra.mxu1 %v11285_v10  ;;  %v10283_v50 = vsel %vm10196_vm4, %v15863_v41, %v10107_v32  ;;  %v14671_v0 = vld [vmem:[%s16596_s13 + $0x274] sm:$0xf]  ;;  %v11290_v13 = vld [vmem:[%s16596_s13 + $0x60c] sm:$0xf0]  ;;  %v14672_v22 = vld [vmem:[%s16596_s13 + $0x27c] sm:$0xf] }
 0x3b8   : > { %14506 = vmatmul.msk.bf16.vlgmr.msrb.gmra.mxu2 %vm6554_vm2, %v16674_v55  ;;  %14507 = vmatmul.msk.bf16.vlgmr.msrb.gmra.mxu3 %vm6554_vm2, %v16674_v55  ;;  %v10285_v53 = vsel %vm10200_vm5, %v10283_v50, %v10284_v47  ;;  %v11298_v10 = vld [vmem:[%s16596_s13 + $0x614] sm:$0xf0]  ;;  %v11293_v15 = vor.u32 %v14671_v0, %v11290_v13  ;;  %v11297_v33 = vor.u32 %v14787_v21, %v11296_v18  ;;  %v15367_v41 = vld [vmem:[%s16596_s13 + $0x1834] sm:$0xf]  ;;  %v12238_v18 = vld [vmem:[%s16596_s13 + $0xd5c] sm:$0xf0] }
 0x3b9   : > { %14508 = vmatmul.msk.bf16.vlgmr.msrb.gmra.mxu0 %vm6554_vm2, %v16674_v55  ;;  %14509 = vmatmul.msk.bf16.vlgmr.msrb.gmra.mxu1 %vm6554_vm2, %v16674_v55  ;;  %10458 = vst [vmem:[%s17074_s16 + $0xe0] sm:$0xff] %v10285_v53  ;;  %15864 = vtanh.f32 %v8102_v29  ;;  %v11301_v37 = vor.u32 %v14672_v22, %v11298_v10  ;;  %v14086_v29 = vld [vmem:[%s16596_s13 + $0x1bcc] sm:$0xf0]  ;;  %v14081_v47 = vor.u32 %v15366_v28, %v14078_v30  ;;  %v12228_v0 = vld [vmem:[%s16596_s13 + $0x9b8] sm:$0xf] }
 0x3ba   : > { %8603 = vmatpush.bf16.msrb.mxu3 %v14065_v35  ;;  %8590 = vmatpush.bf16.msrb.mxu2 %v14061_v24  ;;  %15866 = vtanh.f32 %v8115_v42  ;;  %v15481_v35 = vld [vmem:[%s16596_s13 + $0x1bc0] sm:$0xf0]  ;;  %v14084_v24 = vld [vmem:[%s16596_s13 + $0x1830] sm:$0xf]  ;;  %v13153_v4 = vor.u32 %v15250_v59, %v13152_v58  ;;  %v15019_v13 = vld [vmem:[%s16596_s13 + $0xd50] sm:$0xf0] }
 0x3bb   : > { %v8075_v61 = vpop.f32.mrf.mxu2  ;;  %v8088_v62 = vpop.f32.mrf.mxu3  ;;  %8616 = vmatpush.bf16.msrb.mxu0 %v14069_v36  ;;  %8629 = vmatpush.bf16.msrb.mxu1 %v14073_v43  ;;  %v15482_v36 = vld [vmem:[%s16596_s13 + $0x1bc8] sm:$0xf0]  ;;  %v1589_v43 = vperm.slane %v18472_v9, 1  ;;  %v14077_v50 = vor.u32 %v15481_v35, %v14076_v31  ;;  %v11304_v28 = vld [vmem:[%s16596_s13 + $0x280] sm:$0xf] }
 0x3bc   : > { %v8089_v54 = vadd.f32 %v8088_v62, %v1585_v20  ;;  %v8076_v7 = vadd.f32 %v8075_v61, %v1584_v56  ;;  %v14085_v51 = vor.u32 %v15482_v36, %v14084_v24  ;;  %v13160_v61 = vld [vmem:[%s16596_s13 + $0x10f8] sm:$0xf]  ;;  %v14788_v30 = vld [vmem:[%s16596_s13 + $0x618] sm:$0xf0]  ;;  %v11312_v31 = vld [vmem:[%s16596_s13 + $0x288] sm:$0xf] }
 0x3bd   : > { %v1594_v24 = vperm.slane %v18472_v9, 6  ;;  %v1595_v36 = vperm.slane %v18472_v9, 7 }
 0x3be   : > { %v8103_v60 = vpop.f32.mrf.mxu0  ;;  %v8116_v8 = vpop.f32.mrf.mxu1  ;;  %8604 = vmatpush.bf16.msrb.mxu3 %v13141_v57  ;;  %8591 = vmatpush.bf16.msrb.mxu2 %v13137_v44  ;;  %15868 = vtanh.f32 %v8089_v54  ;;  %v14089_v44 = vor.u32 %v15367_v41, %v14086_v29  ;;  %v1588_v54 = vperm.slane %v18472_v9, 0  ;;  %v15368_v41 = vld [vmem:[%s16596_s13 + $0x183c] sm:$0xf]  ;;  %v14094_v29 = vld [vmem:[%s16596_s13 + $0x1bd4] sm:$0xf0] }
 0x3bf   : > { %8617 = vmatpush.bf16.msrb.mxu0 %v13145_v48  ;;  %8630 = vmatpush.bf16.msrb.mxu1 %v13149_v49  ;;  %v15865_v19 = vpop.eup %15864  ;;  %15870 = vtanh.f32 %v8076_v7  ;;  %v15251_v49 = vld [vmem:[%s16596_s13 + $0x1490] sm:$0xf0]  ;;  %v12230_v7 = vld [vmem:[%s16596_s13 + $0xd54] sm:$0xf0] }
 0x3c0   : > { %v15867_v23 = vpop.eup %15866  ;;  %v10111_v38 = vrot.slane %v15865_v19, 4  ;;  %v12233_v10 = vor.u32 %v14904_v6, %v12230_v7  ;;  %v13168_v6 = vld [vmem:[%s16596_s13 + $0x1100] sm:$0xf]  ;;  %v15252_v7 = vld [vmem:[%s16596_s13 + $0x1498] sm:$0xf0] }
 0x3c1   : > { %v10112_v40 = vrot.slane %v15867_v23, 2  ;;  %v12229_v23 = vor.u32 %v15019_v13, %v12228_v0  ;;  %v15138_v0 = vld [vmem:[%s16596_s13 + $0x110c] sm:$0xf]  ;;  %v13178_v13 = vld [vmem:[%s16596_s13 + $0x14a4] sm:$0xf0] }
 0x3c2   : > { %8605 = vmatpush.bf16.msrb.mxu3 %v12217_v11  ;;  %8592 = vmatpush.bf16.msrb.mxu2 %v12213_v12  ;;  %v13161_v11 = vor.u32 %v15251_v49, %v13160_v61  ;;  %v13165_v12 = vor.u32 %v15136_v63, %v13162_v1  ;;  %v15137_v63 = vld [vmem:[%s16596_s13 + $0x1104] sm:$0xf]  ;;  %v13170_v1 = vld [vmem:[%s16596_s13 + $0x149c] sm:$0xf0] }
 0x3c3   : > { %v8077_v20 = vpop.f32.mrf.mxu2  ;;  %v8090_v32 = vpop.f32.mrf.mxu3  ;;  %8618 = vmatpush.bf16.msrb.mxu0 %v12221_v14  ;;  %8631 = vmatpush.bf16.msrb.mxu1 %v12225_v16  ;;  %v10287_v62 = vsel %vm10198_vm3, %v10111_v38, %v10112_v40  ;;  %v12236_v14 = vld [vmem:[%s16596_s13 + $0x9c0] sm:$0xf]  ;;  %v11305_v40 = vor.u32 %v14788_v30, %v11304_v28  ;;  %v14907_v28 = vld [vmem:[%s16596_s13 + $0x9d4] sm:$0xf]  ;;  %v12254_v30 = vld [vmem:[%s16596_s13 + $0xd6c] sm:$0xf0] }
 0x3c4   : > { %v15869_v42 = vpop.eup %15868  ;;  %v14789_v32 = vld [vmem:[%s16596_s13 + $0x620] sm:$0xf0] }
 0x3c5   : > { %v10110_v45 = vrot.slane %v15869_v42, 6  ;;  %v15871_v53 = vpop.eup %15870  ;;  %v14092_v42 = vld [vmem:[%s16596_s13 + $0x1838] sm:$0xf] }
 0x3c6   : > { %v8153_v46 = vpop.f32.mrf.mxu0  ;;  %v8166_v34 = vpop.f32.mrf.mxu1  ;;  %8606 = vmatpush.bf16.msrb.mxu3 %v11293_v15  ;;  %8593 = vmatpush.bf16.msrb.mxu2 %v11289_v27  ;;  %v12237_v15 = vor.u32 %v15020_v17, %v12236_v14  ;;  %v12241_v27 = vor.u32 %v14905_v5, %v12238_v18  ;;  %v13173_v17 = vor.u32 %v15137_v63, %v13170_v1  ;;  %v14906_v18 = vld [vmem:[%s16596_s13 + $0x9cc] sm:$0xf] }
 0x3c7   : > { %v8154_v56 = vadd.f32 %v8153_v46, %v1590_v25  ;;  %v8167_v57 = vadd.f32 %v8166_v34, %v1591_v26  ;;  %8619 = vmatpush.bf16.msrb.mxu0 %v11297_v33  ;;  %8632 = vmatpush.bf16.msrb.mxu1 %v11301_v37  ;;  %v10286_v48 = vsel %vm10196_vm4, %v15871_v53, %v10110_v45  ;;  %v14673_v25 = vld [vmem:[%s16596_s13 + $0x284] sm:$0xf]  ;;  %v11306_v26 = vld [vmem:[%s16596_s13 + $0x61c] sm:$0xf0]  ;;  %v14674_v33 = vld [vmem:[%s16596_s13 + $0x28c] sm:$0xf] }
 0x3c8   : > { %14510 = vmatmul.msk.bf16.vlgmr.msra.gmra.mxu2 %vm6554_vm2, %v16674_v55  ;;  %14511 = vmatmul.msk.bf16.vlgmr.msra.gmra.mxu3 %vm6554_vm2, %v16674_v55  ;;  %v10288_v2 = vsel %vm10200_vm5, %v10286_v48, %v10287_v62  ;;  %v11314_v37 = vld [vmem:[%s16596_s13 + $0x624] sm:$0xf0]  ;;  %v11309_v38 = vor.u32 %v14673_v25, %v11306_v26  ;;  %v11313_v46 = vor.u32 %v14789_v32, %v11312_v31  ;;  %v15369_v53 = vld [vmem:[%s16596_s13 + $0x1844] sm:$0xf]  ;;  %v12252_v26 = vld [vmem:[%s16596_s13 + $0x9d0] sm:$0xf] }
 0x3c9   : > { %14512 = vmatmul.msk.bf16.vlgmr.msra.gmra.mxu0 %vm6554_vm2, %v16674_v55  ;;  %14513 = vmatmul.msk.bf16.vlgmr.msra.gmra.mxu1 %vm6554_vm2, %v16674_v55  ;;  %10459 = vst [vmem:[%s17074_s16 + $0xe8] sm:$0xff] %v10288_v2  ;;  %15872 = vtanh.f32 %v8154_v56  ;;  %v11317_v34 = vor.u32 %v14674_v33, %v11314_v37  ;;  %v14102_v56 = vld [vmem:[%s16596_s13 + $0x1bdc] sm:$0xf0]  ;;  %v14097_v62 = vor.u32 %v15368_v41, %v14094_v29  ;;  %v15021_v25 = vld [vmem:[%s16596_s13 + $0xd60] sm:$0xf0] }
 0x3ca   : > { %8655 = vmatpush.bf16.msra.mxu3 %v14081_v47  ;;  %8642 = vmatpush.bf16.msra.mxu2 %v14077_v50  ;;  %15874 = vtanh.f32 %v8167_v57  ;;  %v15483_v47 = vld [vmem:[%s16596_s13 + $0x1bd0] sm:$0xf0]  ;;  %v14100_v50 = vld [vmem:[%s16596_s13 + $0x1840] sm:$0xf]  ;;  %v13169_v5 = vor.u32 %v15252_v7, %v13168_v6  ;;  %v11320_v41 = vld [vmem:[%s16596_s13 + $0x290] sm:$0xf] }
 0x3cb   : > { %v8127_v60 = vpop.f32.mrf.mxu2  ;;  %v8140_v8 = vpop.f32.mrf.mxu3  ;;  %8668 = vmatpush.bf16.msra.mxu0 %v14085_v51  ;;  %8681 = vmatpush.bf16.msra.mxu1 %v14089_v44  ;;  %v15484_v51 = vld [vmem:[%s16596_s13 + $0x1bd8] sm:$0xf0]  ;;  %v1593_v44 = vperm.slane %v18472_v9, 5  ;;  %v14093_v48 = vor.u32 %v15483_v47, %v14092_v42  ;;  %v18571_v33 = vld [vmem:[%s16983_s22 + $0x80] sm:$0xff]  ;;  %v11328_v42 = vld [vmem:[%s16596_s13 + $0x298] sm:$0xf] }
 0x3cc   : > { %v8141_v16 = vadd.f32 %v8140_v8, %v1589_v43  ;;  %v8128_v19 = vadd.f32 %v8127_v60, %v1588_v54  ;;  %v14101_v49 = vor.u32 %v15484_v51, %v14100_v50  ;;  %v13176_v60 = vld [vmem:[%s16596_s13 + $0x1108] sm:$0xf]  ;;  %v14790_v29 = vld [vmem:[%s16596_s13 + $0x628] sm:$0xf0]  ;;  %v1598_v50 = vperm.slane %v18571_v33, 2 }
 0x3cd   : > { %v1599_v51 = vperm.slane %v18571_v33, 3 }
 0x3ce   : > { %v8155_v21 = vpop.f32.mrf.mxu0  ;;  %v8168_v22 = vpop.f32.mrf.mxu1  ;;  %8656 = vmatpush.bf16.msra.mxu3 %v13157_v3  ;;  %8643 = vmatpush.bf16.msra.mxu2 %v13153_v4  ;;  %15876 = vtanh.f32 %v8141_v16  ;;  %v14105_v4 = vor.u32 %v15369_v53, %v14102_v56  ;;  %v1592_v16 = vperm.slane %v18472_v9, 4  ;;  %v15370_v53 = vld [vmem:[%s16596_s13 + $0x184c] sm:$0xf]  ;;  %v14110_v56 = vld [vmem:[%s16596_s13 + $0x1be4] sm:$0xf0] }
 0x3cf   : > { %8669 = vmatpush.bf16.msra.mxu0 %v13161_v11  ;;  %8682 = vmatpush.bf16.msra.mxu1 %v13165_v12  ;;  %v15873_v20 = vpop.eup %15872  ;;  %15878 = vtanh.f32 %v8128_v19  ;;  %v15253_v12 = vld [vmem:[%s16596_s13 + $0x14a0] sm:$0xf0]  ;;  %v12246_v19 = vld [vmem:[%s16596_s13 + $0xd64] sm:$0xf0] }
 0x3d0   : > { %v15875_v35 = vpop.eup %15874  ;;  %v10114_v39 = vrot.slane %v15873_v20, 4  ;;  %v13177_v9 = vor.u32 %v15253_v12, %v13176_v60  ;;  %v12249_v37 = vor.u32 %v14906_v18, %v12246_v19  ;;  %v13184_v18 = vld [vmem:[%s16596_s13 + $0x1110] sm:$0xf]  ;;  %v15254_v19 = vld [vmem:[%s16596_s13 + $0x14a8] sm:$0xf0] }
 0x3d1   : > { %v10115_v52 = vrot.slane %v15875_v35, 2 }
 0x3d2   : > { %8657 = vmatpush.bf16.msra.mxu3 %v12233_v10  ;;  %8644 = vmatpush.bf16.msra.mxu2 %v12229_v23  ;;  %v13181_v10 = vor.u32 %v15138_v0, %v13178_v13  ;;  %v12244_v23 = vld [vmem:[%s16596_s13 + $0x9c8] sm:$0xf]  ;;  %v15139_v0 = vld [vmem:[%s16596_s13 + $0x1114] sm:$0xf]  ;;  %v13186_v13 = vld [vmem:[%s16596_s13 + $0x14ac] sm:$0xf0] }
 0x3d3   : > { %v8129_v43 = vpop.f32.mrf.mxu2  ;;  %v8142_v45 = vpop.f32.mrf.mxu3  ;;  %8670 = vmatpush.bf16.msra.mxu0 %v12237_v15  ;;  %8683 = vmatpush.bf16.msra.mxu1 %v12241_v27  ;;  %v10290_v8 = vsel %vm10198_vm3, %v10114_v39, %v10115_v52  ;;  %v15022_v27 = vld [vmem:[%s16596_s13 + $0xd68] sm:$0xf0]  ;;  %v12245_v35 = vor.u32 %v15021_v25, %v12244_v23  ;;  %v11321_v52 = vor.u32 %v14790_v29, %v11320_v41  ;;  %v15140_v23 = vld [vmem:[%s16596_s13 + $0x111c] sm:$0xf]  ;;  %v13194_v25 = vld [vmem:[%s16596_s13 + $0x14b4] sm:$0xf0] }
 0x3d4   : > { %v15877_v57 = vpop.eup %15876  ;;  %v14791_v45 = vld [vmem:[%s16596_s13 + $0x630] sm:$0xf0]  ;;  %v15024_v41 = vld [vmem:[%s16596_s13 + $0xd78] sm:$0xf0]  ;;  %v14909_v29 = vld [vmem:[%s16596_s13 + $0x9e4] sm:$0xf] }
 0x3d5   : > { %v10113_v58 = vrot.slane %v15877_v57, 6  ;;  %v15879_v2 = vpop.eup %15878  ;;  %v14108_v57 = vld [vmem:[%s16596_s13 + $0x1848] sm:$0xf] }
 0x3d6   : > { %v8205_v59 = vpop.f32.mrf.mxu0  ;;  %v8218_v61 = vpop.f32.mrf.mxu1  ;;  %8658 = vmatpush.bf16.msra.mxu3 %v11309_v38  ;;  %8645 = vmatpush.bf16.msra.mxu2 %v11305_v40  ;;  %v12253_v38 = vor.u32 %v15022_v27, %v12252_v26  ;;  %v12257_v40 = vor.u32 %v14907_v28, %v12254_v30  ;;  %v13189_v27 = vor.u32 %v15139_v0, %v13186_v13  ;;  %v14908_v30 = vld [vmem:[%s16596_s13 + $0x9dc] sm:$0xf] }
 0x3d7   : > { %v8206_v54 = vadd.f32 %v8205_v59, %v1594_v24  ;;  %v8219_v3 = vadd.f32 %v8218_v61, %v1595_v36  ;;  %8671 = vmatpush.bf16.msra.mxu0 %v11313_v46  ;;  %8684 = vmatpush.bf16.msra.mxu1 %v11317_v34  ;;  %v10289_v11 = vsel %vm10196_vm4, %v15879_v2, %v10113_v58  ;;  %v14675_v24 = vld [vmem:[%s16596_s13 + $0x294] sm:$0xf]  ;;  %v11322_v36 = vld [vmem:[%s16596_s13 + $0x62c] sm:$0xf0]  ;;  %v14676_v46 = vld [vmem:[%s16596_s13 + $0x29c] sm:$0xf] }
 0x3d8   : > { %14514 = vmatmul.msk.bf16.vlgmr.msrb.gmra.mxu2 %vm6554_vm2, %v16674_v55  ;;  %14515 = vmatmul.msk.bf16.vlgmr.msrb.gmra.mxu3 %vm6554_vm2, %v16674_v55  ;;  %v10291_v14 = vsel %vm10200_vm5, %v10289_v11, %v10290_v8  ;;  %v11330_v34 = vld [vmem:[%s16596_s13 + $0x634] sm:$0xf0]  ;;  %v11325_v39 = vor.u32 %v14675_v24, %v11322_v36  ;;  %v11329_v59 = vor.u32 %v14791_v45, %v11328_v42  ;;  %v15371_v2 = vld [vmem:[%s16596_s13 + $0x1854] sm:$0xf]  ;;  %v12270_v42 = vld [vmem:[%s16596_s13 + $0xd7c] sm:$0xf0] }
 0x3d9   : > { %14516 = vmatmul.msk.bf16.vlgmr.msrb.gmra.mxu0 %vm6554_vm2, %v16674_v55  ;;  %14517 = vmatmul.msk.bf16.vlgmr.msrb.gmra.mxu1 %vm6554_vm2, %v16674_v55  ;;  %10460 = vst [vmem:[%s17074_s16 + $0xf0] sm:$0xff] %v10291_v14  ;;  %15880 = vtanh.f32 %v8206_v54  ;;  %v11333_v61 = vor.u32 %v14676_v46, %v11330_v34  ;;  %v14118_v54 = vld [vmem:[%s16596_s13 + $0x1bec] sm:$0xf0]  ;;  %v14113_v8 = vor.u32 %v15370_v53, %v14110_v56  ;;  %v12260_v24 = vld [vmem:[%s16596_s13 + $0x9d8] sm:$0xf] }
 0x3da   : > { %8707 = vmatpush.bf16.msrb.mxu3 %v14097_v62  ;;  %8694 = vmatpush.bf16.msrb.mxu2 %v14093_v48  ;;  %15882 = vtanh.f32 %v8219_v3  ;;  %v15485_v62 = vld [vmem:[%s16596_s13 + $0x1be0] sm:$0xf0]  ;;  %v14116_v48 = vld [vmem:[%s16596_s13 + $0x1850] sm:$0xf]  ;;  %v13185_v28 = vor.u32 %v15254_v19, %v13184_v18  ;;  %v15023_v36 = vld [vmem:[%s16596_s13 + $0xd70] sm:$0xf0] }
 0x3db   : > { %v8179_v21 = vpop.f32.mrf.mxu2  ;;  %v8192_v22 = vpop.f32.mrf.mxu3  ;;  %8720 = vmatpush.bf16.msrb.mxu0 %v14101_v49  ;;  %8733 = vmatpush.bf16.msrb.mxu1 %v14105_v4  ;;  %v15486_v49 = vld [vmem:[%s16596_s13 + $0x1be8] sm:$0xf0]  ;;  %v1597_v4 = vperm.slane %v18571_v33, 1  ;;  %v14109_v11 = vor.u32 %v15485_v62, %v14108_v57  ;;  %v11336_v53 = vld [vmem:[%s16596_s13 + $0x2a0] sm:$0xf] }
 0x3dc   : > { %v8193_v15 = vadd.f32 %v8192_v22, %v1593_v44  ;;  %v8180_v31 = vadd.f32 %v8179_v21, %v1592_v16  ;;  %v14117_v12 = vor.u32 %v15486_v49, %v14116_v48  ;;  %v13192_v21 = vld [vmem:[%s16596_s13 + $0x1118] sm:$0xf]  ;;  %v14792_v56 = vld [vmem:[%s16596_s13 + $0x638] sm:$0xf0]  ;;  %v11344_v57 = vld [vmem:[%s16596_s13 + $0x2a8] sm:$0xf] }
 0x3dd   : > { %v1602_v48 = vperm.slane %v18571_v33, 6  ;;  %v1603_v49 = vperm.slane %v18571_v33, 7 }
 0x3de   : > { %v8207_v20 = vpop.f32.mrf.mxu0  ;;  %v8220_v32 = vpop.f32.mrf.mxu1  ;;  %8708 = vmatpush.bf16.msrb.mxu3 %v13173_v17  ;;  %8695 = vmatpush.bf16.msrb.mxu2 %v13169_v5  ;;  %15884 = vtanh.f32 %v8193_v15  ;;  %v14121_v5 = vor.u32 %v15371_v2, %v14118_v54  ;;  %v1596_v15 = vperm.slane %v18571_v33, 0  ;;  %v15372_v2 = vld [vmem:[%s16596_s13 + $0x185c] sm:$0xf]  ;;  %v14126_v54 = vld [vmem:[%s16596_s13 + $0x1bf4] sm:$0xf0] }
 0x3df   : > { %8721 = vmatpush.bf16.msrb.mxu0 %v13177_v9  ;;  %8734 = vmatpush.bf16.msrb.mxu1 %v13181_v10  ;;  %v15881_v43 = vpop.eup %15880  ;;  %15886 = vtanh.f32 %v8180_v31  ;;  %v15255_v10 = vld [vmem:[%s16596_s13 + $0x14b0] sm:$0xf0]  ;;  %v12262_v31 = vld [vmem:[%s16596_s13 + $0xd74] sm:$0xf0] }
 0x3e0   : > { %v15883_v47 = vpop.eup %15882  ;;  %v10117_v63 = vrot.slane %v15881_v43, 4  ;;  %v12265_v34 = vor.u32 %v14908_v30, %v12262_v31  ;;  %v13200_v30 = vld [vmem:[%s16596_s13 + $0x1120] sm:$0xf]  ;;  %v15256_v31 = vld [vmem:[%s16596_s13 + $0x14b8] sm:$0xf0] }
 0x3e1   : > { %v10118_v1 = vrot.slane %v15883_v47, 2  ;;  %v12261_v47 = vor.u32 %v15023_v36, %v12260_v24  ;;  %v15142_v24 = vld [vmem:[%s16596_s13 + $0x112c] sm:$0xf]  ;;  %v13210_v36 = vld [vmem:[%s16596_s13 + $0x14c4] sm:$0xf0] }
 0x3e2   : > { %8709 = vmatpush.bf16.msrb.mxu3 %v12249_v37  ;;  %8696 = vmatpush.bf16.msrb.mxu2 %v12245_v35  ;;  %v13193_v37 = vor.u32 %v15255_v10, %v13192_v21  ;;  %v13197_v35 = vor.u32 %v15140_v23, %v13194_v25  ;;  %v15141_v23 = vld [vmem:[%s16596_s13 + $0x1124] sm:$0xf]  ;;  %v13202_v25 = vld [vmem:[%s16596_s13 + $0x14bc] sm:$0xf0] }
 0x3e3   : > { %v8181_v44 = vpop.f32.mrf.mxu2  ;;  %v8194_v58 = vpop.f32.mrf.mxu3  ;;  %8722 = vmatpush.bf16.msrb.mxu0 %v12253_v38  ;;  %8735 = vmatpush.bf16.msrb.mxu1 %v12257_v40  ;;  %v10293_v22 = vsel %vm10198_vm3, %v10117_v63, %v10118_v1  ;;  %v12268_v38 = vld [vmem:[%s16596_s13 + $0x9e0] sm:$0xf]  ;;  %v11337_v1 = vor.u32 %v14792_v56, %v11336_v53  ;;  %v14911_v53 = vld [vmem:[%s16596_s13 + $0x9f4] sm:$0xf]  ;;  %v12286_v56 = vld [vmem:[%s16596_s13 + $0xd8c] sm:$0xf0] }
 0x3e4   : > { %v15885_v3 = vpop.eup %15884  ;;  %v14793_v58 = vld [vmem:[%s16596_s13 + $0x640] sm:$0xf0] }
 0x3e5   : > { %v10116_v6 = vrot.slane %v15885_v3, 6  ;;  %v15887_v14 = vpop.eup %15886  ;;  %v14124_v3 = vld [vmem:[%s16596_s13 + $0x1858] sm:$0xf] }
 0x3e6   : > { %v8257_v7 = vpop.f32.mrf.mxu0  ;;  %v8270_v60 = vpop.f32.mrf.mxu1  ;;  %8710 = vmatpush.bf16.msrb.mxu3 %v11325_v39  ;;  %8697 = vmatpush.bf16.msrb.mxu2 %v11321_v52  ;;  %v12269_v39 = vor.u32 %v15024_v41, %v12268_v38  ;;  %v12273_v52 = vor.u32 %v14909_v29, %v12270_v42  ;;  %v13205_v41 = vor.u32 %v15141_v23, %v13202_v25  ;;  %v14910_v42 = vld [vmem:[%s16596_s13 + $0x9ec] sm:$0xf] }
 0x3e7   : > { %v8258_v16 = vadd.f32 %v8257_v7, %v1598_v50  ;;  %v8271_v17 = vadd.f32 %v8270_v60, %v1599_v51  ;;  %8723 = vmatpush.bf16.msrb.mxu0 %v11329_v59  ;;  %8736 = vmatpush.bf16.msrb.mxu1 %v11333_v61  ;;  %v10292_v9 = vsel %vm10196_vm4, %v15887_v14, %v10116_v6  ;;  %v14677_v50 = vld [vmem:[%s16596_s13 + $0x2a4] sm:$0xf]  ;;  %v11338_v51 = vld [vmem:[%s16596_s13 + $0x63c] sm:$0xf0]  ;;  %v14678_v59 = vld [vmem:[%s16596_s13 + $0x2ac] sm:$0xf] }
 0x3e8   : > { %14518 = vmatmul.msk.bf16.vlgmr.msra.gmra.mxu2 %vm6554_vm2, %v16674_v55  ;;  %14519 = vmatmul.msk.bf16.vlgmr.msra.gmra.mxu3 %vm6554_vm2, %v16674_v55  ;;  %v10294_v26 = vsel %vm10200_vm5, %v10292_v9, %v10293_v22  ;;  %v11346_v61 = vld [vmem:[%s16596_s13 + $0x644] sm:$0xf0]  ;;  %v11341_v63 = vor.u32 %v14677_v50, %v11338_v51  ;;  %v11345_v7 = vor.u32 %v14793_v58, %v11344_v57  ;;  %v15373_v14 = vld [vmem:[%s16596_s13 + $0x1864] sm:$0xf]  ;;  %v12284_v51 = vld [vmem:[%s16596_s13 + $0x9f0] sm:$0xf] }
 0x3e9   : > { %14520 = vmatmul.msk.bf16.vlgmr.msra.gmra.mxu0 %vm6554_vm2, %v16674_v55  ;;  %14521 = vmatmul.msk.bf16.vlgmr.msra.gmra.mxu1 %vm6554_vm2, %v16674_v55  ;;  %10461 = vst [vmem:[%s17074_s16 + $0xf8] sm:$0xff] %v10294_v26  ;;  %15888 = vtanh.f32 %v8258_v16  ;;  %v11349_v60 = vor.u32 %v14678_v59, %v11346_v61  ;;  %v14134_v16 = vld [vmem:[%s16596_s13 + $0x1bfc] sm:$0xf0]  ;;  %v14129_v22 = vor.u32 %v15372_v2, %v14126_v54  ;;  %v15025_v50 = vld [vmem:[%s16596_s13 + $0xd80] sm:$0xf0]  ;;  %v18670_v59 = vld [vmem:[%s16983_s22 + $0x88] sm:$0xff] }
 0x3ea   : > { %8759 = vmatpush.bf16.msra.mxu3 %v14113_v8  ;;  %8746 = vmatpush.bf16.msra.mxu2 %v14109_v11  ;;  %15890 = vtanh.f32 %v8271_v17  ;;  %v15487_v8 = vld [vmem:[%s16596_s13 + $0x1bf0] sm:$0xf0]  ;;  %v14132_v11 = vld [vmem:[%s16596_s13 + $0x1860] sm:$0xf]  ;;  %v13201_v29 = vor.u32 %v15256_v31, %v13200_v30  ;;  %v11352_v2 = vld [vmem:[%s16596_s13 + $0x2b0] sm:$0xf] }
 0x3eb   : > { %v8231_v20 = vpop.f32.mrf.mxu2  ;;  %v8244_v32 = vpop.f32.mrf.mxu3  ;;  %8772 = vmatpush.bf16.msra.mxu0 %v14117_v12  ;;  %8785 = vmatpush.bf16.msra.mxu1 %v14121_v5  ;;  %v15488_v12 = vld [vmem:[%s16596_s13 + $0x1bf8] sm:$0xf0]  ;;  %v1601_v5 = vperm.slane %v18571_v33, 5  ;;  %v14125_v9 = vor.u32 %v15487_v8, %v14124_v3  ;;  %v14794_v54 = vld [vmem:[%s16596_s13 + $0x648] sm:$0xf0] }
 0x3ec   : > { %v8245_v40 = vadd.f32 %v8244_v32, %v1597_v4  ;;  %v8232_v43 = vadd.f32 %v8231_v20, %v1596_v15  ;;  %v14133_v10 = vor.u32 %v15488_v12, %v14132_v11  ;;  %v13208_v20 = vld [vmem:[%s16596_s13 + $0x1128] sm:$0xf]  ;;  %v11360_v3 = vld [vmem:[%s16596_s13 + $0x2b8] sm:$0xf]  ;;  %v1606_v11 = vperm.slane %v18670_v59, 2 }
 0x3ed   : > { %v1607_v12 = vperm.slane %v18670_v59, 3 }
 0x3ee   : > { %v8259_v45 = vpop.f32.mrf.mxu0  ;;  %v8272_v46 = vpop.f32.mrf.mxu1  ;;  %8760 = vmatpush.bf16.msra.mxu3 %v13189_v27  ;;  %8747 = vmatpush.bf16.msra.mxu2 %v13185_v28  ;;  %15892 = vtanh.f32 %v8245_v40  ;;  %v14137_v28 = vor.u32 %v15373_v14, %v14134_v16  ;;  %v1600_v40 = vperm.slane %v18571_v33, 4  ;;  %v15374_v14 = vld [vmem:[%s16596_s13 + $0x186c] sm:$0xf]  ;;  %v14142_v16 = vld [vmem:[%s16596_s13 + $0x1c04] sm:$0xf0] }
 0x3ef   : > { %8773 = vmatpush.bf16.msra.mxu0 %v13193_v37  ;;  %8786 = vmatpush.bf16.msra.mxu1 %v13197_v35  ;;  %v15889_v44 = vpop.eup %15888  ;;  %15894 = vtanh.f32 %v8232_v43  ;;  %v15257_v35 = vld [vmem:[%s16596_s13 + $0x14c0] sm:$0xf0]  ;;  %v12278_v43 = vld [vmem:[%s16596_s13 + $0xd84] sm:$0xf0] }
 0x3f0   : > { %v15891_v62 = vpop.eup %15890  ;;  %v10120_v0 = vrot.slane %v15889_v44, 4  ;;  %v13209_v33 = vor.u32 %v15257_v35, %v13208_v20  ;;  %v12281_v61 = vor.u32 %v14910_v42, %v12278_v43  ;;  %v13216_v42 = vld [vmem:[%s16596_s13 + $0x1130] sm:$0xf]  ;;  %v15258_v43 = vld [vmem:[%s16596_s13 + $0x14c8] sm:$0xf0] }
 0x3f1   : > { %v10121_v13 = vrot.slane %v15891_v62, 2 }
 0x3f2   : > { %8761 = vmatpush.bf16.msra.mxu3 %v12265_v34  ;;  %8748 = vmatpush.bf16.msra.mxu2 %v12261_v47  ;;  %v13213_v34 = vor.u32 %v15142_v24, %v13210_v36  ;;  %v12276_v47 = vld [vmem:[%s16596_s13 + $0x9e8] sm:$0xf]  ;;  %v15143_v24 = vld [vmem:[%s16596_s13 + $0x1134] sm:$0xf]  ;;  %v13218_v36 = vld [vmem:[%s16596_s13 + $0x14cc] sm:$0xf0] }
 0x3f3   : > { %v8233_v4 = vpop.f32.mrf.mxu2  ;;  %v8246_v6 = vpop.f32.mrf.mxu3  ;;  %8774 = vmatpush.bf16.msra.mxu0 %v12269_v39  ;;  %8787 = vmatpush.bf16.msra.mxu1 %v12273_v52  ;;  %v10296_v32 = vsel %vm10198_vm3, %v10120_v0, %v10121_v13  ;;  %v15026_v52 = vld [vmem:[%s16596_s13 + $0xd88] sm:$0xf0]  ;;  %v12277_v62 = vor.u32 %v15025_v50, %v12276_v47  ;;  %v11353_v13 = vor.u32 %v14794_v54, %v11352_v2  ;;  %v15144_v47 = vld [vmem:[%s16596_s13 + $0x113c] sm:$0xf]  ;;  %v13226_v50 = vld [vmem:[%s16596_s13 + $0x14d4] sm:$0xf0] }
 0x3f4   : > { %v15893_v17 = vpop.eup %15892  ;;  %v14795_v6 = vld [vmem:[%s16596_s13 + $0x650] sm:$0xf0]  ;;  %v15028_v2 = vld [vmem:[%s16596_s13 + $0xd98] sm:$0xf0]  ;;  %v14913_v54 = vld [vmem:[%s16596_s13 + $0xa04] sm:$0xf] }
 0x3f5   : > { %v10119_v18 = vrot.slane %v15893_v17, 6  ;;  %v15895_v26 = vpop.eup %15894  ;;  %v14140_v17 = vld [vmem:[%s16596_s13 + $0x1868] sm:$0xf] }
 0x3f6   : > { %v8309_v19 = vpop.f32.mrf.mxu0  ;;  %v8322_v21 = vpop.f32.mrf.mxu1  ;;  %8762 = vmatpush.bf16.msra.mxu3 %v11341_v63  ;;  %8749 = vmatpush.bf16.msra.mxu2 %v11337_v1  ;;  %v12285_v63 = vor.u32 %v15026_v52, %v12284_v51  ;;  %v12289_v1 = vor.u32 %v14911_v53, %v12286_v56  ;;  %v13221_v52 = vor.u32 %v15143_v24, %v13218_v36  ;;  %v14912_v56 = vld [vmem:[%s16596_s13 + $0x9fc] sm:$0xf] }
 0x3f7   : > { %v8310_v15 = vadd.f32 %v8309_v19, %v1602_v48  ;;  %v8323_v27 = vadd.f32 %v8322_v21, %v1603_v49  ;;  %8775 = vmatpush.bf16.msra.mxu0 %v11345_v7  ;;  %8788 = vmatpush.bf16.msra.mxu1 %v11349_v60  ;;  %v10295_v37 = vsel %vm10196_vm4, %v15895_v26, %v10119_v18  ;;  %v14679_v48 = vld [vmem:[%s16596_s13 + $0x2b4] sm:$0xf]  ;;  %v11354_v49 = vld [vmem:[%s16596_s13 + $0x64c] sm:$0xf0]  ;;  %v14680_v7 = vld [vmem:[%s16596_s13 + $0x2bc] sm:$0xf] }
 0x3f8   : > { %14522 = vmatmul.msk.bf16.vlgmr.msrb.gmra.mxu2 %vm6554_vm2, %v16674_v55  ;;  %14523 = vmatmul.msk.bf16.vlgmr.msrb.gmra.mxu3 %vm6554_vm2, %v16674_v55  ;;  %v10297_v38 = vsel %vm10200_vm5, %v10295_v37, %v10296_v32  ;;  %v11362_v60 = vld [vmem:[%s16596_s13 + $0x654] sm:$0xf0]  ;;  %v11357_v0 = vor.u32 %v14679_v48, %v11354_v49  ;;  %v11361_v19 = vor.u32 %v14795_v6, %v11360_v3  ;;  %v15375_v26 = vld [vmem:[%s16596_s13 + $0x1874] sm:$0xf]  ;;  %v12302_v3 = vld [vmem:[%s16596_s13 + $0xd9c] sm:$0xf0] }
 0x3f9   : > { %14524 = vmatmul.msk.bf16.vlgmr.msrb.gmra.mxu0 %vm6554_vm2, %v16674_v55  ;;  %14525 = vmatmul.msk.bf16.vlgmr.msrb.gmra.mxu1 %vm6554_vm2, %v16674_v55  ;;  %10462 = vst [vmem:[%s17074_s16 + $0x100] sm:$0xff] %v10297_v38  ;;  %15896 = vtanh.f32 %v8310_v15  ;;  %v11365_v21 = vor.u32 %v14680_v7, %v11362_v60  ;;  %v14150_v15 = vld [vmem:[%s16596_s13 + $0x1c0c] sm:$0xf0]  ;;  %v14145_v32 = vor.u32 %v15374_v14, %v14142_v16  ;;  %v12292_v48 = vld [vmem:[%s16596_s13 + $0x9f8] sm:$0xf] }
 0x3fa   : > { %8811 = vmatpush.bf16.msrb.mxu3 %v14129_v22  ;;  %8798 = vmatpush.bf16.msrb.mxu2 %v14125_v9  ;;  %15898 = vtanh.f32 %v8323_v27  ;;  %v15489_v22 = vld [vmem:[%s16596_s13 + $0x1c00] sm:$0xf0]  ;;  %v14148_v9 = vld [vmem:[%s16596_s13 + $0x1870] sm:$0xf]  ;;  %v13217_v53 = vor.u32 %v15258_v43, %v13216_v42  ;;  %v15027_v49 = vld [vmem:[%s16596_s13 + $0xd90] sm:$0xf0] }
 0x3fb   : > { %v8283_v45 = vpop.f32.mrf.mxu2  ;;  %v8296_v46 = vpop.f32.mrf.mxu3  ;;  %8824 = vmatpush.bf16.msrb.mxu0 %v14133_v10  ;;  %8837 = vmatpush.bf16.msrb.mxu1 %v14137_v28  ;;  %v15490_v10 = vld [vmem:[%s16596_s13 + $0x1c08] sm:$0xf0]  ;;  %v1605_v28 = vperm.slane %v18670_v59, 1  ;;  %v14141_v37 = vor.u32 %v15489_v22, %v14140_v17  ;;  %v11368_v14 = vld [vmem:[%s16596_s13 + $0x2c0] sm:$0xf] }
 0x3fc   : > { %v8297_v39 = vadd.f32 %v8296_v46, %v1601_v5  ;;  %v8284_v57 = vadd.f32 %v8283_v45, %v1600_v40  ;;  %v14149_v35 = vor.u32 %v15490_v10, %v14148_v9  ;;  %v13224_v45 = vld [vmem:[%s16596_s13 + $0x1138] sm:$0xf]  ;;  %v14796_v16 = vld [vmem:[%s16596_s13 + $0x658] sm:$0xf0]  ;;  %v11376_v17 = vld [vmem:[%s16596_s13 + $0x2c8] sm:$0xf] }
 0x3fd   : > { %v1610_v9 = vperm.slane %v18670_v59, 6  ;;  %v1611_v10 = vperm.slane %v18670_v59, 7 }
 0x3fe   : > { %v8311_v44 = vpop.f32.mrf.mxu0  ;;  %v8324_v58 = vpop.f32.mrf.mxu1  ;;  %8812 = vmatpush.bf16.msrb.mxu3 %v13205_v41  ;;  %8799 = vmatpush.bf16.msrb.mxu2 %v13201_v29  ;;  %15900 = vtanh.f32 %v8297_v39  ;;  %v14153_v29 = vor.u32 %v15375_v26, %v14150_v15  ;;  %v1604_v39 = vperm.slane %v18670_v59, 0  ;;  %v15376_v26 = vld [vmem:[%s16596_s13 + $0x187c] sm:$0xf]  ;;  %v14158_v15 = vld [vmem:[%s16596_s13 + $0x1c14] sm:$0xf0] }
 0x3ff   : > { %8825 = vmatpush.bf16.msrb.mxu0 %v13209_v33  ;;  %8838 = vmatpush.bf16.msrb.mxu1 %v13213_v34  ;;  %v15897_v4 = vpop.eup %15896  ;;  %15902 = vtanh.f32 %v8284_v57  ;;  %v15259_v34 = vld [vmem:[%s16596_s13 + $0x14d0] sm:$0xf0]  ;;  %v12294_v57 = vld [vmem:[%s16596_s13 + $0xd94] sm:$0xf0] }
 0x400   : > { %v15899_v8 = vpop.eup %15898  ;;  %v10123_v23 = vrot.slane %v15897_v4, 4  ;;  %v12297_v60 = vor.u32 %v14912_v56, %v12294_v57  ;;  %v13232_v56 = vld [vmem:[%s16596_s13 + $0x1140] sm:$0xf]  ;;  %v15260_v57 = vld [vmem:[%s16596_s13 + $0x14d8] sm:$0xf0] }
 0x401   : > { %v10124_v25 = vrot.slane %v15899_v8, 2  ;;  %v12293_v8 = vor.u32 %v15027_v49, %v12292_v48  ;;  %v15146_v48 = vld [vmem:[%s16596_s13 + $0x114c] sm:$0xf]  ;;  %v13242_v49 = vld [vmem:[%s16596_s13 + $0x14e4] sm:$0xf0] }
 0x402   : > { %8813 = vmatpush.bf16.msrb.mxu3 %v12281_v61  ;;  %8800 = vmatpush.bf16.msrb.mxu2 %v12277_v62  ;;  %v13225_v61 = vor.u32 %v15259_v34, %v13224_v45  ;;  %v13229_v62 = vor.u32 %v15144_v47, %v13226_v50  ;;  %v15145_v47 = vld [vmem:[%s16596_s13 + $0x1144] sm:$0xf]  ;;  %v13234_v50 = vld [vmem:[%s16596_s13 + $0x14dc] sm:$0xf0] }
 0x403   : > { %v8285_v5 = vpop.f32.mrf.mxu2  ;;  %v8298_v18 = vpop.f32.mrf.mxu3  ;;  %8826 = vmatpush.bf16.msrb.mxu0 %v12285_v63  ;;  %8839 = vmatpush.bf16.msrb.mxu1 %v12289_v1  ;;  %v10299_v46 = vsel %vm10198_vm3, %v10123_v23, %v10124_v25  ;;  %v12300_v63 = vld [vmem:[%s16596_s13 + $0xa00] sm:$0xf]  ;;  %v11369_v25 = vor.u32 %v14796_v16, %v11368_v14  ;;  %v14915_v14 = vld [vmem:[%s16596_s13 + $0xa14] sm:$0xf]  ;;  %v12318_v16 = vld [vmem:[%s16596_s13 + $0xdac] sm:$0xf0] }
 0x404   : > { %v15901_v27 = vpop.eup %15900  ;;  %v14797_v18 = vld [vmem:[%s16596_s13 + $0x660] sm:$0xf0] }
 0x405   : > { %v10122_v30 = vrot.slane %v15901_v27, 6  ;;  %v15903_v38 = vpop.eup %15902  ;;  %v14156_v27 = vld [vmem:[%s16596_s13 + $0x1878] sm:$0xf] }
 0x406   : > { %v8361_v31 = vpop.f32.mrf.mxu0  ;;  %v8374_v20 = vpop.f32.mrf.mxu1  ;;  %8814 = vmatpush.bf16.msrb.mxu3 %v11357_v0  ;;  %8801 = vmatpush.bf16.msrb.mxu2 %v11353_v13  ;;  %v12301_v0 = vor.u32 %v15028_v2, %v12300_v63  ;;  %v12305_v13 = vor.u32 %v14913_v54, %v12302_v3  ;;  %v13237_v2 = vor.u32 %v15145_v47, %v13234_v50  ;;  %v14914_v3 = vld [vmem:[%s16596_s13 + $0xa0c] sm:$0xf] }
 0x407   : > { %v8362_v40 = vadd.f32 %v8361_v31, %v1606_v11  ;;  %v8375_v41 = vadd.f32 %v8374_v20, %v1607_v12  ;;  %8827 = vmatpush.bf16.msrb.mxu0 %v11361_v19  ;;  %8840 = vmatpush.bf16.msrb.mxu1 %v11365_v21  ;;  %v10298_v33 = vsel %vm10196_vm4, %v15903_v38, %v10122_v30  ;;  %v14681_v11 = vld [vmem:[%s16596_s13 + $0x2c4] sm:$0xf]  ;;  %v11370_v12 = vld [vmem:[%s16596_s13 + $0x65c] sm:$0xf0]  ;;  %v14682_v19 = vld [vmem:[%s16596_s13 + $0x2cc] sm:$0xf] }
 0x408   : > { %14526 = vmatmul.msk.bf16.vlgmr.msra.gmra.mxu2 %vm6554_vm2, %v16674_v55  ;;  %14527 = vmatmul.msk.bf16.vlgmr.msra.gmra.mxu3 %vm6554_vm2, %v16674_v55  ;;  %v10300_v51 = vsel %vm10200_vm5, %v10298_v33, %v10299_v46  ;;  %v11378_v21 = vld [vmem:[%s16596_s13 + $0x664] sm:$0xf0]  ;;  %v11373_v23 = vor.u32 %v14681_v11, %v11370_v12  ;;  %v11377_v31 = vor.u32 %v14797_v18, %v11376_v17  ;;  %v15377_v38 = vld [vmem:[%s16596_s13 + $0x1884] sm:$0xf]  ;;  %v12316_v12 = vld [vmem:[%s16596_s13 + $0xa10] sm:$0xf] }
 0x409   : > { %14528 = vmatmul.msk.bf16.vlgmr.msra.gmra.mxu0 %vm6554_vm2, %v16674_v55  ;;  %14529 = vmatmul.msk.bf16.vlgmr.msra.gmra.mxu1 %vm6554_vm2, %v16674_v55  ;;  %10463 = vst [vmem:[%s17074_s16 + $0x108] sm:$0xff] %v10300_v51  ;;  %15904 = vtanh.f32 %v8362_v40  ;;  %v11381_v20 = vor.u32 %v14682_v19, %v11378_v21  ;;  %v14166_v40 = vld [vmem:[%s16596_s13 + $0x1c1c] sm:$0xf0]  ;;  %v14161_v46 = vor.u32 %v15376_v26, %v14158_v15  ;;  %v15029_v11 = vld [vmem:[%s16596_s13 + $0xda0] sm:$0xf0]  ;;  %v18769_v19 = vld [vmem:[%s16983_s22 + $0x90] sm:$0xff] }
 0x40a   : > { %8863 = vmatpush.bf16.msra.mxu3 %v14145_v32  ;;  %8850 = vmatpush.bf16.msra.mxu2 %v14141_v37  ;;  %15906 = vtanh.f32 %v8375_v41  ;;  %v15491_v32 = vld [vmem:[%s16596_s13 + $0x1c10] sm:$0xf0]  ;;  %v14164_v37 = vld [vmem:[%s16596_s13 + $0x1880] sm:$0xf]  ;;  %v13233_v54 = vor.u32 %v15260_v57, %v13232_v56  ;;  %v11384_v26 = vld [vmem:[%s16596_s13 + $0x2d0] sm:$0xf] }
 0x40b   : > { %v8335_v44 = vpop.f32.mrf.mxu2  ;;  %v8348_v58 = vpop.f32.mrf.mxu3  ;;  %8876 = vmatpush.bf16.msra.mxu0 %v14149_v35  ;;  %8889 = vmatpush.bf16.msra.mxu1 %v14153_v29  ;;  %v15492_v35 = vld [vmem:[%s16596_s13 + $0x1c18] sm:$0xf0]  ;;  %v1609_v29 = vperm.slane %v18670_v59, 5  ;;  %v14157_v33 = vor.u32 %v15491_v32, %v14156_v27  ;;  %v14798_v15 = vld [vmem:[%s16596_s13 + $0x668] sm:$0xf0] }
 0x40c   : > { %v8349_v1 = vadd.f32 %v8348_v58, %v1605_v28  ;;  %v8336_v4 = vadd.f32 %v8335_v44, %v1604_v39  ;;  %v14165_v34 = vor.u32 %v15492_v35, %v14164_v37  ;;  %v13240_v44 = vld [vmem:[%s16596_s13 + $0x1148] sm:$0xf]  ;;  %v11392_v27 = vld [vmem:[%s16596_s13 + $0x2d8] sm:$0xf]  ;;  %v1614_v37 = vperm.slane %v18769_v19, 2 }
 0x40d   : > { %v1615_v35 = vperm.slane %v18769_v19, 3 }
 0x40e   : > { %v8363_v6 = vpop.f32.mrf.mxu0  ;;  %v8376_v7 = vpop.f32.mrf.mxu1  ;;  %8864 = vmatpush.bf16.msra.mxu3 %v13221_v52  ;;  %8851 = vmatpush.bf16.msra.mxu2 %v13217_v53  ;;  %15908 = vtanh.f32 %v8349_v1  ;;  %v14169_v53 = vor.u32 %v15377_v38, %v14166_v40  ;;  %v1608_v1 = vperm.slane %v18670_v59, 4  ;;  %v15378_v38 = vld [vmem:[%s16596_s13 + $0x188c] sm:$0xf]  ;;  %v14174_v40 = vld [vmem:[%s16596_s13 + $0x1c24] sm:$0xf0] }
 0x40f   : > { %8877 = vmatpush.bf16.msra.mxu0 %v13225_v61  ;;  %8890 = vmatpush.bf16.msra.mxu1 %v13229_v62  ;;  %v15905_v5 = vpop.eup %15904  ;;  %15910 = vtanh.f32 %v8336_v4  ;;  %v15261_v62 = vld [vmem:[%s16596_s13 + $0x14e0] sm:$0xf0]  ;;  %v12310_v4 = vld [vmem:[%s16596_s13 + $0xda4] sm:$0xf0] }
 0x410   : > { %v15907_v22 = vpop.eup %15906  ;;  %v10126_v24 = vrot.slane %v15905_v5, 4  ;;  %v13241_v59 = vor.u32 %v15261_v62, %v13240_v44  ;;  %v12313_v21 = vor.u32 %v14914_v3, %v12310_v4  ;;  %v13248_v3 = vld [vmem:[%s16596_s13 + $0x1150] sm:$0xf]  ;;  %v15262_v4 = vld [vmem:[%s16596_s13 + $0x14e8] sm:$0xf0] }
 0x411   : > { %v10127_v36 = vrot.slane %v15907_v22, 2 }
 0x412   : > { %8865 = vmatpush.bf16.msra.mxu3 %v12297_v60  ;;  %8852 = vmatpush.bf16.msra.mxu2 %v12293_v8  ;;  %v13245_v60 = vor.u32 %v15146_v48, %v13242_v49  ;;  %v12308_v8 = vld [vmem:[%s16596_s13 + $0xa08] sm:$0xf]  ;;  %v15147_v48 = vld [vmem:[%s16596_s13 + $0x1154] sm:$0xf]  ;;  %v13250_v49 = vld [vmem:[%s16596_s13 + $0x14ec] sm:$0xf0] }
 0x413   : > { %v8337_v28 = vpop.f32.mrf.mxu2  ;;  %v8350_v30 = vpop.f32.mrf.mxu3  ;;  %8878 = vmatpush.bf16.msra.mxu0 %v12301_v0  ;;  %8891 = vmatpush.bf16.msra.mxu1 %v12305_v13  ;;  %v10302_v58 = vsel %vm10198_vm3, %v10126_v24, %v10127_v36  ;;  %v15030_v13 = vld [vmem:[%s16596_s13 + $0xda8] sm:$0xf0]  ;;  %v12309_v22 = vor.u32 %v15029_v11, %v12308_v8  ;;  %v11385_v36 = vor.u32 %v14798_v15, %v11384_v26  ;;  %v15148_v8 = vld [vmem:[%s16596_s13 + $0x115c] sm:$0xf]  ;;  %v13258_v11 = vld [vmem:[%s16596_s13 + $0x14f4] sm:$0xf0] }
 0x414   : > { %v15909_v41 = vpop.eup %15908  ;;  %v14799_v30 = vld [vmem:[%s16596_s13 + $0x670] sm:$0xf0]  ;;  %v15032_v26 = vld [vmem:[%s16596_s13 + $0xdb8] sm:$0xf0]  ;;  %v14917_v15 = vld [vmem:[%s16596_s13 + $0xa24] sm:$0xf] }
 0x415   : > { %v10125_v42 = vrot.slane %v15909_v41, 6  ;;  %v15911_v51 = vpop.eup %15910  ;;  %v14172_v41 = vld [vmem:[%s16596_s13 + $0x1888] sm:$0xf] }
 0x416   : > { %v8413_v43 = vpop.f32.mrf.mxu0  ;;  %v8426_v45 = vpop.f32.mrf.mxu1  ;;  %8866 = vmatpush.bf16.msra.mxu3 %v11373_v23  ;;  %8853 = vmatpush.bf16.msra.mxu2 %v11369_v25  ;;  %v12317_v23 = vor.u32 %v15030_v13, %v12316_v12  ;;  %v12321_v25 = vor.u32 %v14915_v14, %v12318_v16  ;;  %v13253_v13 = vor.u32 %v15147_v48, %v13250_v49  ;;  %v14916_v16 = vld [vmem:[%s16596_s13 + $0xa1c] sm:$0xf] }
 0x417   : > { %v8414_v39 = vadd.f32 %v8413_v43, %v1610_v9  ;;  %v8427_v52 = vadd.f32 %v8426_v45, %v1611_v10  ;;  %8879 = vmatpush.bf16.msra.mxu0 %v11377_v31  ;;  %8892 = vmatpush.bf16.msra.mxu1 %v11381_v20  ;;  %v10301_v61 = vsel %vm10196_vm4, %v15911_v51, %v10125_v42  ;;  %v14683_v9 = vld [vmem:[%s16596_s13 + $0x2d4] sm:$0xf]  ;;  %v11386_v10 = vld [vmem:[%s16596_s13 + $0x66c] sm:$0xf0]  ;;  %v14684_v31 = vld [vmem:[%s16596_s13 + $0x2dc] sm:$0xf] }
 0x418   : > { %14530 = vmatmul.msk.bf16.vlgmr.msrb.gmra.mxu2 %vm6554_vm2, %v16674_v55  ;;  %14531 = vmatmul.msk.bf16.vlgmr.msrb.gmra.mxu3 %vm6554_vm2, %v16674_v55  ;;  %v10303_v63 = vsel %vm10200_vm5, %v10301_v61, %v10302_v58  ;;  %v11394_v20 = vld [vmem:[%s16596_s13 + $0x674] sm:$0xf0]  ;;  %v11389_v24 = vor.u32 %v14683_v9, %v11386_v10  ;;  %v11393_v43 = vor.u32 %v14799_v30, %v11392_v27  ;;  %v15379_v51 = vld [vmem:[%s16596_s13 + $0x1894] sm:$0xf]  ;;  %v12334_v27 = vld [vmem:[%s16596_s13 + $0xdbc] sm:$0xf0] }
 0x419   : > { %14532 = vmatmul.msk.bf16.vlgmr.msrb.gmra.mxu0 %vm6554_vm2, %v16674_v55  ;;  %14533 = vmatmul.msk.bf16.vlgmr.msrb.gmra.mxu1 %vm6554_vm2, %v16674_v55  ;;  %10464 = vst [vmem:[%s17074_s16 + $0x110] sm:$0xff] %v10303_v63  ;;  %15912 = vtanh.f32 %v8414_v39  ;;  %v11397_v45 = vor.u32 %v14684_v31, %v11394_v20  ;;  %v14182_v39 = vld [vmem:[%s16596_s13 + $0x1c2c] sm:$0xf0]  ;;  %v14177_v58 = vor.u32 %v15378_v38, %v14174_v40  ;;  %v12324_v9 = vld [vmem:[%s16596_s13 + $0xa18] sm:$0xf] }
 0x41a   : > { %8915 = vmatpush.bf16.msrb.mxu3 %v14161_v46  ;;  %8902 = vmatpush.bf16.msrb.mxu2 %v14157_v33  ;;  %15914 = vtanh.f32 %v8427_v52  ;;  %v15493_v46 = vld [vmem:[%s16596_s13 + $0x1c20] sm:$0xf0]  ;;  %v14180_v33 = vld [vmem:[%s16596_s13 + $0x1890] sm:$0xf]  ;;  %v13249_v14 = vor.u32 %v15262_v4, %v13248_v3  ;;  %v15031_v10 = vld [vmem:[%s16596_s13 + $0xdb0] sm:$0xf0] }
 0x41b   : > { %v8387_v6 = vpop.f32.mrf.mxu2  ;;  %v8400_v7 = vpop.f32.mrf.mxu3  ;;  %8928 = vmatpush.bf16.msrb.mxu0 %v14165_v34  ;;  %8941 = vmatpush.bf16.msrb.mxu1 %v14169_v53  ;;  %v15494_v34 = vld [vmem:[%s16596_s13 + $0x1c28] sm:$0xf0]  ;;  %v1613_v53 = vperm.slane %v18769_v19, 1  ;;  %v14173_v61 = vor.u32 %v15493_v46, %v14172_v41  ;;  %v11400_v38 = vld [vmem:[%s16596_s13 + $0x2e0] sm:$0xf] }
 0x41c   : > { %v8401_v0 = vadd.f32 %v8400_v7, %v1609_v29  ;;  %v8388_v17 = vadd.f32 %v8387_v6, %v1608_v1  ;;  %v14181_v62 = vor.u32 %v15494_v34, %v14180_v33  ;;  %v13256_v6 = vld [vmem:[%s16596_s13 + $0x1158] sm:$0xf]  ;;  %v14800_v40 = vld [vmem:[%s16596_s13 + $0x678] sm:$0xf0]  ;;  %v11408_v41 = vld [vmem:[%s16596_s13 + $0x2e8] sm:$0xf] }
 0x41d   : > { %v1618_v33 = vperm.slane %v18769_v19, 6  ;;  %v1619_v34 = vperm.slane %v18769_v19, 7 }
 0x41e   : > { %v8415_v5 = vpop.f32.mrf.mxu0  ;;  %v8428_v18 = vpop.f32.mrf.mxu1  ;;  %8916 = vmatpush.bf16.msrb.mxu3 %v13237_v2  ;;  %8903 = vmatpush.bf16.msrb.mxu2 %v13233_v54  ;;  %15916 = vtanh.f32 %v8401_v0  ;;  %v14185_v54 = vor.u32 %v15379_v51, %v14182_v39  ;;  %v1612_v0 = vperm.slane %v18769_v19, 0  ;;  %v15380_v51 = vld [vmem:[%s16596_s13 + $0x189c] sm:$0xf]  ;;  %v14190_v39 = vld [vmem:[%s16596_s13 + $0x1c34] sm:$0xf0] }
 0x41f   : > { %8929 = vmatpush.bf16.msrb.mxu0 %v13241_v59  ;;  %8942 = vmatpush.bf16.msrb.mxu1 %v13245_v60  ;;  %v15913_v28 = vpop.eup %15912  ;;  %15918 = vtanh.f32 %v8388_v17  ;;  %v15263_v60 = vld [vmem:[%s16596_s13 + $0x14f0] sm:$0xf0]  ;;  %v12326_v17 = vld [vmem:[%s16596_s13 + $0xdb4] sm:$0xf0] }
 0x420   : > { %v15915_v32 = vpop.eup %15914  ;;  %v10129_v47 = vrot.slane %v15913_v28, 4  ;;  %v12329_v20 = vor.u32 %v14916_v16, %v12326_v17  ;;  %v13264_v16 = vld [vmem:[%s16596_s13 + $0x1160] sm:$0xf]  ;;  %v15264_v17 = vld [vmem:[%s16596_s13 + $0x14f8] sm:$0xf0] }
 0x421   : > { %v10130_v50 = vrot.slane %v15915_v32, 2  ;;  %v12325_v32 = vor.u32 %v15031_v10, %v12324_v9  ;;  %v15150_v9 = vld [vmem:[%s16596_s13 + $0x116c] sm:$0xf]  ;;  %v13274_v10 = vld [vmem:[%s16596_s13 + $0x1504] sm:$0xf0] }
 0x422   : > { %8917 = vmatpush.bf16.msrb.mxu3 %v12313_v21  ;;  %8904 = vmatpush.bf16.msrb.mxu2 %v12309_v22  ;;  %v13257_v21 = vor.u32 %v15263_v60, %v13256_v6  ;;  %v13261_v22 = vor.u32 %v15148_v8, %v13258_v11  ;;  %v15149_v8 = vld [vmem:[%s16596_s13 + $0x1164] sm:$0xf]  ;;  %v13266_v11 = vld [vmem:[%s16596_s13 + $0x14fc] sm:$0xf0] }
 0x423   : > { %v8389_v29 = vpop.f32.mrf.mxu2  ;;  %v8402_v42 = vpop.f32.mrf.mxu3  ;;  %8930 = vmatpush.bf16.msrb.mxu0 %v12317_v23  ;;  %8943 = vmatpush.bf16.msrb.mxu1 %v12321_v25  ;;  %v10305_v7 = vsel %vm10198_vm3, %v10129_v47, %v10130_v50  ;;  %v12332_v23 = vld [vmem:[%s16596_s13 + $0xa20] sm:$0xf]  ;;  %v11401_v50 = vor.u32 %v14800_v40, %v11400_v38  ;;  %v14919_v38 = vld [vmem:[%s16596_s13 + $0xa34] sm:$0xf]  ;;  %v12350_v40 = vld [vmem:[%s16596_s13 + $0xdcc] sm:$0xf0] }
 0x424   : > { %v15917_v52 = vpop.eup %15916  ;;  %v14801_v42 = vld [vmem:[%s16596_s13 + $0x680] sm:$0xf0] }
 0x425   : > { %v10128_v56 = vrot.slane %v15917_v52, 6  ;;  %v15919_v63 = vpop.eup %15918  ;;  %v14188_v52 = vld [vmem:[%s16596_s13 + $0x1898] sm:$0xf] }
 0x426   : > { %v8465_v57 = vpop.f32.mrf.mxu0  ;;  %v8478_v44 = vpop.f32.mrf.mxu1  ;;  %8918 = vmatpush.bf16.msrb.mxu3 %v11389_v24  ;;  %8905 = vmatpush.bf16.msrb.mxu2 %v11385_v36  ;;  %v12333_v24 = vor.u32 %v15032_v26, %v12332_v23  ;;  %v12337_v36 = vor.u32 %v14917_v15, %v12334_v27  ;;  %v13269_v26 = vor.u32 %v15149_v8, %v13266_v11  ;;  %v14918_v27 = vld [vmem:[%s16596_s13 + $0xa2c] sm:$0xf] }
 0x427   : > { %v8466_v1 = vadd.f32 %v8465_v57, %v1614_v37  ;;  %v8479_v2 = vadd.f32 %v8478_v44, %v1615_v35  ;;  %8931 = vmatpush.bf16.msrb.mxu0 %v11393_v43  ;;  %8944 = vmatpush.bf16.msrb.mxu1 %v11397_v45  ;;  %v10304_v59 = vsel %vm10196_vm4, %v15919_v63, %v10128_v56  ;;  %v14685_v37 = vld [vmem:[%s16596_s13 + $0x2e4] sm:$0xf]  ;;  %v11402_v35 = vld [vmem:[%s16596_s13 + $0x67c] sm:$0xf0]  ;;  %v14686_v43 = vld [vmem:[%s16596_s13 + $0x2ec] sm:$0xf] }
 0x428   : > { %14534 = vmatmul.msk.bf16.vlgmr.msra.gmra.mxu2 %vm6554_vm2, %v16674_v55  ;;  %14535 = vmatmul.msk.bf16.vlgmr.msra.gmra.mxu3 %vm6554_vm2, %v16674_v55  ;;  %v10306_v12 = vsel %vm10200_vm5, %v10304_v59, %v10305_v7  ;;  %v11410_v45 = vld [vmem:[%s16596_s13 + $0x684] sm:$0xf0]  ;;  %v11405_v47 = vor.u32 %v14685_v37, %v11402_v35  ;;  %v11409_v57 = vor.u32 %v14801_v42, %v11408_v41  ;;  %v15381_v63 = vld [vmem:[%s16596_s13 + $0x18a4] sm:$0xf]  ;;  %v12348_v35 = vld [vmem:[%s16596_s13 + $0xa30] sm:$0xf] }
 0x429   : > { %14536 = vmatmul.msk.bf16.vlgmr.msra.gmra.mxu0 %vm6554_vm2, %v16674_v55  ;;  %14537 = vmatmul.msk.bf16.vlgmr.msra.gmra.mxu1 %vm6554_vm2, %v16674_v55  ;;  %10465 = vst [vmem:[%s17074_s16 + $0x118] sm:$0xff] %v10306_v12  ;;  %15920 = vtanh.f32 %v8466_v1  ;;  %v11413_v44 = vor.u32 %v14686_v43, %v11410_v45  ;;  %v14198_v1 = vld [vmem:[%s16596_s13 + $0x1c3c] sm:$0xf0]  ;;  %v14193_v7 = vor.u32 %v15380_v51, %v14190_v39  ;;  %v15033_v37 = vld [vmem:[%s16596_s13 + $0xdc0] sm:$0xf0] }
 0x42a   : > { %8967 = vmatpush.bf16.msra.mxu3 %v14177_v58  ;;  %8954 = vmatpush.bf16.msra.mxu2 %v14173_v61  ;;  %15922 = vtanh.f32 %v8479_v2  ;;  %v15495_v58 = vld [vmem:[%s16596_s13 + $0x1c30] sm:$0xf0]  ;;  %v14196_v61 = vld [vmem:[%s16596_s13 + $0x18a0] sm:$0xf]  ;;  %v13265_v15 = vor.u32 %v15264_v17, %v13264_v16  ;;  %v11416_v51 = vld [vmem:[%s16596_s13 + $0x2f0] sm:$0xf] }
 0x42b   : > { %v8439_v5 = vpop.f32.mrf.mxu2  ;;  %v8452_v18 = vpop.f32.mrf.mxu3  ;;  %8980 = vmatpush.bf16.msra.mxu0 %v14181_v62  ;;  %8993 = vmatpush.bf16.msra.mxu1 %v14185_v54  ;;  %v15496_v62 = vld [vmem:[%s16596_s13 + $0x1c38] sm:$0xf0]  ;;  %v1617_v54 = vperm.slane %v18769_v19, 5  ;;  %v14189_v59 = vor.u32 %v15495_v58, %v14188_v52  ;;  %v14802_v39 = vld [vmem:[%s16596_s13 + $0x688] sm:$0xf0] }
 0x42c   : > { %v8453_v25 = vadd.f32 %v8452_v18, %v1613_v53  ;;  %v8440_v28 = vadd.f32 %v8439_v5, %v1612_v0  ;;  %v14197_v60 = vor.u32 %v15496_v62, %v14196_v61  ;;  %v13272_v5 = vld [vmem:[%s16596_s13 + $0x1168] sm:$0xf]  ;;  %v18868_v43 = vld [vmem:[%s16983_s22 + $0x98] sm:$0xff] }
 0x42d   : > { %v11424_v52 = vld [vmem:[%s16596_s13 + $0x2f8] sm:$0xf]  ;;  %v1622_v61 = vperm.slane %v18868_v43, 2  ;;  %v1623_v62 = vperm.slane %v18868_v43, 3 }
 0x42e   : > { %v8467_v30 = vpop.f32.mrf.mxu0  ;;  %v8480_v31 = vpop.f32.mrf.mxu1  ;;  %8968 = vmatpush.bf16.msra.mxu3 %v13253_v13  ;;  %8955 = vmatpush.bf16.msra.mxu2 %v13249_v14  ;;  %15924 = vtanh.f32 %v8453_v25  ;;  %v14201_v14 = vor.u32 %v15381_v63, %v14198_v1  ;;  %v1616_v25 = vperm.slane %v18769_v19, 4  ;;  %v15382_v63 = vld [vmem:[%s16596_s13 + $0x18ac] sm:$0xf]  ;;  %v14206_v1 = vld [vmem:[%s16596_s13 + $0x1c44] sm:$0xf0] }
 0x42f   : > { %8981 = vmatpush.bf16.msra.mxu0 %v13257_v21  ;;  %8994 = vmatpush.bf16.msra.mxu1 %v13261_v22  ;;  %v15921_v29 = vpop.eup %15920  ;;  %15926 = vtanh.f32 %v8440_v28  ;;  %v15265_v22 = vld [vmem:[%s16596_s13 + $0x1500] sm:$0xf0]  ;;  %v12342_v28 = vld [vmem:[%s16596_s13 + $0xdc4] sm:$0xf0] }
 0x430   : > { %v15923_v46 = vpop.eup %15922  ;;  %v10132_v48 = vrot.slane %v15921_v29, 4  ;;  %v13273_v19 = vor.u32 %v15265_v22, %v13272_v5  ;;  %v12345_v45 = vor.u32 %v14918_v27, %v12342_v28  ;;  %v13280_v27 = vld [vmem:[%s16596_s13 + $0x1170] sm:$0xf]  ;;  %v15266_v28 = vld [vmem:[%s16596_s13 + $0x1508] sm:$0xf0] }
 0x431   : > { %v10133_v49 = vrot.slane %v15923_v46, 2 }
 0x432   : > { %8969 = vmatpush.bf16.msra.mxu3 %v12329_v20  ;;  %8956 = vmatpush.bf16.msra.mxu2 %v12325_v32  ;;  %v13277_v20 = vor.u32 %v15150_v9, %v13274_v10  ;;  %v12340_v32 = vld [vmem:[%s16596_s13 + $0xa28] sm:$0xf]  ;;  %v15151_v9 = vld [vmem:[%s16596_s13 + $0x1174] sm:$0xf]  ;;  %v13282_v10 = vld [vmem:[%s16596_s13 + $0x150c] sm:$0xf0] }
 0x433   : > { %v8441_v53 = vpop.f32.mrf.mxu2  ;;  %v8454_v56 = vpop.f32.mrf.mxu3  ;;  %8982 = vmatpush.bf16.msra.mxu0 %v12333_v24  ;;  %8995 = vmatpush.bf16.msra.mxu1 %v12337_v36  ;;  %v10308_v18 = vsel %vm10198_vm3, %v10132_v48, %v10133_v49  ;;  %v15034_v36 = vld [vmem:[%s16596_s13 + $0xdc8] sm:$0xf0]  ;;  %v12341_v46 = vor.u32 %v15033_v37, %v12340_v32  ;;  %v11417_v49 = vor.u32 %v14802_v39, %v11416_v51  ;;  %v15152_v32 = vld [vmem:[%s16596_s13 + $0x117c] sm:$0xf]  ;;  %v13290_v37 = vld [vmem:[%s16596_s13 + $0x1514] sm:$0xf0] }
 0x434   : > { %v15925_v2 = vpop.eup %15924  ;;  %v14803_v56 = vld [vmem:[%s16596_s13 + $0x690] sm:$0xf0]  ;;  %v15036_v51 = vld [vmem:[%s16596_s13 + $0xdd8] sm:$0xf0]  ;;  %v14921_v39 = vld [vmem:[%s16596_s13 + $0xa44] sm:$0xf] }
 0x435   : > { %v10131_v3 = vrot.slane %v15925_v2, 6  ;;  %v15927_v12 = vpop.eup %15926  ;;  %v14204_v2 = vld [vmem:[%s16596_s13 + $0x18a8] sm:$0xf] }
 0x436   : > { %v8517_v4 = vpop.f32.mrf.mxu0  ;;  %v8530_v6 = vpop.f32.mrf.mxu1  ;;  %8970 = vmatpush.bf16.msra.mxu3 %v11405_v47  ;;  %8957 = vmatpush.bf16.msra.mxu2 %v11401_v50  ;;  %v12349_v47 = vor.u32 %v15034_v36, %v12348_v35  ;;  %v12353_v50 = vor.u32 %v14919_v38, %v12350_v40  ;;  %v13285_v36 = vor.u32 %v15151_v9, %v13282_v10  ;;  %v14920_v40 = vld [vmem:[%s16596_s13 + $0xa3c] sm:$0xf] }
 0x437   : > { %v8518_v0 = vadd.f32 %v8517_v4, %v1618_v33  ;;  %v8531_v13 = vadd.f32 %v8530_v6, %v1619_v34  ;;  %8983 = vmatpush.bf16.msra.mxu0 %v11409_v57  ;;  %8996 = vmatpush.bf16.msra.mxu1 %v11413_v44  ;;  %v10307_v21 = vsel %vm10196_vm4, %v15927_v12, %v10131_v3  ;;  %v14687_v33 = vld [vmem:[%s16596_s13 + $0x2f4] sm:$0xf]  ;;  %v11418_v34 = vld [vmem:[%s16596_s13 + $0x68c] sm:$0xf0]  ;;  %v14688_v57 = vld [vmem:[%s16596_s13 + $0x2fc] sm:$0xf] }
 0x438   : > { %14538 = vmatmul.msk.bf16.vlgmr.msrb.gmra.mxu2 %vm6554_vm2, %v16674_v55  ;;  %14539 = vmatmul.msk.bf16.vlgmr.msrb.gmra.mxu3 %vm6554_vm2, %v16674_v55  ;;  %v10309_v23 = vsel %vm10200_vm5, %v10307_v21, %v10308_v18  ;;  %v11426_v44 = vld [vmem:[%s16596_s13 + $0x694] sm:$0xf0]  ;;  %v11421_v48 = vor.u32 %v14687_v33, %v11418_v34  ;;  %v11425_v4 = vor.u32 %v14803_v56, %v11424_v52  ;;  %v15383_v12 = vld [vmem:[%s16596_s13 + $0x18b4] sm:$0xf]  ;;  %v12366_v52 = vld [vmem:[%s16596_s13 + $0xddc] sm:$0xf0] }
 0x439   : > { %14540 = vmatmul.msk.bf16.vlgmr.msrb.gmra.mxu0 %vm6554_vm2, %v16674_v55  ;;  %14541 = vmatmul.msk.bf16.vlgmr.msrb.gmra.mxu1 %vm6554_vm2, %v16674_v55  ;;  %10466 = vst [vmem:[%s17074_s16 + $0x120] sm:$0xff] %v10309_v23  ;;  %15928 = vtanh.f32 %v8518_v0  ;;  %v11429_v6 = vor.u32 %v14688_v57, %v11426_v44  ;;  %v14214_v0 = vld [vmem:[%s16596_s13 + $0x1c4c] sm:$0xf0]  ;;  %v14209_v18 = vor.u32 %v15382_v63, %v14206_v1  ;;  %v12356_v33 = vld [vmem:[%s16596_s13 + $0xa38] sm:$0xf] }
 0x43a   : > { %9019 = vmatpush.bf16.msrb.mxu3 %v14193_v7  ;;  %9006 = vmatpush.bf16.msrb.mxu2 %v14189_v59  ;;  %15930 = vtanh.f32 %v8531_v13  ;;  %v15497_v7 = vld [vmem:[%s16596_s13 + $0x1c40] sm:$0xf0]  ;;  %v14212_v59 = vld [vmem:[%s16596_s13 + $0x18b0] sm:$0xf]  ;;  %v13281_v38 = vor.u32 %v15266_v28, %v13280_v27  ;;  %v15035_v34 = vld [vmem:[%s16596_s13 + $0xdd0] sm:$0xf0] }
 0x43b   : > { %v8491_v30 = vpop.f32.mrf.mxu2  ;;  %v8504_v31 = vpop.f32.mrf.mxu3  ;;  %9032 = vmatpush.bf16.msrb.mxu0 %v14197_v60  ;;  %9045 = vmatpush.bf16.msrb.mxu1 %v14201_v14  ;;  %v15498_v60 = vld [vmem:[%s16596_s13 + $0x1c48] sm:$0xf0]  ;;  %v1621_v14 = vperm.slane %v18868_v43, 1  ;;  %v14205_v21 = vor.u32 %v15497_v7, %v14204_v2  ;;  %v11432_v63 = vld [vmem:[%s16596_s13 + $0x300] sm:$0xf] }
 0x43c   : > { %v8505_v24 = vadd.f32 %v8504_v31, %v1617_v54  ;;  %v8492_v41 = vadd.f32 %v8491_v30, %v1616_v25  ;;  %v14213_v22 = vor.u32 %v15498_v60, %v14212_v59  ;;  %v13288_v30 = vld [vmem:[%s16596_s13 + $0x1178] sm:$0xf]  ;;  %v14804_v1 = vld [vmem:[%s16596_s13 + $0x698] sm:$0xf0]  ;;  %v11440_v2 = vld [vmem:[%s16596_s13 + $0x308] sm:$0xf] }
 0x43d   : > { %v1626_v59 = vperm.slane %v18868_v43, 6  ;;  %v1627_v60 = vperm.slane %v18868_v43, 7 }
 0x43e   : > { %v8519_v29 = vpop.f32.mrf.mxu0  ;;  %v8532_v42 = vpop.f32.mrf.mxu1  ;;  %9020 = vmatpush.bf16.msrb.mxu3 %v13269_v26  ;;  %9007 = vmatpush.bf16.msrb.mxu2 %v13265_v15  ;;  %15932 = vtanh.f32 %v8505_v24  ;;  %v14217_v15 = vor.u32 %v15383_v12, %v14214_v0  ;;  %v1620_v24 = vperm.slane %v18868_v43, 0  ;;  %v15384_v12 = vld [vmem:[%s16596_s13 + $0x18bc] sm:$0xf]  ;;  %v14222_v0 = vld [vmem:[%s16596_s13 + $0x1c54] sm:$0xf0] }
 0x43f   : > { %9033 = vmatpush.bf16.msrb.mxu0 %v13273_v19  ;;  %9046 = vmatpush.bf16.msrb.mxu1 %v13277_v20  ;;  %v15929_v53 = vpop.eup %15928  ;;  %15934 = vtanh.f32 %v8492_v41  ;;  %v15267_v20 = vld [vmem:[%s16596_s13 + $0x1510] sm:$0xf0]  ;;  %v12358_v41 = vld [vmem:[%s16596_s13 + $0xdd4] sm:$0xf0] }
 0x440   : > { %v15931_v58 = vpop.eup %15930  ;;  %v10135_v8 = vrot.slane %v15929_v53, 4  ;;  %v12361_v44 = vor.u32 %v14920_v40, %v12358_v41  ;;  %v13296_v40 = vld [vmem:[%s16596_s13 + $0x1180] sm:$0xf]  ;;  %v15268_v41 = vld [vmem:[%s16596_s13 + $0x1518] sm:$0xf0] }
 0x441   : > { %v10136_v11 = vrot.slane %v15931_v58, 2  ;;  %v12357_v58 = vor.u32 %v15035_v34, %v12356_v33  ;;  %v15154_v33 = vld [vmem:[%s16596_s13 + $0x118c] sm:$0xf]  ;;  %v13306_v34 = vld [vmem:[%s16596_s13 + $0x1524] sm:$0xf0] }
 0x442   : > { %9021 = vmatpush.bf16.msrb.mxu3 %v12345_v45  ;;  %9008 = vmatpush.bf16.msrb.mxu2 %v12341_v46  ;;  %v13289_v45 = vor.u32 %v15267_v20, %v13288_v30  ;;  %v13293_v46 = vor.u32 %v15152_v32, %v13290_v37  ;;  %v15153_v32 = vld [vmem:[%s16596_s13 + $0x1184] sm:$0xf]  ;;  %v13298_v37 = vld [vmem:[%s16596_s13 + $0x151c] sm:$0xf0] }
 0x443   : > { %v8493_v54 = vpop.f32.mrf.mxu2  ;;  %v8506_v3 = vpop.f32.mrf.mxu3  ;;  %9034 = vmatpush.bf16.msrb.mxu0 %v12349_v47  ;;  %9047 = vmatpush.bf16.msrb.mxu1 %v12353_v50  ;;  %v10311_v31 = vsel %vm10198_vm3, %v10135_v8, %v10136_v11  ;;  %v12364_v47 = vld [vmem:[%s16596_s13 + $0xa40] sm:$0xf]  ;;  %v11433_v11 = vor.u32 %v14804_v1, %v11432_v63  ;;  %v14923_v63 = vld [vmem:[%s16596_s13 + $0xa54] sm:$0xf]  ;;  %v12382_v1 = vld [vmem:[%s16596_s13 + $0xdec] sm:$0xf0] }
 0x444   : > { %v15933_v13 = vpop.eup %15932  ;;  %v14805_v3 = vld [vmem:[%s16596_s13 + $0x6a0] sm:$0xf0] }
 0x445   : > { %v10134_v16 = vrot.slane %v15933_v13, 6  ;;  %v15935_v23 = vpop.eup %15934  ;;  %v14220_v13 = vld [vmem:[%s16596_s13 + $0x18b8] sm:$0xf] }
 0x446   : > { %v8569_v17 = vpop.f32.mrf.mxu0  ;;  %v8582_v5 = vpop.f32.mrf.mxu1  ;;  %9022 = vmatpush.bf16.msrb.mxu3 %v11421_v48  ;;  %9009 = vmatpush.bf16.msrb.mxu2 %v11417_v49  ;;  %v12365_v48 = vor.u32 %v15036_v51, %v12364_v47  ;;  %v12369_v49 = vor.u32 %v14921_v39, %v12366_v52  ;;  %v13301_v51 = vor.u32 %v15153_v32, %v13298_v37  ;;  %v14922_v52 = vld [vmem:[%s16596_s13 + $0xa4c] sm:$0xf] }
 0x447   : > { %v8570_v25 = vadd.f32 %v8569_v17, %v1622_v61  ;;  %v8583_v26 = vadd.f32 %v8582_v5, %v1623_v62  ;;  %9035 = vmatpush.bf16.msrb.mxu0 %v11425_v4  ;;  %9048 = vmatpush.bf16.msrb.mxu1 %v11429_v6  ;;  %v10310_v19 = vsel %vm10196_vm4, %v15935_v23, %v10134_v16  ;;  %v14689_v61 = vld [vmem:[%s16596_s13 + $0x304] sm:$0xf]  ;;  %v11434_v62 = vld [vmem:[%s16596_s13 + $0x69c] sm:$0xf0]  ;;  %v14690_v4 = vld [vmem:[%s16596_s13 + $0x30c] sm:$0xf] }
 0x448   : > { %14542 = vmatmul.msk.bf16.vlgmr.msra.gmra.mxu2 %vm6554_vm2, %v16674_v55  ;;  %14543 = vmatmul.msk.bf16.vlgmr.msra.gmra.mxu3 %vm6554_vm2, %v16674_v55  ;;  %v10312_v35 = vsel %vm10200_vm5, %v10310_v19, %v10311_v31  ;;  %v11442_v6 = vld [vmem:[%s16596_s13 + $0x6a4] sm:$0xf0]  ;;  %v11437_v8 = vor.u32 %v14689_v61, %v11434_v62  ;;  %v11441_v17 = vor.u32 %v14805_v3, %v11440_v2  ;;  %v15385_v23 = vld [vmem:[%s16596_s13 + $0x18c4] sm:$0xf]  ;;  %v12380_v62 = vld [vmem:[%s16596_s13 + $0xa50] sm:$0xf] }
 0x449   : > { %14544 = vmatmul.msk.bf16.vlgmr.msra.gmra.mxu0 %vm6554_vm2, %v16674_v55  ;;  %14545 = vmatmul.msk.bf16.vlgmr.msra.gmra.mxu1 %vm6554_vm2, %v16674_v55  ;;  %10467 = vst [vmem:[%s17074_s16 + $0x128] sm:$0xff] %v10312_v35  ;;  %15936 = vtanh.f32 %v8570_v25  ;;  %v11445_v5 = vor.u32 %v14690_v4, %v11442_v6  ;;  %v14230_v25 = vld [vmem:[%s16596_s13 + $0x1c5c] sm:$0xf0]  ;;  %v14225_v31 = vor.u32 %v15384_v12, %v14222_v0  ;;  %v15037_v61 = vld [vmem:[%s16596_s13 + $0xde0] sm:$0xf0] }
 0x44a   : > { %9071 = vmatpush.bf16.msra.mxu3 %v14209_v18  ;;  %9058 = vmatpush.bf16.msra.mxu2 %v14205_v21  ;;  %15938 = vtanh.f32 %v8583_v26  ;;  %v15499_v18 = vld [vmem:[%s16596_s13 + $0x1c50] sm:$0xf0]  ;;  %v14228_v21 = vld [vmem:[%s16596_s13 + $0x18c0] sm:$0xf]  ;;  %v13297_v39 = vor.u32 %v15268_v41, %v13296_v40  ;;  %v11448_v12 = vld [vmem:[%s16596_s13 + $0x310] sm:$0xf] }
 0x44b   : > { %v8543_v29 = vpop.f32.mrf.mxu2  ;;  %v8556_v42 = vpop.f32.mrf.mxu3  ;;  %9084 = vmatpush.bf16.msra.mxu0 %v14213_v22  ;;  %9097 = vmatpush.bf16.msra.mxu1 %v14217_v15  ;;  %v15500_v22 = vld [vmem:[%s16596_s13 + $0x1c58] sm:$0xf0]  ;;  %v1625_v15 = vperm.slane %v18868_v43, 5  ;;  %v14221_v19 = vor.u32 %v15499_v18, %v14220_v13  ;;  %v18967_v4 = vld [vmem:[%s16983_s22 + $0xa0] sm:$0xff]  ;;  %v11456_v13 = vld [vmem:[%s16596_s13 + $0x318] sm:$0xf] }
 0x44c   : > { %v8557_v50 = vadd.f32 %v8556_v42, %v1621_v14  ;;  %v8544_v53 = vadd.f32 %v8543_v29, %v1620_v24  ;;  %v14229_v20 = vor.u32 %v15500_v22, %v14228_v21  ;;  %v13304_v29 = vld [vmem:[%s16596_s13 + $0x1188] sm:$0xf]  ;;  %v14806_v0 = vld [vmem:[%s16596_s13 + $0x6a8] sm:$0xf0]  ;;  %v1630_v21 = vperm.slane %v18967_v4, 2 }
 0x44d   : > { %v1631_v22 = vperm.slane %v18967_v4, 3 }
 0x44e   : > { %v8571_v56 = vpop.f32.mrf.mxu0  ;;  %v8584_v57 = vpop.f32.mrf.mxu1  ;;  %9072 = vmatpush.bf16.msra.mxu3 %v13285_v36  ;;  %9059 = vmatpush.bf16.msra.mxu2 %v13281_v38  ;;  %15940 = vtanh.f32 %v8557_v50  ;;  %v14233_v38 = vor.u32 %v15385_v23, %v14230_v25  ;;  %v1624_v50 = vperm.slane %v18868_v43, 4  ;;  %v15386_v23 = vld [vmem:[%s16596_s13 + $0x18cc] sm:$0xf]  ;;  %v14238_v25 = vld [vmem:[%s16596_s13 + $0x1c64] sm:$0xf0] }
 0x44f   : > { %9085 = vmatpush.bf16.msra.mxu0 %v13289_v45  ;;  %9098 = vmatpush.bf16.msra.mxu1 %v13293_v46  ;;  %v15937_v54 = vpop.eup %15936  ;;  %15942 = vtanh.f32 %v8544_v53  ;;  %v15269_v46 = vld [vmem:[%s16596_s13 + $0x1520] sm:$0xf0]  ;;  %v12374_v53 = vld [vmem:[%s16596_s13 + $0xde4] sm:$0xf0] }
 0x450   : > { %v15939_v7 = vpop.eup %15938  ;;  %v10138_v9 = vrot.slane %v15937_v54, 4  ;;  %v13305_v43 = vor.u32 %v15269_v46, %v13304_v29  ;;  %v12377_v6 = vor.u32 %v14922_v52, %v12374_v53  ;;  %v13312_v52 = vld [vmem:[%s16596_s13 + $0x1190] sm:$0xf]  ;;  %v15270_v53 = vld [vmem:[%s16596_s13 + $0x1528] sm:$0xf0] }
 0x451   : > { %v10139_v10 = vrot.slane %v15939_v7, 2 }
 0x452   : > { %9073 = vmatpush.bf16.msra.mxu3 %v12361_v44  ;;  %9060 = vmatpush.bf16.msra.mxu2 %v12357_v58  ;;  %v13309_v44 = vor.u32 %v15154_v33, %v13306_v34  ;;  %v12372_v58 = vld [vmem:[%s16596_s13 + $0xa48] sm:$0xf]  ;;  %v15155_v33 = vld [vmem:[%s16596_s13 + $0x1194] sm:$0xf]  ;;  %v13314_v34 = vld [vmem:[%s16596_s13 + $0x152c] sm:$0xf0] }
 0x453   : > { %v8545_v14 = vpop.f32.mrf.mxu2  ;;  %v8558_v16 = vpop.f32.mrf.mxu3  ;;  %9086 = vmatpush.bf16.msra.mxu0 %v12365_v48  ;;  %9099 = vmatpush.bf16.msra.mxu1 %v12369_v49  ;;  %v10314_v42 = vsel %vm10198_vm3, %v10138_v9, %v10139_v10  ;;  %v15038_v49 = vld [vmem:[%s16596_s13 + $0xde8] sm:$0xf0]  ;;  %v12373_v7 = vor.u32 %v15037_v61, %v12372_v58  ;;  %v11449_v10 = vor.u32 %v14806_v0, %v11448_v12  ;;  %v15156_v58 = vld [vmem:[%s16596_s13 + $0x119c] sm:$0xf]  ;;  %v13322_v61 = vld [vmem:[%s16596_s13 + $0x1534] sm:$0xf0] }
 0x454   : > { %v15941_v26 = vpop.eup %15940  ;;  %v14807_v16 = vld [vmem:[%s16596_s13 + $0x6b0] sm:$0xf0]  ;;  %v15040_v12 = vld [vmem:[%s16596_s13 + $0xdf8] sm:$0xf0]  ;;  %v14925_v0 = vld [vmem:[%s16596_s13 + $0xa64] sm:$0xf] }
 0x455   : > { %v10137_v27 = vrot.slane %v15941_v26, 6  ;;  %v15943_v35 = vpop.eup %15942  ;;  %v14236_v26 = vld [vmem:[%s16596_s13 + $0x18c8] sm:$0xf] }
 0x456   : > { %v8621_v28 = vpop.f32.mrf.mxu0  ;;  %v8634_v30 = vpop.f32.mrf.mxu1  ;;  %9074 = vmatpush.bf16.msra.mxu3 %v11437_v8  ;;  %9061 = vmatpush.bf16.msra.mxu2 %v11433_v11  ;;  %v12381_v8 = vor.u32 %v15038_v49, %v12380_v62  ;;  %v12385_v11 = vor.u32 %v14923_v63, %v12382_v1  ;;  %v13317_v49 = vor.u32 %v15155_v33, %v13314_v34  ;;  %v14924_v1 = vld [vmem:[%s16596_s13 + $0xa5c] sm:$0xf] }
 0x457   : > { %v8622_v24 = vadd.f32 %v8621_v28, %v1626_v59  ;;  %v8635_v36 = vadd.f32 %v8634_v30, %v1627_v60  ;;  %9087 = vmatpush.bf16.msra.mxu0 %v11441_v17  ;;  %9100 = vmatpush.bf16.msra.mxu1 %v11445_v5  ;;  %v10313_v45 = vsel %vm10196_vm4, %v15943_v35, %v10137_v27  ;;  %v14691_v59 = vld [vmem:[%s16596_s13 + $0x314] sm:$0xf]  ;;  %v11450_v60 = vld [vmem:[%s16596_s13 + $0x6ac] sm:$0xf0]  ;;  %v14692_v17 = vld [vmem:[%s16596_s13 + $0x31c] sm:$0xf] }
 0x458   : > { %14546 = vmatmul.msk.bf16.vlgmr.msrb.gmra.mxu2 %vm6554_vm2, %v16674_v55  ;;  %14547 = vmatmul.msk.bf16.vlgmr.msrb.gmra.mxu3 %vm6554_vm2, %v16674_v55  ;;  %v10315_v47 = vsel %vm10200_vm5, %v10313_v45, %v10314_v42  ;;  %v11458_v5 = vld [vmem:[%s16596_s13 + $0x6b4] sm:$0xf0]  ;;  %v11453_v9 = vor.u32 %v14691_v59, %v11450_v60  ;;  %v11457_v28 = vor.u32 %v14807_v16, %v11456_v13  ;;  %v15387_v35 = vld [vmem:[%s16596_s13 + $0x18d4] sm:$0xf]  ;;  %v12398_v13 = vld [vmem:[%s16596_s13 + $0xdfc] sm:$0xf0] }
 0x459   : > { %14548 = vmatmul.msk.bf16.vlgmr.msrb.gmra.mxu0 %vm6554_vm2, %v16674_v55  ;;  %14549 = vmatmul.msk.bf16.vlgmr.msrb.gmra.mxu1 %vm6554_vm2, %v16674_v55  ;;  %10468 = vst [vmem:[%s17074_s16 + $0x130] sm:$0xff] %v10315_v47  ;;  %15944 = vtanh.f32 %v8622_v24  ;;  %v11461_v30 = vor.u32 %v14692_v17, %v11458_v5  ;;  %v14246_v24 = vld [vmem:[%s16596_s13 + $0x1c6c] sm:$0xf0]  ;;  %v14241_v42 = vor.u32 %v15386_v23, %v14238_v25  ;;  %v12388_v59 = vld [vmem:[%s16596_s13 + $0xa58] sm:$0xf] }
 0x45a   : > { %9123 = vmatpush.bf16.msrb.mxu3 %v14225_v31  ;;  %9110 = vmatpush.bf16.msrb.mxu2 %v14221_v19  ;;  %15946 = vtanh.f32 %v8635_v36  ;;  %v15501_v31 = vld [vmem:[%s16596_s13 + $0x1c60] sm:$0xf0]  ;;  %v14244_v19 = vld [vmem:[%s16596_s13 + $0x18d0] sm:$0xf]  ;;  %v13313_v63 = vor.u32 %v15270_v53, %v13312_v52  ;;  %v15039_v60 = vld [vmem:[%s16596_s13 + $0xdf0] sm:$0xf0] }
 0x45b   : > { %v8595_v56 = vpop.f32.mrf.mxu2  ;;  %v8608_v57 = vpop.f32.mrf.mxu3  ;;  %9136 = vmatpush.bf16.msrb.mxu0 %v14229_v20  ;;  %9149 = vmatpush.bf16.msrb.mxu1 %v14233_v38  ;;  %v15502_v20 = vld [vmem:[%s16596_s13 + $0x1c68] sm:$0xf0]  ;;  %v1629_v38 = vperm.slane %v18967_v4, 1  ;;  %v14237_v45 = vor.u32 %v15501_v31, %v14236_v26  ;;  %v11464_v23 = vld [vmem:[%s16596_s13 + $0x320] sm:$0xf] }
 0x45c   : > { %v8609_v48 = vadd.f32 %v8608_v57, %v1625_v15  ;;  %v8596_v2 = vadd.f32 %v8595_v56, %v1624_v50  ;;  %v14245_v46 = vor.u32 %v15502_v20, %v14244_v19  ;;  %v13320_v56 = vld [vmem:[%s16596_s13 + $0x1198] sm:$0xf]  ;;  %v14808_v25 = vld [vmem:[%s16596_s13 + $0x6b8] sm:$0xf0]  ;;  %v11472_v26 = vld [vmem:[%s16596_s13 + $0x328] sm:$0xf] }
 0x45d   : > { %v1634_v19 = vperm.slane %v18967_v4, 6  ;;  %v1635_v20 = vperm.slane %v18967_v4, 7 }
 0x45e   : > { %v8623_v54 = vpop.f32.mrf.mxu0  ;;  %v8636_v3 = vpop.f32.mrf.mxu1  ;;  %9124 = vmatpush.bf16.msrb.mxu3 %v13301_v51  ;;  %9111 = vmatpush.bf16.msrb.mxu2 %v13297_v39  ;;  %15948 = vtanh.f32 %v8609_v48  ;;  %v14249_v39 = vor.u32 %v15387_v35, %v14246_v24  ;;  %v1628_v48 = vperm.slane %v18967_v4, 0  ;;  %v15388_v35 = vld [vmem:[%s16596_s13 + $0x18dc] sm:$0xf]  ;;  %v14254_v24 = vld [vmem:[%s16596_s13 + $0x1c74] sm:$0xf0] }
 0x45f   : > { %9137 = vmatpush.bf16.msrb.mxu0 %v13305_v43  ;;  %9150 = vmatpush.bf16.msrb.mxu1 %v13309_v44  ;;  %v15945_v14 = vpop.eup %15944  ;;  %15950 = vtanh.f32 %v8596_v2  ;;  %v15271_v44 = vld [vmem:[%s16596_s13 + $0x1530] sm:$0xf0]  ;;  %v12390_v2 = vld [vmem:[%s16596_s13 + $0xdf4] sm:$0xf0] }
 0x460   : > { %v15947_v18 = vpop.eup %15946  ;;  %v10141_v32 = vrot.slane %v15945_v14, 4  ;;  %v12393_v5 = vor.u32 %v14924_v1, %v12390_v2  ;;  %v13328_v1 = vld [vmem:[%s16596_s13 + $0x11a0] sm:$0xf]  ;;  %v15272_v2 = vld [vmem:[%s16596_s13 + $0x1538] sm:$0xf0] }
 0x461   : > { %v10142_v37 = vrot.slane %v15947_v18, 2  ;;  %v12389_v18 = vor.u32 %v15039_v60, %v12388_v59  ;;  %v15158_v59 = vld [vmem:[%s16596_s13 + $0x11ac] sm:$0xf]  ;;  %v13338_v60 = vld [vmem:[%s16596_s13 + $0x1544] sm:$0xf0] }
 0x462   : > { %9125 = vmatpush.bf16.msrb.mxu3 %v12377_v6  ;;  %9112 = vmatpush.bf16.msrb.mxu2 %v12373_v7  ;;  %v13321_v6 = vor.u32 %v15271_v44, %v13320_v56  ;;  %v13325_v7 = vor.u32 %v15156_v58, %v13322_v61  ;;  %v15157_v58 = vld [vmem:[%s16596_s13 + $0x11a4] sm:$0xf]  ;;  %v13330_v61 = vld [vmem:[%s16596_s13 + $0x153c] sm:$0xf0] }
 0x463   : > { %v8597_v15 = vpop.f32.mrf.mxu2  ;;  %v8610_v27 = vpop.f32.mrf.mxu3  ;;  %9138 = vmatpush.bf16.msrb.mxu0 %v12381_v8  ;;  %9151 = vmatpush.bf16.msrb.mxu1 %v12385_v11  ;;  %v10317_v57 = vsel %vm10198_vm3, %v10141_v32, %v10142_v37  ;;  %v12396_v8 = vld [vmem:[%s16596_s13 + $0xa60] sm:$0xf]  ;;  %v11465_v37 = vor.u32 %v14808_v25, %v11464_v23  ;;  %v14927_v23 = vld [vmem:[%s16596_s13 + $0xa74] sm:$0xf]  ;;  %v12414_v25 = vld [vmem:[%s16596_s13 + $0xe0c] sm:$0xf0] }
 0x464   : > { %v15949_v36 = vpop.eup %15948  ;;  %v14809_v27 = vld [vmem:[%s16596_s13 + $0x6c0] sm:$0xf0] }
 0x465   : > { %v10140_v40 = vrot.slane %v15949_v36, 6  ;;  %v15951_v47 = vpop.eup %15950  ;;  %v14252_v36 = vld [vmem:[%s16596_s13 + $0x18d8] sm:$0xf] }
 0x466   : > { %v8673_v41 = vpop.f32.mrf.mxu0  ;;  %v8686_v29 = vpop.f32.mrf.mxu1  ;;  %9126 = vmatpush.bf16.msrb.mxu3 %v11453_v9  ;;  %9113 = vmatpush.bf16.msrb.mxu2 %v11449_v10  ;;  %v12397_v9 = vor.u32 %v15040_v12, %v12396_v8  ;;  %v12401_v10 = vor.u32 %v14925_v0, %v12398_v13  ;;  %v13333_v12 = vor.u32 %v15157_v58, %v13330_v61  ;;  %v14926_v13 = vld [vmem:[%s16596_s13 + $0xa6c] sm:$0xf] }
 0x467   : > { %v8674_v50 = vadd.f32 %v8673_v41, %v1630_v21  ;;  %v8687_v51 = vadd.f32 %v8686_v29, %v1631_v22  ;;  %9139 = vmatpush.bf16.msrb.mxu0 %v11457_v28  ;;  %9152 = vmatpush.bf16.msrb.mxu1 %v11461_v30  ;;  %v10316_v43 = vsel %vm10196_vm4, %v15951_v47, %v10140_v40  ;;  %v14693_v21 = vld [vmem:[%s16596_s13 + $0x324] sm:$0xf]  ;;  %v11466_v22 = vld [vmem:[%s16596_s13 + $0x6bc] sm:$0xf0]  ;;  %v14694_v28 = vld [vmem:[%s16596_s13 + $0x32c] sm:$0xf] }
 0x468   : > { %14550 = vmatmul.msk.bf16.vlgmr.msra.gmra.mxu2 %vm6554_vm2, %v16674_v55  ;;  %14551 = vmatmul.msk.bf16.vlgmr.msra.gmra.mxu3 %vm6554_vm2, %v16674_v55  ;;  %v10318_v62 = vsel %vm10200_vm5, %v10316_v43, %v10317_v57  ;;  %v11474_v30 = vld [vmem:[%s16596_s13 + $0x6c4] sm:$0xf0]  ;;  %v11469_v32 = vor.u32 %v14693_v21, %v11466_v22  ;;  %v11473_v41 = vor.u32 %v14809_v27, %v11472_v26  ;;  %v15389_v47 = vld [vmem:[%s16596_s13 + $0x18e4] sm:$0xf]  ;;  %v12412_v22 = vld [vmem:[%s16596_s13 + $0xa70] sm:$0xf] }
 0x469   : > { %14552 = vmatmul.msk.bf16.vlgmr.msra.gmra.mxu0 %vm6554_vm2, %v16674_v55  ;;  %14553 = vmatmul.msk.bf16.vlgmr.msra.gmra.mxu1 %vm6554_vm2, %v16674_v55  ;;  %10469 = vst [vmem:[%s17074_s16 + $0x138] sm:$0xff] %v10318_v62  ;;  %15952 = vtanh.f32 %v8674_v50  ;;  %v11477_v29 = vor.u32 %v14694_v28, %v11474_v30  ;;  %v14262_v50 = vld [vmem:[%s16596_s13 + $0x1c7c] sm:$0xf0]  ;;  %v14257_v57 = vor.u32 %v15388_v35, %v14254_v24  ;;  %v15041_v21 = vld [vmem:[%s16596_s13 + $0xe00] sm:$0xf0]  ;;  %v19066_v28 = vld [vmem:[%s16983_s22 + $0xa8] sm:$0xff] }
 0x46a   : > { %9175 = vmatpush.bf16.msra.mxu3 %v14241_v42  ;;  %9162 = vmatpush.bf16.msra.mxu2 %v14237_v45  ;;  %15954 = vtanh.f32 %v8687_v51  ;;  %v15503_v42 = vld [vmem:[%s16596_s13 + $0x1c70] sm:$0xf0]  ;;  %v14260_v45 = vld [vmem:[%s16596_s13 + $0x18e0] sm:$0xf]  ;;  %v13329_v0 = vor.u32 %v15272_v2, %v13328_v1  ;;  %v11480_v35 = vld [vmem:[%s16596_s13 + $0x330] sm:$0xf] }
 0x46b   : > { %v8647_v54 = vpop.f32.mrf.mxu2  ;;  %v8660_v3 = vpop.f32.mrf.mxu3  ;;  %9188 = vmatpush.bf16.msra.mxu0 %v14245_v46  ;;  %9201 = vmatpush.bf16.msra.mxu1 %v14249_v39  ;;  %v15504_v46 = vld [vmem:[%s16596_s13 + $0x1c78] sm:$0xf0]  ;;  %v1633_v39 = vperm.slane %v18967_v4, 5  ;;  %v14253_v43 = vor.u32 %v15503_v42, %v14252_v36  ;;  %v14810_v24 = vld [vmem:[%s16596_s13 + $0x6c8] sm:$0xf0] }
 0x46c   : > { %v8661_v11 = vadd.f32 %v8660_v3, %v1629_v38  ;;  %v8648_v14 = vadd.f32 %v8647_v54, %v1628_v48  ;;  %v14261_v44 = vor.u32 %v15504_v46, %v14260_v45  ;;  %v13336_v54 = vld [vmem:[%s16596_s13 + $0x11a8] sm:$0xf]  ;;  %v11488_v36 = vld [vmem:[%s16596_s13 + $0x338] sm:$0xf]  ;;  %v1638_v45 = vperm.slane %v19066_v28, 2 }
 0x46d   : > { %v1639_v46 = vperm.slane %v19066_v28, 3 }
 0x46e   : > { %v8675_v16 = vpop.f32.mrf.mxu0  ;;  %v8688_v17 = vpop.f32.mrf.mxu1  ;;  %9176 = vmatpush.bf16.msra.mxu3 %v13317_v49  ;;  %9163 = vmatpush.bf16.msra.mxu2 %v13313_v63  ;;  %15956 = vtanh.f32 %v8661_v11  ;;  %v14265_v63 = vor.u32 %v15389_v47, %v14262_v50  ;;  %v1632_v11 = vperm.slane %v18967_v4, 4  ;;  %v15390_v47 = vld [vmem:[%s16596_s13 + $0x18ec] sm:$0xf]  ;;  %v14270_v50 = vld [vmem:[%s16596_s13 + $0x1c84] sm:$0xf0] }
 0x46f   : > { %9189 = vmatpush.bf16.msra.mxu0 %v13321_v6  ;;  %9202 = vmatpush.bf16.msra.mxu1 %v13325_v7  ;;  %v15953_v15 = vpop.eup %15952  ;;  %15958 = vtanh.f32 %v8648_v14  ;;  %v15273_v7 = vld [vmem:[%s16596_s13 + $0x1540] sm:$0xf0]  ;;  %v12406_v14 = vld [vmem:[%s16596_s13 + $0xe04] sm:$0xf0] }
 0x470   : > { %v15955_v31 = vpop.eup %15954  ;;  %v10144_v33 = vrot.slane %v15953_v15, 4  ;;  %v13337_v4 = vor.u32 %v15273_v7, %v13336_v54  ;;  %v12409_v30 = vor.u32 %v14926_v13, %v12406_v14  ;;  %v13344_v13 = vld [vmem:[%s16596_s13 + $0x11b0] sm:$0xf]  ;;  %v15274_v14 = vld [vmem:[%s16596_s13 + $0x1548] sm:$0xf0] }
 0x471   : > { %v10145_v34 = vrot.slane %v15955_v31, 2 }
 0x472   : > { %9177 = vmatpush.bf16.msra.mxu3 %v12393_v5  ;;  %9164 = vmatpush.bf16.msra.mxu2 %v12389_v18  ;;  %v13341_v5 = vor.u32 %v15158_v59, %v13338_v60  ;;  %v12404_v18 = vld [vmem:[%s16596_s13 + $0xa68] sm:$0xf]  ;;  %v15159_v59 = vld [vmem:[%s16596_s13 + $0x11b4] sm:$0xf]  ;;  %v13346_v60 = vld [vmem:[%s16596_s13 + $0x154c] sm:$0xf0] }
 0x473   : > { %v8649_v38 = vpop.f32.mrf.mxu2  ;;  %v8662_v40 = vpop.f32.mrf.mxu3  ;;  %9190 = vmatpush.bf16.msra.mxu0 %v12397_v9  ;;  %9203 = vmatpush.bf16.msra.mxu1 %v12401_v10  ;;  %v10320_v3 = vsel %vm10198_vm3, %v10144_v33, %v10145_v34  ;;  %v15042_v10 = vld [vmem:[%s16596_s13 + $0xe08] sm:$0xf0]  ;;  %v12405_v31 = vor.u32 %v15041_v21, %v12404_v18  ;;  %v11481_v34 = vor.u32 %v14810_v24, %v11480_v35  ;;  %v15160_v18 = vld [vmem:[%s16596_s13 + $0x11bc] sm:$0xf]  ;;  %v13354_v21 = vld [vmem:[%s16596_s13 + $0x1554] sm:$0xf0] }
 0x474   : > { %v15957_v51 = vpop.eup %15956  ;;  %v14811_v40 = vld [vmem:[%s16596_s13 + $0x6d0] sm:$0xf0]  ;;  %v15044_v35 = vld [vmem:[%s16596_s13 + $0xe18] sm:$0xf0]  ;;  %v14929_v24 = vld [vmem:[%s16596_s13 + $0xa84] sm:$0xf] }
 0x475   : > { %v10143_v52 = vrot.slane %v15957_v51, 6  ;;  %v15959_v62 = vpop.eup %15958  ;;  %v14268_v51 = vld [vmem:[%s16596_s13 + $0x18e8] sm:$0xf] }
 0x476   : > { %v8725_v53 = vpop.f32.mrf.mxu0  ;;  %v8738_v56 = vpop.f32.mrf.mxu1  ;;  %9178 = vmatpush.bf16.msra.mxu3 %v11469_v32  ;;  %9165 = vmatpush.bf16.msra.mxu2 %v11465_v37  ;;  %v12413_v32 = vor.u32 %v15042_v10, %v12412_v22  ;;  %v12417_v37 = vor.u32 %v14927_v23, %v12414_v25  ;;  %v13349_v10 = vor.u32 %v15159_v59, %v13346_v60  ;;  %v14928_v25 = vld [vmem:[%s16596_s13 + $0xa7c] sm:$0xf] }
 0x477   : > { %v8726_v48 = vadd.f32 %v8725_v53, %v1634_v19  ;;  %v8739_v49 = vadd.f32 %v8738_v56, %v1635_v20  ;;  %9191 = vmatpush.bf16.msra.mxu0 %v11473_v41  ;;  %9204 = vmatpush.bf16.msra.mxu1 %v11477_v29  ;;  %v10319_v6 = vsel %vm10196_vm4, %v15959_v62, %v10143_v52  ;;  %v14695_v19 = vld [vmem:[%s16596_s13 + $0x334] sm:$0xf]  ;;  %v11482_v20 = vld [vmem:[%s16596_s13 + $0x6cc] sm:$0xf0]  ;;  %v14696_v41 = vld [vmem:[%s16596_s13 + $0x33c] sm:$0xf] }
 0x478   : > { %14554 = vmatmul.msk.bf16.vlgmr.msrb.gmra.mxu2 %vm6554_vm2, %v16674_v55  ;;  %14555 = vmatmul.msk.bf16.vlgmr.msrb.gmra.mxu3 %vm6554_vm2, %v16674_v55  ;;  %v10321_v8 = vsel %vm10200_vm5, %v10319_v6, %v10320_v3  ;;  %v11490_v29 = vld [vmem:[%s16596_s13 + $0x6d4] sm:$0xf0]  ;;  %v11485_v33 = vor.u32 %v14695_v19, %v11482_v20  ;;  %v11489_v53 = vor.u32 %v14811_v40, %v11488_v36  ;;  %v15391_v62 = vld [vmem:[%s16596_s13 + $0x18f4] sm:$0xf]  ;;  %v12430_v36 = vld [vmem:[%s16596_s13 + $0xe1c] sm:$0xf0] }
 0x479   : > { %14556 = vmatmul.msk.bf16.vlgmr.msrb.gmra.mxu0 %vm6554_vm2, %v16674_v55  ;;  %14557 = vmatmul.msk.bf16.vlgmr.msrb.gmra.mxu1 %vm6554_vm2, %v16674_v55  ;;  %10470 = vst [vmem:[%s17074_s16 + $0x140] sm:$0xff] %v10321_v8  ;;  %15960 = vtanh.f32 %v8726_v48  ;;  %v11493_v56 = vor.u32 %v14696_v41, %v11490_v29  ;;  %v14278_v48 = vld [vmem:[%s16596_s13 + $0x1c8c] sm:$0xf0]  ;;  %v14273_v3 = vor.u32 %v15390_v47, %v14270_v50  ;;  %v12420_v19 = vld [vmem:[%s16596_s13 + $0xa78] sm:$0xf] }
 0x47a   : > { %9227 = vmatpush.bf16.msrb.mxu3 %v14257_v57  ;;  %9214 = vmatpush.bf16.msrb.mxu2 %v14253_v43  ;;  %15962 = vtanh.f32 %v8739_v49  ;;  %v15505_v57 = vld [vmem:[%s16596_s13 + $0x1c80] sm:$0xf0]  ;;  %v14276_v43 = vld [vmem:[%s16596_s13 + $0x18f0] sm:$0xf]  ;;  %v13345_v23 = vor.u32 %v15274_v14, %v13344_v13  ;;  %v15043_v20 = vld [vmem:[%s16596_s13 + $0xe10] sm:$0xf0] }
 0x47b   : > { %v8699_v16 = vpop.f32.mrf.mxu2  ;;  %v8712_v17 = vpop.f32.mrf.mxu3  ;;  %9240 = vmatpush.bf16.msrb.mxu0 %v14261_v44  ;;  %9253 = vmatpush.bf16.msrb.mxu1 %v14265_v63  ;;  %v15506_v44 = vld [vmem:[%s16596_s13 + $0x1c88] sm:$0xf0]  ;;  %v1637_v63 = vperm.slane %v19066_v28, 1  ;;  %v14269_v6 = vor.u32 %v15505_v57, %v14268_v51  ;;  %v11496_v47 = vld [vmem:[%s16596_s13 + $0x340] sm:$0xf] }
 0x47c   : > { %v8713_v9 = vadd.f32 %v8712_v17, %v1633_v39  ;;  %v8700_v26 = vadd.f32 %v8699_v16, %v1632_v11  ;;  %v14277_v7 = vor.u32 %v15506_v44, %v14276_v43  ;;  %v13352_v16 = vld [vmem:[%s16596_s13 + $0x11b8] sm:$0xf]  ;;  %v14812_v50 = vld [vmem:[%s16596_s13 + $0x6d8] sm:$0xf0]  ;;  %v11504_v51 = vld [vmem:[%s16596_s13 + $0x348] sm:$0xf] }
 0x47d   : > { %v1642_v43 = vperm.slane %v19066_v28, 6  ;;  %v1643_v44 = vperm.slane %v19066_v28, 7 }
 0x47e   : > { %v8727_v15 = vpop.f32.mrf.mxu0  ;;  %v8740_v27 = vpop.f32.mrf.mxu1  ;;  %9228 = vmatpush.bf16.msrb.mxu3 %v13333_v12  ;;  %9215 = vmatpush.bf16.msrb.mxu2 %v13329_v0  ;;  %15964 = vtanh.f32 %v8713_v9  ;;  %v14281_v0 = vor.u32 %v15391_v62, %v14278_v48  ;;  %v1636_v9 = vperm.slane %v19066_v28, 0  ;;  %v15392_v62 = vld [vmem:[%s16596_s13 + $0x18fc] sm:$0xf]  ;;  %v14286_v48 = vld [vmem:[%s16596_s13 + $0x1c94] sm:$0xf0] }
 0x47f   : > { %9241 = vmatpush.bf16.msrb.mxu0 %v13337_v4  ;;  %9254 = vmatpush.bf16.msrb.mxu1 %v13341_v5  ;;  %v15961_v38 = vpop.eup %15960  ;;  %15966 = vtanh.f32 %v8700_v26  ;;  %v15275_v5 = vld [vmem:[%s16596_s13 + $0x1550] sm:$0xf0]  ;;  %v12422_v26 = vld [vmem:[%s16596_s13 + $0xe14] sm:$0xf0] }
 0x480   : > { %v15963_v42 = vpop.eup %15962  ;;  %v10147_v58 = vrot.slane %v15961_v38, 4  ;;  %v12425_v29 = vor.u32 %v14928_v25, %v12422_v26  ;;  %v13360_v25 = vld [vmem:[%s16596_s13 + $0x11c0] sm:$0xf]  ;;  %v15276_v26 = vld [vmem:[%s16596_s13 + $0x1558] sm:$0xf0] }
 0x481   : > { %v10148_v61 = vrot.slane %v15963_v42, 2  ;;  %v12421_v42 = vor.u32 %v15043_v20, %v12420_v19  ;;  %v15162_v19 = vld [vmem:[%s16596_s13 + $0x11cc] sm:$0xf]  ;;  %v13370_v20 = vld [vmem:[%s16596_s13 + $0x1564] sm:$0xf0] }
 0x482   : > { %9229 = vmatpush.bf16.msrb.mxu3 %v12409_v30  ;;  %9216 = vmatpush.bf16.msrb.mxu2 %v12405_v31  ;;  %v13353_v30 = vor.u32 %v15275_v5, %v13352_v16  ;;  %v13357_v31 = vor.u32 %v15160_v18, %v13354_v21  ;;  %v15161_v18 = vld [vmem:[%s16596_s13 + $0x11c4] sm:$0xf]  ;;  %v13362_v21 = vld [vmem:[%s16596_s13 + $0x155c] sm:$0xf0] }
 0x483   : > { %v8701_v39 = vpop.f32.mrf.mxu2  ;;  %v8714_v52 = vpop.f32.mrf.mxu3  ;;  %9242 = vmatpush.bf16.msrb.mxu0 %v12413_v32  ;;  %9255 = vmatpush.bf16.msrb.mxu1 %v12417_v37  ;;  %v10323_v17 = vsel %vm10198_vm3, %v10147_v58, %v10148_v61  ;;  %v12428_v32 = vld [vmem:[%s16596_s13 + $0xa80] sm:$0xf]  ;;  %v11497_v61 = vor.u32 %v14812_v50, %v11496_v47  ;;  %v14931_v47 = vld [vmem:[%s16596_s13 + $0xa94] sm:$0xf]  ;;  %v12446_v50 = vld [vmem:[%s16596_s13 + $0xe2c] sm:$0xf0] }
 0x484   : > { %v15965_v49 = vpop.eup %15964  ;;  %v14813_v52 = vld [vmem:[%s16596_s13 + $0x6e0] sm:$0xf0] }
 0x485   : > { %v10146_v1 = vrot.slane %v15965_v49, 6  ;;  %v15967_v8 = vpop.eup %15966  ;;  %v14284_v49 = vld [vmem:[%s16596_s13 + $0x18f8] sm:$0xf] }
 0x486   : > { %v8777_v2 = vpop.f32.mrf.mxu0  ;;  %v8790_v54 = vpop.f32.mrf.mxu1  ;;  %9230 = vmatpush.bf16.msrb.mxu3 %v11485_v33  ;;  %9217 = vmatpush.bf16.msrb.mxu2 %v11481_v34  ;;  %v12429_v33 = vor.u32 %v15044_v35, %v12428_v32  ;;  %v12433_v34 = vor.u32 %v14929_v24, %v12430_v36  ;;  %v13365_v35 = vor.u32 %v15161_v18, %v13362_v21  ;;  %v14930_v36 = vld [vmem:[%s16596_s13 + $0xa8c] sm:$0xf] }
 0x487   : > { %v8778_v11 = vadd.f32 %v8777_v2, %v1638_v45  ;;  %v8791_v12 = vadd.f32 %v8790_v54, %v1639_v46  ;;  %9243 = vmatpush.bf16.msrb.mxu0 %v11489_v53  ;;  %9256 = vmatpush.bf16.msrb.mxu1 %v11493_v56  ;;  %v10322_v4 = vsel %vm10196_vm4, %v15967_v8, %v10146_v1  ;;  %v14697_v45 = vld [vmem:[%s16596_s13 + $0x344] sm:$0xf]  ;;  %v11498_v46 = vld [vmem:[%s16596_s13 + $0x6dc] sm:$0xf0]  ;;  %v14698_v53 = vld [vmem:[%s16596_s13 + $0x34c] sm:$0xf] }
 0x488   : > { %14558 = vmatmul.msk.bf16.vlgmr.msra.gmra.mxu2 %vm6554_vm2, %v16674_v55  ;;  %14559 = vmatmul.msk.bf16.vlgmr.msra.gmra.mxu3 %vm6554_vm2, %v16674_v55  ;;  %v10324_v22 = vsel %vm10200_vm5, %v10322_v4, %v10323_v17  ;;  %v11506_v56 = vld [vmem:[%s16596_s13 + $0x6e4] sm:$0xf0]  ;;  %v11501_v58 = vor.u32 %v14697_v45, %v11498_v46  ;;  %v11505_v2 = vor.u32 %v14813_v52, %v11504_v51  ;;  %v15393_v8 = vld [vmem:[%s16596_s13 + $0x1904] sm:$0xf]  ;;  %v12444_v46 = vld [vmem:[%s16596_s13 + $0xa90] sm:$0xf] }
 0x489   : > { %14560 = vmatmul.msk.bf16.vlgmr.msra.gmra.mxu0 %vm6554_vm2, %v16674_v55  ;;  %14561 = vmatmul.msk.bf16.vlgmr.msra.gmra.mxu1 %vm6554_vm2, %v16674_v55  ;;  %10471 = vst [vmem:[%s17074_s16 + $0x148] sm:$0xff] %v10324_v22  ;;  %15968 = vtanh.f32 %v8778_v11  ;;  %v11509_v54 = vor.u32 %v14698_v53, %v11506_v56  ;;  %v14294_v11 = vld [vmem:[%s16596_s13 + $0x1c9c] sm:$0xf0]  ;;  %v14289_v17 = vor.u32 %v15392_v62, %v14286_v48  ;;  %v15045_v45 = vld [vmem:[%s16596_s13 + $0xe20] sm:$0xf0]  ;;  %v19165_v53 = vld [vmem:[%s16983_s22 + $0xb0] sm:$0xff] }
 0x48a   : > { %9279 = vmatpush.bf16.msra.mxu3 %v14273_v3  ;;  %9266 = vmatpush.bf16.msra.mxu2 %v14269_v6  ;;  %15970 = vtanh.f32 %v8791_v12  ;;  %v15507_v3 = vld [vmem:[%s16596_s13 + $0x1c90] sm:$0xf0]  ;;  %v14292_v6 = vld [vmem:[%s16596_s13 + $0x1900] sm:$0xf]  ;;  %v13361_v24 = vor.u32 %v15276_v26, %v13360_v25  ;;  %v11512_v62 = vld [vmem:[%s16596_s13 + $0x350] sm:$0xf] }
 0x48b   : > { %v8751_v15 = vpop.f32.mrf.mxu2  ;;  %v8764_v27 = vpop.f32.mrf.mxu3  ;;  %9292 = vmatpush.bf16.msra.mxu0 %v14277_v7  ;;  %9305 = vmatpush.bf16.msra.mxu1 %v14281_v0  ;;  %v15508_v7 = vld [vmem:[%s16596_s13 + $0x1c98] sm:$0xf0]  ;;  %v1641_v0 = vperm.slane %v19066_v28, 5  ;;  %v14285_v4 = vor.u32 %v15507_v3, %v14284_v49  ;;  %v14814_v48 = vld [vmem:[%s16596_s13 + $0x6e8] sm:$0xf0] }
 0x48c   : > { %v8765_v37 = vadd.f32 %v8764_v27, %v1637_v63  ;;  %v8752_v38 = vadd.f32 %v8751_v15, %v1636_v9  ;;  %v14293_v5 = vor.u32 %v15508_v7, %v14292_v6  ;;  %v13368_v15 = vld [vmem:[%s16596_s13 + $0x11c8] sm:$0xf]  ;;  %v11520_v49 = vld [vmem:[%s16596_s13 + $0x358] sm:$0xf]  ;;  %v1646_v6 = vperm.slane %v19165_v53, 2 }
 0x48d   : > { %v1647_v7 = vperm.slane %v19165_v53, 3 }
 0x48e   : > { %v8779_v40 = vpop.f32.mrf.mxu0  ;;  %v8792_v41 = vpop.f32.mrf.mxu1  ;;  %9280 = vmatpush.bf16.msra.mxu3 %v13349_v10  ;;  %9267 = vmatpush.bf16.msra.mxu2 %v13345_v23  ;;  %15972 = vtanh.f32 %v8765_v37  ;;  %v14297_v23 = vor.u32 %v15393_v8, %v14294_v11  ;;  %v1640_v37 = vperm.slane %v19066_v28, 4  ;;  %v15394_v8 = vld [vmem:[%s16596_s13 + $0x190c] sm:$0xf]  ;;  %v14302_v11 = vld [vmem:[%s16596_s13 + $0x1ca4] sm:$0xf0] }
 0x48f   : > { %9293 = vmatpush.bf16.msra.mxu0 %v13353_v30  ;;  %9306 = vmatpush.bf16.msra.mxu1 %v13357_v31  ;;  %v15969_v39 = vpop.eup %15968  ;;  %15974 = vtanh.f32 %v8752_v38  ;;  %v15277_v31 = vld [vmem:[%s16596_s13 + $0x1560] sm:$0xf0]  ;;  %v12438_v38 = vld [vmem:[%s16596_s13 + $0xe24] sm:$0xf0] }
 0x490   : > { %v15971_v57 = vpop.eup %15970  ;;  %v10150_v59 = vrot.slane %v15969_v39, 4  ;;  %v13369_v28 = vor.u32 %v15277_v31, %v13368_v15  ;;  %v12441_v56 = vor.u32 %v14930_v36, %v12438_v38  ;;  %v13376_v36 = vld [vmem:[%s16596_s13 + $0x11d0] sm:$0xf]  ;;  %v15278_v38 = vld [vmem:[%s16596_s13 + $0x1568] sm:$0xf0] }
 0x491   : > { %v10151_v60 = vrot.slane %v15971_v57, 2 }
 0x492   : > { %9281 = vmatpush.bf16.msra.mxu3 %v12425_v29  ;;  %9268 = vmatpush.bf16.msra.mxu2 %v12421_v42  ;;  %v13373_v29 = vor.u32 %v15162_v19, %v13370_v20  ;;  %v12436_v42 = vld [vmem:[%s16596_s13 + $0xa88] sm:$0xf]  ;;  %v15163_v19 = vld [vmem:[%s16596_s13 + $0x11d4] sm:$0xf]  ;;  %v13378_v20 = vld [vmem:[%s16596_s13 + $0x156c] sm:$0xf0] }
 0x493   : > { %v8753_v63 = vpop.f32.mrf.mxu2  ;;  %v8766_v1 = vpop.f32.mrf.mxu3  ;;  %9294 = vmatpush.bf16.msra.mxu0 %v12429_v33  ;;  %9307 = vmatpush.bf16.msra.mxu1 %v12433_v34  ;;  %v10326_v27 = vsel %vm10198_vm3, %v10150_v59, %v10151_v60  ;;  %v15046_v34 = vld [vmem:[%s16596_s13 + $0xe28] sm:$0xf0]  ;;  %v12437_v57 = vor.u32 %v15045_v45, %v12436_v42  ;;  %v11513_v60 = vor.u32 %v14814_v48, %v11512_v62  ;;  %v15164_v42 = vld [vmem:[%s16596_s13 + $0x11dc] sm:$0xf]  ;;  %v13386_v45 = vld [vmem:[%s16596_s13 + $0x1574] sm:$0xf0] }
 0x494   : > { %v15973_v12 = vpop.eup %15972  ;;  %v14815_v1 = vld [vmem:[%s16596_s13 + $0x6f0] sm:$0xf0]  ;;  %v15048_v62 = vld [vmem:[%s16596_s13 + $0xe38] sm:$0xf0]  ;;  %v14933_v48 = vld [vmem:[%s16596_s13 + $0xaa4] sm:$0xf] }
 0x495   : > { %v10149_v13 = vrot.slane %v15973_v12, 6  ;;  %v15975_v22 = vpop.eup %15974  ;;  %v14300_v12 = vld [vmem:[%s16596_s13 + $0x1908] sm:$0xf] }
 0x496   : > { %v8829_v14 = vpop.f32.mrf.mxu0  ;;  %v8842_v16 = vpop.f32.mrf.mxu1  ;;  %9282 = vmatpush.bf16.msra.mxu3 %v11501_v58  ;;  %9269 = vmatpush.bf16.msra.mxu2 %v11497_v61  ;;  %v12445_v58 = vor.u32 %v15046_v34, %v12444_v46  ;;  %v12449_v61 = vor.u32 %v14931_v47, %v12446_v50  ;;  %v13381_v34 = vor.u32 %v15163_v19, %v13378_v20  ;;  %v14932_v50 = vld [vmem:[%s16596_s13 + $0xa9c] sm:$0xf] }
 0x497   : > { %v8830_v9 = vadd.f32 %v8829_v14, %v1642_v43  ;;  %v8843_v10 = vadd.f32 %v8842_v16, %v1643_v44  ;;  %9295 = vmatpush.bf16.msra.mxu0 %v11505_v2  ;;  %9308 = vmatpush.bf16.msra.mxu1 %v11509_v54  ;;  %v10325_v30 = vsel %vm10196_vm4, %v15975_v22, %v10149_v13  ;;  %v14699_v43 = vld [vmem:[%s16596_s13 + $0x354] sm:$0xf]  ;;  %v11514_v44 = vld [vmem:[%s16596_s13 + $0x6ec] sm:$0xf0]  ;;  %v14700_v2 = vld [vmem:[%s16596_s13 + $0x35c] sm:$0xf] }
 0x498   : > { %14562 = vmatmul.msk.bf16.vlgmr.msrb.gmra.mxu2 %vm6554_vm2, %v16674_v55  ;;  %14563 = vmatmul.msk.bf16.vlgmr.msrb.gmra.mxu3 %vm6554_vm2, %v16674_v55  ;;  %v10327_v32 = vsel %vm10200_vm5, %v10325_v30, %v10326_v27  ;;  %v11522_v54 = vld [vmem:[%s16596_s13 + $0x6f4] sm:$0xf0]  ;;  %v11517_v59 = vor.u32 %v14699_v43, %v11514_v44  ;;  %v11521_v14 = vor.u32 %v14815_v1, %v11520_v49  ;;  %v15395_v22 = vld [vmem:[%s16596_s13 + $0x1914] sm:$0xf]  ;;  %v12462_v49 = vld [vmem:[%s16596_s13 + $0xe3c] sm:$0xf0] }
 0x499   : > { %14564 = vmatmul.msk.bf16.vlgmr.msrb.gmra.mxu0 %vm6554_vm2, %v16674_v55  ;;  %14565 = vmatmul.msk.bf16.vlgmr.msrb.gmra.mxu1 %vm6554_vm2, %v16674_v55  ;;  %10472 = vst [vmem:[%s17074_s16 + $0x150] sm:$0xff] %v10327_v32  ;;  %15976 = vtanh.f32 %v8830_v9  ;;  %v11525_v16 = vor.u32 %v14700_v2, %v11522_v54  ;;  %v14310_v9 = vld [vmem:[%s16596_s13 + $0x1cac] sm:$0xf0]  ;;  %v14305_v27 = vor.u32 %v15394_v8, %v14302_v11  ;;  %v12452_v43 = vld [vmem:[%s16596_s13 + $0xa98] sm:$0xf] }
 0x49a   : > { %9331 = vmatpush.bf16.msrb.mxu3 %v14289_v17  ;;  %9318 = vmatpush.bf16.msrb.mxu2 %v14285_v4  ;;  %15978 = vtanh.f32 %v8843_v10  ;;  %v15509_v17 = vld [vmem:[%s16596_s13 + $0x1ca0] sm:$0xf0]  ;;  %v14308_v4 = vld [vmem:[%s16596_s13 + $0x1910] sm:$0xf]  ;;  %v13377_v47 = vor.u32 %v15278_v38, %v13376_v36  ;;  %v15047_v44 = vld [vmem:[%s16596_s13 + $0xe30] sm:$0xf0] }
 0x49b   : > { %v8803_v40 = vpop.f32.mrf.mxu2  ;;  %v8816_v41 = vpop.f32.mrf.mxu3  ;;  %9344 = vmatpush.bf16.msrb.mxu0 %v14293_v5  ;;  %9357 = vmatpush.bf16.msrb.mxu1 %v14297_v23  ;;  %v15510_v5 = vld [vmem:[%s16596_s13 + $0x1ca8] sm:$0xf0]  ;;  %v1645_v23 = vperm.slane %v19165_v53, 1  ;;  %v14301_v30 = vor.u32 %v15509_v17, %v14300_v12  ;;  %v11528_v8 = vld [vmem:[%s16596_s13 + $0x360] sm:$0xf] }
 0x49c   : > { %v8817_v33 = vadd.f32 %v8816_v41, %v1641_v0  ;;  %v8804_v51 = vadd.f32 %v8803_v40, %v1640_v37  ;;  %v14309_v31 = vor.u32 %v15510_v5, %v14308_v4  ;;  %v13384_v40 = vld [vmem:[%s16596_s13 + $0x11d8] sm:$0xf]  ;;  %v14816_v11 = vld [vmem:[%s16596_s13 + $0x6f8] sm:$0xf0]  ;;  %v11536_v12 = vld [vmem:[%s16596_s13 + $0x368] sm:$0xf] }
 0x49d   : > { %v1650_v4 = vperm.slane %v19165_v53, 6  ;;  %v1651_v5 = vperm.slane %v19165_v53, 7 }
 0x49e   : > { %v8831_v39 = vpop.f32.mrf.mxu0  ;;  %v8844_v52 = vpop.f32.mrf.mxu1  ;;  %9332 = vmatpush.bf16.msrb.mxu3 %v13365_v35  ;;  %9319 = vmatpush.bf16.msrb.mxu2 %v13361_v24  ;;  %15980 = vtanh.f32 %v8817_v33  ;;  %v14313_v24 = vor.u32 %v15395_v22, %v14310_v9  ;;  %v1644_v33 = vperm.slane %v19165_v53, 0  ;;  %v15396_v22 = vld [vmem:[%s16596_s13 + $0x191c] sm:$0xf]  ;;  %v14318_v9 = vld [vmem:[%s16596_s13 + $0x1cb4] sm:$0xf0] }
 0x49f   : > { %9345 = vmatpush.bf16.msrb.mxu0 %v13369_v28  ;;  %9358 = vmatpush.bf16.msrb.mxu1 %v13373_v29  ;;  %v15977_v63 = vpop.eup %15976  ;;  %15982 = vtanh.f32 %v8804_v51  ;;  %v15279_v29 = vld [vmem:[%s16596_s13 + $0x1570] sm:$0xf0]  ;;  %v12454_v51 = vld [vmem:[%s16596_s13 + $0xe34] sm:$0xf0] }
 0x4a0   : > { %v15979_v3 = vpop.eup %15978  ;;  %v10153_v18 = vrot.slane %v15977_v63, 4  ;;  %v12457_v54 = vor.u32 %v14932_v50, %v12454_v51  ;;  %v13392_v50 = vld [vmem:[%s16596_s13 + $0x11e0] sm:$0xf]  ;;  %v15280_v51 = vld [vmem:[%s16596_s13 + $0x1578] sm:$0xf0] }
 0x4a1   : > { %v10154_v21 = vrot.slane %v15979_v3, 2  ;;  %v12453_v3 = vor.u32 %v15047_v44, %v12452_v43  ;;  %v15166_v43 = vld [vmem:[%s16596_s13 + $0x11ec] sm:$0xf]  ;;  %v13402_v44 = vld [vmem:[%s16596_s13 + $0x1584] sm:$0xf0] }
 0x4a2   : > { %9333 = vmatpush.bf16.msrb.mxu3 %v12441_v56  ;;  %9320 = vmatpush.bf16.msrb.mxu2 %v12437_v57  ;;  %v13385_v56 = vor.u32 %v15279_v29, %v13384_v40  ;;  %v13389_v57 = vor.u32 %v15164_v42, %v13386_v45  ;;  %v15165_v42 = vld [vmem:[%s16596_s13 + $0x11e4] sm:$0xf]  ;;  %v13394_v45 = vld [vmem:[%s16596_s13 + $0x157c] sm:$0xf0] }
 0x4a3   : > { %v8805_v0 = vpop.f32.mrf.mxu2  ;;  %v8818_v13 = vpop.f32.mrf.mxu3  ;;  %9346 = vmatpush.bf16.msrb.mxu0 %v12445_v58  ;;  %9359 = vmatpush.bf16.msrb.mxu1 %v12449_v61  ;;  %v10329_v41 = vsel %vm10198_vm3, %v10153_v18, %v10154_v21  ;;  %v12460_v58 = vld [vmem:[%s16596_s13 + $0xaa0] sm:$0xf]  ;;  %v11529_v21 = vor.u32 %v14816_v11, %v11528_v8  ;;  %v14935_v8 = vld [vmem:[%s16596_s13 + $0xab4] sm:$0xf]  ;;  %v12478_v11 = vld [vmem:[%s16596_s13 + $0xe4c] sm:$0xf0] }
 0x4a4   : > { %v15981_v10 = vpop.eup %15980  ;;  %v14817_v13 = vld [vmem:[%s16596_s13 + $0x700] sm:$0xf0] }
 0x4a5   : > { %v10152_v25 = vrot.slane %v15981_v10, 6  ;;  %v15983_v32 = vpop.eup %15982  ;;  %v14316_v10 = vld [vmem:[%s16596_s13 + $0x1918] sm:$0xf] }
 0x4a6   : > { %v8881_v26 = vpop.f32.mrf.mxu0  ;;  %v8894_v15 = vpop.f32.mrf.mxu1  ;;  %9334 = vmatpush.bf16.msrb.mxu3 %v11517_v59  ;;  %9321 = vmatpush.bf16.msrb.mxu2 %v11513_v60  ;;  %v12461_v59 = vor.u32 %v15048_v62, %v12460_v58  ;;  %v12465_v60 = vor.u32 %v14933_v48, %v12462_v49  ;;  %v13397_v62 = vor.u32 %v15165_v42, %v13394_v45  ;;  %v14934_v49 = vld [vmem:[%s16596_s13 + $0xaac] sm:$0xf] }
 0x4a7   : > { %v8882_v37 = vadd.f32 %v8881_v26, %v1646_v6  ;;  %v8895_v35 = vadd.f32 %v8894_v15, %v1647_v7  ;;  %9347 = vmatpush.bf16.msrb.mxu0 %v11521_v14  ;;  %9360 = vmatpush.bf16.msrb.mxu1 %v11525_v16  ;;  %v10328_v28 = vsel %vm10196_vm4, %v15983_v32, %v10152_v25  ;;  %v14701_v6 = vld [vmem:[%s16596_s13 + $0x364] sm:$0xf]  ;;  %v11530_v7 = vld [vmem:[%s16596_s13 + $0x6fc] sm:$0xf0]  ;;  %v14702_v14 = vld [vmem:[%s16596_s13 + $0x36c] sm:$0xf] }
 0x4a8   : > { %14566 = vmatmul.msk.bf16.vlgmr.msra.gmra.mxu2 %vm6554_vm2, %v16674_v55  ;;  %14567 = vmatmul.msk.bf16.vlgmr.msra.gmra.mxu3 %vm6554_vm2, %v16674_v55  ;;  %v10330_v46 = vsel %vm10200_vm5, %v10328_v28, %v10329_v41  ;;  %v11538_v16 = vld [vmem:[%s16596_s13 + $0x704] sm:$0xf0]  ;;  %v11533_v18 = vor.u32 %v14701_v6, %v11530_v7  ;;  %v11537_v26 = vor.u32 %v14817_v13, %v11536_v12  ;;  %v15397_v32 = vld [vmem:[%s16596_s13 + $0x1924] sm:$0xf]  ;;  %v12476_v7 = vld [vmem:[%s16596_s13 + $0xab0] sm:$0xf] }
 0x4a9   : > { %14568 = vmatmul.msk.bf16.vlgmr.msra.gmra.mxu0 %vm6554_vm2, %v16674_v55  ;;  %14569 = vmatmul.msk.bf16.vlgmr.msra.gmra.mxu1 %vm6554_vm2, %v16674_v55  ;;  %10473 = vst [vmem:[%s17074_s16 + $0x158] sm:$0xff] %v10330_v46  ;;  %15984 = vtanh.f32 %v8882_v37  ;;  %v11541_v15 = vor.u32 %v14702_v14, %v11538_v16  ;;  %v14326_v37 = vld [vmem:[%s16596_s13 + $0x1cbc] sm:$0xf0]  ;;  %v14321_v41 = vor.u32 %v15396_v22, %v14318_v9  ;;  %v15049_v6 = vld [vmem:[%s16596_s13 + $0xe40] sm:$0xf0] }
 0x4aa   : > { %9383 = vmatpush.bf16.msra.mxu3 %v14305_v27  ;;  %9370 = vmatpush.bf16.msra.mxu2 %v14301_v30  ;;  %15986 = vtanh.f32 %v8895_v35  ;;  %v15511_v27 = vld [vmem:[%s16596_s13 + $0x1cb0] sm:$0xf0]  ;;  %v14324_v30 = vld [vmem:[%s16596_s13 + $0x1920] sm:$0xf]  ;;  %v13393_v48 = vor.u32 %v15280_v51, %v13392_v50  ;;  %v11544_v22 = vld [vmem:[%s16596_s13 + $0x370] sm:$0xf] }
 0x4ab   : > { %v8855_v39 = vpop.f32.mrf.mxu2  ;;  %v8868_v52 = vpop.f32.mrf.mxu3  ;;  %9396 = vmatpush.bf16.msra.mxu0 %v14309_v31  ;;  %9409 = vmatpush.bf16.msra.mxu1 %v14313_v24  ;;  %v15512_v31 = vld [vmem:[%s16596_s13 + $0x1cb8] sm:$0xf0]  ;;  %v1649_v24 = vperm.slane %v19165_v53, 5  ;;  %v14317_v28 = vor.u32 %v15511_v27, %v14316_v10  ;;  %v14818_v9 = vld [vmem:[%s16596_s13 + $0x708] sm:$0xf0] }
 0x4ac   : > { %v8869_v61 = vadd.f32 %v8868_v52, %v1645_v23  ;;  %v8856_v63 = vadd.f32 %v8855_v39, %v1644_v33  ;;  %v14325_v29 = vor.u32 %v15512_v31, %v14324_v30  ;;  %v13400_v39 = vld [vmem:[%s16596_s13 + $0x11e8] sm:$0xf]  ;;  %v19264_v14 = vld [vmem:[%s16983_s22 + $0xb8] sm:$0xff] }
 0x4ad   : > { %v11552_v10 = vld [vmem:[%s16596_s13 + $0x378] sm:$0xf]  ;;  %v1654_v30 = vperm.slane %v19264_v14, 2  ;;  %v1655_v31 = vperm.slane %v19264_v14, 3 }
 0x4ae   : > { %v8883_v1 = vpop.f32.mrf.mxu0  ;;  %v8896_v2 = vpop.f32.mrf.mxu1  ;;  %9384 = vmatpush.bf16.msra.mxu3 %v13381_v34  ;;  %9371 = vmatpush.bf16.msra.mxu2 %v13377_v47  ;;  %15988 = vtanh.f32 %v8869_v61  ;;  %v14329_v47 = vor.u32 %v15397_v32, %v14326_v37  ;;  %v1648_v61 = vperm.slane %v19165_v53, 4  ;;  %v15398_v32 = vld [vmem:[%s16596_s13 + $0x192c] sm:$0xf]  ;;  %v14334_v37 = vld [vmem:[%s16596_s13 + $0x1cc4] sm:$0xf0] }
 0x4af   : > { %9397 = vmatpush.bf16.msra.mxu0 %v13385_v56  ;;  %9410 = vmatpush.bf16.msra.mxu1 %v13389_v57  ;;  %v15985_v0 = vpop.eup %15984  ;;  %15990 = vtanh.f32 %v8856_v63  ;;  %v15281_v57 = vld [vmem:[%s16596_s13 + $0x1580] sm:$0xf0]  ;;  %v12470_v63 = vld [vmem:[%s16596_s13 + $0xe44] sm:$0xf0] }
 0x4b0   : > { %v15987_v17 = vpop.eup %15986  ;;  %v10156_v19 = vrot.slane %v15985_v0, 4  ;;  %v13401_v53 = vor.u32 %v15281_v57, %v13400_v39  ;;  %v12473_v16 = vor.u32 %v14934_v49, %v12470_v63  ;;  %v13408_v49 = vld [vmem:[%s16596_s13 + $0x11f0] sm:$0xf]  ;;  %v15282_v63 = vld [vmem:[%s16596_s13 + $0x1588] sm:$0xf0] }
 0x4b1   : > { %v10157_v20 = vrot.slane %v15987_v17, 2 }
 0x4b2   : > { %9385 = vmatpush.bf16.msra.mxu3 %v12457_v54  ;;  %9372 = vmatpush.bf16.msra.mxu2 %v12453_v3  ;;  %v13405_v54 = vor.u32 %v15166_v43, %v13402_v44  ;;  %v12468_v3 = vld [vmem:[%s16596_s13 + $0xaa8] sm:$0xf]  ;;  %v15167_v43 = vld [vmem:[%s16596_s13 + $0x11f4] sm:$0xf]  ;;  %v13410_v44 = vld [vmem:[%s16596_s13 + $0x158c] sm:$0xf0] }
 0x4b3   : > { %v8857_v23 = vpop.f32.mrf.mxu2  ;;  %v8870_v25 = vpop.f32.mrf.mxu3  ;;  %9398 = vmatpush.bf16.msra.mxu0 %v12461_v59  ;;  %9411 = vmatpush.bf16.msra.mxu1 %v12465_v60  ;;  %v10332_v52 = vsel %vm10198_vm3, %v10156_v19, %v10157_v20  ;;  %v15050_v60 = vld [vmem:[%s16596_s13 + $0xe48] sm:$0xf0]  ;;  %v12469_v17 = vor.u32 %v15049_v6, %v12468_v3  ;;  %v11545_v20 = vor.u32 %v14818_v9, %v11544_v22  ;;  %v15168_v3 = vld [vmem:[%s16596_s13 + $0x11fc] sm:$0xf]  ;;  %v13418_v6 = vld [vmem:[%s16596_s13 + $0x1594] sm:$0xf0] }
 0x4b4   : > { %v15989_v35 = vpop.eup %15988  ;;  %v14819_v25 = vld [vmem:[%s16596_s13 + $0x710] sm:$0xf0]  ;;  %v15052_v22 = vld [vmem:[%s16596_s13 + $0xe58] sm:$0xf0]  ;;  %v14937_v9 = vld [vmem:[%s16596_s13 + $0xac4] sm:$0xf] }
 0x4b5   : > { %v10155_v36 = vrot.slane %v15989_v35, 6  ;;  %v15991_v46 = vpop.eup %15990  ;;  %v14332_v35 = vld [vmem:[%s16596_s13 + $0x1928] sm:$0xf] }
 0x4b6   : > { %v8933_v38 = vpop.f32.mrf.mxu0  ;;  %v8946_v40 = vpop.f32.mrf.mxu1  ;;  %9386 = vmatpush.bf16.msra.mxu3 %v11533_v18  ;;  %9373 = vmatpush.bf16.msra.mxu2 %v11529_v21  ;;  %v12477_v18 = vor.u32 %v15050_v60, %v12476_v7  ;;  %v12481_v21 = vor.u32 %v14935_v8, %v12478_v11  ;;  %v13413_v60 = vor.u32 %v15167_v43, %v13410_v44  ;;  %v14936_v11 = vld [vmem:[%s16596_s13 + $0xabc] sm:$0xf]  ;;  %v14356_v43 = vld [vmem:[%s16596_s13 + $0x1940] sm:$0xf] }
 0x4b7   : > { %v8934_v33 = vadd.f32 %v8933_v38, %v1650_v4  ;;  %v8947_v34 = vadd.f32 %v8946_v40, %v1651_v5  ;;  %9399 = vmatpush.bf16.msra.mxu0 %v11537_v26  ;;  %9412 = vmatpush.bf16.msra.mxu1 %v11541_v15  ;;  %v10331_v56 = vsel %vm10196_vm4, %v15991_v46, %v10155_v36  ;;  %v14703_v4 = vld [vmem:[%s16596_s13 + $0x374] sm:$0xf]  ;;  %v11546_v5 = vld [vmem:[%s16596_s13 + $0x70c] sm:$0xf0]  ;;  %v14704_v26 = vld [vmem:[%s16596_s13 + $0x37c] sm:$0xf] }
 0x4b8   : > { %14570 = vmatmul.msk.bf16.vlgmr.msrb.gmra.mxu2 %vm6554_vm2, %v16674_v55  ;;  %14571 = vmatmul.msk.bf16.vlgmr.msrb.gmra.mxu3 %vm6554_vm2, %v16674_v55  ;;  %v10333_v58 = vsel %vm10200_vm5, %v10331_v56, %v10332_v52  ;;  %v11554_v15 = vld [vmem:[%s16596_s13 + $0x714] sm:$0xf0]  ;;  %v11549_v19 = vor.u32 %v14703_v4, %v11546_v5  ;;  %v11553_v38 = vor.u32 %v14819_v25, %v11552_v10  ;;  %v15399_v46 = vld [vmem:[%s16596_s13 + $0x1934] sm:$0xf]  ;;  %v12494_v10 = vld [vmem:[%s16596_s13 + $0xe5c] sm:$0xf0] }
 0x4b9   : > { %14572 = vmatmul.msk.bf16.vlgmr.msrb.gmra.mxu0 %vm6554_vm2, %v16674_v55  ;;  %14573 = vmatmul.msk.bf16.vlgmr.msrb.gmra.mxu1 %vm6554_vm2, %v16674_v55  ;;  %10474 = vst [vmem:[%s17074_s16 + $0x160] sm:$0xff] %v10333_v58  ;;  %15992 = vtanh.f32 %v8934_v33  ;;  %v11557_v40 = vor.u32 %v14704_v26, %v11554_v15  ;;  %v14342_v33 = vld [vmem:[%s16596_s13 + $0x1ccc] sm:$0xf0]  ;;  %v14337_v52 = vor.u32 %v15398_v32, %v14334_v37  ;;  %v12484_v4 = vld [vmem:[%s16596_s13 + $0xab8] sm:$0xf] }
 0x4ba   : > { %9435 = vmatpush.bf16.msrb.mxu3 %v14321_v41  ;;  %9422 = vmatpush.bf16.msrb.mxu2 %v14317_v28  ;;  %15994 = vtanh.f32 %v8947_v34  ;;  %v15513_v41 = vld [vmem:[%s16596_s13 + $0x1cc0] sm:$0xf0]  ;;  %v14340_v28 = vld [vmem:[%s16596_s13 + $0x1930] sm:$0xf]  ;;  %v13409_v8 = vor.u32 %v15282_v63, %v13408_v49  ;;  %v15051_v5 = vld [vmem:[%s16596_s13 + $0xe50] sm:$0xf0] }
 0x4bb   : > { %v8907_v1 = vpop.f32.mrf.mxu2  ;;  %v8920_v2 = vpop.f32.mrf.mxu3  ;;  %9448 = vmatpush.bf16.msrb.mxu0 %v14325_v29  ;;  %9461 = vmatpush.bf16.msrb.mxu1 %v14329_v47  ;;  %v15514_v29 = vld [vmem:[%s16596_s13 + $0x1cc8] sm:$0xf0]  ;;  %v1653_v47 = vperm.slane %v19264_v14, 1  ;;  %v14333_v56 = vor.u32 %v15513_v41, %v14332_v35  ;;  %v11560_v32 = vld [vmem:[%s16596_s13 + $0x380] sm:$0xf] }
 0x4bc   : > { %v8921_v59 = vadd.f32 %v8920_v2, %v1649_v24  ;;  %v8908_v12 = vadd.f32 %v8907_v1, %v1648_v61  ;;  %v14341_v57 = vor.u32 %v15514_v29, %v14340_v28  ;;  %v13416_v1 = vld [vmem:[%s16596_s13 + $0x11f8] sm:$0xf]  ;;  %v14820_v37 = vld [vmem:[%s16596_s13 + $0x718] sm:$0xf0]  ;;  %v11568_v35 = vld [vmem:[%s16596_s13 + $0x388] sm:$0xf] }
 0x4bd   : > { %v1658_v28 = vperm.slane %v19264_v14, 6  ;;  %v1659_v29 = vperm.slane %v19264_v14, 7  ;;  %v15516_v44 = vld [vmem:[%s16596_s13 + $0x1cd8] sm:$0xf0] }
 0x4be   : > { %v8935_v0 = vpop.f32.mrf.mxu0  ;;  %v8948_v13 = vpop.f32.mrf.mxu1  ;;  %9436 = vmatpush.bf16.msrb.mxu3 %v13397_v62  ;;  %9423 = vmatpush.bf16.msrb.mxu2 %v13393_v48  ;;  %15996 = vtanh.f32 %v8921_v59  ;;  %v14345_v48 = vor.u32 %v15399_v46, %v14342_v33  ;;  %v1652_v59 = vperm.slane %v19264_v14, 0  ;;  %v15400_v46 = vld [vmem:[%s16596_s13 + $0x193c] sm:$0xf] }
 0x4bf   : > { %9449 = vmatpush.bf16.msrb.mxu0 %v13401_v53  ;;  %9462 = vmatpush.bf16.msrb.mxu1 %v13405_v54  ;;  %v15993_v23 = vpop.eup %15992  ;;  %15998 = vtanh.f32 %v8908_v12  ;;  %v15283_v54 = vld [vmem:[%s16596_s13 + $0x1590] sm:$0xf0]  ;;  %v12486_v12 = vld [vmem:[%s16596_s13 + $0xe54] sm:$0xf0] }
 0x4c0   : > { %v15995_v27 = vpop.eup %15994  ;;  %v10159_v42 = vrot.slane %v15993_v23, 4  ;;  %v12489_v15 = vor.u32 %v14936_v11, %v12486_v12  ;;  %v1657_v11 = vperm.slane %v19264_v14, 5  ;;  %v13432_v12 = vld [vmem:[%s16596_s13 + $0x1208] sm:$0xf] }
 0x4c1   : > { %v10160_v45 = vrot.slane %v15995_v27, 2  ;;  %v12485_v27 = vor.u32 %v15051_v5, %v12484_v4  ;;  %v14938_v5 = vld [vmem:[%s16596_s13 + $0xacc] sm:$0xf] }
 0x4c2   : > { %9437 = vmatpush.bf16.msrb.mxu3 %v12473_v16  ;;  %9424 = vmatpush.bf16.msrb.mxu2 %v12469_v17  ;;  %v13417_v16 = vor.u32 %v15283_v54, %v13416_v1  ;;  %v13421_v17 = vor.u32 %v15168_v3, %v13418_v6  ;;  %v15169_v1 = vld [vmem:[%s16596_s13 + $0x1204] sm:$0xf]  ;;  %v14357_v3 = vor.u32 %v15516_v44, %v14356_v43  ;;  %v13426_v6 = vld [vmem:[%s16596_s13 + $0x159c] sm:$0xf0] }
 0x4c3   : > { %v8909_v24 = vpop.f32.mrf.mxu2  ;;  %v8922_v36 = vpop.f32.mrf.mxu3  ;;  %9450 = vmatpush.bf16.msrb.mxu0 %v12477_v18  ;;  %9463 = vmatpush.bf16.msrb.mxu1 %v12481_v21  ;;  %v10335_v2 = vsel %vm10198_vm3, %v10159_v42, %v10160_v45  ;;  %v12492_v18 = vld [vmem:[%s16596_s13 + $0xac0] sm:$0xf]  ;;  %v11561_v45 = vor.u32 %v14820_v37, %v11560_v32  ;;  %v11578_v37 = vld [vmem:[%s16596_s13 + $0x72c] sm:$0xf0] }
 0x4c4   : > { %v15997_v34 = vpop.eup %15996  ;;  %v14821_v36 = vld [vmem:[%s16596_s13 + $0x720] sm:$0xf0] }
 0x4c5   : > { %v10158_v50 = vrot.slane %v15997_v34, 6  ;;  %v15999_v58 = vpop.eup %15998 }
 0x4c6   : > { %v8985_v51 = vpop.f32.mrf.mxu0  ;;  %v8998_v39 = vpop.f32.mrf.mxu1  ;;  %9438 = vmatpush.bf16.msrb.mxu3 %v11549_v19  ;;  %9425 = vmatpush.bf16.msrb.mxu2 %v11545_v20  ;;  %v12493_v19 = vor.u32 %v15052_v22, %v12492_v18  ;;  %v12497_v20 = vor.u32 %v14937_v9, %v12494_v10  ;;  %v12502_v9 = vld [vmem:[%s16596_s13 + $0xe64] sm:$0xf0] }
 0x4c7   : > { %v8986_v61 = vadd.f32 %v8985_v51, %v1654_v30  ;;  %v8999_v62 = vadd.f32 %v8998_v39, %v1655_v31  ;;  %9451 = vmatpush.bf16.msrb.mxu0 %v11553_v38  ;;  %9464 = vmatpush.bf16.msrb.mxu1 %v11557_v40  ;;  %v10334_v53 = vsel %vm10196_vm4, %v15999_v58, %v10158_v50  ;;  %v14705_v30 = vld [vmem:[%s16596_s13 + $0x384] sm:$0xf]  ;;  %v11562_v31 = vld [vmem:[%s16596_s13 + $0x71c] sm:$0xf0]  ;;  %v14706_v38 = vld [vmem:[%s16596_s13 + $0x38c] sm:$0xf] }
 0x4c8   : > { %14574 = vmatmul.msk.bf16.vlgmr.msra.gmra.mxu2 %vm6554_vm2, %v16674_v55  ;;  %14575 = vmatmul.msk.bf16.vlgmr.msra.gmra.mxu3 %vm6554_vm2, %v16674_v55  ;;  %v10336_v7 = vsel %vm10200_vm5, %v10334_v53, %v10335_v2  ;;  %v11570_v40 = vld [vmem:[%s16596_s13 + $0x724] sm:$0xf0]  ;;  %v11565_v42 = vor.u32 %v14705_v30, %v11562_v31  ;;  %v14350_v51 = vld [vmem:[%s16596_s13 + $0x1cd4] sm:$0xf0]  ;;  %v12505_v31 = vor.u32 %v14938_v5, %v12502_v9 }
 0x4c9   : > { %14576 = vmatmul.msk.bf16.vlgmr.msra.gmra.mxu0 %vm6554_vm2, %v16674_v55  ;;  %14577 = vmatmul.msk.bf16.vlgmr.msra.gmra.mxu1 %vm6554_vm2, %v16674_v55  ;;  %10475 = vst [vmem:[%s17074_s16 + $0x168] sm:$0xff] %v10336_v7  ;;  %16000 = vtanh.f32 %v8986_v61  ;;  %v11573_v50 = vor.u32 %v14706_v38, %v11570_v40  ;;  %v14348_v39 = vld [vmem:[%s16596_s13 + $0x1938] sm:$0xf]  ;;  %v14353_v49 = vor.u32 %v15400_v46, %v14350_v51  ;;  %v13424_v7 = vld [vmem:[%s16596_s13 + $0x1200] sm:$0xf] }
 0x4ca   : > { %9487 = vmatpush.bf16.msra.mxu3 %v14337_v52  ;;  %9474 = vmatpush.bf16.msra.mxu2 %v14333_v56  ;;  %16002 = vtanh.f32 %v8999_v62  ;;  %v15515_v52 = vld [vmem:[%s16596_s13 + $0x1cd0] sm:$0xf0]  ;;  %v12500_v10 = vld [vmem:[%s16596_s13 + $0xac8] sm:$0xf]  ;;  %v11584_v40 = vld [vmem:[%s16596_s13 + $0x398] sm:$0xf] }
 0x4cb   : > { %v8959_v0 = vpop.f32.mrf.mxu2  ;;  %v8972_v13 = vpop.f32.mrf.mxu3  ;;  %9500 = vmatpush.bf16.msra.mxu0 %v14341_v57  ;;  %9513 = vmatpush.bf16.msra.mxu1 %v14345_v48  ;;  %v14349_v63 = vor.u32 %v15515_v52, %v14348_v39  ;;  %v19361_v38 = vld [vmem:[%s16983_s22 + $0xc0] sm:$0xff] }
 0x4cc   : > { %v8973_v21 = vadd.f32 %v8972_v13, %v1653_v47  ;;  %v8960_v23 = vadd.f32 %v8959_v0, %v1652_v59  ;;  %v11569_v47 = vor.u32 %v14821_v36, %v11568_v35  ;;  %v15284_v59 = vld [vmem:[%s16596_s13 + $0x1598] sm:$0xf0]  ;;  %v15285_v0 = vld [vmem:[%s16596_s13 + $0x15a0] sm:$0xf0]  ;;  %v11576_v35 = vld [vmem:[%s16596_s13 + $0x390] sm:$0xf] }
 0x4cd   : > { %v13425_v4 = vor.u32 %v15284_v59, %v13424_v7  ;;  %v13433_v22 = vor.u32 %v15285_v0, %v13432_v12  ;;  %v1667_v12 = vperm.slane %v19361_v38, 7 }
 0x4ce   : > { %v8987_v25 = vpop.f32.mrf.mxu0  ;;  %v9000_v26 = vpop.f32.mrf.mxu1  ;;  %9488 = vmatpush.bf16.msra.mxu3 %v13413_v60  ;;  %9475 = vmatpush.bf16.msra.mxu2 %v13409_v8  ;;  %16004 = vtanh.f32 %v8973_v21 }
 0x4cf   : > { %9501 = vmatpush.bf16.msra.mxu0 %v13417_v16  ;;  %9514 = vmatpush.bf16.msra.mxu1 %v13421_v17  ;;  %v16001_v24 = vpop.eup %16000  ;;  %16006 = vtanh.f32 %v8960_v23  ;;  %v1656_v16 = vperm.slane %v19264_v14, 4  ;;  %v13429_v17 = vor.u32 %v15169_v1, %v13426_v6  ;;  %v15053_v23 = vld [vmem:[%s16596_s13 + $0xe60] sm:$0xf0]  ;;  %v12508_v25 = vld [vmem:[%s16596_s13 + $0xad0] sm:$0xf] }
 0x4d0   : > { %v16003_v41 = vpop.eup %16002  ;;  %v10162_v56 = vrot.slane %v16001_v24, 4  ;;  %v15054_v26 = vld [vmem:[%s16596_s13 + $0xe68] sm:$0xf0] }
 0x4d1   : > { %v10163_v57 = vrot.slane %v16003_v41, 2  ;;  %v12509_v32 = vor.u32 %v15054_v26, %v12508_v25  ;;  %v14822_v24 = vld [vmem:[%s16596_s13 + $0x728] sm:$0xf0]  ;;  %v14823_v41 = vld [vmem:[%s16596_s13 + $0x730] sm:$0xf0]  ;;  %v1664_v25 = vperm.slane %v19361_v38, 4 }
 0x4d2   : > { %9489 = vmatpush.bf16.msra.mxu3 %v12489_v15  ;;  %9476 = vmatpush.bf16.msra.mxu2 %v12485_v27 }
 0x4d3   : > { %v8961_v33 = vpop.f32.mrf.mxu2  ;;  %v8974_v34 = vpop.f32.mrf.mxu3  ;;  %9502 = vmatpush.bf16.msra.mxu0 %v12493_v19  ;;  %9515 = vmatpush.bf16.msra.mxu1 %v12497_v20  ;;  %v10338_v60 = vsel %vm10198_vm3, %v10162_v56, %v10163_v57  ;;  %v12501_v19 = vor.u32 %v15053_v23, %v12500_v10  ;;  %v14707_v20 = vld [vmem:[%s16596_s13 + $0x394] sm:$0xf]  ;;  %v1665_v23 = vperm.slane %v19361_v38, 5 }
 0x4d4   : > { %v16005_v58 = vpop.eup %16004  ;;  %v1662_v33 = vperm.slane %v19361_v38, 2  ;;  %v1663_v34 = vperm.slane %v19361_v38, 3 }
 0x4d5   : > { %v10161_v61 = vrot.slane %v16005_v58, 6  ;;  %v16007_v2 = vpop.eup %16006 }
 0x4d6   : > { %v9037_v62 = vpop.f32.mrf.mxu0  ;;  %v9050_v48 = vpop.f32.mrf.mxu1  ;;  %9490 = vmatpush.bf16.msra.mxu3 %v11565_v42  ;;  %9477 = vmatpush.bf16.msra.mxu2 %v11561_v45  ;;  %v11577_v42 = vor.u32 %v14822_v24, %v11576_v35 }
 0x4d7   : > { %v9038_v53 = vadd.f32 %v9037_v62, %v1658_v28  ;;  %v9051_v54 = vadd.f32 %v9050_v48, %v1659_v29  ;;  %9503 = vmatpush.bf16.msra.mxu0 %v11569_v47  ;;  %9516 = vmatpush.bf16.msra.mxu1 %v11573_v50  ;;  %v10337_v8 = vsel %vm10196_vm4, %v16007_v2, %v10161_v61  ;;  %v1661_v48 = vperm.slane %v19361_v38, 1 }
 0x4d8   : > { %14578 = vmatmul.msk.bf16.vlgmr.msrb.gmra.mxu2 %vm6554_vm2, %v16674_v55  ;;  %14579 = vmatmul.msk.bf16.vlgmr.msrb.gmra.mxu3 %vm6554_vm2, %v16674_v55  ;;  %v10339_v13 = vsel %vm10200_vm5, %v10337_v8, %v10338_v60  ;;  %v11581_v29 = vor.u32 %v14707_v20, %v11578_v37  ;;  %v11585_v47 = vor.u32 %v14823_v41, %v11584_v40 }
 0x4d9   : > { %14580 = vmatmul.msk.bf16.vlgmr.msrb.gmra.mxu0 %vm6554_vm2, %v16674_v55  ;;  %14581 = vmatmul.msk.bf16.vlgmr.msrb.gmra.mxu1 %vm6554_vm2, %v16674_v55  ;;  %10476 = vst [vmem:[%s17074_s16 + $0x170] sm:$0xff] %v10339_v13  ;;  %16008 = vtanh.f32 %v9038_v53 }
 0x4da   : > { %9539 = vmatpush.bf16.msrb.mxu3 %v14353_v49  ;;  %9526 = vmatpush.bf16.msrb.mxu2 %v14349_v63  ;;  %16010 = vtanh.f32 %v9051_v54  ;;  %v1660_v63 = vperm.slane %v19361_v38, 0 }
 0x4db   : > { %v9011_v18 = vpop.f32.mrf.mxu2  ;;  %v9024_v21 = vpop.f32.mrf.mxu3  ;;  %9552 = vmatpush.bf16.msrb.mxu0 %v14357_v3 }
 0x4dc   : > { %v9025_v14 = vadd.f32 %v9024_v21, %v1657_v11  ;;  %v9012_v15 = vadd.f32 %v9011_v18, %v1656_v16  ;;  %v1666_v11 = vperm.slane %v19361_v38, 6 }
 0x4de   : > { %v9039_v27 = vpop.f32.mrf.mxu0  ;;  %v9052_v30 = vpop.f32.mrf.mxu1  ;;  %9540 = vmatpush.bf16.msrb.mxu3 %v13429_v17  ;;  %9527 = vmatpush.bf16.msrb.mxu2 %v13425_v4  ;;  %16012 = vtanh.f32 %v9025_v14 }
 0x4df   : > { %9553 = vmatpush.bf16.msrb.mxu0 %v13433_v22  ;;  %v16009_v36 = vpop.eup %16008  ;;  %16014 = vtanh.f32 %v9012_v15 }
 0x4e0   : > { %v16011_v28 = vpop.eup %16010  ;;  %v10165_v50 = vrot.slane %v16009_v36, 4 }
 0x4e1   : > { %v10166_v51 = vrot.slane %v16011_v28, 2 }
 0x4e2   : > { %9541 = vmatpush.bf16.msrb.mxu3 %v12505_v31  ;;  %9528 = vmatpush.bf16.msrb.mxu2 %v12501_v19 }
 0x4e3   : > { %v9013_v45 = vpop.f32.mrf.mxu2  ;;  %v9026_v46 = vpop.f32.mrf.mxu3  ;;  %9554 = vmatpush.bf16.msrb.mxu0 %v12509_v32  ;;  %v10341_v61 = vsel %vm10198_vm3, %v10165_v50, %v10166_v51  ;;  %v1434_v32 = vld [vmem:[%s16983_s22 + $0xc8] sm:$0xff] }
 0x4e4   : > { %v16013_v39 = vpop.eup %16012  ;;  %v1670_v36 = vperm.slane %v1434_v32, 2  ;;  %v1669_v50 = vperm.slane %v1434_v32, 1 }
 0x4e5   : > { %v10164_v52 = vrot.slane %v16013_v39, 6  ;;  %v16015_v43 = vpop.eup %16014  ;;  %v1668_v39 = vperm.slane %v1434_v32, 0 }
 0x4e6   : > { %v9089_v56 = vpop.f32.mrf.mxu0  ;;  %v9102_v57 = vpop.f32.mrf.mxu1  ;;  %9542 = vmatpush.bf16.msrb.mxu3 %v11581_v29  ;;  %9529 = vmatpush.bf16.msrb.mxu2 %v11577_v42 }
 0x4e7   : > { %v9090_v44 = vadd.f32 %v9089_v56, %v1662_v33  ;;  %v9103_v58 = vadd.f32 %v9102_v57, %v1663_v34  ;;  %9555 = vmatpush.bf16.msrb.mxu0 %v11585_v47  ;;  %v10340_v62 = vsel %vm10196_vm4, %v16015_v43, %v10164_v52 }
 0x4e8   : > { %14582 = vmatmul.msk.bf16.vlgmr.msra.gmra.mxu2 %vm6554_vm2, %v16674_v55  ;;  %14583 = vmatmul.msk.bf16.vlgmr.msra.gmra.mxu3 %vm6554_vm2, %v16674_v55  ;;  %v10342_v49 = vsel %vm10200_vm5, %v10340_v62, %v10341_v61 }
 0x4e9   : > { %14584 = vmatmul.msk.bf16.vlgmr.msra.gmra.mxu0 %vm6554_vm2, %v16674_v55  ;;  %14585 = vmatmul.msk.bf16.vlgmr.msra.gmra.mxu1 %vm6554_vm2, %v16674_v55  ;;  %10477 = vst [vmem:[%s17074_s16 + $0x178] sm:$0xff] %v10342_v49  ;;  %16016 = vtanh.f32 %v9090_v44 }
 0x4ea   : > { %16018 = vtanh.f32 %v9103_v58 }
 0x4eb   : > { %v9063_v1 = vpop.f32.mrf.mxu2  ;;  %v9076_v2 = vpop.f32.mrf.mxu3 }
 0x4ec   : > { %v9077_v53 = vadd.f32 %v9076_v2, %v1661_v48  ;;  %v9064_v54 = vadd.f32 %v9063_v1, %v1660_v63  ;;  %v1674_v63 = vperm.slane %v1434_v32, 6  ;;  %v1675_v1 = vperm.slane %v1434_v32, 7 }
 0x4ee   : > { %v9091_v3 = vpop.f32.mrf.mxu0  ;;  %v9104_v6 = vpop.f32.mrf.mxu1  ;;  %16020 = vtanh.f32 %v9077_v53 }
 0x4ef   : > { %v16017_v7 = vpop.eup %16016  ;;  %16022 = vtanh.f32 %v9064_v54 }
 0x4f0   : > { %v16019_v59 = vpop.eup %16018  ;;  %v10168_v0 = vrot.slane %v16017_v7, 4 }
 0x4f1   : > { %v10169_v13 = vrot.slane %v16019_v59, 2 }
 0x4f3   : > { %v9065_v60 = vpop.f32.mrf.mxu2  ;;  %v9078_v8 = vpop.f32.mrf.mxu3  ;;  %v10344_v9 = vsel %vm10198_vm3, %v10168_v0, %v10169_v13  ;;  %v1673_v0 = vperm.slane %v1434_v32, 5 }
 0x4f4   : > { %v16021_v16 = vpop.eup %16020 }
 0x4f5   : > { %v10167_v17 = vrot.slane %v16021_v16, 6  ;;  %v16023_v18 = vpop.eup %16022  ;;  %v1672_v16 = vperm.slane %v1434_v32, 4 }
 0x4f6   : > { %v9141_v4 = vpop.f32.mrf.mxu0  ;;  %v9154_v5 = vpop.f32.mrf.mxu1 }
 0x4f7   : > { %v9142_v21 = vadd.f32 %v9141_v4, %v1666_v11  ;;  %v9155_v22 = vadd.f32 %v9154_v5, %v1667_v12  ;;  %v10343_v10 = vsel %vm10196_vm4, %v16023_v18, %v10167_v17 }
 0x4f8   : > { %14586 = vmatmul.msk.bf16.vlgmr.msrb.gmra.mxu2 %vm6554_vm2, %v16674_v55  ;;  %14587 = vmatmul.msk.bf16.vlgmr.msrb.gmra.mxu3 %vm6554_vm2, %v16674_v55  ;;  %v10345_v14 = vsel %vm10200_vm5, %v10343_v10, %v10344_v9  ;;  %v1435_v10 = vld [vmem:[%s16983_s22 + $0xd0] sm:$0xff] }
 0x4f9   : > { %14588 = vmatmul.msk.bf16.vlgmr.msrb.gmra.mxu0 %vm6554_vm2, %v16674_v55  ;;  %10478 = vst [vmem:[%s17074_s16 + $0x180] sm:$0xff] %v10345_v14  ;;  %16024 = vtanh.f32 %v9142_v21  ;;  %v1671_v55 = vperm.slane %v1434_v32, 3 }
 0x4fa   : > { %16026 = vtanh.f32 %v9155_v22 }
 0x4fb   : > { %v9115_v26 = vpop.f32.mrf.mxu2  ;;  %v9128_v15 = vpop.f32.mrf.mxu3 }
 0x4fc   : > { %v9129_v27 = vadd.f32 %v9128_v15, %v1665_v23  ;;  %v9116_v30 = vadd.f32 %v9115_v26, %v1664_v25  ;;  %v1678_v26 = vperm.slane %v1435_v10, 2  ;;  %v1679_v15 = vperm.slane %v1435_v10, 3 }
 0x4fe   : > { %v9143_v31 = vpop.f32.mrf.mxu0  ;;  %v9156_v19 = vpop.f32.mrf.mxu1  ;;  %16028 = vtanh.f32 %v9129_v27 }
 0x4ff   : > { %v16025_v20 = vpop.eup %16024  ;;  %16030 = vtanh.f32 %v9116_v30 }
 0x500   : > { %v16027_v37 = vpop.eup %16026  ;;  %v10171_v38 = vrot.slane %v16025_v20, 4 }
 0x501   : > { %v10172_v40 = vrot.slane %v16027_v37, 2 }
 0x503   : > { %v9117_v35 = vpop.f32.mrf.mxu2  ;;  %v9130_v24 = vpop.f32.mrf.mxu3  ;;  %v10347_v34 = vsel %vm10198_vm3, %v10171_v38, %v10172_v40  ;;  %v1677_v38 = vperm.slane %v1435_v10, 1 }
 0x504   : > { %v16029_v41 = vpop.eup %16028 }
 0x505   : > { %v10170_v28 = vrot.slane %v16029_v41, 6  ;;  %v16031_v45 = vpop.eup %16030  ;;  %v1676_v41 = vperm.slane %v1435_v10, 0 }
 0x506   : > { %v9193_v29 = vpop.f32.mrf.mxu0  ;;  %v9206_v42 = vpop.f32.mrf.mxu1 }
 0x507   : > { %v9194_v46 = vadd.f32 %v9193_v29, %v1670_v36  ;;  %v9207_v33 = vadd.f32 %v9206_v42, %v1671_v55  ;;  %v10346_v47 = vsel %vm10196_vm4, %v16031_v45, %v10170_v28 }
 0x508   : > { %v10348_v51 = vsel %vm10200_vm5, %v10346_v47, %v10347_v34 }
 0x509   : > { %10479 = vst [vmem:[%s17074_s16 + $0x188] sm:$0xff] %v10348_v51  ;;  %16032 = vtanh.f32 %v9194_v46 }
 0x50a   : > { %16034 = vtanh.f32 %v9207_v33 }
 0x50b   : > { %v9167_v52 = vpop.f32.mrf.mxu2  ;;  %v9180_v56 = vpop.f32.mrf.mxu3 }
 0x50c   : > { %v9181_v57 = vadd.f32 %v9180_v56, %v1669_v50  ;;  %v9168_v43 = vadd.f32 %v9167_v52, %v1668_v39  ;;  %v1682_v39 = vperm.slane %v1435_v10, 6  ;;  %v1683_v52 = vperm.slane %v1435_v10, 7 }
 0x50e   : > { %v9195_v44 = vpop.f32.mrf.mxu0  ;;  %v9208_v58 = vpop.f32.mrf.mxu1  ;;  %16036 = vtanh.f32 %v9181_v57 }
 0x50f   : > { %v16033_v61 = vpop.eup %16032  ;;  %16038 = vtanh.f32 %v9168_v43 }
 0x510   : > { %v16035_v62 = vpop.eup %16034  ;;  %v10174_v2 = vrot.slane %v16033_v61, 4 }
 0x511   : > { %v10175_v53 = vrot.slane %v16035_v62, 2 }
 0x513   : > { %v9169_v48 = vpop.f32.mrf.mxu2  ;;  %v9182_v49 = vpop.f32.mrf.mxu3  ;;  %v10350_v11 = vsel %vm10198_vm3, %v10174_v2, %v10175_v53  ;;  %v1681_v2 = vperm.slane %v1435_v10, 5 }
 0x514   : > { %v16037_v54 = vpop.eup %16036 }
 0x515   : > { %v10173_v3 = vrot.slane %v16037_v54, 6  ;;  %v16039_v59 = vpop.eup %16038  ;;  %v1680_v54 = vperm.slane %v1435_v10, 4 }
 0x516   : > { %v9245_v6 = vpop.f32.mrf.mxu0  ;;  %v9258_v7 = vpop.f32.mrf.mxu1 }
 0x517   : > { %v9246_v60 = vadd.f32 %v9245_v6, %v1674_v63  ;;  %v9259_v8 = vadd.f32 %v9258_v7, %v1675_v1  ;;  %v10349_v12 = vsel %vm10196_vm4, %v16039_v59, %v10173_v3 }
 0x518   : > { %v10351_v13 = vsel %vm10200_vm5, %v10349_v12, %v10350_v11  ;;  %v1436_v12 = vld [vmem:[%s16983_s22 + $0xd8] sm:$0xff] }
 0x519   : > { %10480 = vst [vmem:[%s17074_s16 + $0x190] sm:$0xff] %v10351_v13  ;;  %16040 = vtanh.f32 %v9246_v60 }
 0x51a   : > { %16042 = vtanh.f32 %v9259_v8 }
 0x51b   : > { %v9219_v17 = vpop.f32.mrf.mxu2  ;;  %v9232_v4 = vpop.f32.mrf.mxu3 }
 0x51c   : > { %v9233_v5 = vadd.f32 %v9232_v4, %v1673_v0  ;;  %v9220_v18 = vadd.f32 %v9219_v17, %v1672_v16  ;;  %v1686_v17 = vperm.slane %v1436_v12, 2  ;;  %v1687_v4 = vperm.slane %v1436_v12, 3 }
 0x51e   : > { %v9247_v21 = vpop.f32.mrf.mxu0  ;;  %v9260_v22 = vpop.f32.mrf.mxu1  ;;  %16044 = vtanh.f32 %v9233_v5 }
 0x51f   : > { %v16041_v9 = vpop.eup %16040  ;;  %16046 = vtanh.f32 %v9220_v18 }
 0x520   : > { %v16043_v23 = vpop.eup %16042  ;;  %v10177_v27 = vrot.slane %v16041_v9, 4 }
 0x521   : > { %v10178_v30 = vrot.slane %v16043_v23, 2 }
 0x523   : > { %v9221_v14 = vpop.f32.mrf.mxu2  ;;  %v9234_v25 = vpop.f32.mrf.mxu3  ;;  %v10353_v36 = vsel %vm10198_vm3, %v10177_v27, %v10178_v30  ;;  %v1685_v27 = vperm.slane %v1436_v12, 1 }
 0x524   : > { %v16045_v31 = vpop.eup %16044 }
 0x525   : > { %v10176_v19 = vrot.slane %v16045_v31, 6  ;;  %v16047_v37 = vpop.eup %16046  ;;  %v1684_v31 = vperm.slane %v1436_v12, 0 }
 0x526   : > { %v9297_v20 = vpop.f32.mrf.mxu0  ;;  %v9310_v32 = vpop.f32.mrf.mxu1 }
 0x527   : > { %v9298_v35 = vadd.f32 %v9297_v20, %v1678_v26  ;;  %v9311_v24 = vadd.f32 %v9310_v32, %v1679_v15  ;;  %v10352_v55 = vsel %vm10196_vm4, %v16047_v37, %v10176_v19 }
 0x528   : > { %v10354_v40 = vsel %vm10200_vm5, %v10352_v55, %v10353_v36 }
 0x529   : > { %10481 = vst [vmem:[%s17074_s16 + $0x198] sm:$0xff] %v10354_v40  ;;  %16048 = vtanh.f32 %v9298_v35 }
 0x52a   : > { %16050 = vtanh.f32 %v9311_v24 }
 0x52b   : > { %v9271_v28 = vpop.f32.mrf.mxu2  ;;  %v9284_v29 = vpop.f32.mrf.mxu3 }
 0x52c   : > { %v9285_v42 = vadd.f32 %v9284_v29, %v1677_v38  ;;  %v9272_v45 = vadd.f32 %v9271_v28, %v1676_v41  ;;  %v1690_v41 = vperm.slane %v1436_v12, 6  ;;  %v1691_v28 = vperm.slane %v1436_v12, 7 }
 0x52e   : > { %v9299_v46 = vpop.f32.mrf.mxu0  ;;  %v9312_v33 = vpop.f32.mrf.mxu1  ;;  %16052 = vtanh.f32 %v9285_v42 }
 0x52f   : > { %v16049_v34 = vpop.eup %16048  ;;  %16054 = vtanh.f32 %v9272_v45 }
 0x530   : > { %v16051_v47 = vpop.eup %16050  ;;  %v10180_v56 = vrot.slane %v16049_v34, 4 }
 0x531   : > { %v10181_v57 = vrot.slane %v16051_v47, 2 }
 0x533   : > { %v9273_v50 = vpop.f32.mrf.mxu2  ;;  %v9286_v51 = vpop.f32.mrf.mxu3  ;;  %v10356_v63 = vsel %vm10198_vm3, %v10180_v56, %v10181_v57  ;;  %v1689_v56 = vperm.slane %v1436_v12, 5 }
 0x534   : > { %v16053_v43 = vpop.eup %16052 }
 0x535   : > { %v10179_v44 = vrot.slane %v16053_v43, 6  ;;  %v16055_v62 = vpop.eup %16054  ;;  %v1688_v43 = vperm.slane %v1436_v12, 4 }
 0x536   : > { %v9349_v58 = vpop.f32.mrf.mxu0  ;;  %v9362_v61 = vpop.f32.mrf.mxu1 }
 0x537   : > { %v9350_v48 = vadd.f32 %v9349_v58, %v1682_v39  ;;  %v9363_v49 = vadd.f32 %v9362_v61, %v1683_v52  ;;  %v10355_v1 = vsel %vm10196_vm4, %v16055_v62, %v10179_v44 }
 0x538   : > { %v10357_v53 = vsel %vm10200_vm5, %v10355_v1, %v10356_v63  ;;  %v1437_v1 = vld [vmem:[%s16983_s22 + $0xe0] sm:$0xff] }
 0x539   : > { %10482 = vst [vmem:[%s17074_s16 + $0x1a0] sm:$0xff] %v10357_v53  ;;  %16056 = vtanh.f32 %v9350_v48 }
 0x53a   : > { %16058 = vtanh.f32 %v9363_v49 }
 0x53b   : > { %v9323_v3 = vpop.f32.mrf.mxu2  ;;  %v9336_v6 = vpop.f32.mrf.mxu3 }
 0x53c   : > { %v9337_v7 = vadd.f32 %v9336_v6, %v1681_v2  ;;  %v9324_v59 = vadd.f32 %v9323_v3, %v1680_v54  ;;  %v1694_v3 = vperm.slane %v1437_v1, 2  ;;  %v1695_v6 = vperm.slane %v1437_v1, 3 }
 0x53e   : > { %v9351_v60 = vpop.f32.mrf.mxu0  ;;  %v9364_v8 = vpop.f32.mrf.mxu1  ;;  %16060 = vtanh.f32 %v9337_v7 }
 0x53f   : > { %v16057_v11 = vpop.eup %16056  ;;  %16062 = vtanh.f32 %v9324_v59 }
 0x540   : > { %v16059_v0 = vpop.eup %16058  ;;  %v10183_v5 = vrot.slane %v16057_v11, 4 }
 0x541   : > { %v10184_v18 = vrot.slane %v16059_v0, 2 }
 0x543   : > { %v9325_v13 = vpop.f32.mrf.mxu2  ;;  %v9338_v16 = vpop.f32.mrf.mxu3  ;;  %v10359_v26 = vsel %vm10198_vm3, %v10183_v5, %v10184_v18  ;;  %v1693_v5 = vperm.slane %v1437_v1, 1 }
 0x544   : > { %v16061_v21 = vpop.eup %16060 }
 0x545   : > { %v10182_v22 = vrot.slane %v16061_v21, 6  ;;  %v16063_v23 = vpop.eup %16062  ;;  %v1692_v21 = vperm.slane %v1437_v1, 0 }
 0x546   : > { %v9401_v9 = vpop.f32.mrf.mxu0  ;;  %v9414_v10 = vpop.f32.mrf.mxu1 }
 0x547   : > { %v9402_v14 = vadd.f32 %v9401_v9, %v1686_v17  ;;  %v9415_v25 = vadd.f32 %v9414_v10, %v1687_v4  ;;  %v10358_v15 = vsel %vm10196_vm4, %v16063_v23, %v10182_v22 }
 0x548   : > { %v10360_v30 = vsel %vm10200_vm5, %v10358_v15, %v10359_v26 }
 0x549   : > { %10483 = vst [vmem:[%s17074_s16 + $0x1a8] sm:$0xff] %v10360_v30  ;;  %16064 = vtanh.f32 %v9402_v14 }
 0x54a   : > { %16066 = vtanh.f32 %v9415_v25 }
 0x54b   : > { %v9375_v19 = vpop.f32.mrf.mxu2  ;;  %v9388_v20 = vpop.f32.mrf.mxu3 }
 0x54c   : > { %v9389_v32 = vadd.f32 %v9388_v20, %v1685_v27  ;;  %v9376_v37 = vadd.f32 %v9375_v19, %v1684_v31 }
 0x54e   : > { %v9403_v35 = vpop.f32.mrf.mxu0  ;;  %v9416_v24 = vpop.f32.mrf.mxu1  ;;  %16068 = vtanh.f32 %v9389_v32 }
 0x54f   : > { %v16065_v36 = vpop.eup %16064  ;;  %16070 = vtanh.f32 %v9376_v37  ;;  %v1698_v37 = vperm.slane %v1437_v1, 6 }
 0x550   : > { %v16067_v55 = vpop.eup %16066  ;;  %v10186_v29 = vrot.slane %v16065_v36, 4 }
 0x551   : > { %v10187_v42 = vrot.slane %v16067_v55, 2 }
 0x553   : > { %v9377_v38 = vpop.f32.mrf.mxu2  ;;  %v9390_v40 = vpop.f32.mrf.mxu3  ;;  %v10362_v39 = vsel %vm10198_vm3, %v10186_v29, %v10187_v42 }
 0x554   : > { %v16069_v45 = vpop.eup %16068  ;;  %v1697_v38 = vperm.slane %v1437_v1, 5 }
 0x555   : > { %v10185_v46 = vrot.slane %v16069_v45, 6  ;;  %v16071_v47 = vpop.eup %16070 }
 0x556   : > { %v9453_v33 = vpop.f32.mrf.mxu0  ;;  %v9466_v34 = vpop.f32.mrf.mxu1 }
 0x557   : > { %v9454_v50 = vadd.f32 %v9453_v33, %v1690_v41  ;;  %v9467_v51 = vadd.f32 %v9466_v34, %v1691_v28  ;;  %v10361_v52 = vsel %vm10196_vm4, %v16071_v47, %v10185_v46  ;;  %v1696_v41 = vperm.slane %v1437_v1, 4 }
 0x558   : > { %v10363_v57 = vsel %vm10200_vm5, %v10361_v52, %v10362_v39 }
 0x559   : > { %10484 = vst [vmem:[%s17074_s16 + $0x1b0] sm:$0xff] %v10363_v57  ;;  %16072 = vtanh.f32 %v9454_v50 }
 0x55a   : > { %16074 = vtanh.f32 %v9467_v51 }
 0x55b   : > { %v9427_v44 = vpop.f32.mrf.mxu2  ;;  %v9440_v58 = vpop.f32.mrf.mxu3 }
 0x55c   : > { %v9441_v61 = vadd.f32 %v9440_v58, %v1689_v56  ;;  %v9428_v62 = vadd.f32 %v9427_v44, %v1688_v43 }
 0x55e   : > { %v9455_v48 = vpop.f32.mrf.mxu0  ;;  %v9468_v49 = vpop.f32.mrf.mxu1  ;;  %16076 = vtanh.f32 %v9441_v61 }
 0x55f   : > { %v16073_v63 = vpop.eup %16072  ;;  %16078 = vtanh.f32 %v9428_v62 }
 0x560   : > { %v16075_v2 = vpop.eup %16074  ;;  %v10189_v7 = vrot.slane %v16073_v63, 4 }
 0x561   : > { %v10190_v59 = vrot.slane %v16075_v2, 2 }
 0x563   : > { %v9429_v53 = vpop.f32.mrf.mxu2  ;;  %v9442_v54 = vpop.f32.mrf.mxu3  ;;  %v10365_v17 = vsel %vm10198_vm3, %v10189_v7, %v10190_v59 }
 0x564   : > { %v16077_v60 = vpop.eup %16076 }
 0x565   : > { %v10188_v8 = vrot.slane %v16077_v60, 6  ;;  %v16079_v0 = vpop.eup %16078 }
 0x566   : > { %v9505_v11 = vpop.f32.mrf.mxu0  ;;  %v9518_v12 = vpop.f32.mrf.mxu1 }
 0x567   : > { %v9506_v13 = vadd.f32 %v9505_v11, %v1694_v3  ;;  %v9519_v16 = vadd.f32 %v9518_v12, %v1695_v6  ;;  %v10364_v4 = vsel %vm10196_vm4, %v16079_v0, %v10188_v8 }
 0x568   : > { %v10366_v18 = vsel %vm10200_vm5, %v10364_v4, %v10365_v17 }
 0x569   : > { %10485 = vst [vmem:[%s17074_s16 + $0x1b8] sm:$0xff] %v10366_v18  ;;  %16080 = vtanh.f32 %v9506_v13 }
 0x56a   : > { %16082 = vtanh.f32 %v9519_v16 }
 0x56b   : > { %v9479_v22 = vpop.f32.mrf.mxu2  ;;  %v9492_v9 = vpop.f32.mrf.mxu3 }
 0x56c   : > { %v9493_v10 = vadd.f32 %v9492_v9, %v1693_v5  ;;  %v9480_v23 = vadd.f32 %v9479_v22, %v1692_v21 }
 0x56e   : > { %v9507_v14 = vpop.f32.mrf.mxu0  ;;  %v9520_v25 = vpop.f32.mrf.mxu1  ;;  %16084 = vtanh.f32 %v9493_v10 }
 0x56f   : > { %v16081_v26 = vpop.eup %16080  ;;  %16086 = vtanh.f32 %v9480_v23 }
 0x570   : > { %v16083_v15 = vpop.eup %16082  ;;  %v10192_v31 = vrot.slane %v16081_v26, 4 }
 0x571   : > { %v10193_v19 = vrot.slane %v16083_v15, 2 }
 0x573   : > { %v9481_v27 = vpop.f32.mrf.mxu2  ;;  %v9494_v30 = vpop.f32.mrf.mxu3  ;;  %v10368_v36 = vsel %vm10198_vm3, %v10192_v31, %v10193_v19 }
 0x574   : > { %v16085_v20 = vpop.eup %16084 }
 0x575   : > { %v10191_v32 = vrot.slane %v16085_v20, 6  ;;  %v16087_v24 = vpop.eup %16086 }
 0x576   : > { %v9557_v35 = vpop.f32.mrf.mxu0 }
 0x577   : > { %v10367_v55 = vsel %vm10196_vm4, %v16087_v24, %v10191_v32  ;;  %v9558_v28 = vadd.f32 %v9557_v35, %v1698_v37 }
 0x578   : > { %v10369_v40 = vsel %vm10200_vm5, %v10367_v55, %v10368_v36 }
 0x579   : > { %10486 = vst [vmem:[%s17074_s16 + $0x1c0] sm:$0xff] %v10369_v40  ;;  %16088 = vtanh.f32 %v9558_v28 }
 0x57b   : > { %v9531_v29 = vpop.f32.mrf.mxu2  ;;  %v9544_v42 = vpop.f32.mrf.mxu3 }
 0x57c   : > { %v9545_v45 = vadd.f32 %v9544_v42, %v1697_v38  ;;  %v9532_v46 = vadd.f32 %v9531_v29, %v1696_v41 }
 0x57e   : > { %v9559_v33 = vpop.f32.mrf.mxu0  ;;  %16090 = vtanh.f32 %v9545_v45 }
 0x57f   : > { %16092 = vtanh.f32 %v9532_v46  ;;  %v16089_v50 = vpop.eup %16088 }
 0x580   : > { %v10195_v56 = vrot.slane %v16089_v50, 4 }
 0x583   : > { %v9533_v34 = vpop.f32.mrf.mxu2  ;;  %v9546_v47 = vpop.f32.mrf.mxu3 }
 0x584   : > { %v16091_v51 = vpop.eup %16090 }
 0x585   : > { %v10194_v39 = vrot.slane %v16091_v51, 6  ;;  %v16093_v52 = vpop.eup %16092 }
 0x587   : > { %v10370_v57 = vsel %vm10196_vm4, %v16093_v52, %v10194_v39 }
 0x588   : > { %v10371_v43 = vsel %vm10200_vm5, %v10370_v57, %v10195_v56 }
 0x589   : > { %10487 = vst [vmem:[%s17074_s16 + $0x1c8] sm:$0x3f] %v10371_v43 }
 0x58a   : > { %16331 = shalt.err (!%p16328_p12)
}
 0x58b   : > { %15547 = dma.vmem_to_hbm [thread:$0]  (%p16508_p3), %s10503_s20, 7392, %s10505_s8, %s10489_s28  }
 0x58c PF: > { %s10516_s3 = sand.u32 1, %s16370_s24   ;;  %p19504_p7 = scmp.ge.s32.totalorder %s16382_s27, 2 }
 0x58d   : > { %s10517_s13 = scalar_lea.sflag [#allocation4], %s10516_s3 }
 0x58e   : > { %p15573_p1 = pnand %p19504_p7, %p16469_p6 }
 0x590   : > { %p15574_p11 = pneg %p15573_p1 }
 0x592   : > { %16365 = dma.done.wait (%p15574_p11), %s10517_s13, 7392  }
 0x593   : > { %16367 = vsyncadd (%p15574_p11), %s10517_s13, 4294959904  ;;  %s19505_s27 = sld [smem:[#allocation21_spill]]  ;;  %s19507_s24 = smov %s16374_s25 }
 0x594   : > { %s19506_s30 = sld [smem:[#allocation22_spill]]  ;;  %s19508_s25 = smov %s16378_s26 }
 0x599   : > { %p23_p2 = scmp.ge.s32.totalorder %s19505_s27, 4  }
 0x59a   : > { %s19509_s26 = smov %s19506_s30 }
 0x59b   :  { %25 = sbr.rel (!%p23_p2) target bundleno = 12 (0xc), region = 125 }
 0x5a0   :  { %10523 = vsyncpa [#allocation3], 1 }
 0x5a1   :  { %10525 = vsyncpa [#allocation3 + $0x1], 1 }
 0x5a2   :  { %10526 = vsyncpa [#allocation6], 1 }
 0x5a3   :  { %10527 = vsyncpa [#allocation9], 1 }
 0x5a4   :  { %10528 = vsyncpa [#allocation12], 1 }
 0x5a5   :  { %10530 = vsyncpa [#allocation12 + $0x1], 1 }
 0x5a6   :  { %10531 = vsyncpa [#allocation4], 1 }
 0x5a7   :  { %10533 = vsyncpa [#allocation4 + $0x1], 1 }

</bundles_post_ra>
